<compile_context>
chip_gen: v6e
topology: v6e:2x2x1
jax: 0.10.0
libtpu: 0.0.40
codegen_flags: <defaults>
</compile_context>

<pallas_src>
import functools

import jax
import jax.numpy as jnp
from jax.experimental import pallas as pl
from jax.experimental.pallas import tpu as pltpu

EPS = 1e-5


# ---------------------------------------------------------------------------
# Parameters (BatchNorm running stats folded into conv weight / bias)
# ---------------------------------------------------------------------------
class KeyGen:
    def __init__(self, key):
        self.key = key

    def __call__(self):
        self.key, sub = jax.random.split(self.key)
        return sub


def _bn_fold(kg, c):
    gamma = jax.random.uniform(kg(), (c,), jnp.float32, 0.8, 1.2)
    beta = 0.05 * jax.random.normal(kg(), (c,), jnp.float32)
    mean = 0.05 * jax.random.normal(kg(), (c,), jnp.float32)
    var = jax.random.uniform(kg(), (c,), jnp.float32, 0.5, 1.5)
    scale = gamma / jnp.sqrt(var + EPS)
    shift = beta - mean * scale
    return scale, shift


def _conv1x1_bn(kg, cin, cout):
    # PyTorch weight [cout, cin, 1, 1] stored as a [cin, cout] matmul matrix;
    # BN folded in: w' = w*scale, b' = b*scale + shift.
    w = 0.1 * jax.random.normal(kg(), (cin, cout), jnp.float32)
    b = 0.05 * jax.random.normal(kg(), (cout,), jnp.float32)
    scale, shift = _bn_fold(kg, cout)
    return {"w": (w * scale[None, :]).astype(jnp.bfloat16),   # MXU operand (bf16)
            "b": (b * scale + shift).reshape(1, cout)}         # f32 epilogue


def _dwconv3x3_bn(kg, c):
    # PyTorch depthwise weight [c, 1, 3, 3] stored as [9, c] (row = kh*3 + kw).
    w = 0.1 * jax.random.normal(kg(), (9, c), jnp.float32)
    b = 0.05 * jax.random.normal(kg(), (c,), jnp.float32)
    scale, shift = _bn_fold(kg, c)
    return {"w": w * scale[None, :],                           # VPU operand (f32)
            "b": (b * scale + shift).reshape(1, c)}


def init_params(key, dilations, num_repeats, in_channels, feat_channels):
    kg = KeyGen(key)
    params = {"img_pool": _conv1x1_bn(kg, in_channels, feat_channels),
              "branches": []}
    for d, r in zip(dilations, num_repeats):
        if d > 1:
            reps = []
            for i in range(r):
                cin = in_channels if i == 0 else feat_channels
                reps.append({"dilation": d,
                             "dw": _dwconv3x3_bn(kg, cin),
                             "pw": _conv1x1_bn(kg, cin, feat_channels)})
            params["branches"].append({"type": "sep", "reps": reps})
        else:
            params["branches"].append(
                {"type": "conv1x1",
                 "p": _conv1x1_bn(kg, in_channels, feat_channels)})
    return params


def _row_tile(m, cap=512):
    # Largest tile <= cap that evenly divides m while keeping >= 2 grid steps
    # (exact divisibility keeps the demo simple; production would use cdiv).
    for t in (512, 256, 128, 64, 32, 16, 8):
        if t <= cap and t < m and m % t == 0:
            return t
    return m


# ---------------------------------------------------------------------------
# 1) img_pool head: tiled global-average-pool + 1x1 conv (BN folded) + ReLU
# ---------------------------------------------------------------------------
def _gap_conv_kernel(inv_hw, x_ref, w_ref, b_ref, o_ref, sum_ref):
    j = pl.program_id(0)

    @pl.when(j == 0)
    def _():
        sum_ref[...] = jnp.zeros_like(sum_ref)

    sum_ref[...] += jnp.sum(x_ref[...].astype(jnp.float32), axis=1)

    @pl.when(j == pl.num_programs(0) - 1)
    def _():
        pooled = (sum_ref[...] * inv_hw).astype(jnp.bfloat16)      # [N, Cin]
        y = jnp.dot(pooled, w_ref[...], preferred_element_type=jnp.float32)
        o_ref[...] = jnp.maximum(y + b_ref[...], 0.0)


def gap_conv_relu(x3d, p):
    # x3d [N, HW, Cin] (bf16) -> [N, Cout] (f32)
    N, HW, Cin = x3d.shape
    Cout = p["w"].shape[1]
    thw = _row_tile(HW)
    return pl.pallas_call(
        functools.partial(_gap_conv_kernel, 1.0 / float(HW)),
        out_shape=jax.ShapeDtypeStruct((N, Cout), jnp.float32),
        grid=(HW // thw,),
        in_specs=[pl.BlockSpec((N, thw, Cin), lambda j: (0, j, 0)),
                  pl.BlockSpec((Cin, Cout), lambda j: (0, 0)),     # resident
                  pl.BlockSpec((1, Cout), lambda j: (0, 0))],      # resident
        out_specs=pl.BlockSpec((N, Cout), lambda j: (0, 0)),
        scratch_shapes=[pltpu.VMEM((N, Cin), jnp.float32)],
        compiler_params=pltpu.CompilerParams(
            dimension_semantics=("arbitrary",)),                   # reduction
    )(x3d, p["w"], p["b"])


# ---------------------------------------------------------------------------
# 2) Broadcast the pooled result into channel block 0 of the output slab.
#    (bilinear upsample of a 1x1 map, align_corners=False == constant bcast)
#    This call also CREATES the slab; later writers alias into it (P8).
# ---------------------------------------------------------------------------
def _pool_bcast_kernel(pooled_ref, o_ref):
    o_ref[...] = jnp.broadcast_to(pooled_ref[0], o_ref.shape).astype(o_ref.dtype)


def write_img_pool(pooled, hw, c_total):
    N, Cout = pooled.shape
    return pl.pallas_call(
        _pool_bcast_kernel,
        out_shape=jax.ShapeDtypeStruct((N * hw, c_total), jnp.float32),
        grid=(N,),
        in_specs=[pl.BlockSpec((1, 1, Cout), lambda n: (n, 0, 0))],
        out_specs=pl.BlockSpec((hw, Cout), lambda n: (n, 0)),
        compiler_params=pltpu.CompilerParams(
            dimension_semantics=("parallel",)),
    )(pooled.reshape(N, 1, Cout))


# ---------------------------------------------------------------------------
# 3) d == 1 branch: row-tiled 1x1 conv (BN folded) + ReLU, writing directly
#    into its channel slice of the aliased output slab.
# ---------------------------------------------------------------------------
def _pw_slab_kernel(x_ref, w_ref, b_ref, _slab_hbm, o_ref):
    y = jnp.dot(x_ref[...], w_ref[...], preferred_element_type=jnp.float32)
    o_ref[...] = jnp.maximum(y + b_ref[...], 0.0).astype(o_ref.dtype)


def pointwise_into_slab(x2d, p, slab, c_block):
    M, Cin = x2d.shape
    Cout = p["w"].shape[1]
    tm = _row_tile(M)
    return pl.pallas_call(
        _pw_slab_kernel,
        out_shape=jax.ShapeDtypeStruct(slab.shape, slab.dtype),
        grid=(M // tm,),
        in_specs=[pl.BlockSpec((tm, Cin), lambda i: (i, 0)),
                  pl.BlockSpec((Cin, Cout), lambda i: (0, 0)),     # resident
                  pl.BlockSpec((1, Cout), lambda i: (0, 0)),       # resident
                  pl.BlockSpec(memory_space=pl.ANY)],              # aliased slab
        out_specs=pl.BlockSpec((tm, Cout), lambda i: (i, c_block)),
        input_output_aliases={3: 0},
        compiler_params=pltpu.CompilerParams(
            dimension_semantics=("parallel",)),
    )(x2d, p["w"], p["b"], slab)


# ---------------------------------------------------------------------------
# 4) Fused separable repeat: depthwise 3x3 (dilation d, padding d) + BN + ReLU
#    then pointwise 1x1 + BN + ReLU -- one kernel, no intermediate HBM traffic.
#    The final repeat of a branch writes straight into the slab.
# ---------------------------------------------------------------------------
def _sep_fused_kernel(d, dpad, H, W, into_slab, *refs):
    if into_slab:
        (x_ref, wdw_ref, bdw_ref, wpw_ref, bpw_ref,
         _slab_hbm, o_ref, xp_ref) = refs
    else:
        x_ref, wdw_ref, bdw_ref, wpw_ref, bpw_ref, o_ref, xp_ref = refs

    C = x_ref.shape[-1]

    # Zero-padded input tile built in VMEM (Conv2d padding == dilation).
    # x is stored at (row=d, col=dpad) with dpad a multiple of 8 so the big
    # store stays sublane-aligned; the 9 shifted tap reads do the rest.
    xp_ref[...] = jnp.zeros_like(xp_ref)
    xp_ref[d:d + H, dpad:dpad + W, :] = x_ref[0].astype(jnp.float32)

    acc = jnp.zeros((H, W, C), jnp.float32)
    for kh in range(3):
        for kw in range(3):
            r0 = kh * d
            c0 = dpad + (kw - 1) * d
            tap = xp_ref[r0:r0 + H, c0:c0 + W, :]
            acc = acc + tap * wdw_ref[kh * 3 + kw:kh * 3 + kw + 1, :]
    dw = jnp.maximum(acc + bdw_ref[...], 0.0)             # depthwise + BN + ReLU

    y = jnp.dot(dw.reshape(H * W, C).astype(jnp.bfloat16), wpw_ref[...],
                preferred_element_type=jnp.float32)
    y = jnp.maximum(y + bpw_ref[...], 0.0)                # pointwise + BN + ReLU

    if into_slab:
        o_ref[...] = y.astype(o_ref.dtype)                # rows of output slab
    else:
        o_ref[0] = y.reshape(H, W, -1).astype(o_ref.dtype)


def sep_repeat(x_nhwc, rep, slab=None, c_block=None):
    N, H, W, Cin = x_nhwc.shape
    d = int(rep["dilation"])
    dpad = ((d + 7) // 8) * 8
    Cout = rep["pw"]["w"].shape[1]
    into_slab = slab is not None
    kernel = functools.partial(_sep_fused_kernel, d, dpad, H, W, into_slab)

    in_specs = [pl.BlockSpec((1, H, W, Cin), lambda n: (n, 0, 0, 0)),
                pl.BlockSpec((9, Cin), lambda n: (0, 0)),
                pl.BlockSpec((1, Cin), lambda n: (0, 0)),
                pl.BlockSpec((Cin, Cout), lambda n: (0, 0)),
                pl.BlockSpec((1, Cout), lambda n: (0, 0))]
    args = [x_nhwc, rep["dw"]["w"], rep["dw"]["b"],
            rep["pw"]["w"], rep["pw"]["b"]]
    if into_slab:
        in_specs.append(pl.BlockSpec(memory_space=pl.ANY))         # aliased slab
        args.append(slab)
        out_shape = jax.ShapeDtypeStruct(slab.shape, slab.dtype)
        out_specs = pl.BlockSpec((H * W, Cout), lambda n: (n, c_block))
        io_alias = {5: 0}
    else:
        out_shape = jax.ShapeDtypeStruct((N, H, W, Cout), jnp.bfloat16)
        out_specs = pl.BlockSpec((1, H, W, Cout), lambda n: (n, 0, 0, 0))
        io_alias = {}

    return pl.pallas_call(
        kernel,
        out_shape=out_shape,
        grid=(N,),
        in_specs=in_specs,
        out_specs=out_specs,
        scratch_shapes=[pltpu.VMEM((H + 2 * d, W + dpad + d, Cin),
                                   jnp.float32)],
        input_output_aliases=io_alias,
        compiler_params=pltpu.CompilerParams(
            dimension_semantics=("parallel",)),
    )(*args)


# ---------------------------------------------------------------------------
# ASPP forward (wrapper)
# ---------------------------------------------------------------------------
def aspp_forward(x_nchw, params):
    """ASPPModule.forward: NCHW in, NCHW out (channel concat of all branches)."""
    N, Cin, H, W = x_nchw.shape
    HW = H * W
    M = N * HW
    Cfeat = params["img_pool"]["w"].shape[1]
    C_total = (1 + len(params["branches"])) * Cfeat

    # Direct-to-slab channel writes need lane-dense, tile-aligned blocks.
    assert Cfeat % 128 == 0, "feat_channels must be a multiple of 128"
    assert HW % 8 == 0 and W % 8 == 0

    # TODO(synk): the NCHW<->NHWC boundary transposes stay as XLA ops; an
    # NHWC-native caller could drop them entirely.
    x_nhwc = jnp.transpose(x_nchw, (0, 2, 3, 1)).astype(jnp.bfloat16)
    x_flat = x_nhwc.reshape(M, Cin)

    # img_pool branch -> channel block 0 (this call also creates the slab).
    pooled = gap_conv_relu(x_nhwc.reshape(N, HW, Cin), params["img_pool"])
    slab = write_img_pool(pooled, HW, C_total)

    # dilation branches -> channel blocks 1..n (PyTorch concat order).
    for blk, branch in enumerate(params["branches"], start=1):
        if branch["type"] == "conv1x1":
            slab = pointwise_into_slab(x_flat, branch["p"], slab, blk)
        else:
            y = x_nhwc
            reps = branch["reps"]
            for i, rep in enumerate(reps):
                if i == len(reps) - 1:
                    slab = sep_repeat(y, rep, slab=slab, c_block=blk)
                else:
                    y = sep_repeat(y, rep)

    return jnp.transpose(slab.reshape(N, H, W, C_total), (0, 3, 1, 2))


# ---------------------------------------------------------------------------
# Demo
# ---------------------------------------------------------------------------
if __name__ == "__main__":
    key = jax.random.PRNGKey(0)
    k_param, k_x = jax.random.split(key)

    # Small demo config (production ASPP uses Cin 512-2048, feat 256); channel
    # counts are kept at the minimal lane-aligned 128 so every output block is
    # lane-dense and the direct-to-slab channel writes stay (8,128)-tiled.
    N, in_channels, H, W = 2, 128, 16, 16
    feat_channels = 128
    dilations = [1, 2, 3]
    num_repeats = [1, 1, 2]

    params = init_params(k_param, dilations, num_repeats,
                         in_channels, feat_channels)
    x = jax.random.normal(k_x, (N, in_channels, H, W), jnp.float32)

    fwd = jax.jit(lambda inp: aspp_forward(inp, params))
    out = jax.block_until_ready(fwd(x))

    expected_channels = feat_channels * (1 + len(dilations))
    assert out.shape == (N, expected_channels, H, W), out.shape
    assert out.dtype == jnp.float32
    assert bool(jnp.all(jnp.isfinite(out)))
    print("KERNEL_OK")
</pallas_src>

<mosaic_0001>
module attributes {stable_mosaic.version = 11 : i64} {
  func.func @_gap_conv_kernel(%arg0: i32, %arg1: memref<2x128x128xbf16, #tpu.memory_space<vmem>>, %arg2: memref<128x128xbf16, #tpu.memory_space<vmem>>, %arg3: memref<1x128xf32, #tpu.memory_space<vmem>>, %arg4: memref<2x128xf32, #tpu.memory_space<vmem>>, %arg5: memref<2x128xf32, #tpu.memory_space<vmem>>) attributes {dimension_semantics = [#tpu.dimension_semantics<arbitrary>], iteration_bounds = array<i64: 2>, scalar_prefetch = 0 : i64, scratch_operands = 1 : i64, tpu.core_type = #tpu.core_type<tc>, window_params = [{transform_indices = @transform_0, window_bounds = array<i64: 2, 128, 128>}, {pipeline_mode = #tpu.pipeline_mode<synchronous>, transform_indices = @transform_1, window_bounds = array<i64: 128, 128>}, {pipeline_mode = #tpu.pipeline_mode<synchronous>, transform_indices = @transform_2, window_bounds = array<i64: 1, 128>}, {pipeline_mode = #tpu.pipeline_mode<synchronous>, transform_indices = @transform_3, window_bounds = array<i64: 2, 128>}]} {
    %c0_i32 = arith.constant 0 : i32
    %0 = arith.cmpi eq, %arg0, %c0_i32 : i32
    %1 = arith.extui %0 : i1 to i32
    %c0_i32_0 = arith.constant 0 : i32
    %2 = arith.cmpi ne, %1, %c0_i32_0 : i32
    scf.if %2 {
      %cst_8 = arith.constant 0.000000e+00 : f32
      %12 = vector.broadcast %cst_8 : f32 to vector<2x128xf32>
      %c0_9 = arith.constant 0 : index
      %c0_10 = arith.constant 0 : index
      %13 = vector.load %arg5[%c0_9, %c0_10] : memref<2x128xf32, #tpu.memory_space<vmem>>, vector<2x128xf32>
      tpu.vector_store %arg5[%c0_9, %c0_10], %12 {strides = array<i32>} : memref<2x128xf32, #tpu.memory_space<vmem>>, vector<2x128xf32>,
    } else {
    }
    %c0 = arith.constant 0 : index
    %c0_1 = arith.constant 0 : index
    %3 = vector.load %arg5[%c0, %c0_1] : memref<2x128xf32, #tpu.memory_space<vmem>>, vector<2x128xf32>
    %c0_2 = arith.constant 0 : index
    %c0_3 = arith.constant 0 : index
    %c0_4 = arith.constant 0 : index
    %4 = vector.load %arg1[%c0_2, %c0_3, %c0_4] : memref<2x128x128xbf16, #tpu.memory_space<vmem>>, vector<2x128x128xbf16>
    %5 = arith.extf %4 : vector<2x128x128xbf16> to vector<2x128x128xf32>
    %cst = arith.constant dense<0.000000e+00> : vector<2x128xf32>
    %6 = vector.multi_reduction <add>, %5, %cst [1] : vector<2x128x128xf32> to vector<2x128xf32>
    %7 = arith.addf %3, %6 : vector<2x128xf32>
    %c0_5 = arith.constant 0 : index
    %c0_6 = arith.constant 0 : index
    %8 = vector.load %arg5[%c0_5, %c0_6] : memref<2x128xf32, #tpu.memory_space<vmem>>, vector<2x128xf32>
    tpu.vector_store %arg5[%c0_5, %c0_6], %7 {strides = array<i32>} : memref<2x128xf32, #tpu.memory_space<vmem>>, vector<2x128xf32>,
    %c1_i32 = arith.constant 1 : i32
    %9 = arith.cmpi eq, %arg0, %c1_i32 : i32
    %10 = arith.extui %9 : i1 to i32
    %c0_i32_7 = arith.constant 0 : i32
    %11 = arith.cmpi ne, %10, %c0_i32_7 : i32
    scf.if %11 {
      %c0_8 = arith.constant 0 : index
      %c0_9 = arith.constant 0 : index
      %12 = vector.load %arg5[%c0_8, %c0_9] : memref<2x128xf32, #tpu.memory_space<vmem>>, vector<2x128xf32>
      %cst_10 = arith.constant 3.906250e-03 : f32
      %13 = vector.broadcast %cst_10 : f32 to vector<2x128xf32>
      %14 = arith.mulf %12, %13 : vector<2x128xf32>
      %15 = arith.truncf %14 : vector<2x128xf32> to vector<2x128xbf16>
      %c0_11 = arith.constant 0 : index
      %c0_12 = arith.constant 0 : index
      %16 = vector.load %arg2[%c0_11, %c0_12] : memref<128x128xbf16, #tpu.memory_space<vmem>>, vector<128x128xbf16>
      %cst_13 = arith.constant dense<0.000000e+00> : vector<2x128xf32>
      %17 = tpu.matmul %15, %16, %cst_13 {dimension_numbers = #tpu.dot_dimension_numbers<[1], [0], [0], [1], [0, 0, 1, 1], [], []>} : vector<2x128xbf16>, vector<128x128xbf16>, vector<2x128xf32> -> vector<2x128xf32>
      %c0_14 = arith.constant 0 : index
      %c0_15 = arith.constant 0 : index
      %18 = vector.load %arg3[%c0_14, %c0_15] : memref<1x128xf32, #tpu.memory_space<vmem>>, vector<1x128xf32>
      %19 = vector.broadcast %18 : vector<1x128xf32> to vector<2x128xf32>
      %20 = arith.addf %17, %19 : vector<2x128xf32>
      %cst_16 = arith.constant 0.000000e+00 : f32
      %21 = vector.broadcast %cst_16 : f32 to vector<2x128xf32>
      %22 = arith.maximumf %20, %21 : vector<2x128xf32>
      %c0_17 = arith.constant 0 : index
      %c0_18 = arith.constant 0 : index
      %23 = vector.load %arg4[%c0_17, %c0_18] : memref<2x128xf32, #tpu.memory_space<vmem>>, vector<2x128xf32>
      tpu.vector_store %arg4[%c0_17, %c0_18], %22 {strides = array<i32>} : memref<2x128xf32, #tpu.memory_space<vmem>>, vector<2x128xf32>,
    } else {
    }
    return
  }
  func.func @transform_0(%arg0: i32) -> (i32, i32, i32) {
    %c0_i32 = arith.constant 0 : i32
    %c0_i32_0 = arith.constant 0 : i32
    %c0_i32_1 = arith.constant 0 : i32
    return %c0_i32, %arg0, %c0_i32_0 : i32, i32, i32
  }
  func.func @transform_1(%arg0: i32) -> (i32, i32) {
    %c0_i32 = arith.constant 0 : i32
    %c0_i32_0 = arith.constant 0 : i32
    %c0_i32_1 = arith.constant 0 : i32
    return %c0_i32, %c0_i32_0 : i32, i32
  }
  func.func @transform_2(%arg0: i32) -> (i32, i32) {
    %c0_i32 = arith.constant 0 : i32
    %c0_i32_0 = arith.constant 0 : i32
    %c0_i32_1 = arith.constant 0 : i32
    return %c0_i32, %c0_i32_0 : i32, i32
  }
  func.func @transform_3(%arg0: i32) -> (i32, i32) {
    %c0_i32 = arith.constant 0 : i32
    %c0_i32_0 = arith.constant 0 : i32
    %c0_i32_1 = arith.constant 0 : i32
    return %c0_i32, %c0_i32_0 : i32, i32
  }
}

module attributes {stable_mosaic.version = 11 : i64} {
  func.func @_pw_slab_kernel(%arg0: i32, %arg1: memref<256x128xbf16, #tpu.memory_space<vmem>>, %arg2: memref<128x128xbf16, #tpu.memory_space<vmem>>, %arg3: memref<1x128xf32, #tpu.memory_space<vmem>>, %arg4: memref<512x512xf32, #tpu.memory_space<any>>, %arg5: memref<256x128xf32, #tpu.memory_space<vmem>>) attributes {dimension_semantics = [#tpu.dimension_semantics<parallel>], iteration_bounds = array<i64: 2>, scalar_prefetch = 0 : i64, scratch_operands = 0 : i64, tpu.core_type = #tpu.core_type<tc>, window_params = [{transform_indices = @transform_0, window_bounds = array<i64: 256, 128>}, {pipeline_mode = #tpu.pipeline_mode<synchronous>, transform_indices = @transform_1, window_bounds = array<i64: 128, 128>}, {pipeline_mode = #tpu.pipeline_mode<synchronous>, transform_indices = @transform_2, window_bounds = array<i64: 1, 128>}, {}, {transform_indices = @transform_4, window_bounds = array<i64: 256, 128>}]} {
    %c0 = arith.constant 0 : index
    %c0_0 = arith.constant 0 : index
    %0 = vector.load %arg1[%c0, %c0_0] : memref<256x128xbf16, #tpu.memory_space<vmem>>, vector<256x128xbf16>
    %c0_1 = arith.constant 0 : index
    %c0_2 = arith.constant 0 : index
    %1 = vector.load %arg2[%c0_1, %c0_2] : memref<128x128xbf16, #tpu.memory_space<vmem>>, vector<128x128xbf16>
    %cst = arith.constant dense<0.000000e+00> : vector<256x128xf32>
    %2 = tpu.matmul %0, %1, %cst {dimension_numbers = #tpu.dot_dimension_numbers<[1], [0], [0], [1], [0, 0, 1, 1], [], []>} : vector<256x128xbf16>, vector<128x128xbf16>, vector<256x128xf32> -> vector<256x128xf32>
    %c0_3 = arith.constant 0 : index
    %c0_4 = arith.constant 0 : index
    %3 = vector.load %arg3[%c0_3, %c0_4] : memref<1x128xf32, #tpu.memory_space<vmem>>, vector<1x128xf32>
    %4 = vector.broadcast %3 : vector<1x128xf32> to vector<256x128xf32>
    %5 = arith.addf %2, %4 : vector<256x128xf32>
    %cst_5 = arith.constant 0.000000e+00 : f32
    %6 = vector.broadcast %cst_5 : f32 to vector<256x128xf32>
    %7 = arith.maximumf %5, %6 : vector<256x128xf32>
    %c0_6 = arith.constant 0 : index
    %c0_7 = arith.constant 0 : index
    %8 = vector.load %arg5[%c0_6, %c0_7] : memref<256x128xf32, #tpu.memory_space<vmem>>, vector<256x128xf32>
    tpu.vector_store %arg5[%c0_6, %c0_7], %7 {strides = array<i32>} : memref<256x128xf32, #tpu.memory_space<vmem>>, vector<256x128xf32>,
    return
  }
  func.func @transform_0(%arg0: i32) -> (i32, i32) {
    %c0_i32 = arith.constant 0 : i32
    %c0_i32_0 = arith.constant 0 : i32
    return %arg0, %c0_i32 : i32, i32
  }
  func.func @transform_1(%arg0: i32) -> (i32, i32) {
    %c0_i32 = arith.constant 0 : i32
    %c0_i32_0 = arith.constant 0 : i32
    %c0_i32_1 = arith.constant 0 : i32
    return %c0_i32, %c0_i32_0 : i32, i32
  }
  func.func @transform_2(%arg0: i32) -> (i32, i32) {
    %c0_i32 = arith.constant 0 : i32
    %c0_i32_0 = arith.constant 0 : i32
    %c0_i32_1 = arith.constant 0 : i32
    return %c0_i32, %c0_i32_0 : i32, i32
  }
  func.func @transform_4(%arg0: i32) -> (i32, i32) {
    %c1_i32 = arith.constant 1 : i32
    %c0_i32 = arith.constant 0 : i32
    return %arg0, %c1_i32 : i32, i32
  }
}

module attributes {stable_mosaic.version = 11 : i64} {
  func.func @_pool_bcast_kernel(%arg0: i32, %arg1: memref<1x1x128xf32, #tpu.memory_space<vmem>>, %arg2: memref<256x128xf32, #tpu.memory_space<vmem>>) attributes {dimension_semantics = [#tpu.dimension_semantics<parallel>], iteration_bounds = array<i64: 2>, scalar_prefetch = 0 : i64, scratch_operands = 0 : i64, tpu.core_type = #tpu.core_type<tc>, window_params = [{transform_indices = @transform_0, window_bounds = array<i64: 1, 1, 128>}, {transform_indices = @transform_1, window_bounds = array<i64: 256, 128>}]} {
    %c0 = arith.constant 0 : index
    %c0_0 = arith.constant 0 : index
    %c0_1 = arith.constant 0 : index
    %0 = vector.load %arg1[%c0, %c0_0, %c0_1] : memref<1x1x128xf32, #tpu.memory_space<vmem>>, vector<1x1x128xf32>
    %1 = vector.shape_cast %0 : vector<1x1x128xf32> to vector<1x128xf32>
    %2 = vector.shape_cast %1 : vector<1x128xf32> to vector<1x128xf32>
    %3 = vector.broadcast %2 : vector<1x128xf32> to vector<256x128xf32>
    %c0_2 = arith.constant 0 : index
    %c0_3 = arith.constant 0 : index
    %4 = vector.load %arg2[%c0_2, %c0_3] : memref<256x128xf32, #tpu.memory_space<vmem>>, vector<256x128xf32>
    tpu.vector_store %arg2[%c0_2, %c0_3], %3 {strides = array<i32>} : memref<256x128xf32, #tpu.memory_space<vmem>>, vector<256x128xf32>,
    return
  }
  func.func @transform_0(%arg0: i32) -> (i32, i32, i32) {
    %c0_i32 = arith.constant 0 : i32
    %c0_i32_0 = arith.constant 0 : i32
    %c0_i32_1 = arith.constant 0 : i32
    return %arg0, %c0_i32, %c0_i32_0 : i32, i32, i32
  }
  func.func @transform_1(%arg0: i32) -> (i32, i32) {
    %c0_i32 = arith.constant 0 : i32
    %c0_i32_0 = arith.constant 0 : i32
    return %arg0, %c0_i32 : i32, i32
  }
}

module attributes {stable_mosaic.version = 11 : i64} {
  func.func @_sep_fused_kernel(%arg0: i32, %arg1: memref<1x16x16x128xbf16, #tpu.memory_space<vmem>>, %arg2: memref<9x128xf32, #tpu.memory_space<vmem>>, %arg3: memref<1x128xf32, #tpu.memory_space<vmem>>, %arg4: memref<128x128xbf16, #tpu.memory_space<vmem>>, %arg5: memref<1x128xf32, #tpu.memory_space<vmem>>, %arg6: memref<512x512xf32, #tpu.memory_space<any>>, %arg7: memref<256x128xf32, #tpu.memory_space<vmem>>, %arg8: memref<20x26x128xf32, #tpu.memory_space<vmem>>) attributes {dimension_semantics = [#tpu.dimension_semantics<parallel>], iteration_bounds = array<i64: 2>, scalar_prefetch = 0 : i64, scratch_operands = 1 : i64, tpu.core_type = #tpu.core_type<tc>, window_params = [{transform_indices = @transform_0, window_bounds = array<i64: 1, 16, 16, 128>}, {pipeline_mode = #tpu.pipeline_mode<synchronous>, transform_indices = @transform_1, window_bounds = array<i64: 9, 128>}, {pipeline_mode = #tpu.pipeline_mode<synchronous>, transform_indices = @transform_2, window_bounds = array<i64: 1, 128>}, {pipeline_mode = #tpu.pipeline_mode<synchronous>, transform_indices = @transform_3, window_bounds = array<i64: 128, 128>}, {pipeline_mode = #tpu.pipeline_mode<synchronous>, transform_indices = @transform_4, window_bounds = array<i64: 1, 128>}, {}, {transform_indices = @transform_6, window_bounds = array<i64: 256, 128>}]} {
    %cst = arith.constant 0.000000e+00 : f32
    %0 = vector.broadcast %cst : f32 to vector<20x26x128xf32>
    %c0 = arith.constant 0 : index
    %c0_0 = arith.constant 0 : index
    %c0_1 = arith.constant 0 : index
    %1 = vector.load %arg8[%c0, %c0_0, %c0_1] : memref<20x26x128xf32, #tpu.memory_space<vmem>>, vector<20x26x128xf32>
    tpu.vector_store %arg8[%c0, %c0_0, %c0_1], %0 {strides = array<i32>} : memref<20x26x128xf32, #tpu.memory_space<vmem>>, vector<20x26x128xf32>,
    %c0_2 = arith.constant 0 : index
    %c0_3 = arith.constant 0 : index
    %c0_4 = arith.constant 0 : index
    %c0_5 = arith.constant 0 : index
    %2 = vector.load %arg1[%c0_2, %c0_3, %c0_4, %c0_5] : memref<1x16x16x128xbf16, #tpu.memory_space<vmem>>, vector<1x16x16x128xbf16>
    %3 = vector.shape_cast %2 : vector<1x16x16x128xbf16> to vector<16x16x128xbf16>
    %4 = arith.extf %3 : vector<16x16x128xbf16> to vector<16x16x128xf32>
    %c2 = arith.constant 2 : index
    %c8 = arith.constant 8 : index
    %c0_6 = arith.constant 0 : index
    %5 = vector.load %arg8[%c2, %c8, %c0_6] : memref<20x26x128xf32, #tpu.memory_space<vmem>>, vector<16x16x128xf32>
    tpu.vector_store %arg8[%c2, %c8, %c0_6], %4 {strides = array<i32>} : memref<20x26x128xf32, #tpu.memory_space<vmem>>, vector<16x16x128xf32>,
    %cst_7 = arith.constant 0.000000e+00 : f32
    %6 = vector.broadcast %cst_7 : f32 to vector<16x16x128xf32>
    %c0_8 = arith.constant 0 : index
    %c6 = arith.constant 6 : index
    %c0_9 = arith.constant 0 : index
    %7 = vector.load %arg8[%c0_8, %c6, %c0_9] : memref<20x26x128xf32, #tpu.memory_space<vmem>>, vector<16x16x128xf32>
    %c0_10 = arith.constant 0 : index
    %c0_11 = arith.constant 0 : index
    %8 = vector.load %arg2[%c0_10, %c0_11] : memref<9x128xf32, #tpu.memory_space<vmem>>, vector<1x128xf32>
    %9 = vector.shape_cast %8 : vector<1x128xf32> to vector<1x1x128xf32>
    %10 = vector.broadcast %9 : vector<1x1x128xf32> to vector<16x16x128xf32>
    %11 = arith.mulf %7, %10 : vector<16x16x128xf32>
    %12 = arith.addf %6, %11 : vector<16x16x128xf32>
    %c0_12 = arith.constant 0 : index
    %c8_13 = arith.constant 8 : index
    %c0_14 = arith.constant 0 : index
    %13 = vector.load %arg8[%c0_12, %c8_13, %c0_14] : memref<20x26x128xf32, #tpu.memory_space<vmem>>, vector<16x16x128xf32>
    %c1 = arith.constant 1 : index
    %c0_15 = arith.constant 0 : index
    %14 = vector.load %arg2[%c1, %c0_15] : memref<9x128xf32, #tpu.memory_space<vmem>>, vector<1x128xf32>
    %15 = vector.shape_cast %14 : vector<1x128xf32> to vector<1x1x128xf32>
    %16 = vector.broadcast %15 : vector<1x1x128xf32> to vector<16x16x128xf32>
    %17 = arith.mulf %13, %16 : vector<16x16x128xf32>
    %18 = arith.addf %12, %17 : vector<16x16x128xf32>
    %c0_16 = arith.constant 0 : index
    %c10 = arith.constant 10 : index
    %c0_17 = arith.constant 0 : index
    %19 = vector.load %arg8[%c0_16, %c10, %c0_17] : memref<20x26x128xf32, #tpu.memory_space<vmem>>, vector<16x16x128xf32>
    %c2_18 = arith.constant 2 : index
    %c0_19 = arith.constant 0 : index
    %20 = vector.load %arg2[%c2_18, %c0_19] : memref<9x128xf32, #tpu.memory_space<vmem>>, vector<1x128xf32>
    %21 = vector.shape_cast %20 : vector<1x128xf32> to vector<1x1x128xf32>
    %22 = vector.broadcast %21 : vector<1x1x128xf32> to vector<16x16x128xf32>
    %23 = arith.mulf %19, %22 : vector<16x16x128xf32>
    %24 = arith.addf %18, %23 : vector<16x16x128xf32>
    %c2_20 = arith.constant 2 : index
    %c6_21 = arith.constant 6 : index
    %c0_22 = arith.constant 0 : index
    %25 = vector.load %arg8[%c2_20, %c6_21, %c0_22] : memref<20x26x128xf32, #tpu.memory_space<vmem>>, vector<16x16x128xf32>
    %c3 = arith.constant 3 : index
    %c0_23 = arith.constant 0 : index
    %26 = vector.load %arg2[%c3, %c0_23] : memref<9x128xf32, #tpu.memory_space<vmem>>, vector<1x128xf32>
    %27 = vector.shape_cast %26 : vector<1x128xf32> to vector<1x1x128xf32>
    %28 = vector.broadcast %27 : vector<1x1x128xf32> to vector<16x16x128xf32>
    %29 = arith.mulf %25, %28 : vector<16x16x128xf32>
    %30 = arith.addf %24, %29 : vector<16x16x128xf32>
    %c2_24 = arith.constant 2 : index
    %c8_25 = arith.constant 8 : index
    %c0_26 = arith.constant 0 : index
    %31 = vector.load %arg8[%c2_24, %c8_25, %c0_26] : memref<20x26x128xf32, #tpu.memory_space<vmem>>, vector<16x16x128xf32>
    %c4 = arith.constant 4 : index
    %c0_27 = arith.constant 0 : index
    %32 = vector.load %arg2[%c4, %c0_27] : memref<9x128xf32, #tpu.memory_space<vmem>>, vector<1x128xf32>
    %33 = vector.shape_cast %32 : vector<1x128xf32> to vector<1x1x128xf32>
    %34 = vector.broadcast %33 : vector<1x1x128xf32> to vector<16x16x128xf32>
    %35 = arith.mulf %31, %34 : vector<16x16x128xf32>
    %36 = arith.addf %30, %35 : vector<16x16x128xf32>
    %c2_28 = arith.constant 2 : index
    %c10_29 = arith.constant 10 : index
    %c0_30 = arith.constant 0 : index
    %37 = vector.load %arg8[%c2_28, %c10_29, %c0_30] : memref<20x26x128xf32, #tpu.memory_space<vmem>>, vector<16x16x128xf32>
    %c5 = arith.constant 5 : index
    %c0_31 = arith.constant 0 : index
    %38 = vector.load %arg2[%c5, %c0_31] : memref<9x128xf32, #tpu.memory_space<vmem>>, vector<1x128xf32>
    %39 = vector.shape_cast %38 : vector<1x128xf32> to vector<1x1x128xf32>
    %40 = vector.broadcast %39 : vector<1x1x128xf32> to vector<16x16x128xf32>
    %41 = arith.mulf %37, %40 : vector<16x16x128xf32>
    %42 = arith.addf %36, %41 : vector<16x16x128xf32>
    %c4_32 = arith.constant 4 : index
    %c6_33 = arith.constant 6 : index
    %c0_34 = arith.constant 0 : index
    %43 = vector.load %arg8[%c4_32, %c6_33, %c0_34] : memref<20x26x128xf32, #tpu.memory_space<vmem>>, vector<16x16x128xf32>
    %c6_35 = arith.constant 6 : index
    %c0_36 = arith.constant 0 : index
    %44 = vector.load %arg2[%c6_35, %c0_36] : memref<9x128xf32, #tpu.memory_space<vmem>>, vector<1x128xf32>
    %45 = vector.shape_cast %44 : vector<1x128xf32> to vector<1x1x128xf32>
    %46 = vector.broadcast %45 : vector<1x1x128xf32> to vector<16x16x128xf32>
    %47 = arith.mulf %43, %46 : vector<16x16x128xf32>
    %48 = arith.addf %42, %47 : vector<16x16x128xf32>
    %c4_37 = arith.constant 4 : index
    %c8_38 = arith.constant 8 : index
    %c0_39 = arith.constant 0 : index
    %49 = vector.load %arg8[%c4_37, %c8_38, %c0_39] : memref<20x26x128xf32, #tpu.memory_space<vmem>>, vector<16x16x128xf32>
    %c7 = arith.constant 7 : index
    %c0_40 = arith.constant 0 : index
    %50 = vector.load %arg2[%c7, %c0_40] : memref<9x128xf32, #tpu.memory_space<vmem>>, vector<1x128xf32>
    %51 = vector.shape_cast %50 : vector<1x128xf32> to vector<1x1x128xf32>
    %52 = vector.broadcast %51 : vector<1x1x128xf32> to vector<16x16x128xf32>
    %53 = arith.mulf %49, %52 : vector<16x16x128xf32>
    %54 = arith.addf %48, %53 : vector<16x16x128xf32>
    %c4_41 = arith.constant 4 : index
    %c10_42 = arith.constant 10 : index
    %c0_43 = arith.constant 0 : index
    %55 = vector.load %arg8[%c4_41, %c10_42, %c0_43] : memref<20x26x128xf32, #tpu.memory_space<vmem>>, vector<16x16x128xf32>
    %c8_44 = arith.constant 8 : index
    %c0_45 = arith.constant 0 : index
    %56 = vector.load %arg2[%c8_44, %c0_45] : memref<9x128xf32, #tpu.memory_space<vmem>>, vector<1x128xf32>
    %57 = vector.shape_cast %56 : vector<1x128xf32> to vector<1x1x128xf32>
    %58 = vector.broadcast %57 : vector<1x1x128xf32> to vector<16x16x128xf32>
    %59 = arith.mulf %55, %58 : vector<16x16x128xf32>
    %60 = arith.addf %54, %59 : vector<16x16x128xf32>
    %c0_46 = arith.constant 0 : index
    %c0_47 = arith.constant 0 : index
    %61 = vector.load %arg3[%c0_46, %c0_47] : memref<1x128xf32, #tpu.memory_space<vmem>>, vector<1x128xf32>
    %62 = vector.shape_cast %61 : vector<1x128xf32> to vector<1x1x128xf32>
    %63 = vector.broadcast %62 : vector<1x1x128xf32> to vector<16x16x128xf32>
    %64 = arith.addf %60, %63 : vector<16x16x128xf32>
    %cst_48 = arith.constant 0.000000e+00 : f32
    %65 = vector.broadcast %cst_48 : f32 to vector<16x16x128xf32>
    %66 = arith.maximumf %64, %65 : vector<16x16x128xf32>
    %67 = vector.shape_cast %66 : vector<16x16x128xf32> to vector<256x128xf32>
    %68 = arith.truncf %67 : vector<256x128xf32> to vector<256x128xbf16>
    %c0_49 = arith.constant 0 : index
    %c0_50 = arith.constant 0 : index
    %69 = vector.load %arg4[%c0_49, %c0_50] : memref<128x128xbf16, #tpu.memory_space<vmem>>, vector<128x128xbf16>
    %cst_51 = arith.constant dense<0.000000e+00> : vector<256x128xf32>
    %70 = tpu.matmul %68, %69, %cst_51 {dimension_numbers = #tpu.dot_dimension_numbers<[1], [0], [0], [1], [0, 0, 1, 1], [], []>} : vector<256x128xbf16>, vector<128x128xbf16>, vector<256x128xf32> -> vector<256x128xf32>
    %c0_52 = arith.constant 0 : index
    %c0_53 = arith.constant 0 : index
    %71 = vector.load %arg5[%c0_52, %c0_53] : memref<1x128xf32, #tpu.memory_space<vmem>>, vector<1x128xf32>
    %72 = vector.broadcast %71 : vector<1x128xf32> to vector<256x128xf32>
    %73 = arith.addf %70, %72 : vector<256x128xf32>
    %cst_54 = arith.constant 0.000000e+00 : f32
    %74 = vector.broadcast %cst_54 : f32 to vector<256x128xf32>
    %75 = arith.maximumf %73, %74 : vector<256x128xf32>
    %c0_55 = arith.constant 0 : index
    %c0_56 = arith.constant 0 : index
    %76 = vector.load %arg7[%c0_55, %c0_56] : memref<256x128xf32, #tpu.memory_space<vmem>>, vector<256x128xf32>
    tpu.vector_store %arg7[%c0_55, %c0_56], %75 {strides = array<i32>} : memref<256x128xf32, #tpu.memory_space<vmem>>, vector<256x128xf32>,
    return
  }
  func.func @transform_0(%arg0: i32) -> (i32, i32, i32, i32) {
    %c0_i32 = arith.constant 0 : i32
    %c0_i32_0 = arith.constant 0 : i32
    %c0_i32_1 = arith.constant 0 : i32
    %c0_i32_2 = arith.constant 0 : i32
    return %arg0, %c0_i32, %c0_i32_0, %c0_i32_1 : i32, i32, i32, i32
  }
  func.func @transform_1(%arg0: i32) -> (i32, i32) {
    %c0_i32 = arith.constant 0 : i32
    %c0_i32_0 = arith.constant 0 : i32
    %c0_i32_1 = arith.constant 0 : i32
    return %c0_i32, %c0_i32_0 : i32, i32
  }
  func.func @transform_2(%arg0: i32) -> (i32, i32) {
    %c0_i32 = arith.constant 0 : i32
    %c0_i32_0 = arith.constant 0 : i32
    %c0_i32_1 = arith.constant 0 : i32
    return %c0_i32, %c0_i32_0 : i32, i32
  }
  func.func @transform_3(%arg0: i32) -> (i32, i32) {
    %c0_i32 = arith.constant 0 : i32
    %c0_i32_0 = arith.constant 0 : i32
    %c0_i32_1 = arith.constant 0 : i32
    return %c0_i32, %c0_i32_0 : i32, i32
  }
  func.func @transform_4(%arg0: i32) -> (i32, i32) {
    %c0_i32 = arith.constant 0 : i32
    %c0_i32_0 = arith.constant 0 : i32
    %c0_i32_1 = arith.constant 0 : i32
    return %c0_i32, %c0_i32_0 : i32, i32
  }
  func.func @transform_6(%arg0: i32) -> (i32, i32) {
    %c2_i32 = arith.constant 2 : i32
    %c0_i32 = arith.constant 0 : i32
    return %arg0, %c2_i32 : i32, i32
  }
}

module attributes {stable_mosaic.version = 11 : i64} {
  func.func @_sep_fused_kernel(%arg0: i32, %arg1: memref<1x16x16x128xbf16, #tpu.memory_space<vmem>>, %arg2: memref<9x128xf32, #tpu.memory_space<vmem>>, %arg3: memref<1x128xf32, #tpu.memory_space<vmem>>, %arg4: memref<128x128xbf16, #tpu.memory_space<vmem>>, %arg5: memref<1x128xf32, #tpu.memory_space<vmem>>, %arg6: memref<512x512xf32, #tpu.memory_space<any>>, %arg7: memref<256x128xf32, #tpu.memory_space<vmem>>, %arg8: memref<22x27x128xf32, #tpu.memory_space<vmem>>) attributes {dimension_semantics = [#tpu.dimension_semantics<parallel>], iteration_bounds = array<i64: 2>, scalar_prefetch = 0 : i64, scratch_operands = 1 : i64, tpu.core_type = #tpu.core_type<tc>, window_params = [{transform_indices = @transform_0, window_bounds = array<i64: 1, 16, 16, 128>}, {pipeline_mode = #tpu.pipeline_mode<synchronous>, transform_indices = @transform_1, window_bounds = array<i64: 9, 128>}, {pipeline_mode = #tpu.pipeline_mode<synchronous>, transform_indices = @transform_2, window_bounds = array<i64: 1, 128>}, {pipeline_mode = #tpu.pipeline_mode<synchronous>, transform_indices = @transform_3, window_bounds = array<i64: 128, 128>}, {pipeline_mode = #tpu.pipeline_mode<synchronous>, transform_indices = @transform_4, window_bounds = array<i64: 1, 128>}, {}, {transform_indices = @transform_6, window_bounds = array<i64: 256, 128>}]} {
    %cst = arith.constant 0.000000e+00 : f32
    %0 = vector.broadcast %cst : f32 to vector<22x27x128xf32>
    %c0 = arith.constant 0 : index
    %c0_0 = arith.constant 0 : index
    %c0_1 = arith.constant 0 : index
    %1 = vector.load %arg8[%c0, %c0_0, %c0_1] : memref<22x27x128xf32, #tpu.memory_space<vmem>>, vector<22x27x128xf32>
    tpu.vector_store %arg8[%c0, %c0_0, %c0_1], %0 {strides = array<i32>} : memref<22x27x128xf32, #tpu.memory_space<vmem>>, vector<22x27x128xf32>,
    %c0_2 = arith.constant 0 : index
    %c0_3 = arith.constant 0 : index
    %c0_4 = arith.constant 0 : index
    %c0_5 = arith.constant 0 : index
    %2 = vector.load %arg1[%c0_2, %c0_3, %c0_4, %c0_5] : memref<1x16x16x128xbf16, #tpu.memory_space<vmem>>, vector<1x16x16x128xbf16>
    %3 = vector.shape_cast %2 : vector<1x16x16x128xbf16> to vector<16x16x128xbf16>
    %4 = arith.extf %3 : vector<16x16x128xbf16> to vector<16x16x128xf32>
    %c3 = arith.constant 3 : index
    %c8 = arith.constant 8 : index
    %c0_6 = arith.constant 0 : index
    %5 = vector.load %arg8[%c3, %c8, %c0_6] : memref<22x27x128xf32, #tpu.memory_space<vmem>>, vector<16x16x128xf32>
    tpu.vector_store %arg8[%c3, %c8, %c0_6], %4 {strides = array<i32>} : memref<22x27x128xf32, #tpu.memory_space<vmem>>, vector<16x16x128xf32>,
    %cst_7 = arith.constant 0.000000e+00 : f32
    %6 = vector.broadcast %cst_7 : f32 to vector<16x16x128xf32>
    %c0_8 = arith.constant 0 : index
    %c5 = arith.constant 5 : index
    %c0_9 = arith.constant 0 : index
    %7 = vector.load %arg8[%c0_8, %c5, %c0_9] : memref<22x27x128xf32, #tpu.memory_space<vmem>>, vector<16x16x128xf32>
    %c0_10 = arith.constant 0 : index
    %c0_11 = arith.constant 0 : index
    %8 = vector.load %arg2[%c0_10, %c0_11] : memref<9x128xf32, #tpu.memory_space<vmem>>, vector<1x128xf32>
    %9 = vector.shape_cast %8 : vector<1x128xf32> to vector<1x1x128xf32>
    %10 = vector.broadcast %9 : vector<1x1x128xf32> to vector<16x16x128xf32>
    %11 = arith.mulf %7, %10 : vector<16x16x128xf32>
    %12 = arith.addf %6, %11 : vector<16x16x128xf32>
    %c0_12 = arith.constant 0 : index
    %c8_13 = arith.constant 8 : index
    %c0_14 = arith.constant 0 : index
    %13 = vector.load %arg8[%c0_12, %c8_13, %c0_14] : memref<22x27x128xf32, #tpu.memory_space<vmem>>, vector<16x16x128xf32>
    %c1 = arith.constant 1 : index
    %c0_15 = arith.constant 0 : index
    %14 = vector.load %arg2[%c1, %c0_15] : memref<9x128xf32, #tpu.memory_space<vmem>>, vector<1x128xf32>
    %15 = vector.shape_cast %14 : vector<1x128xf32> to vector<1x1x128xf32>
    %16 = vector.broadcast %15 : vector<1x1x128xf32> to vector<16x16x128xf32>
    %17 = arith.mulf %13, %16 : vector<16x16x128xf32>
    %18 = arith.addf %12, %17 : vector<16x16x128xf32>
    %c0_16 = arith.constant 0 : index
    %c11 = arith.constant 11 : index
    %c0_17 = arith.constant 0 : index
    %19 = vector.load %arg8[%c0_16, %c11, %c0_17] : memref<22x27x128xf32, #tpu.memory_space<vmem>>, vector<16x16x128xf32>
    %c2 = arith.constant 2 : index
    %c0_18 = arith.constant 0 : index
    %20 = vector.load %arg2[%c2, %c0_18] : memref<9x128xf32, #tpu.memory_space<vmem>>, vector<1x128xf32>
    %21 = vector.shape_cast %20 : vector<1x128xf32> to vector<1x1x128xf32>
    %22 = vector.broadcast %21 : vector<1x1x128xf32> to vector<16x16x128xf32>
    %23 = arith.mulf %19, %22 : vector<16x16x128xf32>
    %24 = arith.addf %18, %23 : vector<16x16x128xf32>
    %c3_19 = arith.constant 3 : index
    %c5_20 = arith.constant 5 : index
    %c0_21 = arith.constant 0 : index
    %25 = vector.load %arg8[%c3_19, %c5_20, %c0_21] : memref<22x27x128xf32, #tpu.memory_space<vmem>>, vector<16x16x128xf32>
    %c3_22 = arith.constant 3 : index
    %c0_23 = arith.constant 0 : index
    %26 = vector.load %arg2[%c3_22, %c0_23] : memref<9x128xf32, #tpu.memory_space<vmem>>, vector<1x128xf32>
    %27 = vector.shape_cast %26 : vector<1x128xf32> to vector<1x1x128xf32>
    %28 = vector.broadcast %27 : vector<1x1x128xf32> to vector<16x16x128xf32>
    %29 = arith.mulf %25, %28 : vector<16x16x128xf32>
    %30 = arith.addf %24, %29 : vector<16x16x128xf32>
    %c3_24 = arith.constant 3 : index
    %c8_25 = arith.constant 8 : index
    %c0_26 = arith.constant 0 : index
    %31 = vector.load %arg8[%c3_24, %c8_25, %c0_26] : memref<22x27x128xf32, #tpu.memory_space<vmem>>, vector<16x16x128xf32>
    %c4 = arith.constant 4 : index
    %c0_27 = arith.constant 0 : index
    %32 = vector.load %arg2[%c4, %c0_27] : memref<9x128xf32, #tpu.memory_space<vmem>>, vector<1x128xf32>
    %33 = vector.shape_cast %32 : vector<1x128xf32> to vector<1x1x128xf32>
    %34 = vector.broadcast %33 : vector<1x1x128xf32> to vector<16x16x128xf32>
    %35 = arith.mulf %31, %34 : vector<16x16x128xf32>
    %36 = arith.addf %30, %35 : vector<16x16x128xf32>
    %c3_28 = arith.constant 3 : index
    %c11_29 = arith.constant 11 : index
    %c0_30 = arith.constant 0 : index
    %37 = vector.load %arg8[%c3_28, %c11_29, %c0_30] : memref<22x27x128xf32, #tpu.memory_space<vmem>>, vector<16x16x128xf32>
    %c5_31 = arith.constant 5 : index
    %c0_32 = arith.constant 0 : index
    %38 = vector.load %arg2[%c5_31, %c0_32] : memref<9x128xf32, #tpu.memory_space<vmem>>, vector<1x128xf32>
    %39 = vector.shape_cast %38 : vector<1x128xf32> to vector<1x1x128xf32>
    %40 = vector.broadcast %39 : vector<1x1x128xf32> to vector<16x16x128xf32>
    %41 = arith.mulf %37, %40 : vector<16x16x128xf32>
    %42 = arith.addf %36, %41 : vector<16x16x128xf32>
    %c6 = arith.constant 6 : index
    %c5_33 = arith.constant 5 : index
    %c0_34 = arith.constant 0 : index
    %43 = vector.load %arg8[%c6, %c5_33, %c0_34] : memref<22x27x128xf32, #tpu.memory_space<vmem>>, vector<16x16x128xf32>
    %c6_35 = arith.constant 6 : index
    %c0_36 = arith.constant 0 : index
    %44 = vector.load %arg2[%c6_35, %c0_36] : memref<9x128xf32, #tpu.memory_space<vmem>>, vector<1x128xf32>
    %45 = vector.shape_cast %44 : vector<1x128xf32> to vector<1x1x128xf32>
    %46 = vector.broadcast %45 : vector<1x1x128xf32> to vector<16x16x128xf32>
    %47 = arith.mulf %43, %46 : vector<16x16x128xf32>
    %48 = arith.addf %42, %47 : vector<16x16x128xf32>
    %c6_37 = arith.constant 6 : index
    %c8_38 = arith.constant 8 : index
    %c0_39 = arith.constant 0 : index
    %49 = vector.load %arg8[%c6_37, %c8_38, %c0_39] : memref<22x27x128xf32, #tpu.memory_space<vmem>>, vector<16x16x128xf32>
    %c7 = arith.constant 7 : index
    %c0_40 = arith.constant 0 : index
    %50 = vector.load %arg2[%c7, %c0_40] : memref<9x128xf32, #tpu.memory_space<vmem>>, vector<1x128xf32>
    %51 = vector.shape_cast %50 : vector<1x128xf32> to vector<1x1x128xf32>
    %52 = vector.broadcast %51 : vector<1x1x128xf32> to vector<16x16x128xf32>
    %53 = arith.mulf %49, %52 : vector<16x16x128xf32>
    %54 = arith.addf %48, %53 : vector<16x16x128xf32>
    %c6_41 = arith.constant 6 : index
    %c11_42 = arith.constant 11 : index
    %c0_43 = arith.constant 0 : index
    %55 = vector.load %arg8[%c6_41, %c11_42, %c0_43] : memref<22x27x128xf32, #tpu.memory_space<vmem>>, vector<16x16x128xf32>
    %c8_44 = arith.constant 8 : index
    %c0_45 = arith.constant 0 : index
    %56 = vector.load %arg2[%c8_44, %c0_45] : memref<9x128xf32, #tpu.memory_space<vmem>>, vector<1x128xf32>
    %57 = vector.shape_cast %56 : vector<1x128xf32> to vector<1x1x128xf32>
    %58 = vector.broadcast %57 : vector<1x1x128xf32> to vector<16x16x128xf32>
    %59 = arith.mulf %55, %58 : vector<16x16x128xf32>
    %60 = arith.addf %54, %59 : vector<16x16x128xf32>
    %c0_46 = arith.constant 0 : index
    %c0_47 = arith.constant 0 : index
    %61 = vector.load %arg3[%c0_46, %c0_47] : memref<1x128xf32, #tpu.memory_space<vmem>>, vector<1x128xf32>
    %62 = vector.shape_cast %61 : vector<1x128xf32> to vector<1x1x128xf32>
    %63 = vector.broadcast %62 : vector<1x1x128xf32> to vector<16x16x128xf32>
    %64 = arith.addf %60, %63 : vector<16x16x128xf32>
    %cst_48 = arith.constant 0.000000e+00 : f32
    %65 = vector.broadcast %cst_48 : f32 to vector<16x16x128xf32>
    %66 = arith.maximumf %64, %65 : vector<16x16x128xf32>
    %67 = vector.shape_cast %66 : vector<16x16x128xf32> to vector<256x128xf32>
    %68 = arith.truncf %67 : vector<256x128xf32> to vector<256x128xbf16>
    %c0_49 = arith.constant 0 : index
    %c0_50 = arith.constant 0 : index
    %69 = vector.load %arg4[%c0_49, %c0_50] : memref<128x128xbf16, #tpu.memory_space<vmem>>, vector<128x128xbf16>
    %cst_51 = arith.constant dense<0.000000e+00> : vector<256x128xf32>
    %70 = tpu.matmul %68, %69, %cst_51 {dimension_numbers = #tpu.dot_dimension_numbers<[1], [0], [0], [1], [0, 0, 1, 1], [], []>} : vector<256x128xbf16>, vector<128x128xbf16>, vector<256x128xf32> -> vector<256x128xf32>
    %c0_52 = arith.constant 0 : index
    %c0_53 = arith.constant 0 : index
    %71 = vector.load %arg5[%c0_52, %c0_53] : memref<1x128xf32, #tpu.memory_space<vmem>>, vector<1x128xf32>
    %72 = vector.broadcast %71 : vector<1x128xf32> to vector<256x128xf32>
    %73 = arith.addf %70, %72 : vector<256x128xf32>
    %cst_54 = arith.constant 0.000000e+00 : f32
    %74 = vector.broadcast %cst_54 : f32 to vector<256x128xf32>
    %75 = arith.maximumf %73, %74 : vector<256x128xf32>
    %c0_55 = arith.constant 0 : index
    %c0_56 = arith.constant 0 : index
    %76 = vector.load %arg7[%c0_55, %c0_56] : memref<256x128xf32, #tpu.memory_space<vmem>>, vector<256x128xf32>
    tpu.vector_store %arg7[%c0_55, %c0_56], %75 {strides = array<i32>} : memref<256x128xf32, #tpu.memory_space<vmem>>, vector<256x128xf32>,
    return
  }
  func.func @transform_0(%arg0: i32) -> (i32, i32, i32, i32) {
    %c0_i32 = arith.constant 0 : i32
    %c0_i32_0 = arith.constant 0 : i32
    %c0_i32_1 = arith.constant 0 : i32
    %c0_i32_2 = arith.constant 0 : i32
    return %arg0, %c0_i32, %c0_i32_0, %c0_i32_1 : i32, i32, i32, i32
  }
  func.func @transform_1(%arg0: i32) -> (i32, i32) {
    %c0_i32 = arith.constant 0 : i32
    %c0_i32_0 = arith.constant 0 : i32
    %c0_i32_1 = arith.constant 0 : i32
    return %c0_i32, %c0_i32_0 : i32, i32
  }
  func.func @transform_2(%arg0: i32) -> (i32, i32) {
    %c0_i32 = arith.constant 0 : i32
    %c0_i32_0 = arith.constant 0 : i32
    %c0_i32_1 = arith.constant 0 : i32
    return %c0_i32, %c0_i32_0 : i32, i32
  }
  func.func @transform_3(%arg0: i32) -> (i32, i32) {
    %c0_i32 = arith.constant 0 : i32
    %c0_i32_0 = arith.constant 0 : i32
    %c0_i32_1 = arith.constant 0 : i32
    return %c0_i32, %c0_i32_0 : i32, i32
  }
  func.func @transform_4(%arg0: i32) -> (i32, i32) {
    %c0_i32 = arith.constant 0 : i32
    %c0_i32_0 = arith.constant 0 : i32
    %c0_i32_1 = arith.constant 0 : i32
    return %c0_i32, %c0_i32_0 : i32, i32
  }
  func.func @transform_6(%arg0: i32) -> (i32, i32) {
    %c3_i32 = arith.constant 3 : i32
    %c0_i32 = arith.constant 0 : i32
    return %arg0, %c3_i32 : i32, i32
  }
}

module attributes {stable_mosaic.version = 11 : i64} {
  func.func @_sep_fused_kernel(%arg0: i32, %arg1: memref<1x16x16x128xbf16, #tpu.memory_space<vmem>>, %arg2: memref<9x128xf32, #tpu.memory_space<vmem>>, %arg3: memref<1x128xf32, #tpu.memory_space<vmem>>, %arg4: memref<128x128xbf16, #tpu.memory_space<vmem>>, %arg5: memref<1x128xf32, #tpu.memory_space<vmem>>, %arg6: memref<1x16x16x128xbf16, #tpu.memory_space<vmem>>, %arg7: memref<22x27x128xf32, #tpu.memory_space<vmem>>) attributes {dimension_semantics = [#tpu.dimension_semantics<parallel>], iteration_bounds = array<i64: 2>, scalar_prefetch = 0 : i64, scratch_operands = 1 : i64, tpu.core_type = #tpu.core_type<tc>, window_params = [{transform_indices = @transform_0, window_bounds = array<i64: 1, 16, 16, 128>}, {pipeline_mode = #tpu.pipeline_mode<synchronous>, transform_indices = @transform_1, window_bounds = array<i64: 9, 128>}, {pipeline_mode = #tpu.pipeline_mode<synchronous>, transform_indices = @transform_2, window_bounds = array<i64: 1, 128>}, {pipeline_mode = #tpu.pipeline_mode<synchronous>, transform_indices = @transform_3, window_bounds = array<i64: 128, 128>}, {pipeline_mode = #tpu.pipeline_mode<synchronous>, transform_indices = @transform_4, window_bounds = array<i64: 1, 128>}, {transform_indices = @transform_5, window_bounds = array<i64: 1, 16, 16, 128>}]} {
    %cst = arith.constant 0.000000e+00 : f32
    %0 = vector.broadcast %cst : f32 to vector<22x27x128xf32>
    %c0 = arith.constant 0 : index
    %c0_0 = arith.constant 0 : index
    %c0_1 = arith.constant 0 : index
    %1 = vector.load %arg7[%c0, %c0_0, %c0_1] : memref<22x27x128xf32, #tpu.memory_space<vmem>>, vector<22x27x128xf32>
    tpu.vector_store %arg7[%c0, %c0_0, %c0_1], %0 {strides = array<i32>} : memref<22x27x128xf32, #tpu.memory_space<vmem>>, vector<22x27x128xf32>,
    %c0_2 = arith.constant 0 : index
    %c0_3 = arith.constant 0 : index
    %c0_4 = arith.constant 0 : index
    %c0_5 = arith.constant 0 : index
    %2 = vector.load %arg1[%c0_2, %c0_3, %c0_4, %c0_5] : memref<1x16x16x128xbf16, #tpu.memory_space<vmem>>, vector<1x16x16x128xbf16>
    %3 = vector.shape_cast %2 : vector<1x16x16x128xbf16> to vector<16x16x128xbf16>
    %4 = arith.extf %3 : vector<16x16x128xbf16> to vector<16x16x128xf32>
    %c3 = arith.constant 3 : index
    %c8 = arith.constant 8 : index
    %c0_6 = arith.constant 0 : index
    %5 = vector.load %arg7[%c3, %c8, %c0_6] : memref<22x27x128xf32, #tpu.memory_space<vmem>>, vector<16x16x128xf32>
    tpu.vector_store %arg7[%c3, %c8, %c0_6], %4 {strides = array<i32>} : memref<22x27x128xf32, #tpu.memory_space<vmem>>, vector<16x16x128xf32>,
    %cst_7 = arith.constant 0.000000e+00 : f32
    %6 = vector.broadcast %cst_7 : f32 to vector<16x16x128xf32>
    %c0_8 = arith.constant 0 : index
    %c5 = arith.constant 5 : index
    %c0_9 = arith.constant 0 : index
    %7 = vector.load %arg7[%c0_8, %c5, %c0_9] : memref<22x27x128xf32, #tpu.memory_space<vmem>>, vector<16x16x128xf32>
    %c0_10 = arith.constant 0 : index
    %c0_11 = arith.constant 0 : index
    %8 = vector.load %arg2[%c0_10, %c0_11] : memref<9x128xf32, #tpu.memory_space<vmem>>, vector<1x128xf32>
    %9 = vector.shape_cast %8 : vector<1x128xf32> to vector<1x1x128xf32>
    %10 = vector.broadcast %9 : vector<1x1x128xf32> to vector<16x16x128xf32>
    %11 = arith.mulf %7, %10 : vector<16x16x128xf32>
    %12 = arith.addf %6, %11 : vector<16x16x128xf32>
    %c0_12 = arith.constant 0 : index
    %c8_13 = arith.constant 8 : index
    %c0_14 = arith.constant 0 : index
    %13 = vector.load %arg7[%c0_12, %c8_13, %c0_14] : memref<22x27x128xf32, #tpu.memory_space<vmem>>, vector<16x16x128xf32>
    %c1 = arith.constant 1 : index
    %c0_15 = arith.constant 0 : index
    %14 = vector.load %arg2[%c1, %c0_15] : memref<9x128xf32, #tpu.memory_space<vmem>>, vector<1x128xf32>
    %15 = vector.shape_cast %14 : vector<1x128xf32> to vector<1x1x128xf32>
    %16 = vector.broadcast %15 : vector<1x1x128xf32> to vector<16x16x128xf32>
    %17 = arith.mulf %13, %16 : vector<16x16x128xf32>
    %18 = arith.addf %12, %17 : vector<16x16x128xf32>
    %c0_16 = arith.constant 0 : index
    %c11 = arith.constant 11 : index
    %c0_17 = arith.constant 0 : index
    %19 = vector.load %arg7[%c0_16, %c11, %c0_17] : memref<22x27x128xf32, #tpu.memory_space<vmem>>, vector<16x16x128xf32>
    %c2 = arith.constant 2 : index
    %c0_18 = arith.constant 0 : index
    %20 = vector.load %arg2[%c2, %c0_18] : memref<9x128xf32, #tpu.memory_space<vmem>>, vector<1x128xf32>
    %21 = vector.shape_cast %20 : vector<1x128xf32> to vector<1x1x128xf32>
    %22 = vector.broadcast %21 : vector<1x1x128xf32> to vector<16x16x128xf32>
    %23 = arith.mulf %19, %22 : vector<16x16x128xf32>
    %24 = arith.addf %18, %23 : vector<16x16x128xf32>
    %c3_19 = arith.constant 3 : index
    %c5_20 = arith.constant 5 : index
    %c0_21 = arith.constant 0 : index
    %25 = vector.load %arg7[%c3_19, %c5_20, %c0_21] : memref<22x27x128xf32, #tpu.memory_space<vmem>>, vector<16x16x128xf32>
    %c3_22 = arith.constant 3 : index
    %c0_23 = arith.constant 0 : index
    %26 = vector.load %arg2[%c3_22, %c0_23] : memref<9x128xf32, #tpu.memory_space<vmem>>, vector<1x128xf32>
    %27 = vector.shape_cast %26 : vector<1x128xf32> to vector<1x1x128xf32>
    %28 = vector.broadcast %27 : vector<1x1x128xf32> to vector<16x16x128xf32>
    %29 = arith.mulf %25, %28 : vector<16x16x128xf32>
    %30 = arith.addf %24, %29 : vector<16x16x128xf32>
    %c3_24 = arith.constant 3 : index
    %c8_25 = arith.constant 8 : index
    %c0_26 = arith.constant 0 : index
    %31 = vector.load %arg7[%c3_24, %c8_25, %c0_26] : memref<22x27x128xf32, #tpu.memory_space<vmem>>, vector<16x16x128xf32>
    %c4 = arith.constant 4 : index
    %c0_27 = arith.constant 0 : index
    %32 = vector.load %arg2[%c4, %c0_27] : memref<9x128xf32, #tpu.memory_space<vmem>>, vector<1x128xf32>
    %33 = vector.shape_cast %32 : vector<1x128xf32> to vector<1x1x128xf32>
    %34 = vector.broadcast %33 : vector<1x1x128xf32> to vector<16x16x128xf32>
    %35 = arith.mulf %31, %34 : vector<16x16x128xf32>
    %36 = arith.addf %30, %35 : vector<16x16x128xf32>
    %c3_28 = arith.constant 3 : index
    %c11_29 = arith.constant 11 : index
    %c0_30 = arith.constant 0 : index
    %37 = vector.load %arg7[%c3_28, %c11_29, %c0_30] : memref<22x27x128xf32, #tpu.memory_space<vmem>>, vector<16x16x128xf32>
    %c5_31 = arith.constant 5 : index
    %c0_32 = arith.constant 0 : index
    %38 = vector.load %arg2[%c5_31, %c0_32] : memref<9x128xf32, #tpu.memory_space<vmem>>, vector<1x128xf32>
    %39 = vector.shape_cast %38 : vector<1x128xf32> to vector<1x1x128xf32>
    %40 = vector.broadcast %39 : vector<1x1x128xf32> to vector<16x16x128xf32>
    %41 = arith.mulf %37, %40 : vector<16x16x128xf32>
    %42 = arith.addf %36, %41 : vector<16x16x128xf32>
    %c6 = arith.constant 6 : index
    %c5_33 = arith.constant 5 : index
    %c0_34 = arith.constant 0 : index
    %43 = vector.load %arg7[%c6, %c5_33, %c0_34] : memref<22x27x128xf32, #tpu.memory_space<vmem>>, vector<16x16x128xf32>
    %c6_35 = arith.constant 6 : index
    %c0_36 = arith.constant 0 : index
    %44 = vector.load %arg2[%c6_35, %c0_36] : memref<9x128xf32, #tpu.memory_space<vmem>>, vector<1x128xf32>
    %45 = vector.shape_cast %44 : vector<1x128xf32> to vector<1x1x128xf32>
    %46 = vector.broadcast %45 : vector<1x1x128xf32> to vector<16x16x128xf32>
    %47 = arith.mulf %43, %46 : vector<16x16x128xf32>
    %48 = arith.addf %42, %47 : vector<16x16x128xf32>
    %c6_37 = arith.constant 6 : index
    %c8_38 = arith.constant 8 : index
    %c0_39 = arith.constant 0 : index
    %49 = vector.load %arg7[%c6_37, %c8_38, %c0_39] : memref<22x27x128xf32, #tpu.memory_space<vmem>>, vector<16x16x128xf32>
    %c7 = arith.constant 7 : index
    %c0_40 = arith.constant 0 : index
    %50 = vector.load %arg2[%c7, %c0_40] : memref<9x128xf32, #tpu.memory_space<vmem>>, vector<1x128xf32>
    %51 = vector.shape_cast %50 : vector<1x128xf32> to vector<1x1x128xf32>
    %52 = vector.broadcast %51 : vector<1x1x128xf32> to vector<16x16x128xf32>
    %53 = arith.mulf %49, %52 : vector<16x16x128xf32>
    %54 = arith.addf %48, %53 : vector<16x16x128xf32>
    %c6_41 = arith.constant 6 : index
    %c11_42 = arith.constant 11 : index
    %c0_43 = arith.constant 0 : index
    %55 = vector.load %arg7[%c6_41, %c11_42, %c0_43] : memref<22x27x128xf32, #tpu.memory_space<vmem>>, vector<16x16x128xf32>
    %c8_44 = arith.constant 8 : index
    %c0_45 = arith.constant 0 : index
    %56 = vector.load %arg2[%c8_44, %c0_45] : memref<9x128xf32, #tpu.memory_space<vmem>>, vector<1x128xf32>
    %57 = vector.shape_cast %56 : vector<1x128xf32> to vector<1x1x128xf32>
    %58 = vector.broadcast %57 : vector<1x1x128xf32> to vector<16x16x128xf32>
    %59 = arith.mulf %55, %58 : vector<16x16x128xf32>
    %60 = arith.addf %54, %59 : vector<16x16x128xf32>
    %c0_46 = arith.constant 0 : index
    %c0_47 = arith.constant 0 : index
    %61 = vector.load %arg3[%c0_46, %c0_47] : memref<1x128xf32, #tpu.memory_space<vmem>>, vector<1x128xf32>
    %62 = vector.shape_cast %61 : vector<1x128xf32> to vector<1x1x128xf32>
    %63 = vector.broadcast %62 : vector<1x1x128xf32> to vector<16x16x128xf32>
    %64 = arith.addf %60, %63 : vector<16x16x128xf32>
    %cst_48 = arith.constant 0.000000e+00 : f32
    %65 = vector.broadcast %cst_48 : f32 to vector<16x16x128xf32>
    %66 = arith.maximumf %64, %65 : vector<16x16x128xf32>
    %67 = vector.shape_cast %66 : vector<16x16x128xf32> to vector<256x128xf32>
    %68 = arith.truncf %67 : vector<256x128xf32> to vector<256x128xbf16>
    %c0_49 = arith.constant 0 : index
    %c0_50 = arith.constant 0 : index
    %69 = vector.load %arg4[%c0_49, %c0_50] : memref<128x128xbf16, #tpu.memory_space<vmem>>, vector<128x128xbf16>
    %cst_51 = arith.constant dense<0.000000e+00> : vector<256x128xf32>
    %70 = tpu.matmul %68, %69, %cst_51 {dimension_numbers = #tpu.dot_dimension_numbers<[1], [0], [0], [1], [0, 0, 1, 1], [], []>} : vector<256x128xbf16>, vector<128x128xbf16>, vector<256x128xf32> -> vector<256x128xf32>
    %c0_52 = arith.constant 0 : index
    %c0_53 = arith.constant 0 : index
    %71 = vector.load %arg5[%c0_52, %c0_53] : memref<1x128xf32, #tpu.memory_space<vmem>>, vector<1x128xf32>
    %72 = vector.broadcast %71 : vector<1x128xf32> to vector<256x128xf32>
    %73 = arith.addf %70, %72 : vector<256x128xf32>
    %cst_54 = arith.constant 0.000000e+00 : f32
    %74 = vector.broadcast %cst_54 : f32 to vector<256x128xf32>
    %75 = arith.maximumf %73, %74 : vector<256x128xf32>
    %76 = vector.shape_cast %75 : vector<256x128xf32> to vector<16x16x128xf32>
    %77 = arith.truncf %76 : vector<16x16x128xf32> to vector<16x16x128xbf16>
    %c0_55 = arith.constant 0 : index
    %c0_56 = arith.constant 0 : index
    %c0_57 = arith.constant 0 : index
    %c0_58 = arith.constant 0 : index
    %78 = vector.load %arg6[%c0_55, %c0_56, %c0_57, %c0_58] : memref<1x16x16x128xbf16, #tpu.memory_space<vmem>>, vector<1x16x16x128xbf16>
    %79 = vector.shape_cast %78 : vector<1x16x16x128xbf16> to vector<16x16x128xbf16>
    %80 = vector.shape_cast %77 : vector<16x16x128xbf16> to vector<1x16x16x128xbf16>
    tpu.vector_store %arg6[%c0_55, %c0_56, %c0_57, %c0_58], %80 {strides = array<i32>} : memref<1x16x16x128xbf16, #tpu.memory_space<vmem>>, vector<1x16x16x128xbf16>,
    return
  }
  func.func @transform_0(%arg0: i32) -> (i32, i32, i32, i32) {
    %c0_i32 = arith.constant 0 : i32
    %c0_i32_0 = arith.constant 0 : i32
    %c0_i32_1 = arith.constant 0 : i32
    %c0_i32_2 = arith.constant 0 : i32
    return %arg0, %c0_i32, %c0_i32_0, %c0_i32_1 : i32, i32, i32, i32
  }
  func.func @transform_1(%arg0: i32) -> (i32, i32) {
    %c0_i32 = arith.constant 0 : i32
    %c0_i32_0 = arith.constant 0 : i32
    %c0_i32_1 = arith.constant 0 : i32
    return %c0_i32, %c0_i32_0 : i32, i32
  }
  func.func @transform_2(%arg0: i32) -> (i32, i32) {
    %c0_i32 = arith.constant 0 : i32
    %c0_i32_0 = arith.constant 0 : i32
    %c0_i32_1 = arith.constant 0 : i32
    return %c0_i32, %c0_i32_0 : i32, i32
  }
  func.func @transform_3(%arg0: i32) -> (i32, i32) {
    %c0_i32 = arith.constant 0 : i32
    %c0_i32_0 = arith.constant 0 : i32
    %c0_i32_1 = arith.constant 0 : i32
    return %c0_i32, %c0_i32_0 : i32, i32
  }
  func.func @transform_4(%arg0: i32) -> (i32, i32) {
    %c0_i32 = arith.constant 0 : i32
    %c0_i32_0 = arith.constant 0 : i32
    %c0_i32_1 = arith.constant 0 : i32
    return %c0_i32, %c0_i32_0 : i32, i32
  }
  func.func @transform_5(%arg0: i32) -> (i32, i32, i32, i32) {
    %c0_i32 = arith.constant 0 : i32
    %c0_i32_0 = arith.constant 0 : i32
    %c0_i32_1 = arith.constant 0 : i32
    %c0_i32_2 = arith.constant 0 : i32
    return %arg0, %c0_i32, %c0_i32_0, %c0_i32_1 : i32, i32, i32, i32
  }
}

</mosaic_0001>

<bundles_post_ra>
// kernel: _lambda_.7
= control target key start
LH: loop header
LB: loop body
LE: loop exit
PB: predicated region body
PF: predicated region fallthrough
CT: control target
= control target key end

     0   :  { %s433_s6 = smov 0   ;;  %s435_s7 = smov 0   ;;  %s580_s0 = inlined_call_operand.vmem [shape: f32[2,1,128], index: 0, kind: input, shape index: {}]   ;;  %s581_s1 = inlined_call_operand.vmem [shape: f32[512,512], index: 1, kind: output, shape index: {}]  }
   0x1   :  { %s437_s8 = smov 0  }
   0x2 LB: > { %s444_s9 = sadd.s32 4294967295, %s421_s8   ;;  %s446_s10 = sadd.s32 1, %s421_s8   ;;  %s421_s8 = sphi %s437_s8, %s585_s8   ;;  %s417_s7 = sphi %s435_s7, %s584_s7   ;;  %s413_s6 = sphi %s433_s6, %s583_s6  }
   0x3   : > { %s41_s11 = ssub.s32 %s421_s8, %s446_s10  ;;  %s44_s12 = sadd.s32 1, %s417_s7 }
   0x4   : > { %p42_p0 = scmp.eq.s32.totalorder %s41_s11, 0  ;;  %p54_p1 = scmp.ne.s32.totalorder %s417_s7, %s413_s6 }
   0x5   : > { %p55_p2 = scmp.eq.s32.totalorder %s444_s9, 1  ;;  %p364_p3 = scmp.ge.s32.totalorder %s421_s8, 1 }
   0x6   : > { %s453_s13 = scalar_select %p42_p0, %s417_s7, %s44_s12  }
   0x7   : > { %p455_p4 = por %p55_p2, %p54_p1  ;;  %p85_p5 = scmp.lt.s32.totalorder %s421_s8, 3 }
   0x9   : > { %p86_p6 = pnand %p364_p3, %p85_p5 }
   0xa   : > { %s99_s15 = sand.u32 (!%p86_p6), 1, %s413_s6   ;;  %p102_p7 = scmp.lt.s32.totalorder (!%p86_p6), %s444_s9, 1 }
   0xb   : > { %89 = sbr.rel (%p86_p6) target bundleno = 52 (0x34), region = 24  ;;  %s365_s16 = sshll.u32 (!%p86_p6), %s99_s15, 8 }
   0xc   : > { %s464_s21 = scalar_lea.vmem (!%p86_p6), [#allocation2], %s365_s16 }
  0x10   : > { %s103_s17 = scalar_select %p102_p7, %s444_s9, 1 }
  0x11   : > { %s374_s22 = sshll.u32 (%p455_p4), %s444_s9, 10 }
  0x12   : > { %s104_s20 = scalar_lea.vmem %s580_s0, %s103_s17  ;;  %s507_s25 = scalar_lea.vmem (%p455_p4), %s581_s1, %s374_s22 }
  0x13   : > { %v366_v0 = vld [vmem:[%s104_s20] ss:$0 sm:$0xff] }
  0x14   : > { %113 = vst [vmem:[%s464_s21] sm:$0xff] %v366_v0  ;;  %114 = vst [vmem:[%s464_s21 + $0x8] sm:$0xff] %v366_v0 }
  0x15   : > { %115 = vst [vmem:[%s464_s21 + $0x10] sm:$0xff] %v366_v0  ;;  %116 = vst [vmem:[%s464_s21 + $0x18] sm:$0xff] %v366_v0 }
  0x16   : > { %117 = vst [vmem:[%s464_s21 + $0x20] sm:$0xff] %v366_v0  ;;  %118 = vst [vmem:[%s464_s21 + $0x28] sm:$0xff] %v366_v0 }
  0x17   : > { %119 = vst [vmem:[%s464_s21 + $0x30] sm:$0xff] %v366_v0  ;;  %120 = vst [vmem:[%s464_s21 + $0x38] sm:$0xff] %v366_v0 }
  0x18   : > { %121 = vst [vmem:[%s464_s21 + $0x40] sm:$0xff] %v366_v0  ;;  %122 = vst [vmem:[%s464_s21 + $0x48] sm:$0xff] %v366_v0 }
  0x19   : > { %123 = vst [vmem:[%s464_s21 + $0x50] sm:$0xff] %v366_v0  ;;  %124 = vst [vmem:[%s464_s21 + $0x58] sm:$0xff] %v366_v0 }
  0x1a   : > { %125 = vst [vmem:[%s464_s21 + $0x60] sm:$0xff] %v366_v0  ;;  %126 = vst [vmem:[%s464_s21 + $0x68] sm:$0xff] %v366_v0 }
  0x1b   : > { %127 = vst [vmem:[%s464_s21 + $0x70] sm:$0xff] %v366_v0  ;;  %128 = vst [vmem:[%s464_s21 + $0x78] sm:$0xff] %v366_v0  ;;  %v246_v1 = vld [vmem:[%s464_s21] sm:$0xff] (%p455_p4)  ;;  %v248_v2 = vld [vmem:[%s464_s21 + $0x8] sm:$0xff] (%p455_p4) }
  0x1c   : > { %129 = vst [vmem:[%s464_s21 + $0x80] sm:$0xff] %v366_v0  ;;  %130 = vst [vmem:[%s464_s21 + $0x88] sm:$0xff] %v366_v0  ;;  %v250_v3 = vld [vmem:[%s464_s21 + $0x10] sm:$0xff] (%p455_p4)  ;;  %v252_v4 = vld [vmem:[%s464_s21 + $0x18] sm:$0xff] (%p455_p4) }
  0x1d   : > { %131 = vst [vmem:[%s464_s21 + $0x90] sm:$0xff] %v366_v0  ;;  %132 = vst [vmem:[%s464_s21 + $0x98] sm:$0xff] %v366_v0  ;;  %v254_v5 = vld [vmem:[%s464_s21 + $0x20] sm:$0xff] (%p455_p4)  ;;  %v256_v6 = vld [vmem:[%s464_s21 + $0x28] sm:$0xff] (%p455_p4) }
  0x1e   : > { %133 = vst [vmem:[%s464_s21 + $0xa0] sm:$0xff] %v366_v0  ;;  %134 = vst [vmem:[%s464_s21 + $0xa8] sm:$0xff] %v366_v0  ;;  %v258_v7 = vld [vmem:[%s464_s21 + $0x30] sm:$0xff] (%p455_p4)  ;;  %v260_v8 = vld [vmem:[%s464_s21 + $0x38] sm:$0xff] (%p455_p4) }
  0x1f   : > { %135 = vst [vmem:[%s464_s21 + $0xb0] sm:$0xff] %v366_v0  ;;  %136 = vst [vmem:[%s464_s21 + $0xb8] sm:$0xff] %v366_v0  ;;  %151 = sbr.rel (!%p455_p4) target bundleno = 52 (0x34), region = 28  ;;  %v262_v9 = vld [vmem:[%s464_s21 + $0x40] sm:$0xff] (%p455_p4)  ;;  %v264_v10 = vld [vmem:[%s464_s21 + $0x48] sm:$0xff] (%p455_p4) }
  0x20   : > { %137 = vst [vmem:[%s464_s21 + $0xc0] sm:$0xff] %v366_v0  ;;  %138 = vst [vmem:[%s464_s21 + $0xc8] sm:$0xff] %v366_v0  ;;  %v266_v11 = vld [vmem:[%s464_s21 + $0x50] sm:$0xff] (%p455_p4)  ;;  %v268_v12 = vld [vmem:[%s464_s21 + $0x58] sm:$0xff] (%p455_p4) }
  0x21   : > { %139 = vst [vmem:[%s464_s21 + $0xd0] sm:$0xff] %v366_v0  ;;  %140 = vst [vmem:[%s464_s21 + $0xd8] sm:$0xff] %v366_v0  ;;  %v270_v13 = vld [vmem:[%s464_s21 + $0x60] sm:$0xff] (%p455_p4)  ;;  %v272_v14 = vld [vmem:[%s464_s21 + $0x68] sm:$0xff] (%p455_p4) }
  0x22   : > { %141 = vst [vmem:[%s464_s21 + $0xe0] sm:$0xff] %v366_v0  ;;  %142 = vst [vmem:[%s464_s21 + $0xe8] sm:$0xff] %v366_v0  ;;  %v274_v15 = vld [vmem:[%s464_s21 + $0x70] sm:$0xff] (%p455_p4)  ;;  %v276_v16 = vld [vmem:[%s464_s21 + $0x78] sm:$0xff] (%p455_p4) }
  0x23   : > { %143 = vst [vmem:[%s464_s21 + $0xf0] sm:$0xff] %v366_v0  ;;  %144 = vst [vmem:[%s464_s21 + $0xf8] sm:$0xff] %v366_v0  ;;  %v278_v17 = vld [vmem:[%s464_s21 + $0x80] sm:$0xff] (%p455_p4)  ;;  %v280_v18 = vld [vmem:[%s464_s21 + $0x88] sm:$0xff] (%p455_p4) }
  0x24   : > { %247 = vst [vmem:[%s507_s25] sm:$0xff] %v246_v1  ;;  %249 = vst [vmem:[%s507_s25 + $0x20] sm:$0xff] %v248_v2  ;;  %v282_v19 = vld [vmem:[%s464_s21 + $0x90] sm:$0xff]  ;;  %v284_v20 = vld [vmem:[%s464_s21 + $0x98] sm:$0xff] }
  0x25   : > { %251 = vst [vmem:[%s507_s25 + $0x40] sm:$0xff] %v250_v3  ;;  %253 = vst [vmem:[%s507_s25 + $0x60] sm:$0xff] %v252_v4  ;;  %v286_v21 = vld [vmem:[%s464_s21 + $0xa0] sm:$0xff]  ;;  %v288_v22 = vld [vmem:[%s464_s21 + $0xa8] sm:$0xff] }
  0x26   : > { %255 = vst [vmem:[%s507_s25 + $0x80] sm:$0xff] %v254_v5  ;;  %257 = vst [vmem:[%s507_s25 + $0xa0] sm:$0xff] %v256_v6  ;;  %v290_v23 = vld [vmem:[%s464_s21 + $0xb0] sm:$0xff]  ;;  %v292_v24 = vld [vmem:[%s464_s21 + $0xb8] sm:$0xff] }
  0x27   : > { %259 = vst [vmem:[%s507_s25 + $0xc0] sm:$0xff] %v258_v7  ;;  %261 = vst [vmem:[%s507_s25 + $0xe0] sm:$0xff] %v260_v8  ;;  %v294_v25 = vld [vmem:[%s464_s21 + $0xc0] sm:$0xff]  ;;  %v296_v26 = vld [vmem:[%s464_s21 + $0xc8] sm:$0xff] }
  0x28   : > { %263 = vst [vmem:[%s507_s25 + $0x100] sm:$0xff] %v262_v9  ;;  %265 = vst [vmem:[%s507_s25 + $0x120] sm:$0xff] %v264_v10  ;;  %v298_v27 = vld [vmem:[%s464_s21 + $0xd0] sm:$0xff]  ;;  %v300_v28 = vld [vmem:[%s464_s21 + $0xd8] sm:$0xff] }
  0x29   : > { %267 = vst [vmem:[%s507_s25 + $0x140] sm:$0xff] %v266_v11  ;;  %269 = vst [vmem:[%s507_s25 + $0x160] sm:$0xff] %v268_v12  ;;  %v302_v29 = vld [vmem:[%s464_s21 + $0xe0] sm:$0xff]  ;;  %v304_v30 = vld [vmem:[%s464_s21 + $0xe8] sm:$0xff] }
  0x2a   : > { %271 = vst [vmem:[%s507_s25 + $0x180] sm:$0xff] %v270_v13  ;;  %273 = vst [vmem:[%s507_s25 + $0x1a0] sm:$0xff] %v272_v14  ;;  %v306_v31 = vld [vmem:[%s464_s21 + $0xf0] sm:$0xff]  ;;  %v308_v32 = vld [vmem:[%s464_s21 + $0xf8] sm:$0xff] }
  0x2b   : > { %275 = vst [vmem:[%s507_s25 + $0x1c0] sm:$0xff] %v274_v15  ;;  %277 = vst [vmem:[%s507_s25 + $0x1e0] sm:$0xff] %v276_v16 }
  0x2c   : > { %279 = vst [vmem:[%s507_s25 + $0x200] sm:$0xff] %v278_v17  ;;  %281 = vst [vmem:[%s507_s25 + $0x220] sm:$0xff] %v280_v18 }
  0x2d   : > { %283 = vst [vmem:[%s507_s25 + $0x240] sm:$0xff] %v282_v19  ;;  %285 = vst [vmem:[%s507_s25 + $0x260] sm:$0xff] %v284_v20 }
  0x2e   : > { %287 = vst [vmem:[%s507_s25 + $0x280] sm:$0xff] %v286_v21  ;;  %289 = vst [vmem:[%s507_s25 + $0x2a0] sm:$0xff] %v288_v22 }
  0x2f   : > { %291 = vst [vmem:[%s507_s25 + $0x2c0] sm:$0xff] %v290_v23  ;;  %293 = vst [vmem:[%s507_s25 + $0x2e0] sm:$0xff] %v292_v24 }
  0x30   : > { %295 = vst [vmem:[%s507_s25 + $0x300] sm:$0xff] %v294_v25  ;;  %297 = vst [vmem:[%s507_s25 + $0x320] sm:$0xff] %v296_v26 }
  0x31   : > { %299 = vst [vmem:[%s507_s25 + $0x340] sm:$0xff] %v298_v27  ;;  %301 = vst [vmem:[%s507_s25 + $0x360] sm:$0xff] %v300_v28 }
  0x32   : > { %303 = vst [vmem:[%s507_s25 + $0x380] sm:$0xff] %v302_v29  ;;  %305 = vst [vmem:[%s507_s25 + $0x3a0] sm:$0xff] %v304_v30 }
  0x33   : > { %307 = vst [vmem:[%s507_s25 + $0x3c0] sm:$0xff] %v306_v31  ;;  %309 = vst [vmem:[%s507_s25 + $0x3e0] sm:$0xff] %v308_v32 }
  0x34 PF: > { %p8_p8 = scmp.ge.s32.totalorder %s446_s10, 4   ;;  %s583_s6 = smov %s417_s7 }
  0x35   : > { %s584_s7 = smov %s453_s13  ;;  %s585_s8 = smov %s446_s10 }
  0x36   :  { %10 = sbr.rel (!%p8_p8) target bundleno = 2 (0x2), region = 92 }

// kernel: _lambda_.8
= control target key start
LH: loop header
LB: loop body
LE: loop exit
PB: predicated region body
PF: predicated region fallthrough
CT: control target
= control target key end

     0   :  { %s1071_s15 = smov 0   ;;  %s1073_s16 = smov 0   ;;  %s1300_s0 = inlined_call_operand.vmem [shape: bf16[512,128], index: 0, kind: input, shape index: {}]   ;;  %s1301_s1 = inlined_call_operand.vmem [shape: bf16[128,128], index: 1, kind: input, shape index: {}]   ;;  %s1302_s2 = inlined_call_operand.vmem [shape: f32[1,128], index: 2, kind: input, shape index: {}]   ;;  %s1303_s3 = inlined_call_operand.vmem [shape: f32[512,512], index: 3, kind: input, shape index: {}, may-alias: {3,4}]   ;;  %s1304_s4 = inlined_call_operand.vmem [shape: f32[512,512], index: 4, kind: output, shape index: {}, may-alias: {3,4}]  }
   0x1   :  { %s1075_s17 = smov 0  }
   0x2 LB: > { %s1084_s3 = sadd.s32 4294967295, %s1044_s17   ;;  %s1086_s18 = sadd.s32 1, %s1044_s17   ;;  %s1044_s17 = sphi %s1075_s17, %s1308_s17   ;;  %s1040_s16 = sphi %s1073_s16, %s1307_s16   ;;  %s1036_s15 = sphi %s1071_s15, %s1306_s15  }
   0x3   : > { %s86_s19 = ssub.s32 %s1044_s17, %s1086_s18  ;;  %s89_s20 = sadd.s32 1, %s1040_s16 }
   0x4   : > { %p87_p0 = scmp.eq.s32.totalorder %s86_s19, 0  ;;  %p99_p1 = scmp.ne.s32.totalorder %s1040_s16, %s1036_s15 }
   0x5   : > { %p100_p2 = scmp.eq.s32.totalorder %s1084_s3, 1  ;;  %p819_p3 = scmp.ge.s32.totalorder %s1044_s17, 1 }
   0x6   : > { %s1094_s21 = scalar_select %p87_p0, %s1040_s16, %s89_s20  }
   0x7   : > { %p1096_p4 = por %p100_p2, %p99_p1  ;;  %p139_p5 = scmp.lt.s32.totalorder %s1044_s17, 3 }
   0x9   : > { %p140_p6 = pnand %p819_p3, %p139_p5 }
   0xa   : > { %s821_s25 = sshll.u32 (!%p140_p6), %s1084_s3, 5  ;;  %s159_s23 = sand.u32 (!%p140_p6), 1, %s1036_s15  }
   0xb   : > { %143 = sbr.rel (%p140_p6) target bundleno = 286 (0x11e), region = 32  ;;  %p163_p7 = scmp.lt.s32.totalorder (!%p140_p6), %s821_s25, 63 }
   0xc   : > { %s820_s26 = sshll.u32 (!%p140_p6), %s159_s23, 8 }
   0xd   : > { %s1156_s15 = scalar_lea.vmem (!%p140_p6), [#allocation2], %s820_s26 }
  0x10   : > { %v998_v0 = vld [vmem:[%s1301_s1 + $0x38] sm:$0xff]   ;;  %v999_v1 = vld [vmem:[%s1301_s1 + $0x30] sm:$0xff]   ;;  %s1310_s25 = smov (!%p163_p7, %s821_s25), 63  ;;  %v1000_v2 = vld [vmem:[%s1301_s1 + $0x28] sm:$0xff]   ;;  %s885_s27 = sshll.u32 (%p1096_p4), %s1084_s3, 10 }
  0x11   : > { %910 = vmatprep.subr.bf16.mxu0 %v998_v0  ;;  %958 = vmatprep.subr.bf16.mxu1 %v998_v0  ;;  %s822_s30 = sshll.u32 %s1310_s25, 2  ;;  %v1001_v3 = vld [vmem:[%s1301_s1 + $0x20] sm:$0xff]   ;;  %v1002_v6 = vld [vmem:[%s1301_s1 + $0x18] sm:$0xff]   ;;  %v1003_v7 = vld [vmem:[%s1301_s1 + $0x10] sm:$0xff]  }
  0x12   : > { %911 = vmatpush3.bf16.msra.mxu0 %v998_v0  ;;  %966 = vmatpush3.bf16.msra.mxu1 %v998_v0  ;;  %s1113_s7 = scalar_lea.vmem %s1300_s0, %s822_s30  ;;  %v1004_v8 = vld [vmem:[%s1301_s1 + $0x8] sm:$0xff]   ;;  %v1005_v9 = vld [vmem:[%s1301_s1] sm:$0xff]   ;;  %s1227_s30 = scalar_lea.vmem (%p1096_p4), %s1304_s4, %s885_s27 }
  0x13   : > { %912 = vmatprep.subr.bf16.mxu0 %v999_v1  ;;  %959 = vmatprep.subr.bf16.mxu1 %v999_v1  ;;  %v1006_v4 = vld [vmem:[%s1113_s7] sm:$0xff]   ;;  %v1008_v10 = vld [vmem:[%s1113_s7 + $0x8] sm:$0xff]   ;;  %v1010_v12 = vld [vmem:[%s1113_s7 + $0x10] sm:$0xff]  }
  0x14   : > { %v1007_v5 = vld [vmem:[%s1113_s7 + $0x40] sm:$0xff]   ;;  %926 = vmatprep.mubr.bf16.mxu0 %v1006_v4  ;;  %v1009_v11 = vld [vmem:[%s1113_s7 + $0x48] sm:$0xff]   ;;  %v1011_v13 = vld [vmem:[%s1113_s7 + $0x50] sm:$0xff]  }
  0x15   : > { %942 = vmatprep.mubr.bf16.mxu1 %v1007_v5  ;;  %v1012_v14 = vld [vmem:[%s1113_s7 + $0x18] sm:$0xff]   ;;  %v1014_v16 = vld [vmem:[%s1113_s7 + $0x20] sm:$0xff]   ;;  %v1016_v18 = vld [vmem:[%s1113_s7 + $0x28] sm:$0xff]  }
  0x16   : > { %913 = vmatpush3.bf16.msra.mxu0 %v999_v1  ;;  %967 = vmatpush3.bf16.msra.mxu1 %v999_v1  ;;  %v1013_v15 = vld [vmem:[%s1113_s7 + $0x58] sm:$0xff]   ;;  %v1015_v17 = vld [vmem:[%s1113_s7 + $0x60] sm:$0xff]   ;;  %v1017_v19 = vld [vmem:[%s1113_s7 + $0x68] sm:$0xff]  }
  0x17   : > { %914 = vmatprep.subr.bf16.mxu0 %v1000_v2  ;;  %960 = vmatprep.subr.bf16.mxu1 %v1000_v2  ;;  %v1018_v20 = vld [vmem:[%s1113_s7 + $0x30] sm:$0xff]   ;;  %v1020_v22 = vld [vmem:[%s1113_s7 + $0x38] sm:$0xff]   ;;  %v1150_v24 = vld [vmem:[%s1302_s2] ss:$0 sm:$0xff] }
  0x18   : > { %v1019_v21 = vld [vmem:[%s1113_s7 + $0x70] sm:$0xff]   ;;  %v1021_v23 = vld [vmem:[%s1113_s7 + $0x78] sm:$0xff]  }
  0x1a   : > { %915 = vmatpush3.bf16.msra.mxu0 %v1000_v2  ;;  %968 = vmatpush3.bf16.msra.mxu1 %v1000_v2 }
  0x1b   : > { %916 = vmatprep.subr.bf16.mxu0 %v1001_v3  ;;  %961 = vmatprep.subr.bf16.mxu1 %v1001_v3 }
  0x1e   : > { %917 = vmatpush3.bf16.msra.mxu0 %v1001_v3  ;;  %969 = vmatpush3.bf16.msra.mxu1 %v1001_v3 }
  0x1f   : > { %918 = vmatprep.subr.bf16.mxu0 %v1002_v6  ;;  %962 = vmatprep.subr.bf16.mxu1 %v1002_v6 }
  0x22   : > { %919 = vmatpush3.bf16.msra.mxu0 %v1002_v6  ;;  %970 = vmatpush3.bf16.msra.mxu1 %v1002_v6 }
  0x23   : > { %920 = vmatprep.subr.bf16.mxu0 %v1003_v7  ;;  %963 = vmatprep.subr.bf16.mxu1 %v1003_v7 }
  0x26   : > { %921 = vmatpush3.bf16.msra.mxu0 %v1003_v7  ;;  %971 = vmatpush3.bf16.msra.mxu1 %v1003_v7 }
  0x27   : > { %922 = vmatprep.subr.bf16.mxu0 %v1004_v8  ;;  %964 = vmatprep.subr.bf16.mxu1 %v1004_v8 }
  0x2a   : > { %923 = vmatpush3.bf16.msra.mxu0 %v1004_v8  ;;  %972 = vmatpush3.bf16.msra.mxu1 %v1004_v8 }
  0x2b   : > { %924 = vmatprep.subr.bf16.mxu0 %v1005_v9  ;;  %965 = vmatprep.subr.bf16.mxu1 %v1005_v9 }
  0x2e   : > { %925 = vmatpush3.bf16.msra.mxu0 %v1005_v9  ;;  %973 = vmatpush3.bf16.msra.mxu1 %v1005_v9 }
  0x31   : > { %927 = vmatmul.mubr.bf16.vlgmr.msra.gmra.mxu0 %v1008_v10  ;;  %943 = vmatmul.mubr.bf16.vlgmr.msra.gmra.mxu1 %v1009_v11 }
  0x32   : > { %930 = vmatprep.mubr.bf16.mxu0 %v1010_v12  ;;  %946 = vmatprep.mubr.bf16.mxu1 %v1011_v13 }
  0x39   : > { %931 = vmatmul.mubr.bf16.gmra.mxu0 %v1012_v14  ;;  %947 = vmatmul.mubr.bf16.gmra.mxu1 %v1013_v15 }
  0x3a   : > { %934 = vmatprep.mubr.bf16.mxu0 %v1014_v16  ;;  %950 = vmatprep.mubr.bf16.mxu1 %v1015_v17 }
  0x41   : > { %935 = vmatmul.mubr.bf16.gmra.mxu0 %v1016_v18  ;;  %951 = vmatmul.mubr.bf16.gmra.mxu1 %v1017_v19 }
  0x42   : > { %938 = vmatprep.mubr.bf16.mxu0 %v1018_v20  ;;  %954 = vmatprep.mubr.bf16.mxu1 %v1019_v21 }
  0x49   : > { %939 = vmatmul.mubr.bf16.gmra.mxu0 %v1020_v22  ;;  %955 = vmatmul.mubr.bf16.gmra.mxu1 %v1021_v23 }
  0xf1   : > { %v928_v25 = vpop.f32.mrf.mxu0  ;;  %v944_v26 = vpop.f32.mrf.mxu1 }
  0xf2   : > { %v412_v27 = vadd.f32 %v928_v25, %v1150_v24  ;;  %v476_v28 = vadd.f32 %v944_v26, %v1150_v24 }
  0xf3   : > { %v403_v29 = vpop.f32.mrf.mxu0  ;;  %v467_v30 = vpop.f32.mrf.mxu1 }
  0xf4   : > { %v532_v31 = vmax.f32 %v412_v27, 0.0  ;;  %v548_v32 = vmax.f32 %v476_v28, 0.0  ;;  %v404_v33 = vadd.f32 %v1150_v24, %v403_v29  ;;  %v468_v34 = vadd.f32 %v1150_v24, %v467_v30 }
  0xf5   : > { %v929_v35 = vpop.f32.mrf.mxu0  ;;  %v945_v36 = vpop.f32.mrf.mxu1 }
  0xf6   : > { %564 = vst [vmem:[%s1156_s15 + $0x10] sm:$0xff] %v532_v31  ;;  %580 = vst [vmem:[%s1156_s15 + $0x90] sm:$0xff] %v548_v32  ;;  %v530_v37 = vmax.f32 %v404_v33, 0.0  ;;  %v546_v38 = vmax.f32 %v468_v34, 0.0  ;;  %v415_v39 = vadd.f32 %v929_v35, %v1150_v24  ;;  %v479_v40 = vadd.f32 %v945_v36, %v1150_v24 }
  0xf7   : > { %v406_v41 = vpop.f32.mrf.mxu0  ;;  %v470_v42 = vpop.f32.mrf.mxu1 }
  0xf8   : > { %562 = vst [vmem:[%s1156_s15] sm:$0xff] %v530_v37  ;;  %578 = vst [vmem:[%s1156_s15 + $0x80] sm:$0xff] %v546_v38  ;;  %v533_v43 = vmax.f32 %v415_v39, 0.0  ;;  %v549_v44 = vmax.f32 %v479_v40, 0.0  ;;  %v407_v45 = vadd.f32 %v1150_v24, %v406_v41  ;;  %v471_v46 = vadd.f32 %v1150_v24, %v470_v42 }
  0xf9   : > { %v932_v47 = vpop.f32.mrf.mxu0  ;;  %v948_v48 = vpop.f32.mrf.mxu1 }
  0xfa   : > { %565 = vst [vmem:[%s1156_s15 + $0x18] sm:$0xff] %v533_v43  ;;  %581 = vst [vmem:[%s1156_s15 + $0x98] sm:$0xff] %v549_v44  ;;  %v531_v49 = vmax.f32 %v407_v45, 0.0  ;;  %v547_v50 = vmax.f32 %v471_v46, 0.0  ;;  %v428_v51 = vadd.f32 %v932_v47, %v1150_v24  ;;  %v492_v52 = vadd.f32 %v948_v48, %v1150_v24 }
  0xfb   : > { %v419_v53 = vpop.f32.mrf.mxu0  ;;  %v483_v54 = vpop.f32.mrf.mxu1 }
  0xfc   : > { %563 = vst [vmem:[%s1156_s15 + $0x8] sm:$0xff] %v531_v49  ;;  %579 = vst [vmem:[%s1156_s15 + $0x88] sm:$0xff] %v547_v50  ;;  %v536_v55 = vmax.f32 %v428_v51, 0.0  ;;  %v552_v56 = vmax.f32 %v492_v52, 0.0  ;;  %v420_v57 = vadd.f32 %v1150_v24, %v419_v53  ;;  %v484_v58 = vadd.f32 %v1150_v24, %v483_v54 }
  0xfd   : > { %v933_v59 = vpop.f32.mrf.mxu0  ;;  %v949_v60 = vpop.f32.mrf.mxu1 }
  0xfe   : > { %568 = vst [vmem:[%s1156_s15 + $0x30] sm:$0xff] %v536_v55  ;;  %584 = vst [vmem:[%s1156_s15 + $0xb0] sm:$0xff] %v552_v56  ;;  %v534_v61 = vmax.f32 %v420_v57, 0.0  ;;  %v550_v62 = vmax.f32 %v484_v58, 0.0  ;;  %v431_v63 = vadd.f32 %v933_v59, %v1150_v24  ;;  %v495_v0 = vadd.f32 %v949_v60, %v1150_v24  ;;  %v700_v59 = vld [vmem:[%s1156_s15 + $0x10] sm:$0xff] (%p1096_p4) }
  0xff   : > { %v422_v1 = vpop.f32.mrf.mxu0  ;;  %v486_v2 = vpop.f32.mrf.mxu1  ;;  %853 = vst [vmem:[%s1227_s30 + $0x48] sm:$0xff] (%p1096_p4), %v700_v59 }
 0x100   : > { %566 = vst [vmem:[%s1156_s15 + $0x20] sm:$0xff] %v534_v61  ;;  %582 = vst [vmem:[%s1156_s15 + $0xa0] sm:$0xff] %v550_v62  ;;  %v537_v3 = vmax.f32 %v431_v63, 0.0  ;;  %v553_v4 = vmax.f32 %v495_v0, 0.0  ;;  %v423_v5 = vadd.f32 %v1150_v24, %v422_v1  ;;  %v487_v6 = vadd.f32 %v1150_v24, %v486_v2 }
 0x101   : > { %v936_v7 = vpop.f32.mrf.mxu0  ;;  %v952_v8 = vpop.f32.mrf.mxu1  ;;  %v702_v60 = vld [vmem:[%s1156_s15 + $0x18] sm:$0xff] (%p1096_p4) }
 0x102   : > { %569 = vst [vmem:[%s1156_s15 + $0x38] sm:$0xff] %v537_v3  ;;  %585 = vst [vmem:[%s1156_s15 + $0xb8] sm:$0xff] %v553_v4  ;;  %v535_v9 = vmax.f32 %v423_v5, 0.0  ;;  %v551_v10 = vmax.f32 %v487_v6, 0.0  ;;  %v444_v11 = vadd.f32 %v936_v7, %v1150_v24  ;;  %v508_v12 = vadd.f32 %v952_v8, %v1150_v24 }
 0x103   : > { %v435_v13 = vpop.f32.mrf.mxu0  ;;  %v499_v14 = vpop.f32.mrf.mxu1  ;;  %v698_v58 = vld [vmem:[%s1156_s15 + $0x8] sm:$0xff] (%p1096_p4)  ;;  %854 = vst [vmem:[%s1227_s30 + $0x68] sm:$0xff] (%p1096_p4), %v702_v60 }
 0x104   : > { %567 = vst [vmem:[%s1156_s15 + $0x28] sm:$0xff] %v535_v9  ;;  %583 = vst [vmem:[%s1156_s15 + $0xa8] sm:$0xff] %v551_v10  ;;  %v540_v15 = vmax.f32 %v444_v11, 0.0  ;;  %v556_v16 = vmax.f32 %v508_v12, 0.0  ;;  %v436_v17 = vadd.f32 %v1150_v24, %v435_v13  ;;  %v500_v18 = vadd.f32 %v1150_v24, %v499_v14  ;;  %v728_v9 = vld [vmem:[%s1156_s15 + $0x80] sm:$0xff] (%p1096_p4)  ;;  %v730_v10 = vld [vmem:[%s1156_s15 + $0x88] sm:$0xff] (%p1096_p4) }
 0x105   : > { %v937_v19 = vpop.f32.mrf.mxu0  ;;  %v953_v20 = vpop.f32.mrf.mxu1  ;;  %852 = vst [vmem:[%s1227_s30 + $0x28] sm:$0xff] (%p1096_p4), %v698_v58  ;;  %v708_v63 = vld [vmem:[%s1156_s15 + $0x30] sm:$0xff] (%p1096_p4)  ;;  %867 = vst [vmem:[%s1227_s30 + $0x208] sm:$0xff] (%p1096_p4), %v728_v9  ;;  %v734_v12 = vld [vmem:[%s1156_s15 + $0x98] sm:$0xff] (%p1096_p4) }
 0x106   : > { %572 = vst [vmem:[%s1156_s15 + $0x50] sm:$0xff] %v540_v15  ;;  %588 = vst [vmem:[%s1156_s15 + $0xd0] sm:$0xff] %v556_v16  ;;  %v538_v21 = vmax.f32 %v436_v17, 0.0  ;;  %v554_v22 = vmax.f32 %v500_v18, 0.0  ;;  %v447_v23 = vadd.f32 %v937_v19, %v1150_v24  ;;  %v511_v25 = vadd.f32 %v953_v20, %v1150_v24  ;;  %v732_v11 = vld [vmem:[%s1156_s15 + $0x90] sm:$0xff] (%p1096_p4) }
 0x107   : > { %v438_v26 = vpop.f32.mrf.mxu0  ;;  %v502_v27 = vpop.f32.mrf.mxu1  ;;  %v704_v61 = vld [vmem:[%s1156_s15 + $0x20] sm:$0xff] (%p1096_p4)  ;;  %857 = vst [vmem:[%s1227_s30 + $0xc8] sm:$0xff] (%p1096_p4), %v708_v63  ;;  %868 = vst [vmem:[%s1227_s30 + $0x228] sm:$0xff] (%p1096_p4), %v730_v10  ;;  %v740_v15 = vld [vmem:[%s1156_s15 + $0xb0] sm:$0xff] (%p1096_p4) }
 0x108   : > { %570 = vst [vmem:[%s1156_s15 + $0x40] sm:$0xff] %v538_v21  ;;  %586 = vst [vmem:[%s1156_s15 + $0xc0] sm:$0xff] %v554_v22  ;;  %v541_v28 = vmax.f32 %v447_v23, 0.0  ;;  %v557_v29 = vmax.f32 %v511_v25, 0.0  ;;  %v439_v30 = vadd.f32 %v1150_v24, %v438_v26  ;;  %v503_v31 = vadd.f32 %v1150_v24, %v502_v27  ;;  %v736_v13 = vld [vmem:[%s1156_s15 + $0xa0] sm:$0xff] (%p1096_p4) }
 0x109   : > { %v940_v32 = vpop.f32.mrf.mxu0  ;;  %v956_v33 = vpop.f32.mrf.mxu1  ;;  %855 = vst [vmem:[%s1227_s30 + $0x88] sm:$0xff] (%p1096_p4), %v704_v61  ;;  %v710_v0 = vld [vmem:[%s1156_s15 + $0x38] sm:$0xff] (%p1096_p4)  ;;  %869 = vst [vmem:[%s1227_s30 + $0x248] sm:$0xff] (%p1096_p4), %v732_v11 }
 0x10a   : > { %573 = vst [vmem:[%s1156_s15 + $0x58] sm:$0xff] %v541_v28  ;;  %589 = vst [vmem:[%s1156_s15 + $0xd8] sm:$0xff] %v557_v29  ;;  %v539_v34 = vmax.f32 %v439_v30, 0.0  ;;  %v555_v35 = vmax.f32 %v503_v31, 0.0  ;;  %v460_v36 = vadd.f32 %v940_v32, %v1150_v24  ;;  %v524_v37 = vadd.f32 %v956_v33, %v1150_v24  ;;  %v742_v16 = vld [vmem:[%s1156_s15 + $0xb8] sm:$0xff] (%p1096_p4) }
 0x10b   : > { %v451_v38 = vpop.f32.mrf.mxu0  ;;  %v515_v39 = vpop.f32.mrf.mxu1  ;;  %v706_v62 = vld [vmem:[%s1156_s15 + $0x28] sm:$0xff] (%p1096_p4)  ;;  %858 = vst [vmem:[%s1227_s30 + $0xe8] sm:$0xff] (%p1096_p4), %v710_v0  ;;  %870 = vst [vmem:[%s1227_s30 + $0x268] sm:$0xff] (%p1096_p4), %v734_v12 }
 0x10c   : > { %571 = vst [vmem:[%s1156_s15 + $0x48] sm:$0xff] %v539_v34  ;;  %587 = vst [vmem:[%s1156_s15 + $0xc8] sm:$0xff] %v555_v35  ;;  %v544_v40 = vmax.f32 %v460_v36, 0.0  ;;  %v560_v41 = vmax.f32 %v524_v37, 0.0  ;;  %v452_v42 = vadd.f32 %v1150_v24, %v451_v38  ;;  %v516_v43 = vadd.f32 %v1150_v24, %v515_v39  ;;  %v738_v14 = vld [vmem:[%s1156_s15 + $0xa8] sm:$0xff] (%p1096_p4) }
 0x10d   : > { %v941_v44 = vpop.f32.mrf.mxu0  ;;  %v957_v45 = vpop.f32.mrf.mxu1  ;;  %856 = vst [vmem:[%s1227_s30 + $0xa8] sm:$0xff] (%p1096_p4), %v706_v62  ;;  %v716_v3 = vld [vmem:[%s1156_s15 + $0x50] sm:$0xff] (%p1096_p4)  ;;  %871 = vst [vmem:[%s1227_s30 + $0x288] sm:$0xff] (%p1096_p4), %v736_v13 }
 0x10e   : > { %576 = vst [vmem:[%s1156_s15 + $0x70] sm:$0xff] %v544_v40  ;;  %592 = vst [vmem:[%s1156_s15 + $0xf0] sm:$0xff] %v560_v41  ;;  %v542_v46 = vmax.f32 %v452_v42, 0.0  ;;  %v558_v47 = vmax.f32 %v516_v43, 0.0  ;;  %v463_v48 = vadd.f32 %v941_v44, %v1150_v24  ;;  %v527_v49 = vadd.f32 %v957_v45, %v1150_v24  ;;  %v748_v19 = vld [vmem:[%s1156_s15 + $0xd0] sm:$0xff] (%p1096_p4) }
 0x10f   : > { %v454_v50 = vpop.f32.mrf.mxu0  ;;  %v518_v51 = vpop.f32.mrf.mxu1  ;;  %v712_v1 = vld [vmem:[%s1156_s15 + $0x40] sm:$0xff] (%p1096_p4)  ;;  %861 = vst [vmem:[%s1227_s30 + $0x148] sm:$0xff] (%p1096_p4), %v716_v3  ;;  %872 = vst [vmem:[%s1227_s30 + $0x2a8] sm:$0xff] (%p1096_p4), %v738_v14 }
 0x110   : > { %574 = vst [vmem:[%s1156_s15 + $0x60] sm:$0xff] %v542_v46  ;;  %590 = vst [vmem:[%s1156_s15 + $0xe0] sm:$0xff] %v558_v47  ;;  %v545_v52 = vmax.f32 %v463_v48, 0.0  ;;  %v561_v53 = vmax.f32 %v527_v49, 0.0  ;;  %v455_v54 = vadd.f32 %v1150_v24, %v454_v50  ;;  %v519_v55 = vadd.f32 %v1150_v24, %v518_v51  ;;  %600 = sbr.rel (!%p1096_p4) target bundleno = 286 (0x11e), region = 36  ;;  %v696_v24 = vld [vmem:[%s1156_s15] sm:$0xff] (%p1096_p4) }
 0x111   : > { %851 = vst [vmem:[%s1227_s30 + $0x8] sm:$0xff] (%p1096_p4), %v696_v24  ;;  %859 = vst [vmem:[%s1227_s30 + $0x108] sm:$0xff] (%p1096_p4), %v712_v1  ;;  %v718_v4 = vld [vmem:[%s1156_s15 + $0x58] sm:$0xff] (%p1096_p4)  ;;  %v744_v17 = vld [vmem:[%s1156_s15 + $0xc0] sm:$0xff] (%p1096_p4) }
 0x112   : > { %577 = vst [vmem:[%s1156_s15 + $0x78] sm:$0xff] %v545_v52  ;;  %593 = vst [vmem:[%s1156_s15 + $0xf8] sm:$0xff] %v561_v53  ;;  %v543_v56 = vmax.f32 %v455_v54, 0.0  ;;  %v559_v57 = vmax.f32 %v519_v55, 0.0  ;;  %v750_v20 = vld [vmem:[%s1156_s15 + $0xd8] sm:$0xff] (%p1096_p4) }
 0x113   : > { %v714_v2 = vld [vmem:[%s1156_s15 + $0x48] sm:$0xff] (%p1096_p4)  ;;  %862 = vst [vmem:[%s1227_s30 + $0x168] sm:$0xff] (%p1096_p4), %v718_v4  ;;  %873 = vst [vmem:[%s1227_s30 + $0x2c8] sm:$0xff] (%p1096_p4), %v740_v15 }
 0x114   : > { %575 = vst [vmem:[%s1156_s15 + $0x68] sm:$0xff] %v543_v56  ;;  %591 = vst [vmem:[%s1156_s15 + $0xe8] sm:$0xff] %v559_v57  ;;  %v746_v18 = vld [vmem:[%s1156_s15 + $0xc8] sm:$0xff] (%p1096_p4) }
 0x115   : > { %860 = vst [vmem:[%s1227_s30 + $0x128] sm:$0xff] %v714_v2  ;;  %v724_v7 = vld [vmem:[%s1156_s15 + $0x70] sm:$0xff]  ;;  %874 = vst [vmem:[%s1227_s30 + $0x2e8] sm:$0xff] %v742_v16 }
 0x116   : > { %865 = vst [vmem:[%s1227_s30 + $0x1c8] sm:$0xff] %v724_v7  ;;  %875 = vst [vmem:[%s1227_s30 + $0x308] sm:$0xff] %v744_v17  ;;  %v756_v23 = vld [vmem:[%s1156_s15 + $0xf0] sm:$0xff] }
 0x117   : > { %v720_v5 = vld [vmem:[%s1156_s15 + $0x60] sm:$0xff]  ;;  %876 = vst [vmem:[%s1227_s30 + $0x328] sm:$0xff] %v746_v18  ;;  %877 = vst [vmem:[%s1227_s30 + $0x348] sm:$0xff] %v748_v19 }
 0x118   : > { %863 = vst [vmem:[%s1227_s30 + $0x188] sm:$0xff] %v720_v5  ;;  %v752_v21 = vld [vmem:[%s1156_s15 + $0xe0] sm:$0xff]  ;;  %878 = vst [vmem:[%s1227_s30 + $0x368] sm:$0xff] %v750_v20 }
 0x119   : > { %v726_v8 = vld [vmem:[%s1156_s15 + $0x78] sm:$0xff]  ;;  %879 = vst [vmem:[%s1227_s30 + $0x388] sm:$0xff] %v752_v21  ;;  %881 = vst [vmem:[%s1227_s30 + $0x3c8] sm:$0xff] %v756_v23 }
 0x11a   : > { %866 = vst [vmem:[%s1227_s30 + $0x1e8] sm:$0xff] %v726_v8  ;;  %v758_v25 = vld [vmem:[%s1156_s15 + $0xf8] sm:$0xff] }
 0x11b   : > { %v722_v6 = vld [vmem:[%s1156_s15 + $0x68] sm:$0xff]  ;;  %882 = vst [vmem:[%s1227_s30 + $0x3e8] sm:$0xff] %v758_v25 }
 0x11c   : > { %864 = vst [vmem:[%s1227_s30 + $0x1a8] sm:$0xff] %v722_v6  ;;  %v754_v22 = vld [vmem:[%s1156_s15 + $0xe8] sm:$0xff] }
 0x11d   : > { %880 = vst [vmem:[%s1227_s30 + $0x3a8] sm:$0xff] %v754_v22 }
 0x11e PF: > { %p11_p8 = scmp.ge.s32.totalorder %s1086_s18, 4   ;;  %s1306_s15 = smov %s1040_s16 }
 0x11f   : > { %s1307_s16 = smov %s1094_s21  ;;  %s1308_s17 = smov %s1086_s18 }
 0x120   :  { %13 = sbr.rel (!%p11_p8) target bundleno = 2 (0x2), region = 100 }

// kernel: _lambda_.6
= control target key start
LH: loop header
LB: loop body
LE: loop exit
PB: predicated region body
PF: predicated region fallthrough
CT: control target
= control target key end

     0   :  { %s811_s12 = smov 0   ;;  %s813_s13 = smov 0   ;;  %s928_s0 = inlined_call_operand.vmem [shape: bf16[2,256,128], index: 0, kind: input, shape index: {}]   ;;  %s929_s1 = inlined_call_operand.vmem [shape: bf16[128,128], index: 1, kind: input, shape index: {}]   ;;  %s930_s2 = inlined_call_operand.vmem [shape: f32[1,128], index: 2, kind: input, shape index: {}]   ;;  %s931_s3 = inlined_call_operand.vmem [shape: f32[2,128], index: 3, kind: output, shape index: {}]  }
   0x1   :  { %s815_s14 = smov 0  }
   0x2 LB: > { %s599_s15 = sadd.s32 4294967295, %s786_s14   ;;  %s828_s16 = sadd.s32 1, %s786_s14   ;;  %s786_s14 = sphi %s815_s14, %s934_s14   ;;  %s782_s13 = sphi %s813_s13, %s933_s13   ;;  %s778_s12 = sphi %s811_s12, %s932_s12  }
   0x3   : > { %s17_s17 = ssub.s32 %s786_s14, %s828_s16  ;;  %s20_s18 = sadd.s32 1, %s782_s13 }
   0x4   : > { %p18_p0 = scmp.eq.s32.totalorder %s17_s17, 0  ;;  %p27_p1 = scmp.ne.s32.totalorder %s782_s13, %s778_s12 }
   0x5   : > { %p28_p2 = scmp.eq.s32.totalorder %s786_s14, 0  ;;  %p601_p4 = scmp.ge.s32.totalorder %s786_s14, 2 }
   0x6   : > { %s837_s19 = scalar_select %p18_p0, %s782_s13, %s20_s18  }
   0x7   : > { %p29_p3 = por %p28_p2, %p27_p1  ;;  %122 = sbr.rel (%p601_p4) target bundleno = 24 (0x18), region = 24 }
   0xc   : > { %125 = sbr.rel (!%p29_p3) target bundleno = 24 (0x18), region = 28  ;;  %s127_s20 = sand.u32 (%p29_p3), 1, %s782_s13  }
   0xd   : > { %s620_s21 = sshll.u32 (%p29_p3), %s786_s14, 6  ;;  %s602_s22 = sshll.u32 (%p29_p3), %s127_s20, 7 }
   0xe   : > { %s845_s25 = scalar_lea.vmem (%p29_p3), %s928_s0, %s620_s21  ;;  %s129_s26 = scalar_lea.vmem (%p29_p3), [#allocation3], %s602_s22 }
   0xf   : > { %v149_v0 = vld [vmem:[%s845_s25] sm:$0xff] (%p29_p3)   ;;  %v153_v1 = vld [vmem:[%s845_s25 + $0x8] sm:$0xff] (%p29_p3)   ;;  %v157_v2 = vld [vmem:[%s845_s25 + $0x10] sm:$0xff] (%p29_p3)  }
  0x10   : > { %150 = vst [vmem:[%s129_s26] sm:$0xff] (%p29_p3), %v149_v0   ;;  %154 = vst [vmem:[%s129_s26 + $0x8] sm:$0xff] (%p29_p3), %v153_v1   ;;  %v161_v3 = vld [vmem:[%s845_s25 + $0x18] sm:$0xff] (%p29_p3)   ;;  %v165_v4 = vld [vmem:[%s845_s25 + $0x20] sm:$0xff] (%p29_p3)  }
  0x11   : > { %158 = vst [vmem:[%s129_s26 + $0x10] sm:$0xff] %v157_v2   ;;  %v169_v5 = vld [vmem:[%s845_s25 + $0x28] sm:$0xff]   ;;  %162 = vst [vmem:[%s129_s26 + $0x18] sm:$0xff] %v161_v3   ;;  %v173_v6 = vld [vmem:[%s845_s25 + $0x30] sm:$0xff]  }
  0x12   : > { %166 = vst [vmem:[%s129_s26 + $0x20] sm:$0xff] %v165_v4   ;;  %170 = vst [vmem:[%s129_s26 + $0x28] sm:$0xff] %v169_v5   ;;  %v177_v7 = vld [vmem:[%s845_s25 + $0x38] sm:$0xff]   ;;  %v181_v8 = vld [vmem:[%s845_s25 + $0x80] sm:$0xff]  }
  0x13   : > { %174 = vst [vmem:[%s129_s26 + $0x30] sm:$0xff] %v173_v6   ;;  %178 = vst [vmem:[%s129_s26 + $0x38] sm:$0xff] %v177_v7   ;;  %v185_v9 = vld [vmem:[%s845_s25 + $0x88] sm:$0xff]   ;;  %v189_v10 = vld [vmem:[%s845_s25 + $0x90] sm:$0xff]  }
  0x14   : > { %182 = vst [vmem:[%s129_s26 + $0x40] sm:$0xff] %v181_v8   ;;  %v193_v11 = vld [vmem:[%s845_s25 + $0x98] sm:$0xff]   ;;  %186 = vst [vmem:[%s129_s26 + $0x48] sm:$0xff] %v185_v9   ;;  %v197_v12 = vld [vmem:[%s845_s25 + $0xa0] sm:$0xff]  }
  0x15   : > { %190 = vst [vmem:[%s129_s26 + $0x50] sm:$0xff] %v189_v10   ;;  %194 = vst [vmem:[%s129_s26 + $0x58] sm:$0xff] %v193_v11   ;;  %v201_v13 = vld [vmem:[%s845_s25 + $0xa8] sm:$0xff]   ;;  %v205_v14 = vld [vmem:[%s845_s25 + $0xb0] sm:$0xff]  }
  0x16   : > { %198 = vst [vmem:[%s129_s26 + $0x60] sm:$0xff] %v197_v12   ;;  %202 = vst [vmem:[%s129_s26 + $0x68] sm:$0xff] %v201_v13   ;;  %v209_v15 = vld [vmem:[%s845_s25 + $0xb8] sm:$0xff]  }
  0x17   : > { %206 = vst [vmem:[%s129_s26 + $0x70] sm:$0xff] %v205_v14   ;;  %210 = vst [vmem:[%s129_s26 + $0x78] sm:$0xff] %v209_v15  }
  0x18 PF: > { %p605_p5 = scmp.ge.s32.totalorder %s786_s14, 1  ;;  %p299_p6 = scmp.lt.s32.totalorder %s786_s14, 3 }
  0x1a   : > { %p300_p7 = pnand %p605_p5, %p299_p6 }
  0x1b   : > { %s306_s27 = sand.u32 (!%p300_p7), 1, %s778_s12   ;;  %p607_p8 = scmp.ne.s32.totalorder (!%p300_p7), %s599_s15, 0 }
  0x1c   : > { %303 = sbr.rel (%p300_p7) target bundleno = 322 (0x142), region = 69  ;;  %s606_s28 = sshll.u32 (!%p300_p7), %s306_s27, 7 }
  0x1d   : > { %s866_s29 = scalar_lea.vmem (!%p300_p7), [#allocation3], %s606_s28 }
  0x21   : > { %329 = sbr.rel (%p607_p8) target bundleno = 40 (0x28), region = 77 }
  0x26   : > { %v788_v16 = vmov 0.0  }
  0x27   : > { %330 = vst [vmem:[#allocation2] sm:$0x3] %v788_v16 }
  0x28 PF: > { %v622_v17 = vld [vmem:[%s866_s29] sm:$0xff]   ;;  %v685_v19 = vld [vmem:[%s866_s29 + $0x8] sm:$0xff]   ;;  %v686_v27 = vld [vmem:[%s866_s29 + $0x10] sm:$0xff]   ;;  %vm440_vm0 = vcmask 1041409   ;;  %p608_p9 = scmp.ne.s32.totalorder %s599_s15, 1 }
  0x29   : > { %v692_v18 = vld [vmem:[%s866_s29 + $0x40] sm:$0xff]   ;;  %v693_v20 = vld [vmem:[%s866_s29 + $0x48] sm:$0xff]   ;;  %v623_v21 = vunpack.c.l.bf16 %v622_v17  ;;  %v624_v22 = vunpack.c.h.bf16 %v622_v17  ;;  %v627_v25 = vunpack.c.l.bf16 %v685_v19  ;;  %v694_v28 = vld [vmem:[%s866_s29 + $0x50] sm:$0xff]   ;;  %v628_v29 = vunpack.c.h.bf16 %v685_v19 }
  0x2a   : > { %v655_v23 = vunpack.c.l.bf16 %v692_v18  ;;  %v656_v24 = vunpack.c.h.bf16 %v692_v18  ;;  %v659_v26 = vunpack.c.l.bf16 %v693_v20  ;;  %v660_v30 = vunpack.c.h.bf16 %v693_v20  ;;  %v687_v37 = vld [vmem:[%s866_s29 + $0x18] sm:$0xff]   ;;  %v688_v47 = vld [vmem:[%s866_s29 + $0x20] sm:$0xff]   ;;  %v689_v57 = vld [vmem:[%s866_s29 + $0x28] sm:$0xff]  }
  0x2b   : > { %v396_v31 = vadd.f32 %v624_v22, %v623_v21  ;;  %v631_v33 = vunpack.c.l.bf16 %v686_v27  ;;  %v663_v34 = vunpack.c.l.bf16 %v694_v28  ;;  %v695_v38 = vld [vmem:[%s866_s29 + $0x58] sm:$0xff]   ;;  %v632_v39 = vunpack.c.h.bf16 %v686_v27  ;;  %v696_v48 = vld [vmem:[%s866_s29 + $0x60] sm:$0xff]   ;;  %v697_v58 = vld [vmem:[%s866_s29 + $0x68] sm:$0xff]  }
  0x2c   : > { %v417_v32 = vadd.f32 %v656_v24, %v655_v23  ;;  %v664_v40 = vunpack.c.h.bf16 %v694_v28  ;;  %v635_v43 = vunpack.c.l.bf16 %v687_v37  ;;  %v667_v44 = vunpack.c.l.bf16 %v695_v38  ;;  %v690_v3 = vld [vmem:[%s866_s29 + $0x30] sm:$0xff]   ;;  %v691_v13 = vld [vmem:[%s866_s29 + $0x38] sm:$0xff]  }
  0x2d   : > { %v397_v35 = vadd.f32 %v627_v25, %v396_v31  ;;  %v636_v49 = vunpack.c.h.bf16 %v687_v37  ;;  %v668_v50 = vunpack.c.h.bf16 %v695_v38  ;;  %v639_v53 = vunpack.c.l.bf16 %v688_v47  ;;  %v698_v4 = vld [vmem:[%s866_s29 + $0x70] sm:$0xff]   ;;  %v699_v14 = vld [vmem:[%s866_s29 + $0x78] sm:$0xff]  }
  0x2e   : > { %v418_v36 = vadd.f32 %v659_v26, %v417_v32  ;;  %v671_v54 = vunpack.c.l.bf16 %v696_v48  ;;  %v640_v59 = vunpack.c.h.bf16 %v688_v47  ;;  %v672_v60 = vunpack.c.h.bf16 %v696_v48 }
  0x2f   : > { %v398_v41 = vadd.f32 %v628_v29, %v397_v35  ;;  %v643_v63 = vunpack.c.l.bf16 %v689_v57  ;;  %v675_v0 = vunpack.c.l.bf16 %v697_v58  ;;  %v644_v5 = vunpack.c.h.bf16 %v689_v57 }
  0x30   : > { %v419_v42 = vadd.f32 %v660_v30, %v418_v36  ;;  %v676_v6 = vunpack.c.h.bf16 %v697_v58  ;;  %v647_v9 = vunpack.c.l.bf16 %v690_v3  ;;  %v679_v10 = vunpack.c.l.bf16 %v698_v4 }
  0x31   : > { %v399_v45 = vadd.f32 %v631_v33, %v398_v41  ;;  %v648_v15 = vunpack.c.h.bf16 %v690_v3  ;;  %v680_v16 = vunpack.c.h.bf16 %v698_v4  ;;  %v651_v19 = vunpack.c.l.bf16 %v691_v13  ;;  %v331_v41 = vld [vmem:[#allocation2] sm:$0x3] }
  0x32   : > { %v420_v46 = vadd.f32 %v663_v34, %v419_v42  ;;  %v683_v20 = vunpack.c.l.bf16 %v699_v14  ;;  %v652_v23 = vunpack.c.h.bf16 %v691_v13  ;;  %v684_v24 = vunpack.c.h.bf16 %v699_v14 }
  0x33   : > { %v400_v51 = vadd.f32 %v632_v39, %v399_v45 }
  0x34   : > { %v421_v52 = vadd.f32 %v664_v40, %v420_v46 }
  0x35   : > { %v401_v55 = vadd.f32 %v635_v43, %v400_v51 }
  0x36   : > { %v422_v56 = vadd.f32 %v667_v44, %v421_v52 }
  0x37   : > { %v402_v61 = vadd.f32 %v636_v49, %v401_v55 }
  0x38   : > { %v423_v62 = vadd.f32 %v668_v50, %v422_v56 }
  0x39   : > { %v403_v1 = vadd.f32 %v639_v53, %v402_v61 }
  0x3a   : > { %v424_v2 = vadd.f32 %v671_v54, %v423_v62 }
  0x3b   : > { %v404_v7 = vadd.f32 %v640_v59, %v403_v1 }
  0x3c   : > { %v425_v8 = vadd.f32 %v672_v60, %v424_v2 }
  0x3d   : > { %v405_v11 = vadd.f32 %v643_v63, %v404_v7 }
  0x3e   : > { %v426_v12 = vadd.f32 %v675_v0, %v425_v8 }
  0x3f   : > { %v406_v17 = vadd.f32 %v644_v5, %v405_v11 }
  0x40   : > { %v427_v18 = vadd.f32 %v676_v6, %v426_v12 }
  0x41   : > { %v407_v21 = vadd.f32 %v647_v9, %v406_v17 }
  0x42   : > { %v428_v22 = vadd.f32 %v679_v10, %v427_v18 }
  0x43   : > { %v408_v25 = vadd.f32 %v648_v15, %v407_v21 }
  0x44   : > { %v429_v26 = vadd.f32 %v680_v16, %v428_v22 }
  0x45   : > { %v409_v27 = vadd.f32 %v651_v19, %v408_v25 }
  0x46   : > { %v430_v28 = vadd.f32 %v683_v20, %v429_v26 }
  0x47   : > { %v410_v29 = vadd.f32 %v652_v23, %v409_v27 }
  0x48   : > { %v431_v30 = vadd.f32 %v684_v24, %v430_v28 }
  0x49   : > { %v411_v31 = vrot.slane %v410_v29, 4 }
  0x4a   : > { %v432_v32 = vrot.slane %v431_v30, 4 }
  0x4b   : > { %v412_v33 = vadd.f32 %v411_v31, %v410_v29 }
  0x4c   : > { %v433_v34 = vadd.f32 %v432_v32, %v431_v30 }
  0x4d   : > { %v413_v35 = vrot.slane %v412_v33, 2 }
  0x4e   : > { %v434_v36 = vrot.slane %v433_v34, 2 }
  0x4f   : > { %v414_v37 = vadd.f32 %v413_v35, %v412_v33 }
  0x50   : > { %v435_v38 = vadd.f32 %v434_v36, %v433_v34 }
  0x51   : > { %v415_v39 = vrot.slane %v414_v37, 1 }
  0x52   : > { %v436_v40 = vrot.slane %v435_v38, 1 }
  0x53   : > { %v416_v42 = vadd.f32 %v415_v39, %v414_v37 }
  0x54   : > { %v437_v43 = vadd.f32 %v436_v40, %v435_v38 }
  0x55   : > { %448 = sbr.rel (%p608_p9) target bundleno = 322 (0x142), region = 81 }
  0x56   : > { %v441_v44 = vsel %vm440_vm0, %v437_v43, %v416_v42 }
  0x57   : > { %v443_v45 = vadd.f32 %v441_v44, %v331_v41 }
  0x59   : > { %444 = vst [vmem:[#allocation2] sm:$0x3] %v443_v45 }
  0x5a   : > { %v756_v46 = vld [vmem:[%s929_s1 + $0x38] sm:$0xff]   ;;  %v789_v47 = vmov 0.0   ;;  %v757_v48 = vld [vmem:[%s929_s1 + $0x30] sm:$0xff]   ;;  %vm790_vm1 = vmmov 0   ;;  %v758_v49 = vld [vmem:[%s929_s1 + $0x28] sm:$0xff]  }
  0x5b   : > { %709 = vmatprep.subr.bf16.mxu0 %v789_v47  ;;  %725 = vmatprep.mubr.msk.bf16.mxu0 %vm790_vm1, %v789_v47  ;;  %v759_v50 = vld [vmem:[%s929_s1 + $0x20] sm:$0xff]   ;;  %v760_v51 = vld [vmem:[%s929_s1 + $0x18] sm:$0xff]   ;;  %v761_v52 = vld [vmem:[%s929_s1 + $0x10] sm:$0xff]  }
  0x5c   : > { %710 = vmatpush3.bf16.msra.mxu0 %v756_v46  ;;  %v762_v53 = vld [vmem:[%s929_s1 + $0x8] sm:$0xff]   ;;  %v763_v56 = vld [vmem:[%s929_s1] sm:$0xff]  }
  0x5d   : > { %711 = vmatprep.subr.bf16.mxu0 %v789_v47  ;;  %v609_v58 = vld [vmem:[%s930_s2] ss:$0 sm:$0xff] }
  0x60   : > { %712 = vmatpush3.bf16.msra.mxu0 %v757_v48  ;;  %v449_v54 = vld [vmem:[#allocation2] sm:$0x3] }
  0x61   : > { %713 = vmatprep.subr.bf16.mxu0 %v789_v47  ;;  %v450_v55 = vmul.f32 0.00390625, %v449_v54 }
  0x63   : > { %v451_v57 = vpack.c.bf16 %v450_v55, %v450_v55 }
  0x64   : > { %714 = vmatpush3.bf16.msra.mxu0 %v758_v49 }
  0x65   : > { %715 = vmatprep.subr.bf16.mxu0 %v789_v47 }
  0x68   : > { %716 = vmatpush3.bf16.msra.mxu0 %v759_v50 }
  0x69   : > { %717 = vmatprep.subr.bf16.mxu0 %v789_v47 }
  0x6c   : > { %718 = vmatpush3.bf16.msra.mxu0 %v760_v51 }
  0x6d   : > { %719 = vmatprep.subr.bf16.mxu0 %v789_v47 }
  0x70   : > { %720 = vmatpush3.bf16.msra.mxu0 %v761_v52 }
  0x71   : > { %721 = vmatprep.subr.bf16.mxu0 %v789_v47 }
  0x74   : > { %722 = vmatpush3.bf16.msra.mxu0 %v762_v53 }
  0x75   : > { %723 = vmatprep.subr.bf16.mxu0 %v789_v47 }
  0x78   : > { %724 = vmatpush3.bf16.msra.mxu0 %v763_v56 }
  0x7b   : > { %726 = vmatmul.mubr.bf16.vlgmr.msra.gmra.mxu0 %v451_v57 }
 0x13b   : > { %v557_v59 = vpop.f32.mrf.mxu0 }
 0x13c   : > { %v558_v60 = vadd.f32 %v609_v58, %v557_v59 }
 0x13d   : > { %v727_v61 = vpop.f32.mrf.mxu0 }
 0x13e   : > { %v563_v62 = vmax.f32 %v558_v60, 0.0 }
 0x13f   : > { %v560_v63 = vpop.f32.mrf.mxu0 }
 0x140   : > { %564 = vst [vmem:[%s931_s3] sm:$0x3] %v563_v62 }
 0x141   : > { %v728_v0 = vpop.f32.mrf.mxu0 }
 0x142 PF: > { %p10_p10 = scmp.ge.s32.totalorder %s828_s16, 4   ;;  %s932_s12 = smov %s782_s13 }
 0x143   : > { %s933_s13 = smov %s837_s19  ;;  %s934_s14 = smov %s828_s16 }
 0x144   :  { %12 = sbr.rel (!%p10_p10) target bundleno = 2 (0x2), region = 112 }

// kernel: _lambda_.9
= control target key start
LH: loop header
LB: loop body
LE: loop exit
PB: predicated region body
PF: predicated region fallthrough
CT: control target
= control target key end

     0   :  { %s2250_s21 = smov 0   ;;  %s2252_s22 = smov 0   ;;  %s3413_s0 = inlined_call_operand.vmem [shape: bf16[2,16,16,128], index: 0, kind: input, shape index: {}]   ;;  %s3414_s1 = inlined_call_operand.vmem [shape: f32[9,128], index: 1, kind: input, shape index: {}]   ;;  %s3415_s2 = inlined_call_operand.vmem [shape: f32[1,128], index: 2, kind: input, shape index: {}]   ;;  %s3416_s3 = inlined_call_operand.vmem [shape: bf16[128,128], index: 3, kind: input, shape index: {}]   ;;  %s3417_s4 = inlined_call_operand.vmem [shape: f32[1,128], index: 4, kind: input, shape index: {}]   ;;  %s3418_s5 = inlined_call_operand.vmem [shape: f32[512,512], index: 5, kind: input, shape index: {}, may-alias: {5,6}]   ;;  %s3419_s6 = inlined_call_operand.vmem [shape: f32[512,512], index: 6, kind: output, shape index: {}, may-alias: {5,6}]  }
   0x1   :  { %s2254_s23 = smov 0  }
   0x2 LB: > { %s2263_s5 = sadd.s32 4294967295, %s2212_s23   ;;  %s2265_s24 = sadd.s32 1, %s2212_s23   ;;  %s2212_s23 = sphi %s2254_s23, %s3618_s23   ;;  %s2208_s22 = sphi %s2252_s22, %s3617_s22   ;;  %s2204_s21 = sphi %s2250_s21, %s3616_s21  }
   0x3   : > { %s130_s25 = ssub.s32 %s2212_s23, %s2265_s24  ;;  %s133_s26 = sadd.s32 1, %s2208_s22 }
   0x4   : > { %p131_p0 = scmp.eq.s32.totalorder %s130_s25, 0  ;;  %p143_p1 = scmp.ne.s32.totalorder %s2208_s22, %s2204_s21 }
   0x5   : > { %p144_p2 = scmp.eq.s32.totalorder %s2263_s5, 1  ;;  %p1917_p3 = scmp.ge.s32.totalorder %s2212_s23, 1 }
   0x6   : > { %s2273_s27 = scalar_select %p131_p0, %s2208_s22, %s133_s26  }
   0x7   : > { %p2275_p4 = por %p144_p2, %p143_p1  ;;  %p188_p5 = scmp.lt.s32.totalorder %s2212_s23, 3 }
   0x9   : > { %p189_p6 = pnand %p1917_p3, %p188_p5 }
   0xb   : > { %192 = sbr.rel (%p189_p6) target bundleno = 430 (0x1ae), region = 40 }
  0x10   : > { %v2171_v0 = vld [vmem:[%s3416_s3 + $0x38] sm:$0xff]   ;;  %p215_p7 = scmp.lt.s32.totalorder %s2263_s5, 1  ;;  %v2172_v1 = vld [vmem:[%s3416_s3 + $0x30] sm:$0xff]   ;;  %v2214_v2 = vmov 0.0   ;;  %v2173_v3 = vld [vmem:[%s3416_s3 + $0x28] sm:$0xff]   ;;  %s212_s10 = sand.u32 1, %s2204_s21  }
  0x11   : > { %2082 = vmatprep.subr.bf16.mxu0 %v2171_v0  ;;  %2130 = vmatprep.subr.bf16.mxu1 %v2171_v0  ;;  %222 = vst [vmem:[#allocation2] sm:$0xff] %v2214_v2  ;;  %223 = vst [vmem:[#allocation2 + $0x8] sm:$0xff] %v2214_v2  ;;  %v2174_v4 = vld [vmem:[%s3416_s3 + $0x20] sm:$0xff]   ;;  %v2175_v25 = vld [vmem:[%s3416_s3 + $0x18] sm:$0xff]   ;;  %s1918_s13 = sshll.u32 %s212_s10, 8  ;;  %s1978_s21 = sshll.u32 (%p2275_p4), %s2263_s5, 10 }
  0x12   : > { %s2287_s9 = scalar_select %p215_p7, %s2263_s5, 1  ;;  %224 = vst [vmem:[#allocation2 + $0x10] sm:$0xff] %v2214_v2  ;;  %225 = vst [vmem:[#allocation2 + $0x18] sm:$0x3] %v2214_v2  ;;  %2083 = vmatpush3.bf16.msra.mxu0 %v2171_v0  ;;  %2138 = vmatpush3.bf16.msra.mxu1 %v2171_v0  ;;  %v2306_v7 = vld [vmem:[%s3414_s1] ss:$0 sm:$0xff] }
  0x13   : > { %230 = vst [vmem:[#allocation2 + $0x40] sm:$0xff] %v2214_v2  ;;  %233 = vst [vmem:[#allocation2 + $0x58] sm:$0x3] %v2214_v2  ;;  %2084 = vmatprep.subr.bf16.mxu0 %v2172_v1  ;;  %2131 = vmatprep.subr.bf16.mxu1 %v2172_v1  ;;  %v2315_v14 = vld [vmem:[%s3414_s1 + $0x1] ss:$0 sm:$0xff]  ;;  %v2367_v36 = vld [vmem:[%s3416_s3 + $0x10] sm:$0xff]   ;;  %s3340_s18 = scalar_lea.vmem (%p2275_p4), %s3419_s6, %s1978_s21 }
  0x14   : > { %238 = vst [vmem:[#allocation2 + $0x80] sm:$0xff] %v2214_v2  ;;  %241 = vst [vmem:[#allocation2 + $0x98] sm:$0x3] %v2214_v2  ;;  %s1977_s12 = sshll.u32 %s2287_s9, 7  ;;  %v537_v17 = vmul.f32 0.0, %v2315_v14  ;;  %v2429_v0 = vld [vmem:[%s3416_s3 + $0x8] sm:$0xff]  }
  0x15   : > { %226 = vst [vmem:[#allocation2 + $0x20] sm:$0xff] %v2214_v2  ;;  %227 = vst [vmem:[#allocation2 + $0x28] sm:$0xff] %v2214_v2  ;;  %s2296_s15 = scalar_lea.vmem %s3413_s0, %s1977_s12  ;;  %v2323_v20 = vld [vmem:[%s3414_s1 + $0x2] ss:$0 sm:$0xff]  ;;  %v2332_v23 = vld [vmem:[%s3414_s1 + $0x4] ss:$0 sm:$0xff] }
  0x16   : > { %228 = vst [vmem:[#allocation2 + $0x30] sm:$0xff] %v2214_v2  ;;  %229 = vst [vmem:[#allocation2 + $0x38] sm:$0x3] %v2214_v2  ;;  %2085 = vmatpush3.bf16.msra.mxu0 %v2172_v1  ;;  %2139 = vmatpush3.bf16.msra.mxu1 %v2172_v1  ;;  %v1980_v5 = vld [vmem:[%s2296_s15] sm:$0xff]   ;;  %v2044_v6 = vld [vmem:[%s2296_s15 + $0x10] sm:$0xff]   ;;  %s3267_s14 = scalar_lea.vmem [#allocation3], %s1918_s13 }
  0x17   : > { %234 = vst [vmem:[#allocation2 + $0x60] sm:$0xff] %v2214_v2  ;;  %237 = vst [vmem:[#allocation2 + $0x78] sm:$0x3] %v2214_v2  ;;  %2086 = vmatprep.subr.bf16.mxu0 %v2173_v3  ;;  %2132 = vmatprep.subr.bf16.mxu1 %v2173_v3  ;;  %v1981_v8 = vunpack.c.l.bf16 %v1980_v5  ;;  %v1982_v9 = vunpack.c.h.bf16 %v1980_v5  ;;  %v2308_v10 = vunpack.c.l.bf16 %v2044_v6  ;;  %v2310_v11 = vunpack.c.h.bf16 %v2044_v6  ;;  %v2346_v29 = vld [vmem:[%s3414_s1 + $0x7] ss:$0 sm:$0xff]  ;;  %v2043_v33 = vld [vmem:[%s2296_s15 + $0x8] sm:$0xff]  }
  0x18   : > { %242 = vst [vmem:[#allocation2 + $0xa0] sm:$0xff] %v2214_v2  ;;  %245 = vst [vmem:[#allocation2 + $0xb8] sm:$0x3] %v2214_v2  ;;  %v399_v12 = vld [vmem:[#allocation2 + $0x6] sm:$0xff]  ;;  %v2045_v34 = vld [vmem:[%s2296_s15 + $0x18] sm:$0xff]   ;;  %v2373_v39 = vunpack.c.l.bf16 %v2043_v33  ;;  %v2375_v40 = vunpack.c.h.bf16 %v2043_v33 }
  0x19   : > { %246 = vst [vmem:[#allocation2 + $0xc0] sm:$0xff] %v2214_v2  ;;  %249 = vst [vmem:[#allocation2 + $0xd8] sm:$0x3] %v2214_v2  ;;  %v400_v13 = vld [vmem:[#allocation2 + $0xe] sm:$0xff]  ;;  %v436_v15 = vmul.f32 %v2306_v7, %v399_v12  ;;  %v2335_v24 = vmul.f32 %v1981_v8, %v2315_v14  ;;  %v2341_v28 = vmul.f32 %v1981_v8, %v2332_v23  ;;  %v2377_v44 = vunpack.c.l.bf16 %v2045_v34  ;;  %v2050_v50 = vld [vmem:[%s2296_s15 + $0x40] sm:$0xff]  }
  0x1a   : > { %250 = vst [vmem:[#allocation2 + $0xe0] sm:$0xff] %v2214_v2  ;;  %253 = vst [vmem:[#allocation2 + $0xf8] sm:$0x3] %v2214_v2  ;;  %v437_v16 = vmul.f32 %v2306_v7, %v400_v13  ;;  %v601_v18 = vld [vmem:[#allocation2 + $0xa] sm:$0xff]  ;;  %v602_v19 = vld [vmem:[#allocation2 + $0x12] sm:$0xff]  ;;  %2087 = vmatpush3.bf16.msra.mxu0 %v2173_v3  ;;  %2140 = vmatpush3.bf16.msra.mxu1 %v2173_v3  ;;  %v2349_v30 = vmul.f32 %v1982_v9, %v2332_v23  ;;  %v2379_v45 = vunpack.c.h.bf16 %v2045_v34 }
  0x1b   : > { %254 = vst [vmem:[#allocation2 + $0x100] sm:$0xff] %v2214_v2  ;;  %257 = vst [vmem:[#allocation2 + $0x118] sm:$0x3] %v2214_v2  ;;  %v638_v21 = vmul.f32 %v2323_v20, %v601_v18  ;;  %v639_v22 = vmul.f32 %v2323_v20, %v602_v19  ;;  %2088 = vmatprep.subr.bf16.mxu0 %v2174_v4  ;;  %2133 = vmatprep.subr.bf16.mxu1 %v2174_v4  ;;  %v2048_v49 = vld [vmem:[%s2296_s15 + $0x30] sm:$0xff]   ;;  %v2388_v51 = vld [vmem:[%s3414_s1 + $0x3] ss:$0 sm:$0xff]  ;;  %v2443_v6 = vunpack.c.l.bf16 %v2050_v50 }
  0x1c   : > { %258 = vst [vmem:[#allocation2 + $0x120] sm:$0xff] %v2214_v2  ;;  %261 = vst [vmem:[#allocation2 + $0x138] sm:$0x3] %v2214_v2  ;;  %v569_v26 = vadd.f32 %v537_v17, %v436_v15  ;;  %v570_v27 = vadd.f32 %v537_v17, %v437_v16  ;;  %v2353_v31 = vmul.f32 %v2308_v10, %v2346_v29  ;;  %v401_v41 = vld [vmem:[#allocation2 + $0x26] sm:$0xff]  ;;  %v2393_v52 = vld [vmem:[%s3414_s1 + $0x5] ss:$0 sm:$0xff]  ;;  %v2403_v56 = vunpack.c.l.bf16 %v2048_v49 }
  0x1d   : > { %262 = vst [vmem:[#allocation2 + $0x140] sm:$0xff] %v2214_v2  ;;  %265 = vst [vmem:[#allocation2 + $0x158] sm:$0x3] %v2214_v2  ;;  %v2357_v32 = vmul.f32 %v2310_v11, %v2346_v29  ;;  %v2362_v35 = vmul.f32 %v1982_v9, %v2315_v14  ;;  %v402_v42 = vld [vmem:[#allocation2 + $0x2e] sm:$0xff]  ;;  %v438_v46 = vmul.f32 %v2306_v7, %v401_v41  ;;  %v2409_v58 = vld [vmem:[%s3414_s1 + $0x6] ss:$0 sm:$0xff]  ;;  %v2441_v5 = vunpack.c.h.bf16 %v2048_v49 }
  0x1e   : > { %266 = vst [vmem:[#allocation2 + $0x160] sm:$0xff] %v2214_v2  ;;  %269 = vst [vmem:[#allocation2 + $0x178] sm:$0x3] %v2214_v2  ;;  %v2369_v37 = vadd.f32 %v638_v21, %v569_v26  ;;  %v2371_v38 = vadd.f32 %v639_v22, %v570_v27  ;;  %v603_v43 = vld [vmem:[#allocation2 + $0x2a] sm:$0xff]  ;;  %2089 = vmatpush3.bf16.msra.mxu0 %v2174_v4  ;;  %2141 = vmatpush3.bf16.msra.mxu1 %v2174_v4  ;;  %v604_v48 = vld [vmem:[#allocation2 + $0x32] sm:$0xff] }
  0x1f   : > { %270 = vst [vmem:[#allocation2 + $0x180] sm:$0xff] %v2214_v2  ;;  %273 = vst [vmem:[#allocation2 + $0x198] sm:$0x3] %v2214_v2  ;;  %v439_v47 = vmul.f32 %v2306_v7, %v402_v42  ;;  %2090 = vmatprep.subr.bf16.mxu0 %v2175_v25  ;;  %2134 = vmatprep.subr.bf16.mxu1 %v2175_v25  ;;  %v640_v53 = vmul.f32 %v2323_v20, %v603_v43  ;;  %v2052_v57 = vld [vmem:[%s2296_s15 + $0x50] sm:$0xff]   ;;  %v2414_v59 = vld [vmem:[%s3414_s1 + $0x8] ss:$0 sm:$0xff] }
  0x20   : > { %274 = vst [vmem:[#allocation2 + $0x1a0] sm:$0xff] %v2214_v2  ;;  %277 = vst [vmem:[#allocation2 + $0x1b8] sm:$0x3] %v2214_v2  ;;  %v641_v54 = vmul.f32 %v2323_v20, %v604_v48  ;;  %v2401_v55 = vmul.f32 %v2373_v39, %v2332_v23  ;;  %v571_v60 = vadd.f32 %v537_v17, %v438_v46  ;;  %v2460_v18 = vunpack.c.l.bf16 %v2052_v57  ;;  %v2049_v33 = vld [vmem:[%s2296_s15 + $0x38] sm:$0xff]   ;;  %v2494_v46 = vld [vmem:[%s3416_s3] sm:$0xff]  }
  0x21   : > { %278 = vst [vmem:[#allocation2 + $0x1c0] sm:$0xff] %v2214_v2  ;;  %281 = vst [vmem:[#allocation2 + $0x1d8] sm:$0x3] %v2214_v2  ;;  %v572_v61 = vadd.f32 %v537_v17, %v439_v47  ;;  %v2420_v62 = vmul.f32 %v2375_v40, %v2332_v23  ;;  %v2424_v63 = vmul.f32 %v2377_v44, %v2346_v29  ;;  %v2474_v27 = vunpack.c.h.bf16 %v2052_v57  ;;  %v2051_v49 = vld [vmem:[%s2296_s15 + $0x48] sm:$0xff]  }
  0x22   : > { %282 = vst [vmem:[#allocation2 + $0x1e0] sm:$0xff] %v2214_v2  ;;  %285 = vst [vmem:[#allocation2 + $0x1f8] sm:$0x3] %v2214_v2  ;;  %v2439_v4 = vmul.f32 %v2379_v45, %v2346_v29  ;;  %2091 = vmatpush3.bf16.msra.mxu0 %v2175_v25  ;;  %2142 = vmatpush3.bf16.msra.mxu1 %v2175_v25  ;;  %v672_v47 = vadd.f32 %v640_v53, %v571_v60 }
  0x23   : > { %286 = vst [vmem:[#allocation2 + $0x200] sm:$0xff] %v2214_v2  ;;  %289 = vst [vmem:[#allocation2 + $0x218] sm:$0x3] %v2214_v2  ;;  %2092 = vmatprep.subr.bf16.mxu0 %v2367_v36  ;;  %2135 = vmatprep.subr.bf16.mxu1 %v2367_v36  ;;  %v673_v48 = vadd.f32 %v641_v54, %v572_v61  ;;  %v2516_v61 = vmul.f32 %v2443_v6, %v2332_v23 }
  0x24   : > { %290 = vst [vmem:[#allocation2 + $0x220] sm:$0xff] %v2214_v2  ;;  %293 = vst [vmem:[#allocation2 + $0x238] sm:$0x3] %v2214_v2 }
  0x25   : > { %294 = vst [vmem:[#allocation2 + $0x240] sm:$0xff] %v2214_v2  ;;  %295 = vst [vmem:[#allocation2 + $0x248] sm:$0xff] %v2214_v2 }
  0x26   : > { %296 = vst [vmem:[#allocation2 + $0x250] sm:$0xff] %v2214_v2  ;;  %297 = vst [vmem:[#allocation2 + $0x258] sm:$0x3] %v2214_v2  ;;  %2093 = vmatpush3.bf16.msra.mxu0 %v2367_v36  ;;  %2143 = vmatpush3.bf16.msra.mxu1 %v2367_v36 }
  0x27   : > { %298 = vst [vmem:[#allocation2 + $0x260] sm:$0xff] %v2214_v2  ;;  %299 = vst [vmem:[#allocation2 + $0x268] sm:$0xff] %v2214_v2  ;;  %2094 = vmatprep.subr.bf16.mxu0 %v2429_v0  ;;  %2136 = vmatprep.subr.bf16.mxu1 %v2429_v0 }
  0x28   : > { %300 = vst [vmem:[#allocation2 + $0x270] sm:$0xff] %v2214_v2  ;;  %301 = vst [vmem:[#allocation2 + $0x278] sm:$0x3] %v2214_v2 }
  0x29   : > { %367 = vst [vmem:[#allocation2 + $0x48] sm:$0xff] %v1981_v8  ;;  %368 = vst [vmem:[#allocation2 + $0x50] sm:$0xff] %v1982_v9  ;;  %v2445_v8 = vunpack.c.h.bf16 %v2050_v50 }
  0x2a   : > { %371 = vst [vmem:[#allocation2 + $0x88] sm:$0xff] %v2308_v10  ;;  %372 = vst [vmem:[#allocation2 + $0x90] sm:$0xff] %v2310_v11  ;;  %2095 = vmatpush3.bf16.msra.mxu0 %v2429_v0  ;;  %2144 = vmatpush3.bf16.msra.mxu1 %v2429_v0 }
  0x2b   : > { %3500 = vst [vmem:[#allocation4_spill] sm:$0xff] %v2373_v39  ;;  %3501 = vst [vmem:[#allocation5_spill] sm:$0xff] %v2375_v40  ;;  %2096 = vmatprep.subr.bf16.mxu0 %v2494_v46  ;;  %2137 = vmatprep.subr.bf16.mxu1 %v2494_v46 }
  0x2c   : > { %3502 = vst [vmem:[#allocation6_spill] sm:$0xff] %v2377_v44  ;;  %3503 = vst [vmem:[#allocation7_spill] sm:$0xff] %v2379_v45 }
  0x2d   : > { %369 = vst [vmem:[#allocation2 + $0x68] sm:$0xff] %v2373_v39  ;;  %370 = vst [vmem:[#allocation2 + $0x70] sm:$0xff] %v2375_v40 }
  0x2e   : > { %3504 = vst [vmem:[#allocation8_spill] sm:$0xff] %v2403_v56  ;;  %373 = vst [vmem:[#allocation2 + $0xa8] sm:$0xff] %v2377_v44  ;;  %2097 = vmatpush3.bf16.msra.mxu0 %v2494_v46  ;;  %2145 = vmatpush3.bf16.msra.mxu1 %v2494_v46 }
  0x2f   : > { %374 = vst [vmem:[#allocation2 + $0xb0] sm:$0xff] %v2379_v45  ;;  %3505 = vst [vmem:[#allocation9_spill] sm:$0xff] %v2441_v5 }
  0x30   : > { %v2431_v1 = vld [vmem:[#allocation2 + $0x46] sm:$0xff]  ;;  %v2433_v2 = vld [vmem:[#allocation2 + $0x4e] sm:$0xff]  ;;  %3506 = vst [vmem:[#allocation10_spill] sm:$0xff] %v2443_v6  ;;  %379 = vst [vmem:[#allocation2 + $0x108] sm:$0xff] %v2403_v56 }
  0x31   : > { %v2435_v3 = vld [vmem:[#allocation2 + $0x4a] sm:$0xff]  ;;  %v739_v9 = vmul.f32 %v2388_v51, %v2431_v1  ;;  %v740_v12 = vmul.f32 %v2388_v51, %v2433_v2  ;;  %v2452_v13 = vld [vmem:[#allocation2 + $0x52] sm:$0xff]  ;;  %380 = vst [vmem:[#allocation2 + $0x110] sm:$0xff] %v2441_v5  ;;  %383 = vst [vmem:[#allocation2 + $0x148] sm:$0xff] %v2443_v6 }
  0x32   : > { %v941_v15 = vmul.f32 %v2393_v52, %v2435_v3  ;;  %v2456_v16 = vld [vmem:[#allocation2 + $0x86] sm:$0xff]  ;;  %v2458_v17 = vld [vmem:[#allocation2 + $0x8e] sm:$0xff]  ;;  %v942_v19 = vmul.f32 %v2393_v52, %v2452_v13  ;;  %384 = vst [vmem:[#allocation2 + $0x150] sm:$0xff] %v2445_v8  ;;  %387 = vst [vmem:[#allocation2 + $0x188] sm:$0xff] %v2460_v18 }
  0x33   : > { %v1043_v21 = vmul.f32 %v2409_v58, %v2456_v16  ;;  %v1044_v22 = vmul.f32 %v2409_v58, %v2458_v17  ;;  %v2470_v25 = vld [vmem:[#allocation2 + $0x8a] sm:$0xff]  ;;  %v2472_v26 = vld [vmem:[#allocation2 + $0x92] sm:$0xff]  ;;  %v771_v34 = vadd.f32 %v739_v9, %v2369_v37  ;;  %v772_v41 = vadd.f32 %v740_v12, %v2371_v38  ;;  %388 = vst [vmem:[#allocation2 + $0x190] sm:$0xff] %v2474_v27 }
  0x34   : > { %v2484_v42 = vmul.f32 %v2414_v59, %v2470_v25  ;;  %v2488_v43 = vmul.f32 %v2414_v59, %v2472_v26  ;;  %v553_v37 = vmul.f32 %v2403_v56, %v2315_v14  ;;  %v2501_v38 = vmul.f32 %v2441_v5, %v2315_v14  ;;  %v2508_v53 = vld [vmem:[#allocation2 + $0x66] sm:$0xff]  ;;  %v2510_v54 = vld [vmem:[#allocation2 + $0x6e] sm:$0xff] }
  0x35   : > { %v872_v50 = vadd.f32 %v2341_v28, %v771_v34  ;;  %v873_v57 = vadd.f32 %v2349_v30, %v772_v41  ;;  %3507 = vst [vmem:[#allocation11_spill] sm:$0xff] %v2508_v53  ;;  %3508 = vst [vmem:[#allocation12_spill] sm:$0xff] %v2510_v54  ;;  %v2512_v60 = vld [vmem:[#allocation2 + $0x6a] sm:$0xff]  ;;  %v2518_v9 = vunpack.c.l.bf16 %v2049_v33  ;;  %v741_v28 = vmul.f32 %v2388_v51, %v2508_v53  ;;  %v2526_v36 = vld [vmem:[#allocation2 + $0x72] sm:$0xff] }
  0x36   : > { %3509 = vst [vmem:[#allocation13_spill] sm:$0xff] %v2512_v60  ;;  %v742_v30 = vmul.f32 %v2388_v51, %v2510_v54  ;;  %v943_v12 = vmul.f32 %v2393_v52, %v2512_v60  ;;  %v2530_v34 = vld [vmem:[#allocation2 + $0xa6] sm:$0xff]  ;;  %v2532_v41 = vld [vmem:[#allocation2 + $0xae] sm:$0xff]  ;;  %v2534_v5 = vunpack.c.h.bf16 %v2049_v33  ;;  %v944_v45 = vmul.f32 %v2393_v52, %v2526_v36 }
  0x37   : > { %3510 = vst [vmem:[#allocation14_spill] sm:$0xff] %v2518_v9  ;;  %3511 = vst [vmem:[#allocation15_spill] sm:$0xff] %v2530_v34  ;;  %v973_v56 = vadd.f32 %v941_v15, %v872_v50  ;;  %v974_v6 = vadd.f32 %v942_v19, %v873_v57  ;;  %v1045_v44 = vmul.f32 %v2409_v58, %v2530_v34  ;;  %v2540_v40 = vld [vmem:[#allocation2 + $0xaa] sm:$0xff]  ;;  %v2542_v39 = vld [vmem:[#allocation2 + $0xb2] sm:$0xff] }
  0x38   : > { %3512 = vst [vmem:[#allocation16_spill] sm:$0xff] %v2532_v41  ;;  %3513 = vst [vmem:[#allocation17_spill] sm:$0xff] %v2534_v5  ;;  %v2544_v54 = vld [vmem:[#allocation2 + $0x106] sm:$0xff]  ;;  %v773_v60 = vadd.f32 %v741_v28, %v672_v47  ;;  %v774_v53 = vadd.f32 %v742_v30, %v673_v48  ;;  %v1046_v15 = vmul.f32 %v2409_v58, %v2532_v41  ;;  %v2556_v47 = vld [vmem:[#allocation2 + $0x10e] sm:$0xff]  ;;  %v2562_v30 = vunpack.c.l.bf16 %v2051_v49 }
  0x39   : > { %3514 = vst [vmem:[#allocation18_spill] sm:$0xff] %v2540_v40  ;;  %3515 = vst [vmem:[#allocation19_spill] sm:$0xff] %v2542_v39  ;;  %v1247_v19 = vmul.f32 %v2414_v59, %v2540_v40  ;;  %v1075_v33 = vadd.f32 %v1043_v21, %v973_v56  ;;  %v1076_v50 = vadd.f32 %v1044_v22, %v974_v6  ;;  %v2558_v48 = vld [vmem:[#allocation2 + $0x10a] sm:$0xff]  ;;  %v2560_v28 = vld [vmem:[#allocation2 + $0x112] sm:$0xff]  ;;  %v2570_v6 = vunpack.c.h.bf16 %v2051_v49 }
  0x3a   : > { %3516 = vst [vmem:[#allocation20_spill] sm:$0xff] %v2544_v54  ;;  %381 = vst [vmem:[#allocation2 + $0x128] sm:$0xff] %v2518_v9  ;;  %v1248_v57 = vmul.f32 %v2414_v59, %v2542_v39  ;;  %v874_v40 = vadd.f32 %v2401_v55, %v773_v60  ;;  %v875_v56 = vadd.f32 %v2420_v62, %v774_v53  ;;  %v2573_v21 = vld [vmem:[%s2296_s15 + $0x58] sm:$0xff]   ;;  %v2581_v55 = vld [vmem:[#allocation2 + $0x146] sm:$0xff] }
  0x3b   : > { %382 = vst [vmem:[#allocation2 + $0x130] sm:$0xff] %v2534_v5  ;;  %3517 = vst [vmem:[#allocation21_spill] sm:$0xff] %v2556_v47  ;;  %v452_v0 = vmul.f32 %v2306_v7, %v2544_v54  ;;  %v1176_v22 = vadd.f32 %v2353_v31, %v1075_v33  ;;  %v1177_v39 = vadd.f32 %v2357_v32, %v1076_v50  ;;  %v2587_v62 = vld [vmem:[%s3415_s2] ss:$0 sm:$0xff]  ;;  %v2591_v60 = vld [vmem:[#allocation2 + $0x14e] sm:$0xff] }
  0x3c   : > { %3518 = vst [vmem:[#allocation22_spill] sm:$0xff] %v2558_v48  ;;  %3519 = vst [vmem:[#allocation23_spill] sm:$0xff] %v2560_v28  ;;  %v453_v41 = vmul.f32 %v2306_v7, %v2556_v47  ;;  %v654_v34 = vmul.f32 %v2323_v20, %v2558_v48  ;;  %v975_v49 = vadd.f32 %v943_v12, %v874_v40  ;;  %v2600_v40 = vunpack.c.l.bf16 %v2573_v21  ;;  %v2610_v46 = vld [vmem:[#allocation2 + $0x152] sm:$0xff] }
  0x3d   : > { %385 = vst [vmem:[#allocation2 + $0x168] sm:$0xff] %v2562_v30  ;;  %v976_v53 = vadd.f32 %v944_v45, %v875_v56  ;;  %v585_v31 = vadd.f32 %v553_v37, %v452_v0  ;;  %v655_v32 = vmul.f32 %v2323_v20, %v2560_v28  ;;  %386 = vst [vmem:[#allocation2 + $0x170] sm:$0xff] %v2570_v6  ;;  %v2604_v0 = vld [vmem:[#allocation2 + $0x14a] sm:$0xff] }
  0x3e   : > { %v1277_v33 = vadd.f32 %v2484_v42, %v1176_v22  ;;  %v1278_v50 = vadd.f32 %v2488_v43, %v1177_v39  ;;  %v586_v48 = vadd.f32 %v2501_v38, %v453_v41  ;;  %3520 = vst [vmem:[#allocation24_spill] sm:$0xff] %v2600_v40  ;;  %v1077_v45 = vadd.f32 %v1045_v44, %v975_v49  ;;  %v2619_v22 = vld [vmem:[#allocation2 + $0x18e] sm:$0xff] }
  0x3f   : > { %v1078_v37 = vadd.f32 %v1046_v15, %v976_v53  ;;  %v686_v12 = vadd.f32 %v654_v34, %v585_v31  ;;  %v755_v56 = vmul.f32 %v2388_v51, %v2581_v55  ;;  %v756_v43 = vmul.f32 %v2388_v51, %v2591_v60  ;;  %389 = vst [vmem:[#allocation2 + $0x1a8] sm:$0xff] %v2600_v40  ;;  %v2617_v15 = vld [vmem:[#allocation2 + $0x186] sm:$0xff] }
  0x40   : > { %v1316_v28 = vadd.f32 %v2587_v62, %v1277_v33  ;;  %v1317_v42 = vadd.f32 %v2587_v62, %v1278_v50  ;;  %v687_v39 = vadd.f32 %v655_v32, %v586_v48  ;;  %v1178_v44 = vadd.f32 %v2424_v63, %v1077_v45  ;;  %v2626_v50 = vld [vmem:[#allocation2 + $0x18a] sm:$0xff]  ;;  %v2628_v45 = vld [vmem:[#allocation2 + $0x192] sm:$0xff] }
  0x41   : > { %v1179_v38 = vadd.f32 %v2439_v4, %v1078_v37  ;;  %v787_v34 = vadd.f32 %v755_v56, %v686_v12  ;;  %v857_v41 = vmul.f32 %v2445_v8, %v2332_v23  ;;  %v957_v31 = vmul.f32 %v2393_v52, %v2604_v0 }
  0x42   : > { %v1348_v48 = vmax.f32 %v1316_v28, 0.0  ;;  %v1349_v49 = vmax.f32 %v1317_v42, 0.0  ;;  %v788_v53 = vadd.f32 %v756_v43, %v687_v39  ;;  %v1279_v32 = vadd.f32 %v1247_v19, %v1178_v44  ;;  %v2638_v39 = vld [vmem:[#allocation2 + $0x126] sm:$0xff]  ;;  %v2640_v43 = vld [vmem:[#allocation2 + $0x12e] sm:$0xff] }
  0x43   : > { %v1280_v33 = vadd.f32 %v1248_v57, %v1179_v38  ;;  %v888_v63 = vadd.f32 %v2516_v61, %v787_v34  ;;  %v958_v4 = vmul.f32 %v2393_v52, %v2610_v46  ;;  %v1059_v28 = vmul.f32 %v2409_v58, %v2617_v15  ;;  %3521 = vst [vmem:[#allocation25_spill] sm:$0xff] %v2638_v39 }
  0x44   : > { %v1380_v37 = vpack.c.bf16 %v1349_v49, %v1348_v48  ;;  %v889_v12 = vadd.f32 %v857_v41, %v788_v53  ;;  %v1060_v56 = vmul.f32 %v2409_v58, %v2619_v22  ;;  %v1318_v19 = vadd.f32 %v2587_v62, %v1279_v32  ;;  %3522 = vst [vmem:[#allocation26_spill] sm:$0xff] %v2640_v43  ;;  %v2648_v48 = vld [vmem:[#allocation2 + $0x12a] sm:$0xff] }
  0x45   : > { %v1319_v57 = vadd.f32 %v2587_v62, %v1280_v33  ;;  %v989_v61 = vadd.f32 %v957_v31, %v888_v63  ;;  %v1160_v42 = vmul.f32 %v2460_v18, %v2346_v29  ;;  %v1161_v38 = vmul.f32 %v2474_v27, %v2346_v29  ;;  %3523 = vst [vmem:[#allocation27_spill] sm:$0xff] %v2648_v48  ;;  %v2653_v33 = vld [vmem:[#allocation2 + $0x132] sm:$0xff]  ;;  %v2655_v63 = vld [vmem:[#allocation2 + $0x166] sm:$0xff] }
  0x46   : > { %2098 = vmatprep.mubr.bf16.mxu0 %v1380_v37  ;;  %v990_v44 = vadd.f32 %v958_v4, %v889_v12  ;;  %v1261_v34 = vmul.f32 %v2414_v59, %v2626_v50  ;;  %v1262_v41 = vmul.f32 %v2414_v59, %v2628_v45  ;;  %v1350_v49 = vmax.f32 %v1318_v19, 0.0  ;;  %3525 = vst [vmem:[#allocation29_spill] sm:$0xff] %v2653_v33  ;;  %v2663_v19 = vld [vmem:[#allocation2 + $0x16e] sm:$0xff] }
  0x47   : > { %v1351_v53 = vmax.f32 %v1319_v57, 0.0  ;;  %v1091_v31 = vadd.f32 %v1059_v28, %v989_v61  ;;  %v2651_v32 = vunpack.c.h.bf16 %v2573_v21  ;;  %v454_v37 = vmul.f32 %v2306_v7, %v2638_v39  ;;  %v2670_v61 = vld [vmem:[#allocation2 + $0x16a] sm:$0xff]  ;;  %v2046_v39 = vld [vmem:[%s2296_s15 + $0x20] sm:$0xff]  }
  0x48   : > { %v1092_v4 = vadd.f32 %v1060_v56, %v990_v44  ;;  %v455_v12 = vmul.f32 %v2306_v7, %v2640_v43  ;;  %v555_v47 = vmul.f32 %v2518_v9, %v2315_v14  ;;  %v556_v21 = vmul.f32 %v2534_v5, %v2315_v14  ;;  %3526 = vst [vmem:[#allocation30_spill] sm:$0xff] %v2670_v61 }
  0x49   : > { %3524 = vst [vmem:[#allocation28_spill] sm:$0xff] %v2651_v32  ;;  %v1381_v28 = vpack.c.bf16 %v1351_v53, %v1350_v49  ;;  %v1192_v57 = vadd.f32 %v1160_v42, %v1091_v31  ;;  %390 = vst [vmem:[#allocation2 + $0x1b0] sm:$0xff] %v2651_v32  ;;  %v656_v56 = vmul.f32 %v2323_v20, %v2648_v48  ;;  %v2676_v42 = vld [vmem:[#allocation2 + $0x172] sm:$0xff]  ;;  %v2678_v53 = vld [vmem:[#allocation2 + $0x1a6] sm:$0xff] }
  0x4a   : > { %v1193_v44 = vadd.f32 %v1161_v38, %v1092_v4  ;;  %v587_v43 = vadd.f32 %v555_v47, %v454_v37  ;;  %v657_v9 = vmul.f32 %v2323_v20, %v2653_v33  ;;  %v757_v49 = vmul.f32 %v2388_v51, %v2655_v63  ;;  %3527 = vst [vmem:[#allocation31_spill] sm:$0xff] %v2676_v42 }
  0x4b   : > { %3528 = vst [vmem:[#allocation32_spill] sm:$0xff] %v2678_v53  ;;  %2099 = vmatmul.mubr.bf16.vlgmr.msra.gmra.mxu0 %v1381_v28  ;;  %v1293_v31 = vadd.f32 %v1261_v34, %v1192_v57  ;;  %v588_v5 = vadd.f32 %v556_v21, %v455_v12  ;;  %v758_v48 = vmul.f32 %v2388_v51, %v2663_v19 }
  0x4c   : > { %v858_v38 = vmul.f32 %v2562_v30, %v2332_v23  ;;  %v1294_v47 = vadd.f32 %v1262_v41, %v1193_v44  ;;  %v688_v4 = vadd.f32 %v656_v56, %v587_v43  ;;  %v859_v37 = vmul.f32 %v2570_v6, %v2332_v23 }
  0x4d   : > { %v959_v33 = vmul.f32 %v2393_v52, %v2670_v61  ;;  %v1332_v54 = vadd.f32 %v2587_v62, %v1293_v31  ;;  %v689_v28 = vadd.f32 %v657_v9, %v588_v5  ;;  %v960_v34 = vmul.f32 %v2393_v52, %v2676_v42 }
  0x4e   : > { %v1061_v12 = vmul.f32 %v2409_v58, %v2678_v53  ;;  %v1333_v57 = vadd.f32 %v2587_v62, %v1294_v47  ;;  %v789_v41 = vadd.f32 %v757_v49, %v688_v4  ;;  %v1162_v43 = vmul.f32 %v2600_v40, %v2346_v29 }
  0x4f   : > { %v1163_v21 = vmul.f32 %v2651_v32, %v2346_v29  ;;  %v1364_v56 = vmax.f32 %v1332_v54, 0.0  ;;  %v790_v44 = vadd.f32 %v758_v48, %v689_v28  ;;  %v2699_v61 = vunpack.c.l.bf16 %v2046_v39 }
  0x50   : > { %v2701_v5 = vunpack.c.h.bf16 %v2046_v39  ;;  %v1365_v9 = vmax.f32 %v1333_v57, 0.0  ;;  %v890_v31 = vadd.f32 %v858_v38, %v789_v41  ;;  %v2703_v42 = vld [vmem:[#allocation2 + $0x1ae] sm:$0xff]  ;;  %v440_v49 = vmul.f32 %v2306_v7, %v2431_v1 }
  0x51   : > { %3529 = vst [vmem:[#allocation33_spill] sm:$0xff] %v2699_v61  ;;  %3531 = vst [vmem:[#allocation35_spill] sm:$0xff] %v2703_v42  ;;  %v2705_v53 = vld [vmem:[#allocation2 + $0x1aa] sm:$0xff]  ;;  %v2707_v47 = vld [vmem:[#allocation2 + $0x1b2] sm:$0xff]  ;;  %v441_v4 = vmul.f32 %v2306_v7, %v2433_v2  ;;  %v891_v54 = vadd.f32 %v859_v37, %v790_v44  ;;  %v1062_v48 = vmul.f32 %v2409_v58, %v2703_v42 }
  0x52   : > { %3530 = vst [vmem:[#allocation34_spill] sm:$0xff] %v2701_v5  ;;  %3532 = vst [vmem:[#allocation36_spill] sm:$0xff] %v2705_v53  ;;  %v1263_v39 = vmul.f32 %v2414_v59, %v2705_v53  ;;  %v1264_v38 = vmul.f32 %v2414_v59, %v2707_v47  ;;  %v1388_v28 = vpack.c.bf16 %v1365_v9, %v1364_v56 }
  0x53   : > { %3533 = vst [vmem:[#allocation37_spill] sm:$0xff] %v2707_v47  ;;  %375 = vst [vmem:[#allocation2 + $0xc8] sm:$0xff] %v2699_v61  ;;  %v991_v1 = vadd.f32 %v959_v33, %v890_v31  ;;  %v573_v57 = vadd.f32 %v2335_v24, %v440_v49  ;;  %v574_v2 = vadd.f32 %v2362_v35, %v441_v4  ;;  %v2047_v33 = vld [vmem:[%s2296_s15 + $0x28] sm:$0xff]  }
  0x54   : > { %376 = vst [vmem:[#allocation2 + $0xd0] sm:$0xff] %v2701_v5  ;;  %v992_v37 = vadd.f32 %v960_v34, %v891_v54  ;;  %v642_v41 = vmul.f32 %v2323_v20, %v2435_v3  ;;  %v643_v44 = vmul.f32 %v2323_v20, %v2452_v13  ;;  %v743_v47 = vmul.f32 %v2388_v51, %v2456_v16 }
  0x55   : > { %2114 = vmatprep.mubr.bf16.mxu1 %v1388_v28  ;;  %v1093_v53 = vadd.f32 %v1061_v12, %v991_v1  ;;  %v744_v56 = vmul.f32 %v2388_v51, %v2458_v17  ;;  %v844_v24 = vmul.f32 %v2308_v10, %v2332_v23  ;;  %v845_v35 = vmul.f32 %v2310_v11, %v2332_v23  ;;  %v3537_v1 = vld [vmem:[#allocation12_spill] sm:$0xff] }
  0x56   : > { %v1094_v34 = vadd.f32 %v1062_v48, %v992_v37  ;;  %v674_v3 = vadd.f32 %v642_v41, %v573_v57  ;;  %v675_v9 = vadd.f32 %v643_v44, %v574_v2  ;;  %v945_v13 = vmul.f32 %v2393_v52, %v2470_v25 }
  0x57   : > { %v1194_v31 = vadd.f32 %v1162_v43, %v1093_v53  ;;  %v946_v16 = vmul.f32 %v2393_v52, %v2472_v26  ;;  %v1148_v17 = vmul.f32 %v2699_v61, %v2346_v29  ;;  %v1149_v10 = vmul.f32 %v2701_v5, %v2346_v29  ;;  %v3536_v26 = vld [vmem:[#allocation11_spill] sm:$0xff] }
  0x58   : > { %v1195_v12 = vadd.f32 %v1163_v21, %v1094_v34  ;;  %v775_v49 = vadd.f32 %v743_v47, %v674_v3  ;;  %v776_v11 = vadd.f32 %v744_v56, %v675_v9  ;;  %v2744_v4 = vunpack.c.l.bf16 %v2047_v33  ;;  %v3539_v34 = vld [vmem:[#allocation4_spill] sm:$0xff] }
  0x59   : > { %v1295_v54 = vadd.f32 %v1263_v39, %v1194_v31  ;;  %v2752_v53 = vunpack.c.h.bf16 %v2047_v33  ;;  %v442_v43 = vmul.f32 %v2306_v7, %v3536_v26  ;;  %v443_v57 = vmul.f32 %v2306_v7, %v3537_v1  ;;  %v3540_v31 = vld [vmem:[#allocation5_spill] sm:$0xff] }
  0x5a   : > { %v2746_v48 = vld [vmem:[#allocation2 + $0xc6] sm:$0xff]  ;;  %v1296_v21 = vadd.f32 %v1264_v38, %v1195_v12  ;;  %v876_v47 = vadd.f32 %v844_v24, %v775_v49  ;;  %v877_v2 = vadd.f32 %v845_v35, %v776_v11  ;;  %377 = vst [vmem:[#allocation2 + $0xe8] sm:$0xff] %v2744_v4  ;;  %v543_v3 = vmul.f32 %v3539_v34, %v2315_v14  ;;  %v3544_v34 = vld [vmem:[#allocation6_spill] sm:$0xff] }
  0x5b   : > { %v2748_v28 = vld [vmem:[#allocation2 + $0xce] sm:$0xff]  ;;  %3535 = vst [vmem:[#allocation39_spill] sm:$0xff] %v2752_v53  ;;  %v1047_v39 = vmul.f32 %v2409_v58, %v2746_v48  ;;  %v1334_v41 = vadd.f32 %v2587_v62, %v1295_v54  ;;  %378 = vst [vmem:[#allocation2 + $0xf0] sm:$0xff] %v2752_v53  ;;  %v544_v12 = vmul.f32 %v3540_v31, %v2315_v14 }
  0x5c   : > { %v2750_v25 = vld [vmem:[#allocation2 + $0xca] sm:$0xff]  ;;  %v2760_v37 = vld [vmem:[#allocation2 + $0xd2] sm:$0xff]  ;;  %v1048_v44 = vmul.f32 %v2409_v58, %v2748_v28  ;;  %v1335_v24 = vadd.f32 %v2587_v62, %v1296_v21  ;;  %v977_v35 = vadd.f32 %v945_v13, %v876_v47  ;;  %v978_v33 = vadd.f32 %v946_v16, %v877_v2  ;;  %v3543_v2 = vld [vmem:[#allocation16_spill] sm:$0xff] }
  0x5d   : > { %3534 = vst [vmem:[#allocation38_spill] sm:$0xff] %v2750_v25  ;;  %3538 = vst [vmem:[#allocation11_spill] sm:$0xff] %v2760_v37  ;;  %v1249_v56 = vmul.f32 %v2414_v59, %v2750_v25  ;;  %v1250_v38 = vmul.f32 %v2414_v59, %v2760_v37  ;;  %v1366_v9 = vmax.f32 %v1334_v41, 0.0  ;;  %v3541_v49 = vld [vmem:[#allocation13_spill] sm:$0xff]  ;;  %v645_v54 = vmul.f32 %v2323_v20, %v2526_v36  ;;  %v3542_v16 = vld [vmem:[#allocation15_spill] sm:$0xff] }
  0x5e   : > { %v644_v11 = vmul.f32 %v2323_v20, %v3541_v49  ;;  %v1367_v26 = vmax.f32 %v1335_v24, 0.0  ;;  %v1079_v1 = vadd.f32 %v1047_v39, %v977_v35  ;;  %v1080_v37 = vadd.f32 %v1048_v44, %v978_v33  ;;  %v3545_v39 = vld [vmem:[#allocation7_spill] sm:$0xff]  ;;  %v3546_v44 = vld [vmem:[#allocation18_spill] sm:$0xff] }
  0x5f   : > { %v575_v21 = vadd.f32 %v543_v3, %v442_v43  ;;  %v576_v13 = vadd.f32 %v544_v12, %v443_v57  ;;  %v745_v47 = vmul.f32 %v2388_v51, %v3542_v16  ;;  %v746_v41 = vmul.f32 %v2388_v51, %v3543_v2  ;;  %v3547_v57 = vld [vmem:[#allocation19_spill] sm:$0xff]  ;;  %v2054_v3 = vld [vmem:[%s2296_s15 + $0x60] sm:$0xff]  }
  0x60   : > { %v846_v31 = vmul.f32 %v3544_v34, %v2332_v23  ;;  %v1389_v25 = vpack.c.bf16 %v1367_v26, %v1366_v9  ;;  %v1180_v49 = vadd.f32 %v1148_v17, %v1079_v1  ;;  %v1181_v5 = vadd.f32 %v1149_v10, %v1080_v37 }
  0x61   : > { %v676_v61 = vadd.f32 %v644_v11, %v575_v21  ;;  %v677_v36 = vadd.f32 %v645_v54, %v576_v13  ;;  %v847_v24 = vmul.f32 %v3545_v39, %v2332_v23  ;;  %v947_v43 = vmul.f32 %v2393_v52, %v3546_v44  ;;  %v2792_v33 = vld [vmem:[#allocation2 + $0xe6] sm:$0xff] }
  0x62   : > { %v948_v35 = vmul.f32 %v2393_v52, %v3547_v57  ;;  %2115 = vmatmul.mubr.bf16.vlgmr.msra.gmra.mxu1 %v1389_v25  ;;  %v1281_v12 = vadd.f32 %v1249_v56, %v1180_v49  ;;  %v1282_v34 = vadd.f32 %v1250_v38, %v1181_v5  ;;  %v2795_v17 = vld [vmem:[#allocation2 + $0xee] sm:$0xff]  ;;  %v1049_v10 = vmul.f32 %v2409_v58, %v2792_v33 }
  0x63   : > { %v777_v9 = vadd.f32 %v745_v47, %v676_v61  ;;  %v2799_v37 = vld [vmem:[#allocation2 + $0xea] sm:$0xff]  ;;  %v2801_v11 = vld [vmem:[#allocation2 + $0xf2] sm:$0xff]  ;;  %v778_v54 = vadd.f32 %v746_v41, %v677_v36  ;;  %v1050_v26 = vmul.f32 %v2409_v58, %v2795_v17  ;;  %v1150_v1 = vmul.f32 %v2744_v4, %v2346_v29 }
  0x64   : > { %v1151_v5 = vmul.f32 %v2752_v53, %v2346_v29  ;;  %v1320_v61 = vadd.f32 %v2587_v62, %v1281_v12  ;;  %v1321_v25 = vadd.f32 %v2587_v62, %v1282_v34  ;;  %v1251_v38 = vmul.f32 %v2414_v59, %v2799_v37 }
  0x65   : > { %v878_v56 = vadd.f32 %v846_v31, %v777_v9  ;;  %v879_v21 = vadd.f32 %v847_v24, %v778_v54  ;;  %v1252_v13 = vmul.f32 %v2414_v59, %v2801_v11  ;;  %v2815_v47 = vunpack.c.l.bf16 %v2054_v3  ;;  %v3550_v24 = vld [vmem:[#allocation10_spill] sm:$0xff] }
  0x66   : > { %v2817_v41 = vunpack.c.h.bf16 %v2054_v3  ;;  %v1352_v49 = vmax.f32 %v1320_v61, 0.0  ;;  %v1353_v36 = vmax.f32 %v1321_v25, 0.0  ;;  %v456_v12 = vmul.f32 %v2306_v7, %v2581_v55 }
  0x67   : > { %3548 = vst [vmem:[#allocation12_spill] sm:$0xff] %v2815_v47  ;;  %v979_v39 = vadd.f32 %v947_v43, %v878_v56  ;;  %v980_v53 = vadd.f32 %v948_v35, %v879_v21  ;;  %391 = vst [vmem:[#allocation2 + $0x1c8] sm:$0xff] %v2815_v47  ;;  %v457_v31 = vmul.f32 %v2306_v7, %v2591_v60 }
  0x68   : > { %3549 = vst [vmem:[#allocation4_spill] sm:$0xff] %v2817_v41  ;;  %392 = vst [vmem:[#allocation2 + $0x1d0] sm:$0xff] %v2817_v41  ;;  %v557_v34 = vmul.f32 %v3550_v24, %v2315_v14  ;;  %v558_v3 = vmul.f32 %v2445_v8, %v2315_v14  ;;  %v1382_v9 = vpack.c.bf16 %v1353_v36, %v1352_v49 }
  0x69   : > { %v1081_v43 = vadd.f32 %v1049_v10, %v979_v39  ;;  %v658_v55 = vmul.f32 %v2323_v20, %v2604_v0  ;;  %v659_v35 = vmul.f32 %v2323_v20, %v2610_v46  ;;  %v1082_v54 = vadd.f32 %v1050_v26, %v980_v53  ;;  %v2055_v10 = vld [vmem:[%s2296_s15 + $0x68] sm:$0xff]  }
  0x6a   : > { %v589_v61 = vadd.f32 %v557_v34, %v456_v12  ;;  %v590_v25 = vadd.f32 %v558_v3, %v457_v31  ;;  %v759_v60 = vmul.f32 %v2388_v51, %v2617_v15  ;;  %2102 = vmatprep.mubr.bf16.mxu0 %v1382_v9  ;;  %v760_v21 = vmul.f32 %v2388_v51, %v2619_v22 }
  0x6b   : > { %v1182_v56 = vadd.f32 %v1150_v1, %v1081_v43  ;;  %v860_v8 = vmul.f32 %v2460_v18, %v2332_v23  ;;  %v861_v0 = vmul.f32 %v2474_v27, %v2332_v23  ;;  %v1183_v49 = vadd.f32 %v1151_v5, %v1082_v54 }
  0x6c   : > { %v690_v46 = vadd.f32 %v658_v55, %v589_v61  ;;  %v691_v53 = vadd.f32 %v659_v35, %v590_v25  ;;  %v961_v26 = vmul.f32 %v2393_v52, %v2626_v50  ;;  %v962_v1 = vmul.f32 %v2393_v52, %v2628_v45 }
  0x6d   : > { %v1283_v36 = vadd.f32 %v1251_v38, %v1182_v56  ;;  %v1164_v39 = vmul.f32 %v2815_v47, %v2346_v29  ;;  %v1165_v12 = vmul.f32 %v2817_v41, %v2346_v29  ;;  %v1284_v31 = vadd.f32 %v1252_v13, %v1183_v49  ;;  %v3558_v47 = vld [vmem:[#allocation36_spill] sm:$0xff] }
  0x6e   : > { %v791_v24 = vadd.f32 %v759_v60, %v690_v46  ;;  %v792_v34 = vadd.f32 %v760_v21, %v691_v53  ;;  %v2850_v3 = vunpack.c.l.bf16 %v2055_v10  ;;  %v2853_v9 = vld [vmem:[#allocation2 + $0x1c6] sm:$0xff]  ;;  %v2859_v55 = vunpack.c.h.bf16 %v2055_v10 }
  0x6f   : > { %v1322_v5 = vadd.f32 %v2587_v62, %v1283_v36  ;;  %v2855_v43 = vld [vmem:[#allocation2 + $0x1ce] sm:$0xff]  ;;  %v458_v35 = vmul.f32 %v2306_v7, %v2655_v63  ;;  %v459_v13 = vmul.f32 %v2306_v7, %v2663_v19  ;;  %v1323_v54 = vadd.f32 %v2587_v62, %v1284_v31 }
  0x70   : > { %3551 = vst [vmem:[#allocation5_spill] sm:$0xff] %v2850_v3  ;;  %v2857_v38 = vld [vmem:[#allocation2 + $0x1ca] sm:$0xff]  ;;  %3553 = vst [vmem:[#allocation15_spill] sm:$0xff] %v2859_v55  ;;  %v892_v61 = vadd.f32 %v860_v8, %v791_v24  ;;  %v893_v25 = vadd.f32 %v861_v0, %v792_v34  ;;  %v1063_v60 = vmul.f32 %v2409_v58, %v2853_v9  ;;  %v2868_v56 = vld [vmem:[#allocation2 + $0x1d2] sm:$0xff] }
  0x71   : > { %3552 = vst [vmem:[#allocation13_spill] sm:$0xff] %v2857_v38  ;;  %3554 = vst [vmem:[#allocation16_spill] sm:$0xff] %v2868_v56  ;;  %v1354_v21 = vmax.f32 %v1322_v5, 0.0  ;;  %v1064_v10 = vmul.f32 %v2409_v58, %v2855_v43  ;;  %v1265_v63 = vmul.f32 %v2414_v59, %v2857_v38  ;;  %v1266_v19 = vmul.f32 %v2414_v59, %v2868_v56  ;;  %v3555_v36 = vld [vmem:[#allocation30_spill] sm:$0xff]  ;;  %v3556_v24 = vld [vmem:[#allocation31_spill] sm:$0xff] }
  0x72   : > { %393 = vst [vmem:[#allocation2 + $0x1e8] sm:$0xff] %v2850_v3  ;;  %394 = vst [vmem:[#allocation2 + $0x1f0] sm:$0xff] %v2859_v55  ;;  %v1355_v8 = vmax.f32 %v1323_v54, 0.0  ;;  %v993_v0 = vadd.f32 %v961_v26, %v892_v61  ;;  %v994_v49 = vadd.f32 %v962_v1, %v893_v25  ;;  %v559_v46 = vmul.f32 %v2562_v30, %v2315_v14  ;;  %v3557_v5 = vld [vmem:[#allocation32_spill] sm:$0xff] }
  0x73   : > { %v560_v53 = vmul.f32 %v2570_v6, %v2315_v14  ;;  %v660_v31 = vmul.f32 %v2323_v20, %v3555_v36  ;;  %v661_v34 = vmul.f32 %v2323_v20, %v3556_v24  ;;  %v761_v56 = vmul.f32 %v2388_v51, %v3557_v5 }
  0x74   : > { %v1383_v38 = vpack.c.bf16 %v1355_v8, %v1354_v21  ;;  %v1095_v41 = vadd.f32 %v1063_v60, %v993_v0  ;;  %v1096_v54 = vadd.f32 %v1064_v10, %v994_v49  ;;  %v591_v26 = vadd.f32 %v559_v46, %v458_v35  ;;  %v407_v60 = vld [vmem:[#allocation2 + $0x86] sm:$0xff]  ;;  %v408_v10 = vld [vmem:[#allocation2 + $0x8e] sm:$0xff] }
  0x75   : > { %v592_v1 = vadd.f32 %v560_v53, %v459_v13  ;;  %v762_v30 = vmul.f32 %v2388_v51, %v2703_v42  ;;  %v862_v6 = vmul.f32 %v2600_v40, %v2332_v23  ;;  %v863_v61 = vmul.f32 %v2651_v32, %v2332_v23  ;;  %v3559_v13 = vld [vmem:[#allocation37_spill] sm:$0xff] }
  0x76   : > { %2103 = vmatmul.mubr.bf16.gmra.mxu0 %v1383_v38  ;;  %v1196_v25 = vadd.f32 %v1164_v39, %v1095_v41  ;;  %v1197_v36 = vadd.f32 %v1165_v12, %v1096_v54  ;;  %v692_v24 = vadd.f32 %v660_v31, %v591_v26  ;;  %v963_v21 = vmul.f32 %v2393_v52, %v3558_v47  ;;  %v508_v41 = vld [vmem:[#allocation2 + $0x88] sm:$0xff]  ;;  %v509_v39 = vld [vmem:[#allocation2 + $0x90] sm:$0xff] }
  0x77   : > { %v693_v35 = vadd.f32 %v661_v34, %v592_v1  ;;  %v964_v8 = vmul.f32 %v2393_v52, %v3559_v13  ;;  %v1166_v49 = vmul.f32 %v2850_v3, %v2346_v29  ;;  %v1167_v38 = vmul.f32 %v2859_v55, %v2346_v29 }
  0x78   : > { %v1297_v12 = vadd.f32 %v1265_v63, %v1196_v25  ;;  %v1298_v46 = vadd.f32 %v1266_v19, %v1197_v36  ;;  %v793_v53 = vadd.f32 %v761_v56, %v692_v24  ;;  %v609_v56 = vld [vmem:[#allocation2 + $0x8a] sm:$0xff]  ;;  %v444_v24 = vmul.f32 %v2306_v7, %v407_v60 }
  0x79   : > { %v2898_v0 = vld [vmem:[#allocation2 + $0x1e6] sm:$0xff]  ;;  %v2904_v31 = vld [vmem:[#allocation2 + $0x1ee] sm:$0xff]  ;;  %v794_v1 = vadd.f32 %v762_v30, %v693_v35  ;;  %v445_v30 = vmul.f32 %v2306_v7, %v408_v10  ;;  %v545_v35 = vmul.f32 %v2315_v14, %v508_v41  ;;  %v748_v7 = vmul.f32 %v2388_v51, %v2748_v28 }
  0x7a   : > { %3560 = vst [vmem:[#allocation6_spill] sm:$0xff] %v2898_v0  ;;  %3561 = vst [vmem:[#allocation7_spill] sm:$0xff] %v2904_v31  ;;  %v1065_v34 = vmul.f32 %v2409_v58, %v2898_v0  ;;  %v2908_v54 = vld [vmem:[#allocation2 + $0x1ea] sm:$0xff]  ;;  %v2910_v26 = vld [vmem:[#allocation2 + $0x1f2] sm:$0xff]  ;;  %v1066_v3 = vmul.f32 %v2409_v58, %v2904_v31  ;;  %v1336_v19 = vadd.f32 %v2587_v62, %v1297_v12 }
  0x7b   : > { %3562 = vst [vmem:[#allocation18_spill] sm:$0xff] %v2908_v54  ;;  %3563 = vst [vmem:[#allocation19_spill] sm:$0xff] %v2910_v26  ;;  %v1267_v55 = vmul.f32 %v2414_v59, %v2908_v54  ;;  %v1268_v63 = vmul.f32 %v2414_v59, %v2910_v26  ;;  %v1337_v25 = vadd.f32 %v2587_v62, %v1298_v46  ;;  %v610_v0 = vld [vmem:[#allocation2 + $0x92] sm:$0xff] }
  0x7c   : > { %v894_v36 = vadd.f32 %v862_v6, %v793_v53  ;;  %v895_v13 = vadd.f32 %v863_v61, %v794_v1  ;;  %v546_v31 = vmul.f32 %v2315_v14, %v509_v39  ;;  %v1368_v54 = vmax.f32 %v1336_v19, 0.0 }
  0x7d   : > { %v1369_v47 = vmax.f32 %v1337_v25, 0.0  ;;  %v646_v26 = vmul.f32 %v2323_v20, %v609_v56  ;;  %v577_v12 = vadd.f32 %v545_v35, %v444_v24  ;;  %v647_v6 = vmul.f32 %v2323_v20, %v610_v0  ;;  %v3566_v0 = vld [vmem:[#allocation38_spill] sm:$0xff]  ;;  %v3571_v25 = vld [vmem:[#allocation9_spill] sm:$0xff] }
  0x7e   : > { %v995_v32 = vadd.f32 %v963_v21, %v894_v36  ;;  %v996_v40 = vadd.f32 %v964_v8, %v895_v13  ;;  %v578_v42 = vadd.f32 %v546_v31, %v445_v30  ;;  %v747_v61 = vmul.f32 %v2388_v51, %v2746_v48  ;;  %v3564_v21 = vld [vmem:[#allocation33_spill] sm:$0xff]  ;;  %v3565_v8 = vld [vmem:[#allocation34_spill] sm:$0xff] }
  0x7f   : > { %v1390_v46 = vpack.c.bf16 %v1369_v47, %v1368_v54  ;;  %v678_v14 = vadd.f32 %v646_v26, %v577_v12  ;;  %v848_v39 = vmul.f32 %v3564_v21, %v2332_v23  ;;  %v849_v53 = vmul.f32 %v3565_v8, %v2332_v23  ;;  %v3567_v47 = vld [vmem:[#allocation11_spill] sm:$0xff]  ;;  %v3569_v26 = vld [vmem:[#allocation21_spill] sm:$0xff] }
  0x80   : > { %v1097_v60 = vadd.f32 %v1065_v34, %v995_v32  ;;  %v1098_v10 = vadd.f32 %v1066_v3, %v996_v40  ;;  %v679_v41 = vadd.f32 %v647_v6, %v578_v42  ;;  %v949_v32 = vmul.f32 %v2393_v52, %v3566_v0  ;;  %v3568_v40 = vld [vmem:[#allocation20_spill] sm:$0xff]  ;;  %v510_v24 = vld [vmem:[#allocation2 + $0xa8] sm:$0xff] }
  0x81   : > { %2118 = vmatprep.mubr.bf16.mxu1 %v1390_v46  ;;  %v950_v31 = vmul.f32 %v2393_v52, %v3567_v47  ;;  %v779_v54 = vadd.f32 %v747_v61, %v678_v14  ;;  %v1051_v42 = vmul.f32 %v2409_v58, %v3568_v40  ;;  %v1052_v56 = vmul.f32 %v2409_v58, %v3569_v26  ;;  %v511_v46 = vld [vmem:[#allocation2 + $0xb0] sm:$0xff] }
  0x82   : > { %v1198_v13 = vadd.f32 %v1166_v49, %v1097_v60  ;;  %v1199_v34 = vadd.f32 %v1167_v38, %v1098_v10  ;;  %v780_v1 = vadd.f32 %v748_v7, %v679_v41  ;;  %v3570_v49 = vld [vmem:[#allocation8_spill] sm:$0xff]  ;;  %v1153_v36 = vmul.f32 %v3571_v25, %v2346_v29  ;;  %v3572_v38 = vld [vmem:[#allocation22_spill] sm:$0xff] }
  0x83   : > { %v1152_v19 = vmul.f32 %v3570_v49, %v2346_v29  ;;  %v880_v35 = vadd.f32 %v848_v39, %v779_v54  ;;  %v1253_v6 = vmul.f32 %v2414_v59, %v3572_v38  ;;  %v2954_v7 = vld [vmem:[%s3414_s1] ss:$0 sm:$0xff]  ;;  %v2964_v39 = vld [vmem:[%s3414_s1 + $0x1] ss:$0 sm:$0xff]  ;;  %v750_v26 = vmul.f32 %v2388_v51, %v2795_v17 }
  0x84   : > { %v1299_v3 = vadd.f32 %v1267_v55, %v1198_v13  ;;  %v1300_v30 = vadd.f32 %v1268_v63, %v1199_v34  ;;  %v881_v12 = vadd.f32 %v849_v53, %v780_v1  ;;  %v3573_v55 = vld [vmem:[#allocation23_spill] sm:$0xff]  ;;  %v446_v29 = vmul.f32 %v2954_v7, %v3542_v16 }
  0x85   : > { %v1254_v61 = vmul.f32 %v2414_v59, %v3573_v55  ;;  %v447_v63 = vmul.f32 %v2954_v7, %v3543_v2  ;;  %v981_v14 = vadd.f32 %v949_v32, %v880_v35  ;;  %v547_v13 = vmul.f32 %v2964_v39, %v510_v24  ;;  %v3576_v55 = vld [vmem:[#allocation26_spill] sm:$0xff] }
  0x86   : > { %v1338_v60 = vadd.f32 %v2587_v62, %v1299_v3  ;;  %v1339_v10 = vadd.f32 %v2587_v62, %v1300_v30  ;;  %v982_v41 = vadd.f32 %v950_v31, %v881_v12  ;;  %v548_v34 = vmul.f32 %v2964_v39, %v511_v46  ;;  %v3575_v12 = vld [vmem:[#allocation25_spill] sm:$0xff]  ;;  %v2056_v46 = vld [vmem:[%s2296_s15 + $0x70] sm:$0xff]  }
  0x87   : > { %v648_v16 = vmul.f32 %v2323_v20, %v3546_v44  ;;  %v649_v2 = vmul.f32 %v2323_v20, %v3547_v57  ;;  %v1083_v1 = vadd.f32 %v1051_v42, %v981_v14  ;;  %v579_v31 = vadd.f32 %v547_v13, %v446_v29  ;;  %v2981_v57 = vld [vmem:[%s3414_s1 + $0x4] ss:$0 sm:$0xff]  ;;  %v3574_v42 = vld [vmem:[#allocation39_spill] sm:$0xff]  ;;  %v3578_v14 = vld [vmem:[#allocation17_spill] sm:$0xff] }
  0x88   : > { %v1370_v53 = vmax.f32 %v1338_v60, 0.0  ;;  %v1371_v54 = vmax.f32 %v1339_v10, 0.0  ;;  %v1084_v32 = vadd.f32 %v1052_v56, %v982_v41  ;;  %v580_v40 = vadd.f32 %v548_v34, %v447_v63  ;;  %v2997_v63 = vld [vmem:[%s3414_s1 + $0x7] ss:$0 sm:$0xff]  ;;  %v3577_v10 = vld [vmem:[#allocation14_spill] sm:$0xff] }
  0x89   : > { %v749_v3 = vmul.f32 %v2388_v51, %v2792_v33  ;;  %v850_v49 = vmul.f32 %v2744_v4, %v2332_v23  ;;  %v1184_v44 = vadd.f32 %v1152_v19, %v1083_v1  ;;  %v680_v30 = vadd.f32 %v648_v16, %v579_v31  ;;  %v3580_v16 = vld [vmem:[#allocation29_spill] sm:$0xff] }
  0x8a   : > { %v1391_v25 = vpack.c.bf16 %v1371_v54, %v1370_v53  ;;  %v1185_v24 = vadd.f32 %v1153_v36, %v1084_v32  ;;  %v681_v20 = vadd.f32 %v649_v2, %v580_v40  ;;  %v851_v56 = vmul.f32 %v2981_v57, %v3574_v42  ;;  %v3579_v53 = vld [vmem:[#allocation27_spill] sm:$0xff] }
  0x8b   : > { %v951_v51 = vmul.f32 %v2393_v52, %v2799_v37  ;;  %v952_v35 = vmul.f32 %v2393_v52, %v2801_v11  ;;  %v1285_v23 = vadd.f32 %v1253_v6, %v1184_v44  ;;  %v781_v36 = vadd.f32 %v749_v3, %v680_v30 }
  0x8c   : > { %2119 = vmatmul.mubr.bf16.gmra.mxu1 %v1391_v25  ;;  %v1286_v19 = vadd.f32 %v1254_v61, %v1185_v24  ;;  %v1053_v38 = vmul.f32 %v2409_v58, %v3575_v12  ;;  %v782_v60 = vadd.f32 %v750_v26, %v681_v20  ;;  %v1054_v29 = vmul.f32 %v2409_v58, %v3576_v55  ;;  %v2057_v12 = vld [vmem:[%s2296_s15 + $0x78] sm:$0xff]   ;;  %v3049_v55 = vld [vmem:[%s3414_s1 + $0x5] ss:$0 sm:$0xff] }
  0x8d   : > { %v1154_v52 = vmul.f32 %v2997_v63, %v3577_v10  ;;  %v1155_v6 = vmul.f32 %v2997_v63, %v3578_v14  ;;  %v1324_v61 = vadd.f32 %v2587_v62, %v1285_v23  ;;  %v882_v13 = vadd.f32 %v850_v49, %v781_v36  ;;  %v3586_v14 = vld [vmem:[#allocation16_spill] sm:$0xff] }
  0x8e   : > { %v1325_v41 = vadd.f32 %v2587_v62, %v1286_v19  ;;  %v1255_v34 = vmul.f32 %v2414_v59, %v3579_v53  ;;  %v883_v58 = vadd.f32 %v851_v56, %v782_v60  ;;  %v1256_v2 = vmul.f32 %v2414_v59, %v3580_v16 }
  0x8f   : > { %v3009_v54 = vunpack.c.l.bf16 %v2056_v46  ;;  %v3011_v1 = vunpack.c.h.bf16 %v2056_v46  ;;  %v1356_v32 = vmax.f32 %v1324_v61, 0.0  ;;  %v983_v40 = vadd.f32 %v951_v51, %v882_v13 }
  0x90   : > { %v1357_v31 = vmax.f32 %v1325_v41, 0.0  ;;  %v460_v3 = vmul.f32 %v2954_v7, %v2617_v15  ;;  %v984_v26 = vadd.f32 %v952_v35, %v883_v58  ;;  %v461_v49 = vmul.f32 %v2954_v7, %v2619_v22  ;;  %v3026_v15 = vld [vmem:[%s3414_s1 + $0x2] ss:$0 sm:$0xff] }
  0x91   : > { %3581 = vst [vmem:[#allocation10_spill] sm:$0xff] %v3009_v54  ;;  %3582 = vst [vmem:[#allocation30_spill] sm:$0xff] %v3011_v1  ;;  %v561_v59 = vmul.f32 %v2964_v39, %v2460_v18  ;;  %v562_v25 = vmul.f32 %v2964_v39, %v2474_v27  ;;  %v1085_v24 = vadd.f32 %v1053_v38, %v983_v40  ;;  %v3035_v27 = vld [vmem:[%s3414_s1 + $0x3] ss:$0 sm:$0xff]  ;;  %v3059_v16 = vunpack.c.l.bf16 %v2057_v12 }
  0x92   : > { %395 = vst [vmem:[#allocation2 + $0x208] sm:$0xff] %v3009_v54  ;;  %396 = vst [vmem:[#allocation2 + $0x210] sm:$0xff] %v3011_v1  ;;  %v1384_v44 = vpack.c.bf16 %v1357_v31, %v1356_v32  ;;  %v662_v30 = vmul.f32 %v3026_v15, %v2626_v50  ;;  %v663_v22 = vmul.f32 %v3026_v15, %v2628_v45  ;;  %v3583_v50 = vld [vmem:[#allocation12_spill] sm:$0xff] }
  0x93   : > { %v1086_v20 = vadd.f32 %v1054_v29, %v984_v26  ;;  %v593_v56 = vadd.f32 %v561_v59, %v460_v3  ;;  %v594_v18 = vadd.f32 %v562_v25, %v461_v49  ;;  %v763_v51 = vmul.f32 %v3035_v27, %v2853_v9  ;;  %v3584_v45 = vld [vmem:[#allocation4_spill] sm:$0xff]  ;;  %v3585_v29 = vld [vmem:[#allocation13_spill] sm:$0xff]  ;;  %3587 = vst [vmem:[#allocation31_spill] sm:$0xff] %v3059_v16  ;;  %v3591_v49 = vld [vmem:[#allocation35_spill] sm:$0xff] }
  0x94   : > { %2106 = vmatprep.mubr.bf16.mxu0 %v1384_v44  ;;  %v1186_v35 = vadd.f32 %v1154_v52, %v1085_v24  ;;  %v764_v23 = vmul.f32 %v3035_v27, %v2855_v43  ;;  %v864_v19 = vmul.f32 %v2981_v57, %v3583_v50  ;;  %v865_v36 = vmul.f32 %v2981_v57, %v3584_v45  ;;  %v3078_v24 = vld [vmem:[%s3414_s1 + $0x6] ss:$0 sm:$0xff] }
  0x95   : > { %v1187_v38 = vadd.f32 %v1155_v6, %v1086_v20  ;;  %v694_v46 = vadd.f32 %v662_v30, %v593_v56  ;;  %v695_v60 = vadd.f32 %v663_v22, %v594_v18  ;;  %v965_v10 = vmul.f32 %v3049_v55, %v3585_v29  ;;  %397 = vst [vmem:[#allocation2 + $0x228] sm:$0xff] %v3059_v16  ;;  %v3090_v56 = vld [vmem:[%s3414_s1 + $0x8] ss:$0 sm:$0xff] }
  0x96   : > { %v1287_v52 = vadd.f32 %v1255_v34, %v1186_v35  ;;  %v966_v61 = vmul.f32 %v3049_v55, %v3586_v14  ;;  %v1168_v41 = vmul.f32 %v2997_v63, %v3009_v54  ;;  %v1169_v6 = vmul.f32 %v2997_v63, %v3011_v1 }
  0x97   : > { %v1288_v13 = vadd.f32 %v1256_v2, %v1187_v38  ;;  %v795_v53 = vadd.f32 %v763_v51, %v694_v46  ;;  %v796_v58 = vadd.f32 %v764_v23, %v695_v60  ;;  %v3068_v3 = vunpack.c.h.bf16 %v2057_v12  ;;  %v3594_v38 = vld [vmem:[#allocation28_spill] sm:$0xff] }
  0x98   : > { %v1326_v32 = vadd.f32 %v2587_v62, %v1287_v52  ;;  %v462_v26 = vmul.f32 %v2954_v7, %v3557_v5  ;;  %v463_v2 = vmul.f32 %v2954_v7, %v3591_v49  ;;  %v564_v46 = vmul.f32 %v2964_v39, %v3594_v38  ;;  %v3595_v60 = vld [vmem:[#allocation36_spill] sm:$0xff] }
  0x99   : > { %v3062_v31 = vld [vmem:[#allocation2 + $0x206] sm:$0xff]  ;;  %v3064_v40 = vld [vmem:[#allocation2 + $0x20e] sm:$0xff]  ;;  %3590 = vst [vmem:[#allocation34_spill] sm:$0xff] %v3068_v3  ;;  %v1327_v59 = vadd.f32 %v2587_v62, %v1288_v13  ;;  %v896_v25 = vadd.f32 %v864_v19, %v795_v53  ;;  %v897_v44 = vadd.f32 %v865_v36, %v796_v58  ;;  %398 = vst [vmem:[#allocation2 + $0x230] sm:$0xff] %v3068_v3 }
  0x9a   : > { %3588 = vst [vmem:[#allocation32_spill] sm:$0xff] %v3064_v40  ;;  %v3066_v34 = vld [vmem:[#allocation2 + $0x20a] sm:$0xff]  ;;  %v1067_v30 = vmul.f32 %v3078_v24, %v3062_v31  ;;  %v3082_v22 = vld [vmem:[#allocation2 + $0x212] sm:$0xff]  ;;  %v1358_v5 = vmax.f32 %v1326_v32, 0.0  ;;  %v1068_v20 = vmul.f32 %v3078_v24, %v3064_v40  ;;  %v3593_v36 = vld [vmem:[#allocation24_spill] sm:$0xff]  ;;  %v664_v52 = vmul.f32 %v3026_v15, %v3595_v60 }
  0x9b   : > { %3589 = vst [vmem:[#allocation33_spill] sm:$0xff] %v3066_v34  ;;  %3592 = vst [vmem:[#allocation38_spill] sm:$0xff] %v3082_v22  ;;  %v1269_v18 = vmul.f32 %v3090_v56, %v3066_v34  ;;  %v1270_v51 = vmul.f32 %v3090_v56, %v3082_v22  ;;  %v1359_v35 = vmax.f32 %v1327_v59, 0.0  ;;  %v997_v23 = vadd.f32 %v965_v10, %v896_v25  ;;  %v3596_v13 = vld [vmem:[#allocation37_spill] sm:$0xff]  ;;  %v3597_v58 = vld [vmem:[#allocation6_spill] sm:$0xff] }
  0x9c   : > { %v998_v19 = vadd.f32 %v966_v61, %v897_v44  ;;  %v563_v12 = vmul.f32 %v2964_v39, %v3593_v36  ;;  %v665_v53 = vmul.f32 %v3026_v15, %v3596_v13  ;;  %v765_v32 = vmul.f32 %v3035_v27, %v3597_v58  ;;  %v3598_v25 = vld [vmem:[#allocation7_spill] sm:$0xff]  ;;  %v3599_v36 = vld [vmem:[#allocation5_spill] sm:$0xff]  ;;  %v3601_v40 = vld [vmem:[#allocation18_spill] sm:$0xff] }
  0x9d   : > { %v1385_v49 = vpack.c.bf16 %v1359_v35, %v1358_v5  ;;  %v1099_v22 = vadd.f32 %v1067_v30, %v997_v23  ;;  %v596_v61 = vadd.f32 %v564_v46, %v463_v2  ;;  %v766_v44 = vmul.f32 %v3035_v27, %v3598_v25  ;;  %v3600_v34 = vld [vmem:[#allocation15_spill] sm:$0xff]  ;;  %v3117_v2 = vld [vmem:[#allocation2 + $0x226] sm:$0xff] }
  0x9e   : > { %v1100_v59 = vadd.f32 %v1068_v20, %v998_v19  ;;  %v595_v10 = vadd.f32 %v563_v12, %v462_v26  ;;  %v866_v38 = vmul.f32 %v2981_v57, %v3599_v36  ;;  %v867_v60 = vmul.f32 %v2981_v57, %v3600_v34  ;;  %v3602_v20 = vld [vmem:[#allocation19_spill] sm:$0xff] }
  0x9f   : > { %2107 = vmatmul.mubr.bf16.gmra.mxu0 %v1385_v49  ;;  %v1200_v1 = vadd.f32 %v1168_v41, %v1099_v22  ;;  %v967_v5 = vmul.f32 %v3049_v55, %v3601_v40  ;;  %v697_v30 = vadd.f32 %v665_v53, %v596_v61  ;;  %v968_v26 = vmul.f32 %v3049_v55, %v3602_v20 }
  0xa0   : > { %v1201_v13 = vadd.f32 %v1169_v6, %v1100_v59  ;;  %v696_v54 = vadd.f32 %v664_v52, %v595_v10  ;;  %v1170_v35 = vmul.f32 %v2997_v63, %v3059_v16  ;;  %v1171_v23 = vmul.f32 %v2997_v63, %v3068_v3  ;;  %v3123_v6 = vld [vmem:[#allocation2 + $0x22e] sm:$0xff] }
  0xa1   : > { %v1301_v19 = vadd.f32 %v1269_v18, %v1200_v1  ;;  %3603 = vst [vmem:[#allocation11_spill] sm:$0xff] %v3123_v6  ;;  %v1069_v22 = vmul.f32 %v3078_v24, %v3117_v2  ;;  %v3127_v46 = vld [vmem:[#allocation2 + $0x22a] sm:$0xff]  ;;  %v3129_v52 = vld [vmem:[#allocation2 + $0x232] sm:$0xff]  ;;  %v798_v53 = vadd.f32 %v766_v44, %v697_v30  ;;  %v1070_v49 = vmul.f32 %v3078_v24, %v3123_v6 }
  0xa2   : > { %v1302_v12 = vadd.f32 %v1270_v51, %v1201_v13  ;;  %v797_v41 = vadd.f32 %v765_v32, %v696_v54  ;;  %3604 = vst [vmem:[#allocation20_spill] sm:$0xff] %v3127_v46  ;;  %3605 = vst [vmem:[#allocation21_spill] sm:$0xff] %v3129_v52  ;;  %v1271_v59 = vmul.f32 %v3090_v56, %v3127_v46  ;;  %v714_v30 = vld [vmem:[#allocation2 + $0x106] sm:$0xff] }
  0xa3   : > { %v1272_v1 = vmul.f32 %v3090_v56, %v3129_v52  ;;  %v1340_v54 = vadd.f32 %v2587_v62, %v1301_v19  ;;  %v448_v32 = vmul.f32 %v2954_v7, %v2746_v48  ;;  %v899_v10 = vadd.f32 %v867_v60, %v798_v53  ;;  %v715_v52 = vld [vmem:[#allocation2 + $0x10e] sm:$0xff] }
  0xa4   : > { %v1341_v18 = vadd.f32 %v2587_v62, %v1302_v12  ;;  %v898_v51 = vadd.f32 %v866_v38, %v797_v41  ;;  %v449_v61 = vmul.f32 %v2954_v7, %v2748_v28  ;;  %v549_v44 = vmul.f32 %v2964_v39, %v3564_v21  ;;  %v815_v38 = vld [vmem:[#allocation2 + $0x108] sm:$0xff]  ;;  %v816_v41 = vld [vmem:[#allocation2 + $0x110] sm:$0xff] }
  0xa5   : > { %v550_v13 = vmul.f32 %v2964_v39, %v3565_v8  ;;  %v1372_v46 = vmax.f32 %v1340_v54, 0.0  ;;  %v650_v62 = vmul.f32 %v3026_v15, %v3566_v0  ;;  %v1000_v48 = vadd.f32 %v968_v26, %v899_v10  ;;  %v916_v21 = vld [vmem:[#allocation2 + $0x10a] sm:$0xff]  ;;  %v917_v53 = vld [vmem:[#allocation2 + $0x112] sm:$0xff] }
  0xa6   : > { %v1373_v19 = vmax.f32 %v1341_v18, 0.0  ;;  %v999_v3 = vadd.f32 %v967_v5, %v898_v51  ;;  %v581_v60 = vadd.f32 %v549_v44, %v448_v32  ;;  %v651_v28 = vmul.f32 %v3026_v15, %v3567_v47  ;;  %v1018_v5 = vld [vmem:[#allocation2 + $0x146] sm:$0xff]  ;;  %v1019_v32 = vld [vmem:[#allocation2 + $0x14e] sm:$0xff] }
  0xa7   : > { %v582_v12 = vadd.f32 %v550_v13, %v449_v61  ;;  %v751_v6 = vmul.f32 %v3035_v27, %v714_v30  ;;  %v752_v54 = vmul.f32 %v3035_v27, %v715_v52  ;;  %v1102_v18 = vadd.f32 %v1070_v49, %v1000_v48  ;;  %v1119_v10 = vld [vmem:[#allocation2 + $0x148] sm:$0xff]  ;;  %v1120_v61 = vld [vmem:[#allocation2 + $0x150] sm:$0xff] }
  0xa8   : > { %v1392_v16 = vpack.c.bf16 %v1373_v19, %v1372_v46  ;;  %v1101_v8 = vadd.f32 %v1069_v22, %v999_v3  ;;  %v682_v51 = vadd.f32 %v650_v62, %v581_v60  ;;  %v852_v26 = vmul.f32 %v2981_v57, %v815_v38  ;;  %v1220_v22 = vld [vmem:[#allocation2 + $0x14a] sm:$0xff]  ;;  %v1221_v19 = vld [vmem:[#allocation2 + $0x152] sm:$0xff] }
  0xa9   : > { %v683_v0 = vadd.f32 %v651_v28, %v582_v12  ;;  %v853_v44 = vmul.f32 %v2981_v57, %v816_v41  ;;  %v953_v46 = vmul.f32 %v3049_v55, %v916_v21  ;;  %v954_v3 = vmul.f32 %v3049_v55, %v917_v53 }
  0xaa   : > { %2122 = vmatprep.mubr.bf16.mxu1 %v1392_v16  ;;  %v1202_v47 = vadd.f32 %v1170_v35, %v1101_v8  ;;  %v1203_v13 = vadd.f32 %v1171_v23, %v1102_v18  ;;  %v783_v52 = vadd.f32 %v751_v6, %v682_v51  ;;  %v1055_v49 = vmul.f32 %v3078_v24, %v1018_v5  ;;  %v3165_v23 = vld [vmem:[%s3415_s2] ss:$0 sm:$0xff]  ;;  %v716_v5 = vld [vmem:[#allocation2 + $0x126] sm:$0xff]  ;;  %v717_v18 = vld [vmem:[#allocation2 + $0x12e] sm:$0xff] }
  0xab   : > { %v784_v30 = vadd.f32 %v752_v54, %v683_v0  ;;  %v1056_v38 = vmul.f32 %v3078_v24, %v1019_v32  ;;  %v1156_v48 = vmul.f32 %v2997_v63, %v1119_v10  ;;  %v1157_v16 = vmul.f32 %v2997_v63, %v1120_v61  ;;  %v817_v51 = vld [vmem:[#allocation2 + $0x128] sm:$0xff] }
  0xac   : > { %v1303_v62 = vadd.f32 %v1271_v59, %v1202_v47  ;;  %v1304_v35 = vadd.f32 %v1272_v1, %v1203_v13  ;;  %v884_v60 = vadd.f32 %v852_v26, %v783_v52  ;;  %v1257_v28 = vmul.f32 %v3090_v56, %v1220_v22  ;;  %v1020_v52 = vld [vmem:[#allocation2 + $0x166] sm:$0xff] }
  0xad   : > { %v885_v12 = vadd.f32 %v853_v44, %v784_v30  ;;  %v1258_v59 = vmul.f32 %v3090_v56, %v1221_v19  ;;  %v450_v41 = vmul.f32 %v2954_v7, %v2792_v33  ;;  %v451_v21 = vmul.f32 %v2954_v7, %v2795_v17  ;;  %v818_v44 = vld [vmem:[#allocation2 + $0x130] sm:$0xff] }
  0xae   : > { %v1342_v6 = vadd.f32 %v3165_v23, %v1303_v62  ;;  %v1343_v1 = vadd.f32 %v3165_v23, %v1304_v35  ;;  %v985_v53 = vadd.f32 %v953_v46, %v884_v60  ;;  %v551_v54 = vmul.f32 %v2964_v39, %v2744_v4  ;;  %v918_v46 = vld [vmem:[#allocation2 + $0x12a] sm:$0xff]  ;;  %v919_v4 = vld [vmem:[#allocation2 + $0x132] sm:$0xff] }
  0xaf   : > { %v986_v8 = vadd.f32 %v954_v3, %v885_v12  ;;  %v552_v26 = vmul.f32 %v2964_v39, %v3574_v42  ;;  %v652_v33 = vmul.f32 %v3026_v15, %v2799_v37  ;;  %v653_v17 = vmul.f32 %v3026_v15, %v2801_v11  ;;  %v1021_v11 = vld [vmem:[#allocation2 + $0x16e] sm:$0xff] }
  0xb0   : > { %v1374_v0 = vmax.f32 %v1342_v6, 0.0  ;;  %v1375_v32 = vmax.f32 %v1343_v1, 0.0  ;;  %v1087_v10 = vadd.f32 %v1055_v49, %v985_v53  ;;  %v583_v47 = vadd.f32 %v551_v54, %v450_v41  ;;  %v1121_v35 = vld [vmem:[#allocation2 + $0x168] sm:$0xff]  ;;  %v1122_v49 = vld [vmem:[#allocation2 + $0x170] sm:$0xff] }
  0xb1   : > { %v1088_v61 = vadd.f32 %v1056_v38, %v986_v8  ;;  %v584_v3 = vadd.f32 %v552_v26, %v451_v21  ;;  %v753_v22 = vmul.f32 %v3035_v27, %v716_v5  ;;  %v754_v13 = vmul.f32 %v3035_v27, %v717_v18  ;;  %v1222_v41 = vld [vmem:[#allocation2 + $0x16a] sm:$0xff] }
  0xb2   : > { %v854_v42 = vmul.f32 %v2981_v57, %v817_v51  ;;  %v1393_v30 = vpack.c.bf16 %v1375_v32, %v1374_v0  ;;  %v1188_v37 = vadd.f32 %v1156_v48, %v1087_v10  ;;  %v684_v62 = vadd.f32 %v652_v33, %v583_v47  ;;  %v1223_v48 = vld [vmem:[#allocation2 + $0x172] sm:$0xff] }
  0xb3   : > { %v1189_v19 = vadd.f32 %v1157_v16, %v1088_v61  ;;  %v685_v38 = vadd.f32 %v653_v17, %v584_v3  ;;  %v855_v60 = vmul.f32 %v2981_v57, %v818_v44  ;;  %v955_v12 = vmul.f32 %v3049_v55, %v918_v46 }
  0xb4   : > { %v956_v6 = vmul.f32 %v3049_v55, %v919_v4  ;;  %2123 = vmatmul.mubr.bf16.gmra.mxu1 %v1393_v30  ;;  %v1289_v21 = vadd.f32 %v1257_v28, %v1188_v37  ;;  %v785_v53 = vadd.f32 %v753_v22, %v684_v62  ;;  %v1057_v8 = vmul.f32 %v3078_v24, %v1020_v52  ;;  %v1034_v52 = vld [vmem:[#allocation2 + $0x246] sm:$0xff]  ;;  %v3607_v62 = vld [vmem:[#allocation10_spill] sm:$0xff] }
  0xb5   : > { %v1290_v1 = vadd.f32 %v1258_v59, %v1189_v19  ;;  %v786_v16 = vadd.f32 %v754_v13, %v685_v38  ;;  %v1058_v54 = vmul.f32 %v3078_v24, %v1021_v11  ;;  %v1158_v5 = vmul.f32 %v2997_v63, %v1121_v35  ;;  %v1035_v11 = vld [vmem:[#allocation2 + $0x24e] sm:$0xff] }
  0xb6   : > { %v1159_v18 = vmul.f32 %v2997_v63, %v1122_v49  ;;  %v1328_v51 = vadd.f32 %v3165_v23, %v1289_v21  ;;  %v886_v26 = vadd.f32 %v854_v42, %v785_v53  ;;  %v1259_v33 = vmul.f32 %v3090_v56, %v1222_v41  ;;  %v3609_v38 = vld [vmem:[#allocation33_spill] sm:$0xff]  ;;  %v3610_v21 = vld [vmem:[#allocation38_spill] sm:$0xff] }
  0xb7   : > { %v1329_v0 = vadd.f32 %v3165_v23, %v1290_v1  ;;  %v887_v28 = vadd.f32 %v855_v60, %v786_v16  ;;  %v1260_v59 = vmul.f32 %v3090_v56, %v1223_v48  ;;  %v464_v17 = vmul.f32 %v2954_v7, %v2853_v9 }
  0xb8   : > { %v465_v32 = vmul.f32 %v2954_v7, %v2855_v43  ;;  %v1360_v10 = vmax.f32 %v1328_v51, 0.0  ;;  %v987_v47 = vadd.f32 %v955_v12, %v886_v26  ;;  %v565_v44 = vmul.f32 %v2964_v39, %v3583_v50  ;;  %v3606_v50 = vld [vmem:[#allocation32_spill] sm:$0xff]  ;;  %v1237_v12 = vld [vmem:[#allocation2 + $0x252] sm:$0xff] }
  0xb9   : > { %v1361_v61 = vmax.f32 %v1329_v0, 0.0  ;;  %v988_v46 = vadd.f32 %v956_v6, %v887_v28  ;;  %v566_v4 = vmul.f32 %v2964_v39, %v3584_v45  ;;  %v666_v3 = vmul.f32 %v3026_v15, %v3585_v29 }
  0xba   : > { %v667_v22 = vmul.f32 %v3026_v15, %v3586_v14  ;;  %v1089_v13 = vadd.f32 %v1057_v8, %v987_v47  ;;  %v597_v42 = vadd.f32 %v565_v44, %v464_v17  ;;  %v767_v43 = vmul.f32 %v3035_v27, %v3062_v31  ;;  %v3608_v14 = vld [vmem:[#allocation30_spill] sm:$0xff] }
  0xbb   : > { %v1386_v9 = vpack.c.bf16 %v1361_v61, %v1360_v10  ;;  %v1090_v30 = vadd.f32 %v1058_v54, %v988_v46  ;;  %v598_v37 = vadd.f32 %v566_v4, %v465_v32  ;;  %v768_v19 = vmul.f32 %v3035_v27, %v3606_v50  ;;  %v1236_v31 = vld [vmem:[#allocation2 + $0x24a] sm:$0xff]  ;;  %v2189_v54 = vld [vmem:[#allocation2] sm:$0xff] }
  0xbc   : > { %v868_v45 = vmul.f32 %v2981_v57, %v3607_v62  ;;  %v1190_v29 = vadd.f32 %v1158_v5, %v1089_v13  ;;  %v698_v35 = vadd.f32 %v666_v3, %v597_v42  ;;  %v869_v49 = vmul.f32 %v2981_v57, %v3608_v14  ;;  %v3614_v50 = vld [vmem:[#allocation20_spill] sm:$0xff]  ;;  %v1037_v62 = vld [vmem:[#allocation2 + $0x26e] sm:$0xff] }
  0xbd   : > { %2110 = vmatprep.mubr.bf16.mxu0 %v1386_v9  ;;  %v969_v60 = vmul.f32 %v3049_v55, %v3609_v38  ;;  %v1191_v6 = vadd.f32 %v1159_v18, %v1090_v30  ;;  %v699_v41 = vadd.f32 %v667_v22, %v598_v37  ;;  %v970_v1 = vmul.f32 %v3049_v55, %v3610_v21  ;;  %v1036_v30 = vld [vmem:[#allocation2 + $0x266] sm:$0xff] }
  0xbe   : > { %v1071_v53 = vmul.f32 %v3078_v24, %v1034_v52  ;;  %v1291_v8 = vadd.f32 %v1259_v33, %v1190_v29  ;;  %v799_v48 = vadd.f32 %v767_v43, %v698_v35  ;;  %v1072_v16 = vmul.f32 %v3078_v24, %v1035_v11  ;;  %v3615_v11 = vld [vmem:[#allocation21_spill] sm:$0xff] }
  0xbf   : > { %v1172_v5 = vmul.f32 %v2189_v54, %v2997_v63  ;;  %v1292_v51 = vadd.f32 %v1260_v59, %v1191_v6  ;;  %v800_v0 = vadd.f32 %v768_v19, %v699_v41  ;;  %v1273_v26 = vmul.f32 %v3090_v56, %v1236_v31  ;;  %v1239_v6 = vld [vmem:[#allocation2 + $0x272] sm:$0xff] }
  0xc0   : > { %v1274_v28 = vmul.f32 %v3090_v56, %v1237_v12  ;;  %v1330_v18 = vadd.f32 %v3165_v23, %v1291_v8  ;;  %v900_v17 = vadd.f32 %v868_v45, %v799_v48  ;;  %v466_v32 = vmul.f32 %v2954_v7, %v3597_v58 }
  0xc1   : > { %v467_v33 = vmul.f32 %v2954_v7, %v3598_v25  ;;  %v1331_v10 = vadd.f32 %v3165_v23, %v1292_v51  ;;  %v901_v61 = vadd.f32 %v869_v49, %v800_v0  ;;  %v567_v63 = vmul.f32 %v2964_v39, %v3599_v36  ;;  %v3611_v36 = vld [vmem:[#allocation11_spill] sm:$0xff] }
  0xc2   : > { %v568_v59 = vmul.f32 %v2964_v39, %v3600_v34  ;;  %v1362_v47 = vmax.f32 %v1330_v18, 0.0  ;;  %v1001_v44 = vadd.f32 %v969_v60, %v900_v17  ;;  %v668_v46 = vmul.f32 %v3026_v15, %v3601_v40  ;;  %v3612_v39 = vld [vmem:[#allocation31_spill] sm:$0xff] }
  0xc3   : > { %v669_v58 = vmul.f32 %v3026_v15, %v3602_v20  ;;  %v1363_v4 = vmax.f32 %v1331_v10, 0.0  ;;  %v1002_v3 = vadd.f32 %v970_v1, %v901_v61  ;;  %v599_v7 = vadd.f32 %v567_v63, %v466_v32  ;;  %v3613_v20 = vld [vmem:[#allocation34_spill] sm:$0xff]  ;;  %v3263_v61 = vld [vmem:[%s3417_s4] ss:$0 sm:$0xff] }
  0xc4   : > { %v600_v25 = vadd.f32 %v568_v59, %v467_v33  ;;  %v1103_v22 = vadd.f32 %v1071_v53, %v1001_v44  ;;  %v769_v9 = vmul.f32 %v3035_v27, %v3117_v2  ;;  %v770_v13 = vmul.f32 %v3035_v27, %v3611_v36 }
  0xc5   : > { %v870_v34 = vmul.f32 %v2981_v57, %v3612_v39  ;;  %v1387_v42 = vpack.c.bf16 %v1363_v4, %v1362_v47  ;;  %v1104_v43 = vadd.f32 %v1072_v16, %v1002_v3  ;;  %v700_v40 = vadd.f32 %v668_v46, %v599_v7 }
  0xc6   : > { %v701_v52 = vadd.f32 %v669_v58, %v600_v25  ;;  %v1204_v15 = vadd.f32 %v1172_v5, %v1103_v22  ;;  %v871_v37 = vmul.f32 %v2981_v57, %v3613_v20  ;;  %v971_v19 = vmul.f32 %v3049_v55, %v3614_v50  ;;  %v1238_v57 = vld [vmem:[#allocation2 + $0x26a] sm:$0xff] }
  0xc7   : > { %2111 = vmatmul.mubr.bf16.gmra.mxu0 %v1387_v42  ;;  %v1205_v2 = vadd.f32 %v1172_v5, %v1104_v43  ;;  %v801_v45 = vadd.f32 %v769_v9, %v700_v40  ;;  %v972_v29 = vmul.f32 %v3049_v55, %v3615_v11  ;;  %v1073_v14 = vmul.f32 %v3078_v24, %v1036_v30 }
  0xc8   : > { %v802_v27 = vadd.f32 %v770_v13, %v701_v52  ;;  %v1305_v35 = vadd.f32 %v1273_v26, %v1204_v15  ;;  %v1074_v31 = vmul.f32 %v3078_v24, %v1037_v62  ;;  %v1275_v8 = vmul.f32 %v3090_v56, %v1238_v57 }
  0xc9   : > { %v1306_v49 = vadd.f32 %v1274_v28, %v1205_v2  ;;  %v902_v38 = vadd.f32 %v870_v34, %v801_v45  ;;  %v1276_v54 = vmul.f32 %v3090_v56, %v1239_v6 }
  0xca   : > { %v903_v60 = vadd.f32 %v871_v37, %v802_v27  ;;  %v1344_v12 = vadd.f32 %v3165_v23, %v1305_v35 }
  0xcb   : > { %v1345_v41 = vadd.f32 %v3165_v23, %v1306_v49  ;;  %v1003_v21 = vadd.f32 %v971_v19, %v902_v38 }
  0xcc   : > { %v1004_v1 = vadd.f32 %v972_v29, %v903_v60  ;;  %v1376_v53 = vmax.f32 %v1344_v12, 0.0 }
  0xcd   : > { %v1377_v55 = vmax.f32 %v1345_v41, 0.0  ;;  %v1105_v48 = vadd.f32 %v1073_v14, %v1003_v21 }
  0xce   : > { %v1106_v16 = vadd.f32 %v1074_v31, %v1004_v1 }
  0xcf   : > { %v1394_v51 = vpack.c.bf16 %v1377_v55, %v1376_v53  ;;  %v1206_v0 = vadd.f32 %v1172_v5, %v1105_v48 }
  0xd0   : > { %v1207_v24 = vadd.f32 %v1172_v5, %v1106_v16 }
  0xd1   : > { %2126 = vmatprep.mubr.bf16.mxu1 %v1394_v51  ;;  %v1307_v26 = vadd.f32 %v1275_v8, %v1206_v0 }
  0xd2   : > { %v1308_v28 = vadd.f32 %v1276_v54, %v1207_v24 }
  0xd3   : > { %v1346_v18 = vadd.f32 %v3165_v23, %v1307_v26 }
  0xd4   : > { %v1347_v17 = vadd.f32 %v3165_v23, %v1308_v28 }
  0xd5   : > { %v1378_v32 = vmax.f32 %v1346_v18, 0.0 }
  0xd6   : > { %v1379_v33 = vmax.f32 %v1347_v17, 0.0 }
  0xd8   : > { %v1395_v10 = vpack.c.bf16 %v1379_v33, %v1378_v32 }
  0xda   : > { %2127 = vmatmul.mubr.bf16.gmra.mxu1 %v1395_v10 }
 0x10b   : > { %v2100_v56 = vpop.f32.mrf.mxu0 }
 0x10c   : > { %v1510_v5 = vadd.f32 %v2100_v56, %v3263_v61 }
 0x10d   : > { %v1501_v63 = vpop.f32.mrf.mxu0 }
 0x10e   : > { %v1630_v59 = vmax.f32 %v1510_v5, 0.0  ;;  %v1502_v47 = vadd.f32 %v3263_v61, %v1501_v63 }
 0x10f   : > { %v2101_v44 = vpop.f32.mrf.mxu0 }
 0x110   : > { %1662 = vst [vmem:[%s3267_s14 + $0x10] sm:$0xff] %v1630_v59  ;;  %v1628_v23 = vmax.f32 %v1502_v47, 0.0  ;;  %v1513_v46 = vadd.f32 %v2101_v44, %v3263_v61 }
 0x111   : > { %v1504_v58 = vpop.f32.mrf.mxu0 }
 0x112   : > { %1660 = vst [vmem:[%s3267_s14] sm:$0xff] %v1628_v23  ;;  %v1631_v4 = vmax.f32 %v1513_v46, 0.0  ;;  %v1505_v3 = vadd.f32 %v3263_v61, %v1504_v58 }
 0x114   : > { %1663 = vst [vmem:[%s3267_s14 + $0x18] sm:$0xff] %v1631_v4  ;;  %v1629_v7 = vmax.f32 %v1505_v3, 0.0 }
 0x116   : > { %1661 = vst [vmem:[%s3267_s14 + $0x8] sm:$0xff] %v1629_v7 }
 0x122   : > { %v2116_v25 = vpop.f32.mrf.mxu1 }
 0x123   : > { %v1574_v22 = vadd.f32 %v2116_v25, %v3263_v61 }
 0x124   : > { %v1565_v9 = vpop.f32.mrf.mxu1 }
 0x125   : > { %v1646_v36 = vmax.f32 %v1574_v22, 0.0  ;;  %v1566_v13 = vadd.f32 %v3263_v61, %v1565_v9 }
 0x126   : > { %v2117_v39 = vpop.f32.mrf.mxu1 }
 0x127   : > { %1678 = vst [vmem:[%s3267_s14 + $0x90] sm:$0xff] %v1646_v36  ;;  %v1644_v34 = vmax.f32 %v1566_v13, 0.0  ;;  %v1577_v42 = vadd.f32 %v2117_v39, %v3263_v61 }
 0x128   : > { %v1568_v43 = vpop.f32.mrf.mxu1 }
 0x129   : > { %1676 = vst [vmem:[%s3267_s14 + $0x80] sm:$0xff] %v1644_v34  ;;  %v1647_v40 = vmax.f32 %v1577_v42, 0.0  ;;  %v1569_v52 = vadd.f32 %v3263_v61, %v1568_v43 }
 0x12b   : > { %1679 = vst [vmem:[%s3267_s14 + $0x98] sm:$0xff] %v1647_v40  ;;  %v1645_v30 = vmax.f32 %v1569_v52, 0.0 }
 0x12d   : > { %1677 = vst [vmem:[%s3267_s14 + $0x88] sm:$0xff] %v1645_v30 }
 0x136   : > { %v2104_v15 = vpop.f32.mrf.mxu0 }
 0x137   : > { %v1526_v20 = vadd.f32 %v2104_v15, %v3263_v61 }
 0x138   : > { %v1517_v37 = vpop.f32.mrf.mxu0 }
 0x139   : > { %v1634_v50 = vmax.f32 %v1526_v20, 0.0  ;;  %v1518_v19 = vadd.f32 %v3263_v61, %v1517_v37 }
 0x13a   : > { %v2105_v62 = vpop.f32.mrf.mxu0 }
 0x13b   : > { %1666 = vst [vmem:[%s3267_s14 + $0x30] sm:$0xff] %v1634_v50  ;;  %v1632_v2 = vmax.f32 %v1518_v19, 0.0  ;;  %v1529_v45 = vadd.f32 %v2105_v62, %v3263_v61 }
 0x13c   : > { %v1520_v27 = vpop.f32.mrf.mxu0 }
 0x13d   : > { %1664 = vst [vmem:[%s3267_s14 + $0x20] sm:$0xff] %v1632_v2  ;;  %v1635_v11 = vmax.f32 %v1529_v45, 0.0  ;;  %v1521_v29 = vadd.f32 %v3263_v61, %v1520_v27 }
 0x13f   : > { %1667 = vst [vmem:[%s3267_s14 + $0x38] sm:$0xff] %v1635_v11  ;;  %v1633_v35 = vmax.f32 %v1521_v29, 0.0  ;;  %v1794_v11 = vld [vmem:[%s3267_s14] sm:$0xff] (%p2275_p4)  ;;  %v1796_v29 = vld [vmem:[%s3267_s14 + $0x8] sm:$0xff] (%p2275_p4) }
 0x140   : > { %1943 = vst [vmem:[%s3340_s18 + $0x10] sm:$0xff] (%p2275_p4), %v1794_v11  ;;  %1944 = vst [vmem:[%s3340_s18 + $0x30] sm:$0xff] (%p2275_p4), %v1796_v29 }
 0x141   : > { %1665 = vst [vmem:[%s3267_s14 + $0x28] sm:$0xff] %v1633_v35  ;;  %v1800_v35 = vld [vmem:[%s3267_s14 + $0x18] sm:$0xff] (%p2275_p4) }
 0x142   : > { %1946 = vst [vmem:[%s3340_s18 + $0x70] sm:$0xff] (%p2275_p4), %v1800_v35 }
 0x14c   : > { %v2120_v14 = vpop.f32.mrf.mxu1 }
 0x14d   : > { %v1590_v49 = vadd.f32 %v2120_v14, %v3263_v61  ;;  %v1802_v14 = vld [vmem:[%s3267_s14 + $0x20] sm:$0xff] (%p2275_p4) }
 0x14e   : > { %v1581_v38 = vpop.f32.mrf.mxu1  ;;  %1947 = vst [vmem:[%s3340_s18 + $0x90] sm:$0xff] (%p2275_p4), %v1802_v14 }
 0x14f   : > { %v1650_v60 = vmax.f32 %v1590_v49, 0.0  ;;  %v1582_v31 = vadd.f32 %v3263_v61, %v1581_v38  ;;  %v1804_v49 = vld [vmem:[%s3267_s14 + $0x28] sm:$0xff] (%p2275_p4)  ;;  %v1806_v38 = vld [vmem:[%s3267_s14 + $0x30] sm:$0xff] (%p2275_p4) }
 0x150   : > { %v2121_v57 = vpop.f32.mrf.mxu1  ;;  %1948 = vst [vmem:[%s3340_s18 + $0xb0] sm:$0xff] (%p2275_p4), %v1804_v49  ;;  %1949 = vst [vmem:[%s3340_s18 + $0xd0] sm:$0xff] (%p2275_p4), %v1806_v38 }
 0x151   : > { %1682 = vst [vmem:[%s3267_s14 + $0xb0] sm:$0xff] %v1650_v60  ;;  %v1648_v12 = vmax.f32 %v1582_v31, 0.0  ;;  %v1593_v6 = vadd.f32 %v2121_v57, %v3263_v61  ;;  %v1808_v60 = vld [vmem:[%s3267_s14 + $0x38] sm:$0xff] (%p2275_p4) }
 0x152   : > { %v1584_v41 = vpop.f32.mrf.mxu1  ;;  %1950 = vst [vmem:[%s3340_s18 + $0xf0] sm:$0xff] (%p2275_p4), %v1808_v60 }
 0x153   : > { %1680 = vst [vmem:[%s3267_s14 + $0xa0] sm:$0xff] %v1648_v12  ;;  %v1651_v21 = vmax.f32 %v1593_v6, 0.0  ;;  %v1585_v1 = vadd.f32 %v3263_v61, %v1584_v41 }
 0x155   : > { %1683 = vst [vmem:[%s3267_s14 + $0xb8] sm:$0xff] %v1651_v21  ;;  %v1649_v53 = vmax.f32 %v1585_v1, 0.0 }
 0x157   : > { %1681 = vst [vmem:[%s3267_s14 + $0xa8] sm:$0xff] %v1649_v53 }
 0x15f   : > { %v2108_v8 = vpop.f32.mrf.mxu0 }
 0x160   : > { %v1542_v55 = vadd.f32 %v2108_v8, %v3263_v61  ;;  %v1826_v8 = vld [vmem:[%s3267_s14 + $0x80] sm:$0xff] (%p2275_p4) }
 0x161   : > { %v1533_v48 = vpop.f32.mrf.mxu0  ;;  %1959 = vst [vmem:[%s3340_s18 + $0x210] sm:$0xff] (%p2275_p4), %v1826_v8 }
 0x162   : > { %v1638_v16 = vmax.f32 %v1542_v55, 0.0  ;;  %v1534_v54 = vadd.f32 %v3263_v61, %v1533_v48  ;;  %v1828_v55 = vld [vmem:[%s3267_s14 + $0x88] sm:$0xff] (%p2275_p4)  ;;  %v1830_v48 = vld [vmem:[%s3267_s14 + $0x90] sm:$0xff] (%p2275_p4) }
 0x163   : > { %v2109_v51 = vpop.f32.mrf.mxu0  ;;  %1960 = vst [vmem:[%s3340_s18 + $0x230] sm:$0xff] (%p2275_p4), %v1828_v55  ;;  %1961 = vst [vmem:[%s3340_s18 + $0x250] sm:$0xff] (%p2275_p4), %v1830_v48 }
 0x164   : > { %1670 = vst [vmem:[%s3267_s14 + $0x50] sm:$0xff] %v1638_v16  ;;  %v1636_v0 = vmax.f32 %v1534_v54, 0.0  ;;  %v1545_v24 = vadd.f32 %v2109_v51, %v3263_v61  ;;  %v1832_v16 = vld [vmem:[%s3267_s14 + $0x98] sm:$0xff] (%p2275_p4)  ;;  %v1834_v54 = vld [vmem:[%s3267_s14 + $0xa0] sm:$0xff] (%p2275_p4)  ;;  %v1836_v51 = vld [vmem:[%s3267_s14 + $0xa8] sm:$0xff] (%p2275_p4) }
 0x165   : > { %v1536_v26 = vpop.f32.mrf.mxu0  ;;  %1962 = vst [vmem:[%s3340_s18 + $0x270] sm:$0xff] (%p2275_p4), %v1832_v16  ;;  %1963 = vst [vmem:[%s3340_s18 + $0x290] sm:$0xff] (%p2275_p4), %v1834_v54 }
 0x166   : > { %1668 = vst [vmem:[%s3267_s14 + $0x40] sm:$0xff] %v1636_v0  ;;  %v1639_v28 = vmax.f32 %v1545_v24, 0.0  ;;  %v1537_v18 = vadd.f32 %v3263_v61, %v1536_v26  ;;  %v1838_v0 = vld [vmem:[%s3267_s14 + $0xb0] sm:$0xff] (%p2275_p4)  ;;  %v1840_v24 = vld [vmem:[%s3267_s14 + $0xb8] sm:$0xff] (%p2275_p4)  ;;  %1964 = vst [vmem:[%s3340_s18 + $0x2b0] sm:$0xff] (%p2275_p4), %v1836_v51 }
 0x167   : > { %1965 = vst [vmem:[%s3340_s18 + $0x2d0] sm:$0xff] (%p2275_p4), %v1838_v0  ;;  %1966 = vst [vmem:[%s3340_s18 + $0x2f0] sm:$0xff] (%p2275_p4), %v1840_v24 }
 0x168   : > { %1671 = vst [vmem:[%s3267_s14 + $0x58] sm:$0xff] %v1639_v28  ;;  %v1637_v17 = vmax.f32 %v1537_v18, 0.0 }
 0x16a   : > { %1669 = vst [vmem:[%s3267_s14 + $0x48] sm:$0xff] %v1637_v17 }
 0x16b   : > { %v1814_v12 = vld [vmem:[%s3267_s14 + $0x50] sm:$0xff] (%p2275_p4) }
 0x16c   : > { %1953 = vst [vmem:[%s3340_s18 + $0x150] sm:$0xff] (%p2275_p4), %v1814_v12 }
 0x16d   : > { %v1810_v31 = vld [vmem:[%s3267_s14 + $0x40] sm:$0xff] (%p2275_p4) }
 0x16e   : > { %1951 = vst [vmem:[%s3340_s18 + $0x110] sm:$0xff] (%p2275_p4), %v1810_v31 }
 0x16f   : > { %v1816_v6 = vld [vmem:[%s3267_s14 + $0x58] sm:$0xff] (%p2275_p4) }
 0x170   : > { %1954 = vst [vmem:[%s3340_s18 + $0x170] sm:$0xff] (%p2275_p4), %v1816_v6 }
 0x171   : > { %v1812_v57 = vld [vmem:[%s3267_s14 + $0x48] sm:$0xff] (%p2275_p4) }
 0x172   : > { %1952 = vst [vmem:[%s3340_s18 + $0x130] sm:$0xff] (%p2275_p4), %v1812_v57 }
 0x174   : > { %v2124_v32 = vpop.f32.mrf.mxu1 }
 0x175   : > { %v1606_v33 = vadd.f32 %v2124_v32, %v3263_v61 }
 0x176   : > { %v1597_v10 = vpop.f32.mrf.mxu1 }
 0x177   : > { %v1654_v56 = vmax.f32 %v1606_v33, 0.0  ;;  %v1598_v5 = vadd.f32 %v3263_v61, %v1597_v10 }
 0x178   : > { %v2125_v63 = vpop.f32.mrf.mxu1 }
 0x179   : > { %1686 = vst [vmem:[%s3267_s14 + $0xd0] sm:$0xff] %v1654_v56  ;;  %v1652_v59 = vmax.f32 %v1598_v5, 0.0  ;;  %v1609_v47 = vadd.f32 %v2125_v63, %v3263_v61 }
 0x17a   : > { %v1600_v44 = vpop.f32.mrf.mxu1 }
 0x17b   : > { %1684 = vst [vmem:[%s3267_s14 + $0xc0] sm:$0xff] %v1652_v59  ;;  %v1655_v23 = vmax.f32 %v1609_v47, 0.0  ;;  %v1601_v46 = vadd.f32 %v3263_v61, %v1600_v44 }
 0x17d   : > { %1687 = vst [vmem:[%s3267_s14 + $0xd8] sm:$0xff] %v1655_v23  ;;  %v1653_v58 = vmax.f32 %v1601_v46, 0.0 }
 0x17f   : > { %1685 = vst [vmem:[%s3267_s14 + $0xc8] sm:$0xff] %v1653_v58 }
 0x180   : > { %v1846_v18 = vld [vmem:[%s3267_s14 + $0xd0] sm:$0xff] (%p2275_p4) }
 0x181   : > { %1969 = vst [vmem:[%s3340_s18 + $0x350] sm:$0xff] (%p2275_p4), %v1846_v18 }
 0x182   : > { %v1842_v26 = vld [vmem:[%s3267_s14 + $0xc0] sm:$0xff] (%p2275_p4) }
 0x183   : > { %1967 = vst [vmem:[%s3340_s18 + $0x310] sm:$0xff] (%p2275_p4), %v1842_v26 }
 0x184   : > { %v1848_v17 = vld [vmem:[%s3267_s14 + $0xd8] sm:$0xff] (%p2275_p4) }
 0x185   : > { %1970 = vst [vmem:[%s3340_s18 + $0x370] sm:$0xff] (%p2275_p4), %v1848_v17 }
 0x186   : > { %v1844_v28 = vld [vmem:[%s3267_s14 + $0xc8] sm:$0xff] (%p2275_p4) }
 0x187   : > { %v2112_v4 = vpop.f32.mrf.mxu0  ;;  %1968 = vst [vmem:[%s3340_s18 + $0x330] sm:$0xff] (%p2275_p4), %v1844_v28 }
 0x188   : > { %v1558_v3 = vadd.f32 %v2112_v4, %v3263_v61 }
 0x189   : > { %v1549_v7 = vpop.f32.mrf.mxu0 }
 0x18a   : > { %v1642_v25 = vmax.f32 %v1558_v3, 0.0  ;;  %v1550_v22 = vadd.f32 %v3263_v61, %v1549_v7 }
 0x18b   : > { %v2113_v9 = vpop.f32.mrf.mxu0 }
 0x18c   : > { %1674 = vst [vmem:[%s3267_s14 + $0x70] sm:$0xff] %v1642_v25  ;;  %v1640_v36 = vmax.f32 %v1550_v22, 0.0  ;;  %v1561_v13 = vadd.f32 %v2113_v9, %v3263_v61 }
 0x18d   : > { %v1552_v39 = vpop.f32.mrf.mxu0 }
 0x18e   : > { %1672 = vst [vmem:[%s3267_s14 + $0x60] sm:$0xff] %v1640_v36  ;;  %v1643_v34 = vmax.f32 %v1561_v13, 0.0  ;;  %v1553_v42 = vadd.f32 %v3263_v61, %v1552_v39 }
 0x190   : > { %1675 = vst [vmem:[%s3267_s14 + $0x78] sm:$0xff] %v1643_v34  ;;  %v1641_v43 = vmax.f32 %v1553_v42, 0.0 }
 0x192   : > { %1673 = vst [vmem:[%s3267_s14 + $0x68] sm:$0xff] %v1641_v43 }
 0x193   : > { %v1822_v1 = vld [vmem:[%s3267_s14 + $0x70] sm:$0xff] (%p2275_p4) }
 0x194   : > { %1957 = vst [vmem:[%s3340_s18 + $0x1d0] sm:$0xff] (%p2275_p4), %v1822_v1 }
 0x195   : > { %v1818_v41 = vld [vmem:[%s3267_s14 + $0x60] sm:$0xff] (%p2275_p4) }
 0x196   : > { %1955 = vst [vmem:[%s3340_s18 + $0x190] sm:$0xff] (%p2275_p4), %v1818_v41 }
 0x197   : > { %v1824_v53 = vld [vmem:[%s3267_s14 + $0x78] sm:$0xff] (%p2275_p4) }
 0x198   : > { %1958 = vst [vmem:[%s3340_s18 + $0x1f0] sm:$0xff] (%p2275_p4), %v1824_v53 }
 0x199   : > { %v1820_v21 = vld [vmem:[%s3267_s14 + $0x68] sm:$0xff] (%p2275_p4) }
 0x19a   : > { %v2128_v40 = vpop.f32.mrf.mxu1  ;;  %1956 = vst [vmem:[%s3340_s18 + $0x1b0] sm:$0xff] (%p2275_p4), %v1820_v21 }
 0x19b   : > { %v1622_v52 = vadd.f32 %v2128_v40, %v3263_v61 }
 0x19c   : > { %v1613_v30 = vpop.f32.mrf.mxu1 }
 0x19d   : > { %v1658_v15 = vmax.f32 %v1622_v52, 0.0  ;;  %v1614_v20 = vadd.f32 %v3263_v61, %v1613_v30 }
 0x19e   : > { %v2129_v37 = vpop.f32.mrf.mxu1 }
 0x19f   : > { %1690 = vst [vmem:[%s3267_s14 + $0xf0] sm:$0xff] %v1658_v15  ;;  %v1656_v50 = vmax.f32 %v1614_v20, 0.0  ;;  %v1625_v19 = vadd.f32 %v2129_v37, %v3263_v61 }
 0x1a0   : > { %v1616_v62 = vpop.f32.mrf.mxu1 }
 0x1a1   : > { %1688 = vst [vmem:[%s3267_s14 + $0xe0] sm:$0xff] %v1656_v50  ;;  %v1659_v2 = vmax.f32 %v1625_v19, 0.0  ;;  %v1617_v45 = vadd.f32 %v3263_v61, %v1616_v62  ;;  %1698 = sbr.rel (!%p2275_p4) target bundleno = 430 (0x1ae), region = 44  ;;  %v1798_v61 = vld [vmem:[%s3267_s14 + $0x10] sm:$0xff] (%p2275_p4) }
 0x1a2   : > { %1945 = vst [vmem:[%s3340_s18 + $0x50] sm:$0xff] (%p2275_p4), %v1798_v61 }
 0x1a3   : > { %1691 = vst [vmem:[%s3267_s14 + $0xf8] sm:$0xff] %v1659_v2  ;;  %v1657_v27 = vmax.f32 %v1617_v45, 0.0 }
 0x1a5   : > { %1689 = vst [vmem:[%s3267_s14 + $0xe8] sm:$0xff] %v1657_v27 }
 0x1a6   : > { %v1854_v10 = vld [vmem:[%s3267_s14 + $0xf0] sm:$0xff] }
 0x1a7   : > { %1973 = vst [vmem:[%s3340_s18 + $0x3d0] sm:$0xff] %v1854_v10 }
 0x1a8   : > { %v1850_v32 = vld [vmem:[%s3267_s14 + $0xe0] sm:$0xff] }
 0x1a9   : > { %1971 = vst [vmem:[%s3340_s18 + $0x390] sm:$0xff] %v1850_v32 }
 0x1aa   : > { %v1856_v56 = vld [vmem:[%s3267_s14 + $0xf8] sm:$0xff] }
 0x1ab   : > { %1974 = vst [vmem:[%s3340_s18 + $0x3f0] sm:$0xff] %v1856_v56 }
 0x1ac   : > { %v1852_v33 = vld [vmem:[%s3267_s14 + $0xe8] sm:$0xff] }
 0x1ad   : > { %1972 = vst [vmem:[%s3340_s18 + $0x3b0] sm:$0xff] %v1852_v33 }
 0x1ae PF: > { %p13_p8 = scmp.ge.s32.totalorder %s2265_s24, 4   ;;  %s3616_s21 = smov %s2208_s22 }
 0x1af   : > { %s3617_s22 = smov %s2273_s27  ;;  %s3618_s23 = smov %s2265_s24 }
 0x1b0   :  { %15 = sbr.rel (!%p13_p8) target bundleno = 2 (0x2), region = 110 }

// kernel: _lambda_.10
= control target key start
LH: loop header
LB: loop body
LE: loop exit
PB: predicated region body
PF: predicated region fallthrough
CT: control target
= control target key end

     0   :  { %s2312_s18 = smov 0   ;;  %s3389_s0 = inlined_call_operand.vmem [shape: bf16[2,16,16,128], index: 0, kind: input, shape index: {}]   ;;  %s3390_s1 = inlined_call_operand.vmem [shape: f32[9,128], index: 1, kind: input, shape index: {}]   ;;  %s3391_s2 = inlined_call_operand.vmem [shape: f32[1,128], index: 2, kind: input, shape index: {}]   ;;  %s3392_s3 = inlined_call_operand.vmem [shape: bf16[128,128], index: 3, kind: input, shape index: {}]   ;;  %s3393_s4 = inlined_call_operand.vmem [shape: f32[1,128], index: 4, kind: input, shape index: {}]   ;;  %s3394_s5 = inlined_call_operand.vmem [shape: bf16[2,16,16,128], index: 5, kind: output, shape index: {}]  }
   0x1 LB: > { %s1887_s19 = sadd.s32 4294967295, %s2279_s18   ;;  %p1891_p0 = scmp.ge.s32.totalorder %s2279_s18, 1  ;;  %s2279_s18 = sphi %s2312_s18, %s15_s18  }
   0x2   : > { %p187_p1 = scmp.lt.s32.totalorder %s2279_s18, 3 }
   0x4   : > { %p188_p2 = pnand %p1891_p0, %p187_p1 }
   0x6   : > { %191 = sbr.rel (%p188_p2) target bundleno = 423 (0x1a7), region = 40 }
   0xb   : > { %v2323_v0 = vld [vmem:[%s3392_s3 + $0x38] sm:$0xff]   ;;  %p215_p3 = scmp.lt.s32.totalorder %s1887_s19, 1  ;;  %v2328_v1 = vld [vmem:[%s3392_s3 + $0x30] sm:$0xff]   ;;  %v2281_v2 = vmov 0.0   ;;  %v2256_v3 = vld [vmem:[%s3392_s3 + $0x28] sm:$0xff]  }
   0xc   : > { %2181 = vmatprep.subr.bf16.mxu0 %v2323_v0  ;;  %2229 = vmatprep.subr.bf16.mxu1 %v2323_v0  ;;  %226 = vst [vmem:[#allocation2] sm:$0xff] %v2281_v2  ;;  %227 = vst [vmem:[#allocation2 + $0x8] sm:$0xff] %v2281_v2  ;;  %v2257_v4 = vld [vmem:[%s3392_s3 + $0x20] sm:$0xff]   ;;  %v2258_v25 = vld [vmem:[%s3392_s3 + $0x18] sm:$0xff]  }
   0xd   : > { %s3588_s19 = smov (!%p215_p3, %s1887_s19), 1  ;;  %228 = vst [vmem:[#allocation2 + $0x10] sm:$0xff] %v2281_v2  ;;  %229 = vst [vmem:[#allocation2 + $0x18] sm:$0x7] %v2281_v2  ;;  %2182 = vmatpush3.bf16.msra.mxu0 %v2323_v0  ;;  %2237 = vmatpush3.bf16.msra.mxu1 %v2323_v0  ;;  %v2359_v7 = vld [vmem:[%s3390_s1] ss:$0 sm:$0xff] }
   0xe   : > { %238 = vst [vmem:[#allocation2 + $0x60] sm:$0xff] %v2281_v2  ;;  %241 = vst [vmem:[#allocation2 + $0x78] sm:$0x7] %v2281_v2  ;;  %2183 = vmatprep.subr.bf16.mxu0 %v2328_v1  ;;  %2230 = vmatprep.subr.bf16.mxu1 %v2328_v1  ;;  %s1949_s26 = sshll.u32 %s3588_s19, 7  ;;  %v2368_v14 = vld [vmem:[%s3390_s1 + $0x1] ss:$0 sm:$0xff] }
   0xf   : > { %250 = vst [vmem:[#allocation2 + $0xc0] sm:$0xff] %v2281_v2  ;;  %253 = vst [vmem:[#allocation2 + $0xd8] sm:$0x7] %v2281_v2  ;;  %s2347_s29 = scalar_lea.vmem %s3389_s0, %s1949_s26  ;;  %v2373_v17 = vmul.f32 0.0, %v2368_v14  ;;  %v2378_v20 = vld [vmem:[%s3390_s1 + $0x2] ss:$0 sm:$0xff]  ;;  %s3340_s16 = scalar_lea.vmem %s3394_s5, %s1949_s26 }
  0x10   : > { %230 = vst [vmem:[#allocation2 + $0x20] sm:$0xff] %v2281_v2  ;;  %231 = vst [vmem:[#allocation2 + $0x28] sm:$0xff] %v2281_v2  ;;  %v1984_v5 = vld [vmem:[%s2347_s29] sm:$0xff]   ;;  %v2129_v6 = vld [vmem:[%s2347_s29 + $0x18] sm:$0xff]  }
  0x11   : > { %232 = vst [vmem:[#allocation2 + $0x30] sm:$0xff] %v2281_v2  ;;  %233 = vst [vmem:[#allocation2 + $0x38] sm:$0x7] %v2281_v2  ;;  %2184 = vmatpush3.bf16.msra.mxu0 %v2328_v1  ;;  %2238 = vmatpush3.bf16.msra.mxu1 %v2328_v1  ;;  %v1985_v8 = vunpack.c.l.bf16 %v1984_v5  ;;  %v1986_v9 = vunpack.c.h.bf16 %v1984_v5  ;;  %v2361_v10 = vunpack.c.l.bf16 %v2129_v6  ;;  %v2363_v11 = vunpack.c.h.bf16 %v2129_v6  ;;  %v2387_v23 = vld [vmem:[%s3390_s1 + $0x4] ss:$0 sm:$0xff]  ;;  %v2127_v33 = vld [vmem:[%s2347_s29 + $0x8] sm:$0xff]  }
  0x12   : > { %234 = vst [vmem:[#allocation2 + $0x40] sm:$0xff] %v2281_v2  ;;  %235 = vst [vmem:[#allocation2 + $0x48] sm:$0xff] %v2281_v2  ;;  %2185 = vmatprep.subr.bf16.mxu0 %v2256_v3  ;;  %2231 = vmatprep.subr.bf16.mxu1 %v2256_v3  ;;  %v2403_v29 = vld [vmem:[%s3390_s1 + $0x7] ss:$0 sm:$0xff]  ;;  %v2424_v36 = vld [vmem:[%s3392_s3 + $0x10] sm:$0xff]   ;;  %v2430_v39 = vunpack.c.l.bf16 %v2127_v33  ;;  %v2432_v40 = vunpack.c.h.bf16 %v2127_v33 }
  0x13   : > { %236 = vst [vmem:[#allocation2 + $0x50] sm:$0xff] %v2281_v2  ;;  %237 = vst [vmem:[#allocation2 + $0x58] sm:$0x7] %v2281_v2  ;;  %v411_v12 = vld [vmem:[#allocation2 + $0x5] sm:$0xff]  ;;  %v2390_v24 = vmul.f32 %v1985_v8, %v2368_v14  ;;  %v2398_v28 = vmul.f32 %v1985_v8, %v2387_v23  ;;  %v2406_v30 = vmul.f32 %v1986_v9, %v2387_v23  ;;  %v2445_v51 = vld [vmem:[%s3390_s1 + $0x3] ss:$0 sm:$0xff] }
  0x14   : > { %242 = vst [vmem:[#allocation2 + $0x80] sm:$0xff] %v2281_v2  ;;  %245 = vst [vmem:[#allocation2 + $0x98] sm:$0x7] %v2281_v2  ;;  %v412_v13 = vld [vmem:[#allocation2 + $0xd] sm:$0xff]  ;;  %v448_v15 = vmul.f32 %v2359_v7, %v411_v12  ;;  %v2410_v31 = vmul.f32 %v2361_v10, %v2403_v29  ;;  %v2414_v32 = vmul.f32 %v2363_v11, %v2403_v29  ;;  %v2130_v34 = vld [vmem:[%s2347_s29 + $0x20] sm:$0xff]  }
  0x15   : > { %246 = vst [vmem:[#allocation2 + $0xa0] sm:$0xff] %v2281_v2  ;;  %249 = vst [vmem:[#allocation2 + $0xb8] sm:$0x7] %v2281_v2  ;;  %v449_v16 = vmul.f32 %v2359_v7, %v412_v13  ;;  %v613_v18 = vld [vmem:[#allocation2 + $0xb] sm:$0xff]  ;;  %v614_v19 = vld [vmem:[#allocation2 + $0x13] sm:$0xff]  ;;  %2186 = vmatpush3.bf16.msra.mxu0 %v2256_v3  ;;  %2239 = vmatpush3.bf16.msra.mxu1 %v2256_v3  ;;  %v2419_v35 = vmul.f32 %v1986_v9, %v2368_v14  ;;  %v2434_v44 = vunpack.c.l.bf16 %v2130_v34 }
  0x16   : > { %254 = vst [vmem:[#allocation2 + $0xe0] sm:$0xff] %v2281_v2  ;;  %257 = vst [vmem:[#allocation2 + $0xf8] sm:$0x7] %v2281_v2  ;;  %v650_v21 = vmul.f32 %v2378_v20, %v613_v18  ;;  %v651_v22 = vmul.f32 %v2378_v20, %v614_v19  ;;  %2187 = vmatprep.subr.bf16.mxu0 %v2257_v4  ;;  %2232 = vmatprep.subr.bf16.mxu1 %v2257_v4  ;;  %v2436_v45 = vunpack.c.h.bf16 %v2130_v34  ;;  %v2131_v49 = vld [vmem:[%s2347_s29 + $0x28] sm:$0xff]   ;;  %v2134_v50 = vld [vmem:[%s2347_s29 + $0x40] sm:$0xff]  }
  0x17   : > { %258 = vst [vmem:[#allocation2 + $0x100] sm:$0xff] %v2281_v2  ;;  %261 = vst [vmem:[#allocation2 + $0x118] sm:$0x7] %v2281_v2  ;;  %v581_v26 = vadd.f32 %v2373_v17, %v448_v15  ;;  %v582_v27 = vadd.f32 %v2373_v17, %v449_v16  ;;  %v413_v41 = vld [vmem:[#allocation2 + $0x25] sm:$0xff]  ;;  %v2458_v55 = vmul.f32 %v2430_v39, %v2387_v23  ;;  %v2460_v56 = vunpack.c.l.bf16 %v2131_v49  ;;  %v2137_v57 = vld [vmem:[%s2347_s29 + $0x58] sm:$0xff]  }
  0x18   : > { %262 = vst [vmem:[#allocation2 + $0x120] sm:$0xff] %v2281_v2  ;;  %265 = vst [vmem:[#allocation2 + $0x138] sm:$0x7] %v2281_v2  ;;  %v414_v42 = vld [vmem:[#allocation2 + $0x2d] sm:$0xff]  ;;  %v450_v46 = vmul.f32 %v2359_v7, %v413_v41  ;;  %v2450_v52 = vld [vmem:[%s3390_s1 + $0x5] ss:$0 sm:$0xff]  ;;  %v2479_v62 = vmul.f32 %v2432_v40, %v2387_v23  ;;  %v2483_v63 = vmul.f32 %v2434_v44, %v2403_v29  ;;  %v2500_v5 = vunpack.c.h.bf16 %v2131_v49 }
  0x19   : > { %266 = vst [vmem:[#allocation2 + $0x140] sm:$0xff] %v2281_v2  ;;  %269 = vst [vmem:[#allocation2 + $0x158] sm:$0x7] %v2281_v2  ;;  %v2426_v37 = vadd.f32 %v650_v21, %v581_v26  ;;  %v2428_v38 = vadd.f32 %v651_v22, %v582_v27  ;;  %v615_v43 = vld [vmem:[#allocation2 + $0x2b] sm:$0xff]  ;;  %2188 = vmatpush3.bf16.msra.mxu0 %v2257_v4  ;;  %2240 = vmatpush3.bf16.msra.mxu1 %v2257_v4  ;;  %v616_v48 = vld [vmem:[#allocation2 + $0x33] sm:$0xff]  ;;  %v2502_v6 = vunpack.c.l.bf16 %v2134_v50 }
  0x1a   : > { %270 = vst [vmem:[#allocation2 + $0x160] sm:$0xff] %v2281_v2  ;;  %273 = vst [vmem:[#allocation2 + $0x178] sm:$0x7] %v2281_v2  ;;  %v451_v47 = vmul.f32 %v2359_v7, %v414_v42  ;;  %2189 = vmatprep.subr.bf16.mxu0 %v2258_v25  ;;  %2233 = vmatprep.subr.bf16.mxu1 %v2258_v25  ;;  %v652_v53 = vmul.f32 %v2378_v20, %v615_v43  ;;  %v2466_v58 = vld [vmem:[%s3390_s1 + $0x6] ss:$0 sm:$0xff]  ;;  %v2488_v0 = vld [vmem:[%s3392_s3 + $0x8] sm:$0xff]   ;;  %v2519_v19 = vunpack.c.l.bf16 %v2137_v57 }
  0x1b   : > { %274 = vst [vmem:[#allocation2 + $0x180] sm:$0xff] %v2281_v2  ;;  %277 = vst [vmem:[#allocation2 + $0x198] sm:$0x7] %v2281_v2  ;;  %v653_v54 = vmul.f32 %v2378_v20, %v616_v48  ;;  %v2471_v59 = vld [vmem:[%s3390_s1 + $0x8] ss:$0 sm:$0xff]  ;;  %v583_v60 = vadd.f32 %v2373_v17, %v450_v46  ;;  %v2498_v4 = vmul.f32 %v2436_v45, %v2403_v29  ;;  %v2533_v33 = vunpack.c.h.bf16 %v2137_v57  ;;  %v2132_v34 = vld [vmem:[%s2347_s29 + $0x30] sm:$0xff]  }
  0x1c   : > { %278 = vst [vmem:[#allocation2 + $0x1a0] sm:$0xff] %v2281_v2  ;;  %281 = vst [vmem:[#allocation2 + $0x1b8] sm:$0x7] %v2281_v2  ;;  %v584_v61 = vadd.f32 %v2373_v17, %v451_v47  ;;  %v2553_v47 = vld [vmem:[%s3392_s3] sm:$0xff]  }
  0x1d   : > { %282 = vst [vmem:[#allocation2 + $0x1c0] sm:$0xff] %v2281_v2  ;;  %285 = vst [vmem:[#allocation2 + $0x1d8] sm:$0x7] %v2281_v2  ;;  %2190 = vmatpush3.bf16.msra.mxu0 %v2258_v25  ;;  %2241 = vmatpush3.bf16.msra.mxu1 %v2258_v25  ;;  %v684_v48 = vadd.f32 %v652_v53, %v583_v60 }
  0x1e   : > { %286 = vst [vmem:[#allocation2 + $0x1e0] sm:$0xff] %v2281_v2  ;;  %289 = vst [vmem:[#allocation2 + $0x1f8] sm:$0x7] %v2281_v2  ;;  %2191 = vmatprep.subr.bf16.mxu0 %v2424_v36  ;;  %2234 = vmatprep.subr.bf16.mxu1 %v2424_v36  ;;  %v685_v49 = vadd.f32 %v653_v54, %v584_v61  ;;  %v2575_v61 = vmul.f32 %v2502_v6, %v2387_v23 }
  0x1f   : > { %290 = vst [vmem:[#allocation2 + $0x200] sm:$0xff] %v2281_v2  ;;  %293 = vst [vmem:[#allocation2 + $0x218] sm:$0x7] %v2281_v2 }
  0x20   : > { %294 = vst [vmem:[#allocation2 + $0x220] sm:$0xff] %v2281_v2  ;;  %297 = vst [vmem:[#allocation2 + $0x238] sm:$0x7] %v2281_v2 }
  0x21   : > { %298 = vst [vmem:[#allocation2 + $0x240] sm:$0xff] %v2281_v2  ;;  %301 = vst [vmem:[#allocation2 + $0x258] sm:$0x7] %v2281_v2  ;;  %2192 = vmatpush3.bf16.msra.mxu0 %v2424_v36  ;;  %2242 = vmatpush3.bf16.msra.mxu1 %v2424_v36 }
  0x22   : > { %302 = vst [vmem:[#allocation2 + $0x260] sm:$0xff] %v2281_v2  ;;  %303 = vst [vmem:[#allocation2 + $0x268] sm:$0xff] %v2281_v2  ;;  %2193 = vmatprep.subr.bf16.mxu0 %v2488_v0  ;;  %2235 = vmatprep.subr.bf16.mxu1 %v2488_v0 }
  0x23   : > { %304 = vst [vmem:[#allocation2 + $0x270] sm:$0xff] %v2281_v2  ;;  %305 = vst [vmem:[#allocation2 + $0x278] sm:$0x7] %v2281_v2 }
  0x24   : > { %306 = vst [vmem:[#allocation2 + $0x280] sm:$0xff] %v2281_v2  ;;  %307 = vst [vmem:[#allocation2 + $0x288] sm:$0xff] %v2281_v2 }
  0x25   : > { %308 = vst [vmem:[#allocation2 + $0x290] sm:$0xff] %v2281_v2  ;;  %309 = vst [vmem:[#allocation2 + $0x298] sm:$0x7] %v2281_v2  ;;  %2194 = vmatpush3.bf16.msra.mxu0 %v2488_v0  ;;  %2243 = vmatpush3.bf16.msra.mxu1 %v2488_v0 }
  0x26   : > { %310 = vst [vmem:[#allocation2 + $0x2a0] sm:$0xff] %v2281_v2  ;;  %311 = vst [vmem:[#allocation2 + $0x2a8] sm:$0xff] %v2281_v2  ;;  %2195 = vmatprep.subr.bf16.mxu0 %v2553_v47  ;;  %2236 = vmatprep.subr.bf16.mxu1 %v2553_v47 }
  0x27   : > { %312 = vst [vmem:[#allocation2 + $0x2b0] sm:$0xff] %v2281_v2  ;;  %313 = vst [vmem:[#allocation2 + $0x2b8] sm:$0x7] %v2281_v2 }
  0x28   : > { %3464 = vst [vmem:[#allocation3_spill] sm:$0xff] %v2361_v10  ;;  %3465 = vst [vmem:[#allocation4_spill] sm:$0xff] %v2363_v11 }
  0x29   : > { %379 = vst [vmem:[#allocation2 + $0x68] sm:$0xff] %v1985_v8  ;;  %380 = vst [vmem:[#allocation2 + $0x70] sm:$0xff] %v1986_v9  ;;  %v2504_v8 = vunpack.c.h.bf16 %v2134_v50  ;;  %v2135_v50 = vld [vmem:[%s2347_s29 + $0x48] sm:$0xff]   ;;  %2196 = vmatpush3.bf16.msra.mxu0 %v2553_v47  ;;  %2244 = vmatpush3.bf16.msra.mxu1 %v2553_v47 }
  0x2a   : > { %385 = vst [vmem:[#allocation2 + $0xc8] sm:$0xff] %v2361_v10  ;;  %386 = vst [vmem:[#allocation2 + $0xd0] sm:$0xff] %v2363_v11  ;;  %v2629_v0 = vunpack.c.h.bf16 %v2135_v50 }
  0x2b   : > { %3466 = vst [vmem:[#allocation5_spill] sm:$0xff] %v2430_v39  ;;  %3467 = vst [vmem:[#allocation6_spill] sm:$0xff] %v2432_v40 }
  0x2c   : > { %3468 = vst [vmem:[#allocation7_spill] sm:$0xff] %v2434_v44  ;;  %3469 = vst [vmem:[#allocation8_spill] sm:$0xff] %v2436_v45 }
  0x2d   : > { %381 = vst [vmem:[#allocation2 + $0x88] sm:$0xff] %v2430_v39  ;;  %382 = vst [vmem:[#allocation2 + $0x90] sm:$0xff] %v2432_v40 }
  0x2e   : > { %3470 = vst [vmem:[#allocation9_spill] sm:$0xff] %v2460_v56  ;;  %387 = vst [vmem:[#allocation2 + $0xe8] sm:$0xff] %v2434_v44  ;;  %v2593_v44 = vunpack.c.h.bf16 %v2132_v34 }
  0x2f   : > { %388 = vst [vmem:[#allocation2 + $0xf0] sm:$0xff] %v2436_v45  ;;  %3471 = vst [vmem:[#allocation10_spill] sm:$0xff] %v2500_v5 }
  0x30   : > { %v2490_v1 = vld [vmem:[#allocation2 + $0x65] sm:$0xff]  ;;  %v2492_v2 = vld [vmem:[#allocation2 + $0x6d] sm:$0xff]  ;;  %3472 = vst [vmem:[#allocation11_spill] sm:$0xff] %v2502_v6  ;;  %3473 = vst [vmem:[#allocation12_spill] sm:$0xff] %v2504_v8 }
  0x31   : > { %v2494_v3 = vld [vmem:[#allocation2 + $0x6b] sm:$0xff]  ;;  %389 = vst [vmem:[#allocation2 + $0x108] sm:$0xff] %v2460_v56  ;;  %v751_v9 = vmul.f32 %v2445_v51, %v2490_v1  ;;  %v752_v12 = vmul.f32 %v2445_v51, %v2492_v2  ;;  %v2511_v13 = vld [vmem:[#allocation2 + $0x73] sm:$0xff]  ;;  %3474 = vst [vmem:[#allocation13_spill] sm:$0xff] %v2519_v19 }
  0x32   : > { %v953_v15 = vmul.f32 %v2450_v52, %v2494_v3  ;;  %v2515_v16 = vld [vmem:[#allocation2 + $0xc5] sm:$0xff]  ;;  %v2517_v18 = vld [vmem:[#allocation2 + $0xcd] sm:$0xff]  ;;  %v954_v21 = vmul.f32 %v2450_v52, %v2511_v13  ;;  %3477 = vst [vmem:[#allocation16_spill] sm:$0xff] %v2533_v33  ;;  %390 = vst [vmem:[#allocation2 + $0x110] sm:$0xff] %v2500_v5 }
  0x33   : > { %v1055_v22 = vmul.f32 %v2466_v58, %v2515_v16  ;;  %v1056_v25 = vmul.f32 %v2466_v58, %v2517_v18  ;;  %v2529_v26 = vld [vmem:[#allocation2 + $0xcb] sm:$0xff]  ;;  %v2531_v27 = vld [vmem:[#allocation2 + $0xd3] sm:$0xff]  ;;  %395 = vst [vmem:[#allocation2 + $0x168] sm:$0xff] %v2502_v6  ;;  %396 = vst [vmem:[#allocation2 + $0x170] sm:$0xff] %v2504_v8  ;;  %v783_v41 = vadd.f32 %v751_v9, %v2426_v37 }
  0x34   : > { %3475 = vst [vmem:[#allocation14_spill] sm:$0xff] %v2529_v26  ;;  %3476 = vst [vmem:[#allocation15_spill] sm:$0xff] %v2531_v27  ;;  %v784_v42 = vadd.f32 %v752_v12, %v2428_v38  ;;  %v2543_v43 = vmul.f32 %v2471_v59, %v2529_v26  ;;  %v2547_v46 = vmul.f32 %v2471_v59, %v2531_v27  ;;  %v2567_v53 = vld [vmem:[#allocation2 + $0x85] sm:$0xff]  ;;  %v2569_v54 = vld [vmem:[#allocation2 + $0x8d] sm:$0xff]  ;;  %v2577_v12 = vunpack.c.l.bf16 %v2132_v34 }
  0x35   : > { %401 = vst [vmem:[#allocation2 + $0x1c8] sm:$0xff] %v2519_v19  ;;  %402 = vst [vmem:[#allocation2 + $0x1d0] sm:$0xff] %v2533_v33  ;;  %v565_v37 = vmul.f32 %v2460_v56, %v2368_v14  ;;  %v2560_v38 = vmul.f32 %v2500_v5, %v2368_v14  ;;  %v884_v57 = vadd.f32 %v2398_v28, %v783_v41  ;;  %v2571_v60 = vld [vmem:[#allocation2 + $0x8b] sm:$0xff]  ;;  %v2585_v36 = vld [vmem:[#allocation2 + $0x93] sm:$0xff] }
  0x36   : > { %v885_v9 = vadd.f32 %v2406_v30, %v784_v42  ;;  %3478 = vst [vmem:[#allocation17_spill] sm:$0xff] %v2567_v53  ;;  %3479 = vst [vmem:[#allocation18_spill] sm:$0xff] %v2569_v54  ;;  %v753_v28 = vmul.f32 %v2445_v51, %v2567_v53  ;;  %v754_v30 = vmul.f32 %v2445_v51, %v2569_v54  ;;  %v2589_v42 = vld [vmem:[#allocation2 + $0xe5] sm:$0xff]  ;;  %v2591_v45 = vld [vmem:[#allocation2 + $0xed] sm:$0xff] }
  0x37   : > { %3480 = vst [vmem:[#allocation19_spill] sm:$0xff] %v2571_v60  ;;  %3481 = vst [vmem:[#allocation20_spill] sm:$0xff] %v2585_v36  ;;  %v955_v41 = vmul.f32 %v2450_v52, %v2571_v60  ;;  %v985_v40 = vadd.f32 %v953_v15, %v884_v57  ;;  %v956_v6 = vmul.f32 %v2450_v52, %v2585_v36  ;;  %v2599_v54 = vld [vmem:[#allocation2 + $0xeb] sm:$0xff]  ;;  %v2601_v27 = vld [vmem:[#allocation2 + $0xf3] sm:$0xff] }
  0x38   : > { %3482 = vst [vmem:[#allocation21_spill] sm:$0xff] %v2589_v42  ;;  %3483 = vst [vmem:[#allocation22_spill] sm:$0xff] %v2591_v45  ;;  %v986_v39 = vadd.f32 %v954_v21, %v885_v9  ;;  %v1057_v53 = vmul.f32 %v2466_v58, %v2589_v42  ;;  %v2603_v26 = vld [vmem:[#allocation2 + $0x105] sm:$0xff]  ;;  %v785_v60 = vadd.f32 %v753_v28, %v684_v48 }
  0x39   : > { %3484 = vst [vmem:[#allocation23_spill] sm:$0xff] %v2599_v54  ;;  %3485 = vst [vmem:[#allocation24_spill] sm:$0xff] %v2601_v27  ;;  %v786_v11 = vadd.f32 %v754_v30, %v685_v49  ;;  %v1058_v15 = vmul.f32 %v2466_v58, %v2591_v45  ;;  %v1259_v21 = vmul.f32 %v2471_v59, %v2599_v54  ;;  %v2615_v48 = vld [vmem:[#allocation2 + $0x10d] sm:$0xff]  ;;  %v2621_v30 = vunpack.c.l.bf16 %v2135_v50 }
  0x3a   : > { %3486 = vst [vmem:[#allocation25_spill] sm:$0xff] %v2603_v26  ;;  %391 = vst [vmem:[#allocation2 + $0x128] sm:$0xff] %v2577_v12  ;;  %v1087_v34 = vadd.f32 %v1055_v22, %v985_v40  ;;  %v1088_v57 = vadd.f32 %v1056_v25, %v986_v39  ;;  %v1260_v9 = vmul.f32 %v2471_v59, %v2601_v27  ;;  %v2617_v49 = vld [vmem:[#allocation2 + $0x10b] sm:$0xff]  ;;  %v2619_v28 = vld [vmem:[#allocation2 + $0x113] sm:$0xff] }
  0x3b   : > { %392 = vst [vmem:[#allocation2 + $0x130] sm:$0xff] %v2593_v44  ;;  %3487 = vst [vmem:[#allocation26_spill] sm:$0xff] %v2615_v48  ;;  %v886_v54 = vadd.f32 %v2458_v55, %v785_v60  ;;  %v887_v40 = vadd.f32 %v2479_v62, %v786_v11  ;;  %v464_v39 = vmul.f32 %v2359_v7, %v2603_v26  ;;  %v2632_v22 = vld [vmem:[%s2347_s29 + $0x60] sm:$0xff]   ;;  %v2650_v60 = vld [vmem:[#allocation2 + $0x16d] sm:$0xff] }
  0x3c   : > { %3488 = vst [vmem:[#allocation27_spill] sm:$0xff] %v2617_v49  ;;  %3489 = vst [vmem:[#allocation28_spill] sm:$0xff] %v2619_v28  ;;  %v1188_v25 = vadd.f32 %v2410_v31, %v1087_v34  ;;  %v1189_v27 = vadd.f32 %v2414_v32, %v1088_v57  ;;  %v465_v45 = vmul.f32 %v2359_v7, %v2615_v48  ;;  %v2640_v55 = vld [vmem:[#allocation2 + $0x165] sm:$0xff]  ;;  %v2646_v11 = vld [vmem:[%s3391_s2] ss:$0 sm:$0xff] }
  0x3d   : > { %3490 = vst [vmem:[#allocation29_spill] sm:$0xff] %v2621_v30  ;;  %3491 = vst [vmem:[#allocation30_spill] sm:$0xff] %v2629_v0  ;;  %v666_v42 = vmul.f32 %v2378_v20, %v2617_v49  ;;  %v987_v62 = vadd.f32 %v955_v41, %v886_v54  ;;  %v988_v50 = vadd.f32 %v956_v6, %v887_v40  ;;  %v2659_v6 = vunpack.c.l.bf16 %v2632_v22 }
  0x3e   : > { %397 = vst [vmem:[#allocation2 + $0x188] sm:$0xff] %v2621_v30  ;;  %v597_v31 = vadd.f32 %v565_v37, %v464_v39  ;;  %v667_v32 = vmul.f32 %v2378_v20, %v2619_v28  ;;  %398 = vst [vmem:[#allocation2 + $0x190] sm:$0xff] %v2629_v0  ;;  %v1289_v34 = vadd.f32 %v2543_v43, %v1188_v25  ;;  %v2663_v39 = vld [vmem:[#allocation2 + $0x16b] sm:$0xff] }
  0x3f   : > { %v1290_v57 = vadd.f32 %v2547_v46, %v1189_v27  ;;  %v598_v36 = vadd.f32 %v2560_v38, %v465_v45  ;;  %3492 = vst [vmem:[#allocation31_spill] sm:$0xff] %v2659_v6  ;;  %v1089_v37 = vadd.f32 %v1057_v53, %v987_v62  ;;  %v1090_v54 = vadd.f32 %v1058_v15, %v988_v50  ;;  %v2669_v45 = vld [vmem:[#allocation2 + $0x173] sm:$0xff]  ;;  %v2676_v15 = vld [vmem:[#allocation2 + $0x1c5] sm:$0xff] }
  0x40   : > { %v698_v41 = vadd.f32 %v666_v42, %v597_v31  ;;  %v767_v40 = vmul.f32 %v2445_v51, %v2640_v55  ;;  %3493 = vst [vmem:[#allocation32_spill] sm:$0xff] %v2663_v39  ;;  %v1328_v10 = vadd.f32 %v2646_v11, %v1289_v34  ;;  %v768_v46 = vmul.f32 %v2445_v51, %v2650_v60  ;;  %v2678_v25 = vld [vmem:[#allocation2 + $0x1cd] sm:$0xff] }
  0x41   : > { %v1329_v43 = vadd.f32 %v2646_v11, %v1290_v57  ;;  %v699_v27 = vadd.f32 %v667_v32, %v598_v36  ;;  %3494 = vst [vmem:[#allocation33_spill] sm:$0xff] %v2669_v45  ;;  %403 = vst [vmem:[#allocation2 + $0x1e8] sm:$0xff] %v2659_v6  ;;  %v1190_v47 = vadd.f32 %v2483_v63, %v1089_v37  ;;  %v2685_v57 = vld [vmem:[#allocation2 + $0x1cb] sm:$0xff]  ;;  %v2687_v37 = vld [vmem:[#allocation2 + $0x1d3] sm:$0xff] }
  0x42   : > { %v1191_v38 = vadd.f32 %v2498_v4, %v1090_v54  ;;  %v799_v53 = vadd.f32 %v767_v40, %v698_v41  ;;  %v869_v42 = vmul.f32 %v2504_v8, %v2387_v23  ;;  %3495 = vst [vmem:[#allocation34_spill] sm:$0xff] %v2676_v15  ;;  %3496 = vst [vmem:[#allocation35_spill] sm:$0xff] %v2678_v25  ;;  %v1360_v36 = vmax.f32 %v1328_v10, 0.0 }
  0x43   : > { %v1361_v62 = vmax.f32 %v1329_v43, 0.0  ;;  %v800_v50 = vadd.f32 %v768_v46, %v699_v27  ;;  %v969_v31 = vmul.f32 %v2450_v52, %v2663_v39  ;;  %v1291_v32 = vadd.f32 %v1259_v21, %v1190_v47  ;;  %3497 = vst [vmem:[#allocation36_spill] sm:$0xff] %v2685_v57  ;;  %3498 = vst [vmem:[#allocation37_spill] sm:$0xff] %v2687_v37  ;;  %v2697_v27 = vld [vmem:[#allocation2 + $0x125] sm:$0xff]  ;;  %v2699_v46 = vld [vmem:[#allocation2 + $0x12d] sm:$0xff] }
  0x44   : > { %v1292_v34 = vadd.f32 %v1260_v9, %v1191_v38  ;;  %v900_v63 = vadd.f32 %v2575_v61, %v799_v53  ;;  %v970_v4 = vmul.f32 %v2450_v52, %v2669_v45  ;;  %v1071_v10 = vmul.f32 %v2466_v58, %v2676_v15  ;;  %v2128_v15 = vld [vmem:[%s2347_s29 + $0x10] sm:$0xff]  }
  0x45   : > { %v1392_v54 = vpack.c.bf16 %v1361_v62, %v1360_v36  ;;  %v901_v41 = vadd.f32 %v869_v42, %v800_v50  ;;  %v1072_v40 = vmul.f32 %v2466_v58, %v2678_v25  ;;  %v1330_v21 = vadd.f32 %v2646_v11, %v1291_v32  ;;  %v2707_v36 = vld [vmem:[#allocation2 + $0x12b] sm:$0xff] }
  0x46   : > { %v1331_v9 = vadd.f32 %v2646_v11, %v1292_v34  ;;  %v1001_v61 = vadd.f32 %v969_v31, %v900_v63  ;;  %v1172_v43 = vmul.f32 %v2519_v19, %v2403_v29  ;;  %v1173_v38 = vmul.f32 %v2533_v33, %v2403_v29  ;;  %v2712_v34 = vld [vmem:[#allocation2 + $0x133] sm:$0xff]  ;;  %v2714_v63 = vld [vmem:[#allocation2 + $0x185] sm:$0xff] }
  0x47   : > { %2197 = vmatprep.mubr.bf16.mxu0 %v1392_v54  ;;  %v1002_v47 = vadd.f32 %v970_v4, %v901_v41  ;;  %v1273_v53 = vmul.f32 %v2471_v59, %v2685_v57  ;;  %v1274_v42 = vmul.f32 %v2471_v59, %v2687_v37  ;;  %v1362_v62 = vmax.f32 %v1330_v21, 0.0  ;;  %3500 = vst [vmem:[#allocation39_spill] sm:$0xff] %v2714_v63  ;;  %v2722_v21 = vld [vmem:[#allocation2 + $0x18d] sm:$0xff] }
  0x48   : > { %v1363_v50 = vmax.f32 %v1331_v9, 0.0  ;;  %v1103_v31 = vadd.f32 %v1071_v10, %v1001_v61  ;;  %v2710_v32 = vunpack.c.h.bf16 %v2632_v22  ;;  %v466_v54 = vmul.f32 %v2359_v7, %v2697_v27  ;;  %3501 = vst [vmem:[#allocation40_spill] sm:$0xff] %v2722_v21  ;;  %v2729_v61 = vld [vmem:[#allocation2 + $0x18b] sm:$0xff] }
  0x49   : > { %v1104_v4 = vadd.f32 %v1072_v40, %v1002_v47  ;;  %v467_v41 = vmul.f32 %v2359_v7, %v2699_v46  ;;  %v567_v37 = vmul.f32 %v2577_v12, %v2368_v14  ;;  %v568_v22 = vmul.f32 %v2593_v44, %v2368_v14  ;;  %3502 = vst [vmem:[#allocation41_spill] sm:$0xff] %v2729_v61 }
  0x4a   : > { %3499 = vst [vmem:[#allocation38_spill] sm:$0xff] %v2710_v32  ;;  %v1393_v10 = vpack.c.bf16 %v1363_v50, %v1362_v62  ;;  %v1204_v9 = vadd.f32 %v1172_v43, %v1103_v31  ;;  %404 = vst [vmem:[#allocation2 + $0x1f0] sm:$0xff] %v2710_v32  ;;  %v668_v40 = vmul.f32 %v2378_v20, %v2707_v36  ;;  %v2735_v43 = vld [vmem:[#allocation2 + $0x193] sm:$0xff]  ;;  %v2737_v50 = vld [vmem:[#allocation2 + $0x1e5] sm:$0xff] }
  0x4b   : > { %v1205_v47 = vadd.f32 %v1173_v38, %v1104_v4  ;;  %v599_v57 = vadd.f32 %v567_v37, %v466_v54  ;;  %v669_v33 = vmul.f32 %v2378_v20, %v2712_v34  ;;  %v769_v62 = vmul.f32 %v2445_v51, %v2714_v63  ;;  %3503 = vst [vmem:[#allocation42_spill] sm:$0xff] %v2735_v43 }
  0x4c   : > { %3504 = vst [vmem:[#allocation43_spill] sm:$0xff] %v2737_v50  ;;  %2198 = vmatmul.mubr.bf16.vlgmr.msra.gmra.mxu0 %v1393_v10  ;;  %v1305_v31 = vadd.f32 %v1273_v53, %v1204_v9  ;;  %v600_v19 = vadd.f32 %v568_v22, %v467_v41  ;;  %v770_v25 = vmul.f32 %v2445_v51, %v2722_v21  ;;  %v415_v9 = vld [vmem:[#allocation2 + $0x45] sm:$0xff]  ;;  %v416_v22 = vld [vmem:[#allocation2 + $0x4d] sm:$0xff] }
  0x4d   : > { %v870_v38 = vmul.f32 %v2621_v30, %v2387_v23  ;;  %v1306_v37 = vadd.f32 %v1274_v42, %v1205_v47  ;;  %v700_v4 = vadd.f32 %v668_v40, %v599_v57  ;;  %v871_v54 = vmul.f32 %v2629_v0, %v2387_v23  ;;  %v618_v0 = vld [vmem:[#allocation2 + $0x53] sm:$0xff] }
  0x4e   : > { %v971_v63 = vmul.f32 %v2450_v52, %v2729_v61  ;;  %v1344_v45 = vadd.f32 %v2646_v11, %v1305_v31  ;;  %v701_v10 = vadd.f32 %v669_v33, %v600_v19  ;;  %v972_v53 = vmul.f32 %v2450_v52, %v2735_v43  ;;  %v617_v43 = vld [vmem:[#allocation2 + $0x4b] sm:$0xff] }
  0x4f   : > { %v1073_v41 = vmul.f32 %v2466_v58, %v2737_v50  ;;  %v1345_v57 = vadd.f32 %v2646_v11, %v1306_v37  ;;  %v801_v42 = vadd.f32 %v769_v62, %v700_v4  ;;  %v1174_v40 = vmul.f32 %v2659_v6, %v2403_v29 }
  0x50   : > { %v1175_v47 = vmul.f32 %v2710_v32, %v2403_v29  ;;  %v1376_v61 = vmax.f32 %v1344_v45, 0.0  ;;  %v802_v31 = vadd.f32 %v770_v25, %v701_v10  ;;  %v2758_v19 = vunpack.c.l.bf16 %v2128_v15 }
  0x51   : > { %v2760_v33 = vunpack.c.h.bf16 %v2128_v15  ;;  %v1377_v50 = vmax.f32 %v1345_v57, 0.0  ;;  %v902_v30 = vadd.f32 %v870_v38, %v801_v42  ;;  %v2762_v21 = vld [vmem:[#allocation2 + $0x1ed] sm:$0xff]  ;;  %v452_v4 = vmul.f32 %v2359_v7, %v415_v9 }
  0x52   : > { %3505 = vst [vmem:[#allocation44_spill] sm:$0xff] %v2762_v21  ;;  %v2764_v37 = vld [vmem:[#allocation2 + $0x1eb] sm:$0xff]  ;;  %v2766_v62 = vld [vmem:[#allocation2 + $0x1f3] sm:$0xff]  ;;  %v453_v32 = vmul.f32 %v2359_v7, %v416_v22  ;;  %v903_v45 = vadd.f32 %v871_v54, %v802_v31  ;;  %v1074_v25 = vmul.f32 %v2466_v58, %v2762_v21  ;;  %383 = vst [vmem:[#allocation2 + $0xa8] sm:$0xff] %v2758_v19 }
  0x53   : > { %3506 = vst [vmem:[#allocation45_spill] sm:$0xff] %v2764_v37  ;;  %3507 = vst [vmem:[#allocation46_spill] sm:$0xff] %v2766_v62  ;;  %v1275_v15 = vmul.f32 %v2471_v59, %v2764_v37  ;;  %v1276_v38 = vmul.f32 %v2471_v59, %v2766_v62  ;;  %v1400_v10 = vpack.c.bf16 %v1377_v50, %v1376_v61 }
  0x54   : > { %384 = vst [vmem:[#allocation2 + $0xb0] sm:$0xff] %v2760_v33  ;;  %v1003_v57 = vadd.f32 %v971_v63, %v902_v30  ;;  %v585_v9 = vadd.f32 %v2373_v17, %v452_v4  ;;  %v586_v22 = vadd.f32 %v2373_v17, %v453_v32  ;;  %v1004_v54 = vadd.f32 %v972_v53, %v903_v45 }
  0x55   : > { %v654_v42 = vmul.f32 %v2378_v20, %v617_v43  ;;  %v655_v31 = vmul.f32 %v2378_v20, %v618_v0  ;;  %v856_v37 = vmul.f32 %v2758_v19, %v2387_v23  ;;  %2213 = vmatprep.mubr.bf16.mxu1 %v1400_v10  ;;  %v857_v6 = vmul.f32 %v2760_v33, %v2387_v23 }
  0x56   : > { %v1105_v62 = vadd.f32 %v1073_v41, %v1003_v57  ;;  %v1059_v30 = vmul.f32 %v2466_v58, %v2603_v26  ;;  %v1060_v63 = vmul.f32 %v2466_v58, %v2615_v48  ;;  %v1106_v17 = vadd.f32 %v1074_v25, %v1004_v54 }
  0x57   : > { %v686_v32 = vadd.f32 %v654_v42, %v585_v9  ;;  %v687_v61 = vadd.f32 %v655_v31, %v586_v22  ;;  %v1160_v0 = vmul.f32 %v2460_v56, %v2403_v29  ;;  %v1161_v50 = vmul.f32 %v2500_v5, %v2403_v29 }
  0x58   : > { %v1206_v43 = vadd.f32 %v1174_v40, %v1105_v62  ;;  %v2796_v53 = vmul.f32 %v2471_v59, %v2617_v49  ;;  %v2800_v41 = vmul.f32 %v2471_v59, %v2619_v28  ;;  %v1207_v4 = vadd.f32 %v1175_v47, %v1106_v17 }
  0x59   : > { %v454_v45 = vmul.f32 %v2359_v7, %v2490_v1  ;;  %v455_v25 = vmul.f32 %v2359_v7, %v2492_v2  ;;  %v656_v40 = vmul.f32 %v2378_v20, %v2494_v3  ;;  %v2808_v10 = vld [vmem:[#allocation2 + $0xa5] sm:$0xff]  ;;  %v657_v22 = vmul.f32 %v2378_v20, %v2511_v13 }
  0x5a   : > { %v1307_v62 = vadd.f32 %v1275_v15, %v1206_v43  ;;  %v757_v47 = vmul.f32 %v2445_v51, %v2515_v16  ;;  %v758_v1 = vmul.f32 %v2445_v51, %v2517_v18  ;;  %v1308_v2 = vadd.f32 %v1276_v38, %v1207_v4  ;;  %v3508_v4 = vld [vmem:[#allocation3_spill] sm:$0xff] }
  0x5b   : > { %v2810_v57 = vld [vmem:[#allocation2 + $0xad] sm:$0xff]  ;;  %v755_v3 = vmul.f32 %v2445_v51, %v2808_v10  ;;  %v587_v31 = vadd.f32 %v2390_v24, %v454_v45  ;;  %v588_v18 = vadd.f32 %v2419_v35, %v455_v25  ;;  %v858_v21 = vmul.f32 %v3508_v4, %v2387_v23  ;;  %v3510_v45 = vld [vmem:[#allocation14_spill] sm:$0xff] }
  0x5c   : > { %v2812_v9 = vld [vmem:[#allocation2 + $0xab] sm:$0xff]  ;;  %v756_v15 = vmul.f32 %v2445_v51, %v2810_v57  ;;  %v2824_v54 = vld [vmem:[#allocation2 + $0xb3] sm:$0xff]  ;;  %v1346_v13 = vadd.f32 %v2646_v11, %v1307_v62  ;;  %v1347_v38 = vadd.f32 %v2646_v11, %v1308_v2  ;;  %v959_v35 = vmul.f32 %v2450_v52, %v3510_v45 }
  0x5d   : > { %v957_v42 = vmul.f32 %v2450_v52, %v2812_v9  ;;  %v958_v16 = vmul.f32 %v2450_v52, %v2824_v54  ;;  %v787_v17 = vadd.f32 %v755_v3, %v686_v32  ;;  %v688_v49 = vadd.f32 %v656_v40, %v587_v31  ;;  %v3509_v62 = vld [vmem:[#allocation4_spill] sm:$0xff] }
  0x5e   : > { %v788_v43 = vadd.f32 %v756_v15, %v687_v61  ;;  %v1378_v28 = vmax.f32 %v1346_v13, 0.0  ;;  %v689_v5 = vadd.f32 %v657_v22, %v588_v18  ;;  %v859_v56 = vmul.f32 %v3509_v62, %v2387_v23  ;;  %v3511_v61 = vld [vmem:[#allocation15_spill] sm:$0xff]  ;;  %v2133_v13 = vld [vmem:[%s2347_s29 + $0x38] sm:$0xff]  }
  0x5f   : > { %v1379_v48 = vmax.f32 %v1347_v38, 0.0  ;;  %v888_v26 = vadd.f32 %v856_v37, %v787_v17  ;;  %v789_v25 = vadd.f32 %v757_v47, %v688_v49  ;;  %v960_v2 = vmul.f32 %v2450_v52, %v3511_v61  ;;  %v2136_v47 = vld [vmem:[%s2347_s29 + $0x50] sm:$0xff]  }
  0x60   : > { %v889_v24 = vadd.f32 %v857_v6, %v788_v43  ;;  %v790_v32 = vadd.f32 %v758_v1, %v689_v5  ;;  %v1061_v3 = vmul.f32 %v2466_v58, %v2697_v27  ;;  %v1062_v37 = vmul.f32 %v2466_v58, %v2699_v46  ;;  %v2140_v43 = vld [vmem:[%s2347_s29 + $0x70] sm:$0xff]  }
  0x61   : > { %v1401_v40 = vpack.c.bf16 %v1379_v48, %v1378_v28  ;;  %v989_v22 = vadd.f32 %v957_v42, %v888_v26  ;;  %v890_v6 = vadd.f32 %v858_v21, %v789_v25  ;;  %v1162_v49 = vmul.f32 %v2577_v12, %v2403_v29  ;;  %v2139_v28 = vld [vmem:[%s2347_s29 + $0x68] sm:$0xff]  }
  0x62   : > { %v990_v15 = vadd.f32 %v958_v16, %v889_v24  ;;  %v891_v31 = vadd.f32 %v859_v56, %v790_v32  ;;  %v1163_v5 = vmul.f32 %v2593_v44, %v2403_v29  ;;  %v1263_v26 = vmul.f32 %v2471_v59, %v2707_v36 }
  0x63   : > { %2214 = vmatmul.mubr.bf16.vlgmr.msra.gmra.mxu1 %v1401_v40  ;;  %v1091_v1 = vadd.f32 %v1059_v30, %v989_v22  ;;  %v1264_v48 = vmul.f32 %v2471_v59, %v2712_v34  ;;  %v991_v46 = vadd.f32 %v959_v35, %v890_v6  ;;  %v2857_v56 = vunpack.c.l.bf16 %v2133_v13 }
  0x64   : > { %v1092_v27 = vadd.f32 %v1060_v63, %v990_v15  ;;  %v992_v21 = vadd.f32 %v960_v2, %v891_v31  ;;  %v2859_v42 = vunpack.c.h.bf16 %v2133_v13  ;;  %v2861_v16 = vunpack.c.l.bf16 %v2136_v47  ;;  %v3518_v31 = vld [vmem:[#allocation11_spill] sm:$0xff] }
  0x65   : > { %v1192_v12 = vadd.f32 %v1160_v0, %v1091_v1  ;;  %v2863_v30 = vunpack.c.h.bf16 %v2136_v47  ;;  %v1093_v63 = vadd.f32 %v1061_v3, %v991_v46  ;;  %v2865_v36 = vunpack.c.l.bf16 %v2139_v28  ;;  %393 = vst [vmem:[#allocation2 + $0x148] sm:$0xff] %v2857_v56 }
  0x66   : > { %v1193_v44 = vadd.f32 %v1161_v50, %v1092_v27  ;;  %3512 = vst [vmem:[#allocation3_spill] sm:$0xff] %v2861_v16  ;;  %v1094_v18 = vadd.f32 %v1062_v37, %v992_v21  ;;  %v2867_v38 = vunpack.c.h.bf16 %v2139_v28  ;;  %394 = vst [vmem:[#allocation2 + $0x150] sm:$0xff] %v2859_v42  ;;  %v569_v50 = vmul.f32 %v2857_v56, %v2368_v14  ;;  %v3519_v28 = vld [vmem:[#allocation33_spill] sm:$0xff]  ;;  %v3520_v21 = vld [vmem:[#allocation34_spill] sm:$0xff] }
  0x67   : > { %3513 = vst [vmem:[#allocation4_spill] sm:$0xff] %v2863_v30  ;;  %3514 = vst [vmem:[#allocation14_spill] sm:$0xff] %v2865_v36  ;;  %v1293_v34 = vadd.f32 %v2796_v53, %v1192_v12  ;;  %v570_v17 = vmul.f32 %v2859_v42, %v2368_v14  ;;  %v1194_v4 = vadd.f32 %v1162_v49, %v1093_v63  ;;  %v2900_v2 = vunpack.c.l.bf16 %v2140_v43 }
  0x68   : > { %3515 = vst [vmem:[#allocation15_spill] sm:$0xff] %v2867_v38  ;;  %v1294_v0 = vadd.f32 %v2800_v41, %v1193_v44  ;;  %399 = vst [vmem:[#allocation2 + $0x1a8] sm:$0xff] %v2861_v16  ;;  %v1195_v62 = vadd.f32 %v1163_v5, %v1094_v18  ;;  %v2884_v53 = vmul.f32 %v2861_v16, %v2387_v23  ;;  %v2902_v3 = vunpack.c.h.bf16 %v2140_v43 }
  0x69   : > { %400 = vst [vmem:[#allocation2 + $0x1b0] sm:$0xff] %v2863_v30  ;;  %405 = vst [vmem:[#allocation2 + $0x208] sm:$0xff] %v2865_v36  ;;  %v2888_v41 = vmul.f32 %v2863_v30, %v2387_v23  ;;  %v1332_v24 = vadd.f32 %v2646_v11, %v1293_v34  ;;  %v2894_v35 = vmul.f32 %v2865_v36, %v2403_v29 }
  0x6a   : > { %406 = vst [vmem:[#allocation2 + $0x210] sm:$0xff] %v2867_v38  ;;  %v1333_v45 = vadd.f32 %v2646_v11, %v1294_v0  ;;  %v2898_v25 = vmul.f32 %v2867_v38, %v2403_v29  ;;  %v1295_v32 = vadd.f32 %v1263_v26, %v1194_v4  ;;  %v1296_v61 = vadd.f32 %v1264_v48, %v1195_v62 }
  0x6b   : > { %3516 = vst [vmem:[#allocation47_spill] sm:$0xff] %v2900_v2  ;;  %3517 = vst [vmem:[#allocation48_spill] sm:$0xff] %v2902_v3  ;;  %v1364_v40 = vmax.f32 %v1332_v24, 0.0  ;;  %v470_v15 = vmul.f32 %v2359_v7, %v2640_v55  ;;  %v471_v37 = vmul.f32 %v2359_v7, %v2650_v60  ;;  %v571_v49 = vmul.f32 %v3518_v31, %v2368_v14 }
  0x6c   : > { %v1365_v22 = vmax.f32 %v1333_v45, 0.0  ;;  %v1334_v13 = vadd.f32 %v2646_v11, %v1295_v32  ;;  %v1335_v6 = vadd.f32 %v2646_v11, %v1296_v61  ;;  %407 = vst [vmem:[#allocation2 + $0x228] sm:$0xff] %v2900_v2  ;;  %408 = vst [vmem:[#allocation2 + $0x230] sm:$0xff] %v2902_v3  ;;  %v572_v5 = vmul.f32 %v2504_v8, %v2368_v14  ;;  %v2916_v1 = vld [vmem:[#allocation2 + $0x145] sm:$0xff] }
  0x6d   : > { %v2918_v27 = vld [vmem:[#allocation2 + $0x14d] sm:$0xff]  ;;  %v672_v48 = vmul.f32 %v2378_v20, %v2663_v39  ;;  %v673_v46 = vmul.f32 %v2378_v20, %v3519_v28  ;;  %v773_v12 = vmul.f32 %v2445_v51, %v3520_v21  ;;  %v468_v18 = vmul.f32 %v2359_v7, %v2916_v1 }
  0x6e   : > { %v1394_v47 = vpack.c.bf16 %v1365_v22, %v1364_v40  ;;  %v2920_v26 = vld [vmem:[#allocation2 + $0x14b] sm:$0xff]  ;;  %v1366_v44 = vmax.f32 %v1334_v13, 0.0  ;;  %v1367_v63 = vmax.f32 %v1335_v6, 0.0  ;;  %v469_v34 = vmul.f32 %v2359_v7, %v2918_v27  ;;  %v2932_v0 = vld [vmem:[#allocation2 + $0x153] sm:$0xff] }
  0x6f   : > { %v2934_v43 = vld [vmem:[#allocation2 + $0x1a5] sm:$0xff]  ;;  %v670_v62 = vmul.f32 %v2378_v20, %v2920_v26  ;;  %v671_v24 = vmul.f32 %v2378_v20, %v2932_v0  ;;  %v601_v6 = vadd.f32 %v569_v50, %v468_v18  ;;  %v3529_v28 = vld [vmem:[#allocation13_spill] sm:$0xff] }
  0x70   : > { %3521 = vst [vmem:[#allocation11_spill] sm:$0xff] %v2934_v43  ;;  %v2936_v4 = vld [vmem:[#allocation2 + $0x1ad] sm:$0xff]  ;;  %2201 = vmatprep.mubr.bf16.mxu0 %v1394_v47  ;;  %v771_v45 = vmul.f32 %v2445_v51, %v2934_v43  ;;  %v2950_v22 = vld [vmem:[#allocation2 + $0x205] sm:$0xff]  ;;  %v1395_v13 = vpack.c.bf16 %v1367_v63, %v1366_v44  ;;  %v602_v47 = vadd.f32 %v570_v17, %v469_v34 }
  0x71   : > { %3522 = vst [vmem:[#allocation34_spill] sm:$0xff] %v2936_v4  ;;  %v772_v32 = vmul.f32 %v2445_v51, %v2936_v4  ;;  %v2946_v61 = vld [vmem:[#allocation2 + $0x1ab] sm:$0xff]  ;;  %v2948_v40 = vld [vmem:[#allocation2 + $0x1b3] sm:$0xff]  ;;  %3525 = vst [vmem:[#allocation51_spill] sm:$0xff] %v2950_v22  ;;  %v1075_v4 = vmul.f32 %v2466_v58, %v2950_v22  ;;  %v702_v17 = vadd.f32 %v670_v62, %v601_v6 }
  0x72   : > { %3523 = vst [vmem:[#allocation49_spill] sm:$0xff] %v2946_v61  ;;  %3524 = vst [vmem:[#allocation50_spill] sm:$0xff] %v2948_v40  ;;  %v973_v21 = vmul.f32 %v2450_v52, %v2946_v61  ;;  %v2954_v38 = vld [vmem:[#allocation2 + $0x20d] sm:$0xff]  ;;  %v974_v16 = vmul.f32 %v2450_v52, %v2948_v40  ;;  %2202 = vmatmul.mubr.bf16.gmra.mxu0 %v1395_v13  ;;  %v703_v63 = vadd.f32 %v671_v24, %v602_v47  ;;  %v3528_v43 = vld [vmem:[#allocation35_spill] sm:$0xff] }
  0x73   : > { %3526 = vst [vmem:[#allocation52_spill] sm:$0xff] %v2954_v38  ;;  %v2956_v36 = vld [vmem:[#allocation2 + $0x20b] sm:$0xff]  ;;  %v2958_v30 = vld [vmem:[#allocation2 + $0x213] sm:$0xff]  ;;  %v1076_v44 = vmul.f32 %v2466_v58, %v2954_v38  ;;  %v603_v34 = vadd.f32 %v571_v49, %v470_v15  ;;  %v604_v61 = vadd.f32 %v572_v5, %v471_v37  ;;  %v774_v40 = vmul.f32 %v2445_v51, %v3528_v43 }
  0x74   : > { %3527 = vst [vmem:[#allocation53_spill] sm:$0xff] %v2956_v36  ;;  %v1277_v50 = vmul.f32 %v2471_v59, %v2956_v36  ;;  %v1278_v18 = vmul.f32 %v2471_v59, %v2958_v30  ;;  %v874_v22 = vmul.f32 %v3529_v28, %v2387_v23  ;;  %v3530_v39 = vld [vmem:[#allocation16_spill] sm:$0xff]  ;;  %v803_v62 = vadd.f32 %v771_v45, %v702_v17  ;;  %v2984_v49 = vld [vmem:[#allocation2 + $0x233] sm:$0xff] }
  0x75   : > { %v875_v38 = vmul.f32 %v3530_v39, %v2387_v23  ;;  %v2976_v8 = vld [vmem:[#allocation2 + $0x225] sm:$0xff]  ;;  %v2978_v36 = vld [vmem:[#allocation2 + $0x22d] sm:$0xff]  ;;  %v804_v24 = vadd.f32 %v772_v32, %v703_v63  ;;  %v704_v13 = vadd.f32 %v672_v48, %v603_v34  ;;  %v705_v5 = vadd.f32 %v673_v46, %v604_v61 }
  0x76   : > { %3531 = vst [vmem:[#allocation35_spill] sm:$0xff] %v2976_v8  ;;  %3532 = vst [vmem:[#allocation13_spill] sm:$0xff] %v2978_v36  ;;  %v3533_v6 = vld [vmem:[#allocation36_spill] sm:$0xff]  ;;  %v3536_v43 = vld [vmem:[#allocation37_spill] sm:$0xff]  ;;  %v1077_v39 = vmul.f32 %v2466_v58, %v2976_v8  ;;  %v1078_v47 = vmul.f32 %v2466_v58, %v2978_v36  ;;  %v904_v45 = vadd.f32 %v2884_v53, %v803_v62 }
  0x77   : > { %v975_v15 = vmul.f32 %v2450_v52, %v3533_v6  ;;  %v2982_v37 = vld [vmem:[#allocation2 + $0x22b] sm:$0xff]  ;;  %3535 = vst [vmem:[#allocation36_spill] sm:$0xff] %v2984_v49  ;;  %v976_v28 = vmul.f32 %v2450_v52, %v3536_v43  ;;  %v905_v48 = vadd.f32 %v2888_v41, %v804_v24  ;;  %v805_v32 = vadd.f32 %v773_v12, %v704_v13  ;;  %v3538_v62 = vld [vmem:[#allocation18_spill] sm:$0xff] }
  0x78   : > { %3534 = vst [vmem:[#allocation16_spill] sm:$0xff] %v2982_v37  ;;  %v1178_v17 = vmul.f32 %v2900_v2, %v2403_v29  ;;  %v806_v63 = vadd.f32 %v774_v40, %v705_v5  ;;  %v1179_v46 = vmul.f32 %v2902_v3, %v2403_v29  ;;  %v1279_v61 = vmul.f32 %v2471_v59, %v2982_v37  ;;  %v3537_v53 = vld [vmem:[#allocation17_spill] sm:$0xff]  ;;  %v3540_v5 = vld [vmem:[#allocation6_spill] sm:$0xff] }
  0x79   : > { %v1280_v34 = vmul.f32 %v2471_v59, %v2984_v49  ;;  %v1005_v6 = vadd.f32 %v973_v21, %v904_v45  ;;  %v1006_v43 = vadd.f32 %v974_v16, %v905_v48  ;;  %v906_v36 = vadd.f32 %v874_v22, %v805_v32  ;;  %v3539_v40 = vld [vmem:[#allocation5_spill] sm:$0xff]  ;;  %v3541_v49 = vld [vmem:[#allocation19_spill] sm:$0xff]  ;;  %v3542_v48 = vld [vmem:[#allocation20_spill] sm:$0xff] }
  0x7a   : > { %v456_v41 = vmul.f32 %v2359_v7, %v3537_v53  ;;  %v907_v12 = vadd.f32 %v875_v38, %v806_v63  ;;  %v457_v24 = vmul.f32 %v2359_v7, %v3538_v62  ;;  %v557_v13 = vmul.f32 %v3539_v40, %v2368_v14  ;;  %v3543_v53 = vld [vmem:[#allocation21_spill] sm:$0xff] }
  0x7b   : > { %v558_v3 = vmul.f32 %v3540_v5, %v2368_v14  ;;  %v1107_v37 = vadd.f32 %v1075_v4, %v1005_v6  ;;  %v1108_v2 = vadd.f32 %v1076_v44, %v1006_v43  ;;  %v1007_v8 = vadd.f32 %v975_v15, %v906_v36  ;;  %v3544_v15 = vld [vmem:[#allocation22_spill] sm:$0xff]  ;;  %v3545_v43 = vld [vmem:[#allocation7_spill] sm:$0xff] }
  0x7c   : > { %v658_v16 = vmul.f32 %v2378_v20, %v3541_v49  ;;  %v1008_v22 = vadd.f32 %v976_v28, %v907_v12  ;;  %v589_v21 = vadd.f32 %v557_v13, %v456_v41  ;;  %v659_v38 = vmul.f32 %v2378_v20, %v3542_v48  ;;  %v3547_v12 = vld [vmem:[#allocation23_spill] sm:$0xff] }
  0x7d   : > { %v590_v45 = vadd.f32 %v558_v3, %v457_v24  ;;  %v1208_v7 = vadd.f32 %v2894_v35, %v1107_v37  ;;  %v1209_v32 = vadd.f32 %v2898_v25, %v1108_v2  ;;  %v1109_v63 = vadd.f32 %v1077_v39, %v1007_v8  ;;  %v3546_v8 = vld [vmem:[#allocation8_spill] sm:$0xff] }
  0x7e   : > { %v759_v14 = vmul.f32 %v2445_v51, %v3543_v53  ;;  %v1110_v4 = vadd.f32 %v1078_v47, %v1008_v22  ;;  %v690_v44 = vadd.f32 %v658_v16, %v589_v21  ;;  %v760_v49 = vmul.f32 %v2445_v51, %v3544_v15  ;;  %v3548_v24 = vld [vmem:[#allocation24_spill] sm:$0xff] }
  0x7f   : > { %v691_v36 = vadd.f32 %v659_v38, %v590_v45  ;;  %v1309_v28 = vadd.f32 %v1277_v50, %v1208_v7  ;;  %v1310_v6 = vadd.f32 %v1278_v18, %v1209_v32  ;;  %v1210_v3 = vadd.f32 %v1178_v17, %v1109_v63 }
  0x80   : > { %v860_v20 = vmul.f32 %v3545_v43, %v2387_v23  ;;  %v1211_v41 = vadd.f32 %v1179_v46, %v1110_v4  ;;  %v791_v35 = vadd.f32 %v759_v14, %v690_v44  ;;  %v861_v25 = vmul.f32 %v3546_v8, %v2387_v23  ;;  %v3047_v4 = vld [vmem:[%s3390_s1] ss:$0 sm:$0xff]  ;;  %v3550_v8 = vld [vmem:[#allocation26_spill] sm:$0xff] }
  0x81   : > { %v792_v37 = vadd.f32 %v760_v49, %v691_v36  ;;  %v1348_v2 = vadd.f32 %v2646_v11, %v1309_v28  ;;  %v1349_v39 = vadd.f32 %v2646_v11, %v1310_v6  ;;  %v1311_v47 = vadd.f32 %v1279_v61, %v1210_v3  ;;  %v3056_v36 = vld [vmem:[%s3390_s1 + $0x1] ss:$0 sm:$0xff] }
  0x82   : > { %v961_v62 = vmul.f32 %v2450_v52, %v3547_v12  ;;  %v1312_v50 = vadd.f32 %v1280_v34, %v1211_v41  ;;  %v892_v18 = vadd.f32 %v860_v20, %v791_v35  ;;  %v962_v40 = vmul.f32 %v2450_v52, %v3548_v24  ;;  %v3549_v41 = vld [vmem:[#allocation25_spill] sm:$0xff]  ;;  %v3554_v24 = vld [vmem:[#allocation28_spill] sm:$0xff] }
  0x83   : > { %v893_v17 = vadd.f32 %v861_v25, %v792_v37  ;;  %v1380_v46 = vmax.f32 %v1348_v2, 0.0  ;;  %v1381_v13 = vmax.f32 %v1349_v39, 0.0  ;;  %v1350_v5 = vadd.f32 %v2646_v11, %v1311_v47  ;;  %v3078_v39 = vld [vmem:[%s3390_s1 + $0x4] ss:$0 sm:$0xff]  ;;  %v3552_v47 = vld [vmem:[#allocation10_spill] sm:$0xff] }
  0x84   : > { %v1063_v23 = vmul.f32 %v2466_v58, %v2916_v1  ;;  %v1351_v16 = vadd.f32 %v2646_v11, %v1312_v50  ;;  %v993_v22 = vadd.f32 %v961_v62, %v892_v18  ;;  %v1064_v21 = vmul.f32 %v2466_v58, %v2918_v27  ;;  %v3553_v62 = vld [vmem:[#allocation27_spill] sm:$0xff] }
  0x85   : > { %v994_v61 = vadd.f32 %v962_v40, %v893_v17  ;;  %v1402_v34 = vpack.c.bf16 %v1381_v13, %v1380_v46  ;;  %v1382_v45 = vmax.f32 %v1350_v5, 0.0  ;;  %v1164_v48 = vmul.f32 %v2857_v56, %v2403_v29  ;;  %v2141_v46 = vld [vmem:[%s2347_s29 + $0x78] sm:$0xff]  }
  0x86   : > { %v1165_v38 = vmul.f32 %v2859_v42, %v2403_v29  ;;  %v1383_v7 = vmax.f32 %v1351_v16, 0.0  ;;  %v1095_v32 = vadd.f32 %v1063_v23, %v993_v22  ;;  %v1265_v53 = vmul.f32 %v2471_v59, %v2920_v26  ;;  %v3098_v16 = vld [vmem:[%s3390_s1 + $0x7] ss:$0 sm:$0xff] }
  0x87   : > { %v1096_v63 = vadd.f32 %v1064_v21, %v994_v61  ;;  %2217 = vmatprep.mubr.bf16.mxu1 %v1402_v34  ;;  %v1266_v14 = vmul.f32 %v2471_v59, %v2932_v0  ;;  %v458_v44 = vmul.f32 %v3047_v4, %v2808_v10  ;;  %v459_v29 = vmul.f32 %v3047_v4, %v2810_v57  ;;  %v3065_v10 = vld [vmem:[%s3390_s1 + $0x2] ss:$0 sm:$0xff] }
  0x88   : > { %v559_v15 = vmul.f32 %v3056_v36, %v2758_v19  ;;  %v1403_v49 = vpack.c.bf16 %v1383_v7, %v1382_v45  ;;  %v1196_v28 = vadd.f32 %v1164_v48, %v1095_v32  ;;  %v560_v3 = vmul.f32 %v3056_v36, %v2760_v33  ;;  %v3557_v7 = vld [vmem:[#allocation33_spill] sm:$0xff] }
  0x89   : > { %v1197_v6 = vadd.f32 %v1165_v38, %v1096_v63  ;;  %v660_v57 = vmul.f32 %v3065_v10, %v2812_v9  ;;  %v661_v20 = vmul.f32 %v3065_v10, %v2824_v54  ;;  %v761_v19 = vmul.f32 %v2445_v51, %v3549_v41  ;;  %v3551_v9 = vld [vmem:[#allocation9_spill] sm:$0xff]  ;;  %v3556_v38 = vld [vmem:[#allocation32_spill] sm:$0xff] }
  0x8a   : > { %v591_v43 = vadd.f32 %v559_v15, %v458_v44  ;;  %2218 = vmatmul.mubr.bf16.gmra.mxu1 %v1403_v49  ;;  %v1297_v35 = vadd.f32 %v1265_v53, %v1196_v28  ;;  %v592_v33 = vadd.f32 %v560_v3, %v459_v29  ;;  %v762_v25 = vmul.f32 %v2445_v51, %v3550_v8  ;;  %v3559_v29 = vld [vmem:[#allocation40_spill] sm:$0xff]  ;;  %v3560_v49 = vld [vmem:[#allocation29_spill] sm:$0xff] }
  0x8b   : > { %v1298_v37 = vadd.f32 %v1266_v14, %v1197_v6  ;;  %v862_v54 = vmul.f32 %v3078_v39, %v3551_v9  ;;  %v863_v12 = vmul.f32 %v3078_v39, %v3552_v47  ;;  %v963_v50 = vmul.f32 %v2450_v52, %v3553_v62  ;;  %v3561_v6 = vld [vmem:[#allocation30_spill] sm:$0xff]  ;;  %v3566_v47 = vld [vmem:[#allocation31_spill] sm:$0xff] }
  0x8c   : > { %v692_v2 = vadd.f32 %v660_v57, %v591_v43  ;;  %v1336_v18 = vadd.f32 %v2646_v11, %v1297_v35  ;;  %v693_v51 = vadd.f32 %v661_v20, %v592_v33  ;;  %v964_v40 = vmul.f32 %v2450_v52, %v3554_v24  ;;  %v3555_v52 = vld [vmem:[#allocation12_spill] sm:$0xff]  ;;  %v3562_v43 = vld [vmem:[#allocation41_spill] sm:$0xff]  ;;  %v3563_v20 = vld [vmem:[#allocation42_spill] sm:$0xff] }
  0x8d   : > { %v1337_v17 = vadd.f32 %v2646_v11, %v1298_v37  ;;  %v1065_v5 = vmul.f32 %v2466_v58, %v2640_v55  ;;  %v1066_v23 = vmul.f32 %v2466_v58, %v2650_v60  ;;  %v1166_v22 = vmul.f32 %v3098_v16, %v3518_v31  ;;  %v3558_v31 = vld [vmem:[#allocation39_spill] sm:$0xff]  ;;  %v3567_v62 = vld [vmem:[#allocation38_spill] sm:$0xff] }
  0x8e   : > { %v793_v13 = vadd.f32 %v761_v19, %v692_v2  ;;  %v1368_v61 = vmax.f32 %v1336_v18, 0.0  ;;  %v794_v34 = vadd.f32 %v762_v25, %v693_v51  ;;  %v1167_v45 = vmul.f32 %v3098_v16, %v3555_v52  ;;  %v3129_v19 = vld [vmem:[%s3390_s1 + $0x3] ss:$0 sm:$0xff]  ;;  %v3565_v2 = vld [vmem:[#allocation44_spill] sm:$0xff]  ;;  %v3142_v18 = vld [vmem:[%s3390_s1 + $0x5] ss:$0 sm:$0xff] }
  0x8f   : > { %v1369_v21 = vmax.f32 %v1337_v17, 0.0  ;;  %v1267_v55 = vmul.f32 %v2471_v59, %v3556_v38  ;;  %v1268_v58 = vmul.f32 %v2471_v59, %v3557_v7  ;;  %v3108_v60 = vunpack.c.l.bf16 %v2141_v46  ;;  %v3564_v35 = vld [vmem:[#allocation43_spill] sm:$0xff]  ;;  %v3568_v17 = vld [vmem:[#allocation45_spill] sm:$0xff] }
  0x90   : > { %v894_v48 = vadd.f32 %v862_v54, %v793_v13  ;;  %v895_v63 = vadd.f32 %v863_v12, %v794_v34  ;;  %v3110_v53 = vunpack.c.h.bf16 %v2141_v46  ;;  %v472_v14 = vmul.f32 %v3047_v4, %v3558_v31  ;;  %v3569_v13 = vld [vmem:[#allocation46_spill] sm:$0xff]  ;;  %v3570_v34 = vld [vmem:[#allocation11_spill] sm:$0xff] }
  0x91   : > { %v1396_v32 = vpack.c.bf16 %v1369_v21, %v1368_v61  ;;  %409 = vst [vmem:[#allocation2 + $0x248] sm:$0xff] %v3108_v60  ;;  %v473_v15 = vmul.f32 %v3047_v4, %v3559_v29  ;;  %v573_v28 = vmul.f32 %v3056_v36, %v3560_v49  ;;  %v574_v59 = vmul.f32 %v3056_v36, %v3561_v6 }
  0x92   : > { %v995_v44 = vadd.f32 %v963_v50, %v894_v48  ;;  %v996_v3 = vadd.f32 %v964_v40, %v895_v63  ;;  %410 = vst [vmem:[#allocation2 + $0x250] sm:$0xff] %v3110_v53  ;;  %v674_v57 = vmul.f32 %v3065_v10, %v3562_v43  ;;  %v675_v41 = vmul.f32 %v3065_v10, %v3563_v20 }
  0x93   : > { %2205 = vmatprep.mubr.bf16.mxu0 %v1396_v32  ;;  %v775_v37 = vmul.f32 %v3129_v19, %v3564_v35  ;;  %v605_v8 = vadd.f32 %v573_v28, %v472_v14  ;;  %v606_v25 = vadd.f32 %v574_v59, %v473_v15  ;;  %v776_v9 = vmul.f32 %v3129_v19, %v3565_v2  ;;  %v3571_v32 = vld [vmem:[#allocation34_spill] sm:$0xff]  ;;  %v3572_v14 = vld [vmem:[#allocation3_spill] sm:$0xff]  ;;  %v3574_v15 = vld [vmem:[#allocation49_spill] sm:$0xff] }
  0x94   : > { %v1097_v33 = vadd.f32 %v1065_v5, %v995_v44  ;;  %v1098_v54 = vadd.f32 %v1066_v23, %v996_v3  ;;  %v876_v12 = vmul.f32 %v3078_v39, %v3566_v47  ;;  %v877_v50 = vmul.f32 %v3078_v39, %v3567_v62  ;;  %v3573_v44 = vld [vmem:[#allocation4_spill] sm:$0xff] }
  0x95   : > { %v977_v51 = vmul.f32 %v3142_v18, %v3568_v17  ;;  %v706_v40 = vadd.f32 %v674_v57, %v605_v8  ;;  %v707_v46 = vadd.f32 %v675_v41, %v606_v25  ;;  %v978_v5 = vmul.f32 %v3142_v18, %v3569_v13  ;;  %v3184_v35 = vld [vmem:[%s3390_s1 + $0x8] ss:$0 sm:$0xff] }
  0x96   : > { %v1198_v24 = vadd.f32 %v1166_v22, %v1097_v33  ;;  %v1199_v23 = vadd.f32 %v1167_v45, %v1098_v54  ;;  %v1180_v61 = vmul.f32 %v3098_v16, %v3108_v60  ;;  %v1181_v21 = vmul.f32 %v3098_v16, %v3110_v53  ;;  %v3577_v13 = vld [vmem:[#allocation52_spill] sm:$0xff] }
  0x97   : > { %v474_v52 = vmul.f32 %v3047_v4, %v3570_v34  ;;  %v807_v38 = vadd.f32 %v775_v37, %v706_v40  ;;  %v808_v7 = vadd.f32 %v776_v9, %v707_v46  ;;  %v475_v22 = vmul.f32 %v3047_v4, %v3571_v32 }
  0x98   : > { %v1299_v48 = vadd.f32 %v1267_v55, %v1198_v24  ;;  %v1300_v63 = vadd.f32 %v1268_v58, %v1199_v23  ;;  %v3156_v31 = vld [vmem:[#allocation2 + $0x245] sm:$0xff]  ;;  %v575_v45 = vmul.f32 %v3056_v36, %v3572_v14  ;;  %v576_v29 = vmul.f32 %v3056_v36, %v3573_v44 }
  0x99   : > { %v676_v49 = vmul.f32 %v3065_v10, %v3574_v15  ;;  %v908_v55 = vadd.f32 %v876_v12, %v807_v38  ;;  %v909_v6 = vadd.f32 %v877_v50, %v808_v7  ;;  %v3165_v59 = vld [vmem:[#allocation2 + $0x24d] sm:$0xff]  ;;  %v3170_v58 = vld [vmem:[%s3390_s1 + $0x6] ss:$0 sm:$0xff]  ;;  %v3575_v12 = vld [vmem:[#allocation50_spill] sm:$0xff]  ;;  %v778_v23 = vmul.f32 %v3129_v19, %v3577_v13 }
  0x9a   : > { %v1338_v28 = vadd.f32 %v2646_v11, %v1299_v48  ;;  %v1079_v3 = vmul.f32 %v3170_v58, %v3156_v31  ;;  %v3174_v43 = vld [vmem:[#allocation2 + $0x24b] sm:$0xff]  ;;  %v3176_v57 = vld [vmem:[#allocation2 + $0x253] sm:$0xff]  ;;  %v1339_v20 = vadd.f32 %v2646_v11, %v1300_v63  ;;  %v1080_v41 = vmul.f32 %v3170_v58, %v3165_v59  ;;  %v3576_v50 = vld [vmem:[#allocation51_spill] sm:$0xff] }
  0x9b   : > { %v1281_v37 = vmul.f32 %v3184_v35, %v3174_v43  ;;  %v1282_v33 = vmul.f32 %v3184_v35, %v3176_v57  ;;  %v1009_v25 = vadd.f32 %v977_v51, %v908_v55  ;;  %v1010_v2 = vadd.f32 %v978_v5, %v909_v6  ;;  %v1044_v48 = vld [vmem:[#allocation2 + $0x265] sm:$0xff]  ;;  %v1045_v38 = vld [vmem:[#allocation2 + $0x26d] sm:$0xff]  ;;  %v3578_v5 = vld [vmem:[#allocation14_spill] sm:$0xff] }
  0x9c   : > { %v1370_v8 = vmax.f32 %v1338_v28, 0.0  ;;  %v607_v9 = vadd.f32 %v575_v45, %v474_v52  ;;  %v1371_v54 = vmax.f32 %v1339_v20, 0.0  ;;  %v608_v47 = vadd.f32 %v576_v29, %v475_v22  ;;  %v3579_v22 = vld [vmem:[#allocation15_spill] sm:$0xff]  ;;  %v3580_v55 = vld [vmem:[#allocation53_spill] sm:$0xff] }
  0x9d   : > { %v677_v62 = vmul.f32 %v3065_v10, %v3575_v12  ;;  %v777_v17 = vmul.f32 %v3129_v19, %v3576_v50  ;;  %v1111_v24 = vadd.f32 %v1079_v3, %v1009_v25  ;;  %v1112_v40 = vadd.f32 %v1080_v41, %v1010_v2  ;;  %v1247_v3 = vld [vmem:[#allocation2 + $0x273] sm:$0xff]  ;;  %v423_v20 = vld [vmem:[#allocation2 + $0xc5] sm:$0xff] }
  0x9e   : > { %v708_v46 = vadd.f32 %v676_v49, %v607_v9  ;;  %v1397_v7 = vpack.c.bf16 %v1371_v54, %v1370_v8  ;;  %v878_v52 = vmul.f32 %v3078_v39, %v3578_v5  ;;  %v879_v63 = vmul.f32 %v3078_v39, %v3579_v22  ;;  %v1246_v49 = vld [vmem:[#allocation2 + $0x26b] sm:$0xff] }
  0x9f   : > { %v709_v51 = vadd.f32 %v677_v62, %v608_v47  ;;  %v1212_v45 = vadd.f32 %v1180_v61, %v1111_v24  ;;  %v1213_v29 = vadd.f32 %v1181_v21, %v1112_v40  ;;  %v979_v6 = vmul.f32 %v3142_v18, %v3580_v55  ;;  %v424_v9 = vld [vmem:[#allocation2 + $0xcd] sm:$0xff]  ;;  %v2271_v47 = vld [vmem:[#allocation2] sm:$0xff] }
  0xa0   : > { %v809_v28 = vadd.f32 %v777_v17, %v708_v46  ;;  %2206 = vmatmul.mubr.bf16.gmra.mxu0 %v1397_v7  ;;  %v980_v8 = vmul.f32 %v3142_v18, %v2958_v30  ;;  %v1081_v25 = vmul.f32 %v3170_v58, %v1044_v48  ;;  %v1082_v2 = vmul.f32 %v3170_v58, %v1045_v38  ;;  %v524_v50 = vld [vmem:[#allocation2 + $0xc8] sm:$0xff]  ;;  %v525_v17 = vld [vmem:[#allocation2 + $0xd0] sm:$0xff] }
  0xa1   : > { %v810_v41 = vadd.f32 %v778_v23, %v709_v51  ;;  %v1313_v54 = vadd.f32 %v1281_v37, %v1212_v45  ;;  %v1314_v61 = vadd.f32 %v1282_v33, %v1213_v29  ;;  %v3207_v62 = vmul.f32 %v2271_v47, %v3098_v16  ;;  %v625_v24 = vld [vmem:[#allocation2 + $0xcb] sm:$0xff]  ;;  %v626_v23 = vld [vmem:[#allocation2 + $0xd3] sm:$0xff] }
  0xa2   : > { %v910_v21 = vadd.f32 %v878_v52, %v809_v28  ;;  %v1283_v46 = vmul.f32 %v3184_v35, %v1246_v49  ;;  %v1284_v30 = vmul.f32 %v3184_v35, %v1247_v3  ;;  %v460_v13 = vmul.f32 %v3047_v4, %v423_v20  ;;  %v726_v7 = vld [vmem:[#allocation2 + $0x125] sm:$0xff]  ;;  %v828_v3 = vld [vmem:[#allocation2 + $0x130] sm:$0xff] }
  0xa3   : > { %v911_v40 = vadd.f32 %v879_v63, %v810_v41  ;;  %v1352_v48 = vadd.f32 %v2646_v11, %v1313_v54  ;;  %v1353_v37 = vadd.f32 %v2646_v11, %v1314_v61  ;;  %v461_v38 = vmul.f32 %v3047_v4, %v424_v9  ;;  %v727_v63 = vld [vmem:[#allocation2 + $0x12d] sm:$0xff]  ;;  %v1030_v54 = vld [vmem:[#allocation2 + $0x185] sm:$0xff] }
  0xa4   : > { %v1011_v33 = vadd.f32 %v979_v6, %v910_v21  ;;  %v561_v5 = vmul.f32 %v3056_v36, %v524_v50  ;;  %v562_v52 = vmul.f32 %v3056_v36, %v525_v17  ;;  %v662_v22 = vmul.f32 %v3065_v10, %v625_v24  ;;  %v827_v45 = vld [vmem:[#allocation2 + $0x128] sm:$0xff]  ;;  %v929_v9 = vld [vmem:[#allocation2 + $0x133] sm:$0xff] }
  0xa5   : > { %v1012_v51 = vadd.f32 %v980_v8, %v911_v40  ;;  %v1384_v29 = vmax.f32 %v1352_v48, 0.0  ;;  %v1385_v28 = vmax.f32 %v1353_v37, 0.0  ;;  %v663_v49 = vmul.f32 %v3065_v10, %v626_v23  ;;  %v928_v8 = vld [vmem:[#allocation2 + $0x12b] sm:$0xff] }
  0xa6   : > { %v1113_v55 = vadd.f32 %v1081_v25, %v1011_v33  ;;  %v593_v6 = vadd.f32 %v561_v5, %v460_v13  ;;  %v594_v20 = vadd.f32 %v562_v52, %v461_v38  ;;  %v763_v41 = vmul.f32 %v3129_v19, %v726_v7  ;;  %v1031_v17 = vld [vmem:[#allocation2 + $0x18d] sm:$0xff] }
  0xa7   : > { %v1114_v11 = vadd.f32 %v1082_v2, %v1012_v51  ;;  %v1404_v61 = vpack.c.bf16 %v1385_v28, %v1384_v29  ;;  %v764_v47 = vmul.f32 %v3129_v19, %v727_v63  ;;  %v864_v50 = vmul.f32 %v3078_v39, %v827_v45  ;;  %v1131_v13 = vld [vmem:[#allocation2 + $0x188] sm:$0xff]  ;;  %v1132_v23 = vld [vmem:[#allocation2 + $0x190] sm:$0xff] }
  0xa8   : > { %v1214_v21 = vadd.f32 %v3207_v62, %v1113_v55  ;;  %v694_v24 = vadd.f32 %v662_v22, %v593_v6  ;;  %v695_v40 = vadd.f32 %v663_v49, %v594_v20  ;;  %v865_v2 = vmul.f32 %v3078_v39, %v828_v3  ;;  %v1232_v48 = vld [vmem:[#allocation2 + $0x18b] sm:$0xff]  ;;  %v1233_v51 = vld [vmem:[#allocation2 + $0x193] sm:$0xff]  ;;  %v3232_v55 = vld [vmem:[%s3391_s2] ss:$0 sm:$0xff] }
  0xa9   : > { %v1215_v25 = vadd.f32 %v3207_v62, %v1114_v11  ;;  %2221 = vmatprep.mubr.bf16.mxu1 %v1404_v61  ;;  %v965_v33 = vmul.f32 %v3142_v18, %v928_v8  ;;  %v966_v38 = vmul.f32 %v3142_v18, %v929_v9  ;;  %v1067_v7 = vmul.f32 %v3170_v58, %v1030_v54  ;;  %v425_v45 = vld [vmem:[#allocation2 + $0xe5] sm:$0xff]  ;;  %v426_v29 = vld [vmem:[#allocation2 + $0xed] sm:$0xff] }
  0xaa   : > { %v1315_v37 = vadd.f32 %v1283_v46, %v1214_v21  ;;  %v795_v52 = vadd.f32 %v763_v41, %v694_v24  ;;  %v796_v63 = vadd.f32 %v764_v47, %v695_v40  ;;  %v1068_v22 = vmul.f32 %v3170_v58, %v1031_v17  ;;  %v526_v28 = vld [vmem:[#allocation2 + $0xe8] sm:$0xff]  ;;  %v527_v11 = vld [vmem:[#allocation2 + $0xf0] sm:$0xff] }
  0xab   : > { %v1316_v5 = vadd.f32 %v1284_v30, %v1215_v25  ;;  %v1168_v49 = vmul.f32 %v3098_v16, %v1131_v13  ;;  %v1169_v3 = vmul.f32 %v3098_v16, %v1132_v23  ;;  %v1269_v30 = vmul.f32 %v3184_v35, %v1232_v48  ;;  %v627_v9 = vld [vmem:[#allocation2 + $0xeb] sm:$0xff]  ;;  %v628_v54 = vld [vmem:[#allocation2 + $0xf3] sm:$0xff] }
  0xac   : > { %v1354_v46 = vadd.f32 %v3232_v55, %v1315_v37  ;;  %v896_v20 = vadd.f32 %v864_v50, %v795_v52  ;;  %v897_v41 = vadd.f32 %v865_v2, %v796_v63  ;;  %v1270_v8 = vmul.f32 %v3184_v35, %v1233_v51 }
  0xad   : > { %v1355_v6 = vadd.f32 %v3232_v55, %v1316_v5  ;;  %v462_v21 = vmul.f32 %v3047_v4, %v425_v45  ;;  %v463_v47 = vmul.f32 %v3047_v4, %v426_v29  ;;  %v563_v17 = vmul.f32 %v3056_v36, %v526_v28 }
  0xae   : > { %v1386_v61 = vmax.f32 %v1354_v46, 0.0  ;;  %v997_v24 = vadd.f32 %v965_v33, %v896_v20  ;;  %v998_v40 = vadd.f32 %v966_v38, %v897_v41  ;;  %v564_v13 = vmul.f32 %v3056_v36, %v527_v11  ;;  %v439_v11 = vld [vmem:[#allocation2 + $0x1c5] sm:$0xff] }
  0xaf   : > { %v1387_v25 = vmax.f32 %v1355_v6, 0.0  ;;  %v595_v23 = vadd.f32 %v563_v17, %v462_v21  ;;  %v664_v50 = vmul.f32 %v3065_v10, %v627_v9  ;;  %v665_v2 = vmul.f32 %v3065_v10, %v628_v54  ;;  %v540_v41 = vld [vmem:[#allocation2 + $0x1c8] sm:$0xff]  ;;  %v642_v21 = vld [vmem:[#allocation2 + $0x1d3] sm:$0xff] }
  0xb0   : > { %v765_v48 = vmul.f32 %v3129_v19, %v2916_v1  ;;  %v1099_v51 = vadd.f32 %v1067_v7, %v997_v24  ;;  %v1100_v5 = vadd.f32 %v1068_v22, %v998_v40  ;;  %v596_v52 = vadd.f32 %v564_v13, %v463_v47  ;;  %v641_v54 = vld [vmem:[#allocation2 + $0x1cb] sm:$0xff] }
  0xb1   : > { %v1405_v37 = vpack.c.bf16 %v1387_v25, %v1386_v61  ;;  %v696_v63 = vadd.f32 %v664_v50, %v595_v23  ;;  %v766_v45 = vmul.f32 %v3129_v19, %v2918_v27  ;;  %v866_v33 = vmul.f32 %v3078_v39, %v2857_v56 }
  0xb2   : > { %v867_v38 = vmul.f32 %v3078_v39, %v2859_v42  ;;  %v1200_v29 = vadd.f32 %v1168_v49, %v1099_v51  ;;  %v1201_v28 = vadd.f32 %v1169_v3, %v1100_v5  ;;  %v697_v46 = vadd.f32 %v665_v2, %v596_v52  ;;  %v440_v3 = vld [vmem:[#allocation2 + $0x1cd] sm:$0xff] }
  0xb3   : > { %2222 = vmatmul.mubr.bf16.gmra.mxu1 %v1405_v37  ;;  %v967_v1 = vmul.f32 %v3142_v18, %v2920_v26  ;;  %v797_v7 = vadd.f32 %v765_v48, %v696_v63  ;;  %v968_v22 = vmul.f32 %v3142_v18, %v2932_v0  ;;  %v1069_v27 = vmul.f32 %v3170_v58, %v3570_v34  ;;  %v541_v26 = vld [vmem:[#allocation2 + $0x1d0] sm:$0xff]  ;;  %v3581_v37 = vld [vmem:[#allocation35_spill] sm:$0xff] }
  0xb4   : > { %v1070_v56 = vmul.f32 %v3170_v58, %v3571_v32  ;;  %v1301_v6 = vadd.f32 %v1269_v30, %v1200_v29  ;;  %v1302_v42 = vadd.f32 %v1270_v8, %v1201_v28  ;;  %v798_v20 = vadd.f32 %v766_v45, %v697_v46  ;;  %v3582_v5 = vld [vmem:[#allocation13_spill] sm:$0xff]  ;;  %v1046_v63 = vld [vmem:[#allocation2 + $0x285] sm:$0xff] }
  0xb5   : > { %v1170_v49 = vmul.f32 %v3098_v16, %v3572_v14  ;;  %v898_v9 = vadd.f32 %v866_v33, %v797_v7  ;;  %v1171_v0 = vmul.f32 %v3098_v16, %v3573_v44  ;;  %v1271_v34 = vmul.f32 %v3184_v35, %v3574_v15  ;;  %v3583_v29 = vld [vmem:[#allocation47_spill] sm:$0xff]  ;;  %v1047_v46 = vld [vmem:[#allocation2 + $0x28d] sm:$0xff] }
  0xb6   : > { %v1272_v32 = vmul.f32 %v3184_v35, %v3575_v12  ;;  %v1340_v30 = vadd.f32 %v3232_v55, %v1301_v6  ;;  %v1341_v8 = vadd.f32 %v3232_v55, %v1302_v42  ;;  %v899_v61 = vadd.f32 %v867_v38, %v798_v20  ;;  %v1249_v7 = vld [vmem:[#allocation2 + $0x293] sm:$0xff]  ;;  %v3586_v42 = vld [vmem:[#allocation36_spill] sm:$0xff] }
  0xb7   : > { %v476_v14 = vmul.f32 %v3047_v4, %v439_v11  ;;  %v999_v47 = vadd.f32 %v967_v1, %v898_v9  ;;  %v477_v17 = vmul.f32 %v3047_v4, %v440_v3  ;;  %v577_v16 = vmul.f32 %v3056_v36, %v540_v41  ;;  %v1248_v1 = vld [vmem:[#allocation2 + $0x28b] sm:$0xff] }
  0xb8   : > { %v578_v44 = vmul.f32 %v3056_v36, %v541_v26  ;;  %v1372_v15 = vmax.f32 %v1340_v30, 0.0  ;;  %v1373_v25 = vmax.f32 %v1341_v8, 0.0  ;;  %v1000_v24 = vadd.f32 %v968_v22, %v899_v61  ;;  %v3585_v11 = vld [vmem:[#allocation16_spill] sm:$0xff]  ;;  %v543_v8 = vld [vmem:[#allocation2 + $0x1f0] sm:$0xff] }
  0xb9   : > { %v678_v12 = vmul.f32 %v3065_v10, %v641_v54  ;;  %v1101_v40 = vadd.f32 %v1069_v27, %v999_v47  ;;  %v609_v13 = vadd.f32 %v577_v16, %v476_v14  ;;  %v679_v50 = vmul.f32 %v3065_v10, %v642_v21  ;;  %v3584_v27 = vld [vmem:[#allocation48_spill] sm:$0xff] }
  0xba   : > { %v610_v23 = vadd.f32 %v578_v44, %v477_v17  ;;  %v1398_v2 = vpack.c.bf16 %v1373_v25, %v1372_v15  ;;  %v1102_v48 = vadd.f32 %v1070_v56, %v1000_v24  ;;  %v779_v51 = vmul.f32 %v3129_v19, %v3581_v37  ;;  %v442_v54 = vld [vmem:[#allocation2 + $0x1ed] sm:$0xff] }
  0xbb   : > { %v780_v52 = vmul.f32 %v3129_v19, %v3582_v5  ;;  %v1202_v45 = vadd.f32 %v1170_v49, %v1101_v40  ;;  %v710_v33 = vadd.f32 %v678_v12, %v609_v13  ;;  %v880_v28 = vmul.f32 %v3078_v39, %v3583_v29  ;;  %v441_v49 = vld [vmem:[#allocation2 + $0x1e5] sm:$0xff]  ;;  %v644_v15 = vld [vmem:[#allocation2 + $0x1f3] sm:$0xff] }
  0xbc   : > { %v711_v38 = vadd.f32 %v679_v50, %v610_v23  ;;  %2209 = vmatprep.mubr.bf16.mxu0 %v1398_v2  ;;  %v1203_v22 = vadd.f32 %v1171_v0, %v1102_v48  ;;  %v881_v56 = vmul.f32 %v3078_v39, %v3584_v27  ;;  %v981_v6 = vmul.f32 %v3142_v18, %v3585_v11  ;;  %v542_v30 = vld [vmem:[#allocation2 + $0x1e8] sm:$0xff] }
  0xbd   : > { %v982_v20 = vmul.f32 %v3142_v18, %v3586_v42  ;;  %v1303_v3 = vadd.f32 %v1271_v34, %v1202_v45  ;;  %v811_v41 = vadd.f32 %v779_v51, %v710_v33  ;;  %v1083_v9 = vmul.f32 %v3170_v58, %v1046_v63  ;;  %v643_v47 = vld [vmem:[#allocation2 + $0x1eb] sm:$0xff] }
  0xbe   : > { %v812_v26 = vadd.f32 %v780_v52, %v711_v38  ;;  %v1304_v61 = vadd.f32 %v1272_v32, %v1203_v22  ;;  %v1084_v0 = vmul.f32 %v3170_v58, %v1047_v46  ;;  %v1285_v14 = vmul.f32 %v3184_v35, %v1248_v1  ;;  %v1048_v46 = vld [vmem:[#allocation2 + $0x2a5] sm:$0xff]  ;;  %v1049_v1 = vld [vmem:[#allocation2 + $0x2ad] sm:$0xff] }
  0xbf   : > { %v1286_v21 = vmul.f32 %v3184_v35, %v1249_v7  ;;  %v1342_v17 = vadd.f32 %v3232_v55, %v1303_v3  ;;  %v912_v16 = vadd.f32 %v880_v28, %v811_v41  ;;  %v478_v34 = vmul.f32 %v3047_v4, %v441_v49  ;;  %v1250_v42 = vld [vmem:[#allocation2 + $0x2ab] sm:$0xff] }
  0xc0   : > { %v913_v44 = vadd.f32 %v881_v56, %v812_v26  ;;  %v1343_v25 = vadd.f32 %v3232_v55, %v1304_v61  ;;  %v479_v24 = vmul.f32 %v3047_v4, %v442_v54  ;;  %v579_v32 = vmul.f32 %v3056_v36, %v542_v30 }
  0xc1   : > { %v580_v12 = vmul.f32 %v3056_v36, %v543_v8  ;;  %v1374_v40 = vmax.f32 %v1342_v17, 0.0  ;;  %v1013_v13 = vadd.f32 %v981_v6, %v912_v16  ;;  %v680_v50 = vmul.f32 %v3065_v10, %v643_v47 }
  0xc2   : > { %v1014_v23 = vadd.f32 %v982_v20, %v913_v44  ;;  %v1375_v2 = vmax.f32 %v1343_v25, 0.0  ;;  %v611_v48 = vadd.f32 %v579_v32, %v478_v34  ;;  %v681_v51 = vmul.f32 %v3065_v10, %v644_v15  ;;  %v1251_v20 = vld [vmem:[#allocation2 + $0x2b3] sm:$0xff] }
  0xc3   : > { %v612_v37 = vadd.f32 %v580_v12, %v479_v24  ;;  %v1115_v5 = vadd.f32 %v1083_v9, %v1013_v13  ;;  %v781_v63 = vmul.f32 %v3129_v19, %v3156_v31  ;;  %v782_v4 = vmul.f32 %v3129_v19, %v3165_v59 }
  0xc4   : > { %v1116_v52 = vadd.f32 %v1084_v0, %v1014_v23  ;;  %v1399_v45 = vpack.c.bf16 %v1375_v2, %v1374_v40  ;;  %v712_v36 = vadd.f32 %v680_v50, %v611_v48  ;;  %v882_v38 = vmul.f32 %v3078_v39, %v3108_v60 }
  0xc5   : > { %v713_v33 = vadd.f32 %v681_v51, %v612_v37  ;;  %v1216_v29 = vadd.f32 %v3207_v62, %v1115_v5  ;;  %v883_v10 = vmul.f32 %v3078_v39, %v3110_v53  ;;  %v983_v19 = vmul.f32 %v3142_v18, %v3174_v43 }
  0xc6   : > { %v1217_v28 = vadd.f32 %v3207_v62, %v1116_v52  ;;  %2210 = vmatmul.mubr.bf16.gmra.mxu0 %v1399_v45  ;;  %v813_v31 = vadd.f32 %v781_v63, %v712_v36  ;;  %v984_v59 = vmul.f32 %v3142_v18, %v3176_v57  ;;  %v1085_v11 = vmul.f32 %v3170_v58, %v1048_v46 }
  0xc7   : > { %v814_v7 = vadd.f32 %v782_v4, %v713_v33  ;;  %v1317_v22 = vadd.f32 %v1285_v14, %v1216_v29  ;;  %v1086_v6 = vmul.f32 %v3170_v58, %v1049_v1  ;;  %v1287_v57 = vmul.f32 %v3184_v35, %v1250_v42 }
  0xc8   : > { %v1318_v60 = vadd.f32 %v1286_v21, %v1217_v28  ;;  %v914_v27 = vadd.f32 %v882_v38, %v813_v31  ;;  %v1288_v9 = vmul.f32 %v3184_v35, %v1251_v20  ;;  %v3329_v35 = vld [vmem:[%s3393_s4] ss:$0 sm:$0xff] }
  0xc9   : > { %v915_v56 = vadd.f32 %v883_v10, %v814_v7  ;;  %v1356_v39 = vadd.f32 %v3232_v55, %v1317_v22 }
  0xca   : > { %v1357_v53 = vadd.f32 %v3232_v55, %v1318_v60  ;;  %v1015_v49 = vadd.f32 %v983_v19, %v914_v27 }
  0xcb   : > { %v1016_v3 = vadd.f32 %v984_v59, %v915_v56  ;;  %v1388_v43 = vmax.f32 %v1356_v39, 0.0 }
  0xcc   : > { %v1389_v41 = vmax.f32 %v1357_v53, 0.0  ;;  %v1117_v26 = vadd.f32 %v1085_v11, %v1015_v49 }
  0xcd   : > { %v1118_v18 = vadd.f32 %v1086_v6, %v1016_v3 }
  0xce   : > { %v1406_v54 = vpack.c.bf16 %v1389_v41, %v1388_v43  ;;  %v1218_v30 = vadd.f32 %v3207_v62, %v1117_v26 }
  0xcf   : > { %v1219_v58 = vadd.f32 %v3207_v62, %v1118_v18 }
  0xd0   : > { %2225 = vmatprep.mubr.bf16.mxu1 %v1406_v54  ;;  %v1319_v8 = vadd.f32 %v1287_v57, %v1218_v30 }
  0xd1   : > { %v1320_v61 = vadd.f32 %v1288_v9, %v1219_v58 }
  0xd2   : > { %v1358_v0 = vadd.f32 %v3232_v55, %v1319_v8 }
  0xd3   : > { %v1359_v14 = vadd.f32 %v3232_v55, %v1320_v61 }
  0xd4   : > { %v1390_v21 = vmax.f32 %v1358_v0, 0.0 }
  0xd5   : > { %v1391_v47 = vmax.f32 %v1359_v14, 0.0 }
  0xd7   : > { %v1407_v17 = vpack.c.bf16 %v1391_v47, %v1390_v21 }
  0xd9   : > { %2226 = vmatmul.mubr.bf16.gmra.mxu1 %v1407_v17 }
 0x10c   : > { %v2199_v16 = vpop.f32.mrf.mxu0 }
 0x10d   : > { %v1522_v62 = vadd.f32 %v2199_v16, %v3329_v35 }
 0x10e   : > { %v1513_v44 = vpop.f32.mrf.mxu0 }
 0x10f   : > { %v1642_v15 = vmax.f32 %v1522_v62, 0.0  ;;  %v1514_v25 = vadd.f32 %v3329_v35, %v1513_v44 }
 0x110   : > { %v2200_v34 = vpop.f32.mrf.mxu0 }
 0x111   : > { %v1525_v55 = vadd.f32 %v2200_v34, %v3329_v35  ;;  %v1640_v40 = vmax.f32 %v1514_v25, 0.0 }
 0x112   : > { %v1516_v24 = vpop.f32.mrf.mxu0 }
 0x113   : > { %v1643_v32 = vmax.f32 %v1525_v55, 0.0  ;;  %v1517_v12 = vadd.f32 %v3329_v35, %v1516_v24 }
 0x115   : > { %v2055_v13 = vpack.c.bf16 %v1643_v32, %v1642_v15  ;;  %v1641_v23 = vmax.f32 %v1517_v12, 0.0 }
 0x117   : > { %2142 = vst [vmem:[%s3340_s16 + $0x8] sm:$0xff] %v2055_v13   ;;  %v2050_v50 = vpack.c.bf16 %v1641_v23, %v1640_v40 }
 0x119   : > { %2051 = vst [vmem:[%s3340_s16] sm:$0xff] %v2050_v50  }
 0x123   : > { %v2215_v2 = vpop.f32.mrf.mxu1 }
 0x124   : > { %v1586_v37 = vadd.f32 %v2215_v2, %v3329_v35 }
 0x125   : > { %v1577_v48 = vpop.f32.mrf.mxu1 }
 0x126   : > { %v1578_v5 = vadd.f32 %v3329_v35, %v1577_v48  ;;  %v1658_v4 = vmax.f32 %v1586_v37, 0.0 }
 0x127   : > { %v2216_v51 = vpop.f32.mrf.mxu1 }
 0x128   : > { %v1589_v52 = vadd.f32 %v2216_v51, %v3329_v35  ;;  %v1656_v33 = vmax.f32 %v1578_v5, 0.0 }
 0x129   : > { %v1580_v63 = vpop.f32.mrf.mxu1 }
 0x12a   : > { %v1659_v45 = vmax.f32 %v1589_v52, 0.0  ;;  %v1581_v36 = vadd.f32 %v3329_v35, %v1580_v63 }
 0x12c   : > { %v2095_v38 = vpack.c.bf16 %v1659_v45, %v1658_v4  ;;  %v1657_v29 = vmax.f32 %v1581_v36, 0.0 }
 0x12e   : > { %2150 = vst [vmem:[%s3340_s16 + $0x48] sm:$0xff] %v2095_v38   ;;  %v2090_v28 = vpack.c.bf16 %v1657_v29, %v1656_v33 }
 0x130   : > { %2149 = vst [vmem:[%s3340_s16 + $0x40] sm:$0xff] %v2090_v28  }
 0x132   : > { %v2203_v10 = vpop.f32.mrf.mxu0 }
 0x133   : > { %v1538_v46 = vadd.f32 %v2203_v10, %v3329_v35 }
 0x134   : > { %v1529_v1 = vpop.f32.mrf.mxu0 }
 0x135   : > { %v1646_v7 = vmax.f32 %v1538_v46, 0.0  ;;  %v1530_v19 = vadd.f32 %v3329_v35, %v1529_v1 }
 0x136   : > { %v2204_v31 = vpop.f32.mrf.mxu0 }
 0x137   : > { %v1541_v59 = vadd.f32 %v2204_v31, %v3329_v35  ;;  %v1644_v56 = vmax.f32 %v1530_v19, 0.0 }
 0x138   : > { %v1532_v22 = vpop.f32.mrf.mxu0 }
 0x139   : > { %v1647_v60 = vmax.f32 %v1541_v59, 0.0  ;;  %v1533_v27 = vadd.f32 %v3329_v35, %v1532_v22 }
 0x13b   : > { %v2065_v11 = vpack.c.bf16 %v1647_v60, %v1646_v7  ;;  %v1645_v6 = vmax.f32 %v1533_v27, 0.0 }
 0x13d   : > { %2144 = vst [vmem:[%s3340_s16 + $0x18] sm:$0xff] %v2065_v11   ;;  %v2060_v39 = vpack.c.bf16 %v1645_v6, %v1644_v56 }
 0x13f   : > { %2143 = vst [vmem:[%s3340_s16 + $0x10] sm:$0xff] %v2060_v39  }
 0x14a   : > { %v2219_v53 = vpop.f32.mrf.mxu1 }
 0x14b   : > { %v1602_v20 = vadd.f32 %v2219_v53, %v3329_v35 }
 0x14c   : > { %v1593_v42 = vpop.f32.mrf.mxu1 }
 0x14d   : > { %v1594_v3 = vadd.f32 %v3329_v35, %v1593_v42  ;;  %v1662_v26 = vmax.f32 %v1602_v20, 0.0 }
 0x14e   : > { %v2220_v49 = vpop.f32.mrf.mxu1 }
 0x14f   : > { %v1605_v43 = vadd.f32 %v2220_v49, %v3329_v35  ;;  %v1660_v9 = vmax.f32 %v1594_v3, 0.0 }
 0x150   : > { %v1596_v41 = vpop.f32.mrf.mxu1 }
 0x151   : > { %v1663_v18 = vmax.f32 %v1605_v43, 0.0  ;;  %v1597_v57 = vadd.f32 %v3329_v35, %v1596_v41 }
 0x153   : > { %v2105_v54 = vpack.c.bf16 %v1663_v18, %v1662_v26  ;;  %v1661_v30 = vmax.f32 %v1597_v57, 0.0 }
 0x155   : > { %2152 = vst [vmem:[%s3340_s16 + $0x58] sm:$0xff] %v2105_v54   ;;  %v2100_v58 = vpack.c.bf16 %v1661_v30, %v1660_v9 }
 0x157   : > { %2151 = vst [vmem:[%s3340_s16 + $0x50] sm:$0xff] %v2100_v58  }
 0x160   : > { %v2207_v8 = vpop.f32.mrf.mxu0 }
 0x161   : > { %v1554_v61 = vadd.f32 %v2207_v8, %v3329_v35 }
 0x162   : > { %v1545_v0 = vpop.f32.mrf.mxu0 }
 0x163   : > { %v1650_v21 = vmax.f32 %v1554_v61, 0.0  ;;  %v1546_v47 = vadd.f32 %v3329_v35, %v1545_v0 }
 0x164   : > { %v2208_v14 = vpop.f32.mrf.mxu0 }
 0x165   : > { %v1557_v17 = vadd.f32 %v2208_v14, %v3329_v35  ;;  %v1648_v34 = vmax.f32 %v1546_v47, 0.0 }
 0x166   : > { %v1548_v16 = vpop.f32.mrf.mxu0 }
 0x167   : > { %v1651_v62 = vmax.f32 %v1557_v17, 0.0  ;;  %v1549_v44 = vadd.f32 %v3329_v35, %v1548_v16 }
 0x169   : > { %v2075_v15 = vpack.c.bf16 %v1651_v62, %v1650_v21  ;;  %v1649_v25 = vmax.f32 %v1549_v44, 0.0 }
 0x16b   : > { %2146 = vst [vmem:[%s3340_s16 + $0x28] sm:$0xff] %v2075_v15   ;;  %v2070_v55 = vpack.c.bf16 %v1649_v25, %v1648_v34 }
 0x16d   : > { %2145 = vst [vmem:[%s3340_s16 + $0x20] sm:$0xff] %v2070_v55  }
 0x173   : > { %v2223_v24 = vpop.f32.mrf.mxu1 }
 0x174   : > { %v1618_v12 = vadd.f32 %v2223_v24, %v3329_v35 }
 0x175   : > { %v1609_v32 = vpop.f32.mrf.mxu1 }
 0x176   : > { %v1610_v13 = vadd.f32 %v3329_v35, %v1609_v32  ;;  %v1666_v2 = vmax.f32 %v1618_v12, 0.0 }
 0x177   : > { %v2224_v40 = vpop.f32.mrf.mxu1 }
 0x178   : > { %v1621_v23 = vadd.f32 %v2224_v40, %v3329_v35  ;;  %v1664_v51 = vmax.f32 %v1610_v13, 0.0 }
 0x179   : > { %v1612_v50 = vpop.f32.mrf.mxu1 }
 0x17a   : > { %v1667_v48 = vmax.f32 %v1621_v23, 0.0  ;;  %v1613_v37 = vadd.f32 %v3329_v35, %v1612_v50 }
 0x17c   : > { %v2115_v5 = vpack.c.bf16 %v1667_v48, %v1666_v2  ;;  %v1665_v52 = vmax.f32 %v1613_v37, 0.0 }
 0x17e   : > { %2154 = vst [vmem:[%s3340_s16 + $0x68] sm:$0xff] %v2115_v5   ;;  %v2110_v63 = vpack.c.bf16 %v1665_v52, %v1664_v51 }
 0x180   : > { %2153 = vst [vmem:[%s3340_s16 + $0x60] sm:$0xff] %v2110_v63  }
 0x186   : > { %v2211_v4 = vpop.f32.mrf.mxu0 }
 0x187   : > { %v1570_v45 = vadd.f32 %v2211_v4, %v3329_v35 }
 0x188   : > { %v1561_v36 = vpop.f32.mrf.mxu0 }
 0x189   : > { %v1654_v38 = vmax.f32 %v1570_v45, 0.0  ;;  %v1562_v29 = vadd.f32 %v3329_v35, %v1561_v36 }
 0x18a   : > { %v2212_v33 = vpop.f32.mrf.mxu0 }
 0x18b   : > { %v1573_v28 = vadd.f32 %v2212_v33, %v3329_v35  ;;  %v1652_v31 = vmax.f32 %v1562_v29, 0.0 }
 0x18c   : > { %v1564_v10 = vpop.f32.mrf.mxu0 }
 0x18d   : > { %v1655_v46 = vmax.f32 %v1573_v28, 0.0  ;;  %v1565_v1 = vadd.f32 %v3329_v35, %v1564_v10 }
 0x18f   : > { %v2085_v7 = vpack.c.bf16 %v1655_v46, %v1654_v38  ;;  %v1653_v19 = vmax.f32 %v1565_v1, 0.0 }
 0x191   : > { %2148 = vst [vmem:[%s3340_s16 + $0x38] sm:$0xff] %v2085_v7   ;;  %v2080_v59 = vpack.c.bf16 %v1653_v19, %v1652_v31 }
 0x193   : > { %2147 = vst [vmem:[%s3340_s16 + $0x30] sm:$0xff] %v2080_v59  }
 0x199   : > { %v2227_v22 = vpop.f32.mrf.mxu1 }
 0x19a   : > { %v1634_v27 = vadd.f32 %v2227_v22, %v3329_v35 }
 0x19b   : > { %v1625_v60 = vpop.f32.mrf.mxu1 }
 0x19c   : > { %v1626_v11 = vadd.f32 %v3329_v35, %v1625_v60  ;;  %v1670_v53 = vmax.f32 %v1634_v27, 0.0 }
 0x19d   : > { %v2228_v56 = vpop.f32.mrf.mxu1 }
 0x19e   : > { %v1637_v6 = vadd.f32 %v2228_v56, %v3329_v35  ;;  %v1668_v49 = vmax.f32 %v1626_v11, 0.0 }
 0x19f   : > { %v1628_v39 = vpop.f32.mrf.mxu1 }
 0x1a0   : > { %v1671_v42 = vmax.f32 %v1637_v6, 0.0  ;;  %v1629_v20 = vadd.f32 %v3329_v35, %v1628_v39 }
 0x1a2   : > { %v2125_v3 = vpack.c.bf16 %v1671_v42, %v1670_v53  ;;  %v1669_v43 = vmax.f32 %v1629_v20, 0.0 }
 0x1a4   : > { %2156 = vst [vmem:[%s3340_s16 + $0x78] sm:$0xff] %v2125_v3   ;;  %v2120_v41 = vpack.c.bf16 %v1669_v43, %v1668_v49 }
 0x1a6   : > { %2155 = vst [vmem:[%s3340_s16 + $0x70] sm:$0xff] %v2120_v41  }
 0x1a7 PF: > { %s15_s18 = sadd.s32 1, %s2279_s18  }
 0x1a8   : > { %p12_p4 = scmp.ge.s32.totalorder %s15_s18, 4  }
 0x1aa   :  { %14 = sbr.rel (!%p12_p4) target bundleno = 1 (0x1), region = 72 }

// kernel: _lambda_.11
= control target key start
LH: loop header
LB: loop body
LE: loop exit
PB: predicated region body
PF: predicated region fallthrough
CT: control target
= control target key end

     0   :  { %s2258_s21 = smov 0   ;;  %s2260_s22 = smov 0   ;;  %s3447_s0 = inlined_call_operand.vmem [shape: bf16[2,16,16,128], index: 0, kind: input, shape index: {}]   ;;  %s3448_s1 = inlined_call_operand.vmem [shape: f32[9,128], index: 1, kind: input, shape index: {}]   ;;  %s3449_s2 = inlined_call_operand.vmem [shape: f32[1,128], index: 2, kind: input, shape index: {}]   ;;  %s3450_s3 = inlined_call_operand.vmem [shape: bf16[128,128], index: 3, kind: input, shape index: {}]   ;;  %s3451_s4 = inlined_call_operand.vmem [shape: f32[1,128], index: 4, kind: input, shape index: {}]   ;;  %s3452_s5 = inlined_call_operand.vmem [shape: f32[512,512], index: 5, kind: input, shape index: {}, may-alias: {5,6}]   ;;  %s3453_s6 = inlined_call_operand.vmem [shape: f32[512,512], index: 6, kind: output, shape index: {}, may-alias: {5,6}]  }
   0x1   :  { %s2262_s23 = smov 0  }
   0x2 LB: > { %s2271_s5 = sadd.s32 4294967295, %s2220_s23   ;;  %s2273_s24 = sadd.s32 1, %s2220_s23   ;;  %s2220_s23 = sphi %s2262_s23, %s3649_s23   ;;  %s2216_s22 = sphi %s2260_s22, %s3648_s22   ;;  %s2212_s21 = sphi %s2258_s21, %s3647_s21  }
   0x3   : > { %s130_s25 = ssub.s32 %s2220_s23, %s2273_s24  ;;  %s133_s26 = sadd.s32 1, %s2216_s22 }
   0x4   : > { %p131_p0 = scmp.eq.s32.totalorder %s130_s25, 0  ;;  %p143_p1 = scmp.ne.s32.totalorder %s2216_s22, %s2212_s21 }
   0x5   : > { %p144_p2 = scmp.eq.s32.totalorder %s2271_s5, 1  ;;  %p1925_p3 = scmp.ge.s32.totalorder %s2220_s23, 1 }
   0x6   : > { %s2281_s27 = scalar_select %p131_p0, %s2216_s22, %s133_s26  }
   0x7   : > { %p2283_p4 = por %p144_p2, %p143_p1  ;;  %p188_p5 = scmp.lt.s32.totalorder %s2220_s23, 3 }
   0x9   : > { %p189_p6 = pnand %p1925_p3, %p188_p5 }
   0xb   : > { %192 = sbr.rel (%p189_p6) target bundleno = 434 (0x1b2), region = 40 }
  0x10   : > { %v2290_v0 = vld [vmem:[%s3450_s3 + $0x38] sm:$0xff]   ;;  %p215_p7 = scmp.lt.s32.totalorder %s2271_s5, 1  ;;  %v2296_v1 = vld [vmem:[%s3450_s3 + $0x30] sm:$0xff]   ;;  %v2222_v2 = vmov 0.0   ;;  %v2181_v3 = vld [vmem:[%s3450_s3 + $0x28] sm:$0xff]   ;;  %s212_s10 = sand.u32 1, %s2212_s21  }
  0x11   : > { %2090 = vmatprep.subr.bf16.mxu0 %v2290_v0  ;;  %2138 = vmatprep.subr.bf16.mxu1 %v2290_v0  ;;  %222 = vst [vmem:[#allocation2] sm:$0xff] %v2222_v2  ;;  %223 = vst [vmem:[#allocation2 + $0x8] sm:$0xff] %v2222_v2  ;;  %v2182_v4 = vld [vmem:[%s3450_s3 + $0x20] sm:$0xff]   ;;  %v2183_v25 = vld [vmem:[%s3450_s3 + $0x18] sm:$0xff]   ;;  %s1926_s13 = sshll.u32 %s212_s10, 8  ;;  %s1986_s21 = sshll.u32 (%p2283_p4), %s2271_s5, 10 }
  0x12   : > { %s2301_s9 = scalar_select %p215_p7, %s2271_s5, 1  ;;  %224 = vst [vmem:[#allocation2 + $0x10] sm:$0xff] %v2222_v2  ;;  %225 = vst [vmem:[#allocation2 + $0x18] sm:$0x7] %v2222_v2  ;;  %2091 = vmatpush3.bf16.msra.mxu0 %v2290_v0  ;;  %2146 = vmatpush3.bf16.msra.mxu1 %v2290_v0  ;;  %v2326_v7 = vld [vmem:[%s3448_s1] ss:$0 sm:$0xff] }
  0x13   : > { %234 = vst [vmem:[#allocation2 + $0x60] sm:$0xff] %v2222_v2  ;;  %237 = vst [vmem:[#allocation2 + $0x78] sm:$0x7] %v2222_v2  ;;  %2092 = vmatprep.subr.bf16.mxu0 %v2296_v1  ;;  %2139 = vmatprep.subr.bf16.mxu1 %v2296_v1  ;;  %v2335_v14 = vld [vmem:[%s3448_s1 + $0x1] ss:$0 sm:$0xff]  ;;  %v2391_v36 = vld [vmem:[%s3450_s3 + $0x10] sm:$0xff]   ;;  %s3374_s18 = scalar_lea.vmem (%p2283_p4), %s3453_s6, %s1986_s21 }
  0x14   : > { %246 = vst [vmem:[#allocation2 + $0xc0] sm:$0xff] %v2222_v2  ;;  %249 = vst [vmem:[#allocation2 + $0xd8] sm:$0x7] %v2222_v2  ;;  %s1985_s12 = sshll.u32 %s2301_s9, 7  ;;  %v2340_v17 = vmul.f32 0.0, %v2335_v14  ;;  %v2455_v0 = vld [vmem:[%s3450_s3 + $0x8] sm:$0xff]  }
  0x15   : > { %226 = vst [vmem:[#allocation2 + $0x20] sm:$0xff] %v2222_v2  ;;  %227 = vst [vmem:[#allocation2 + $0x28] sm:$0xff] %v2222_v2  ;;  %s2314_s15 = scalar_lea.vmem %s3447_s0, %s1985_s12  ;;  %v2345_v20 = vld [vmem:[%s3448_s1 + $0x2] ss:$0 sm:$0xff]  ;;  %v2354_v23 = vld [vmem:[%s3448_s1 + $0x4] ss:$0 sm:$0xff] }
  0x16   : > { %228 = vst [vmem:[#allocation2 + $0x30] sm:$0xff] %v2222_v2  ;;  %229 = vst [vmem:[#allocation2 + $0x38] sm:$0x7] %v2222_v2  ;;  %2093 = vmatpush3.bf16.msra.mxu0 %v2296_v1  ;;  %2147 = vmatpush3.bf16.msra.mxu1 %v2296_v1  ;;  %v1988_v5 = vld [vmem:[%s2314_s15] sm:$0xff]   ;;  %v2053_v6 = vld [vmem:[%s2314_s15 + $0x18] sm:$0xff]   ;;  %s3301_s14 = scalar_lea.vmem [#allocation3], %s1926_s13 }
  0x17   : > { %230 = vst [vmem:[#allocation2 + $0x40] sm:$0xff] %v2222_v2  ;;  %231 = vst [vmem:[#allocation2 + $0x48] sm:$0xff] %v2222_v2  ;;  %2094 = vmatprep.subr.bf16.mxu0 %v2181_v3  ;;  %2140 = vmatprep.subr.bf16.mxu1 %v2181_v3  ;;  %v1989_v8 = vunpack.c.l.bf16 %v1988_v5  ;;  %v1990_v9 = vunpack.c.h.bf16 %v1988_v5  ;;  %v2328_v10 = vunpack.c.l.bf16 %v2053_v6  ;;  %v2330_v11 = vunpack.c.h.bf16 %v2053_v6  ;;  %v2370_v29 = vld [vmem:[%s3448_s1 + $0x7] ss:$0 sm:$0xff]  ;;  %v2051_v33 = vld [vmem:[%s2314_s15 + $0x8] sm:$0xff]  }
  0x18   : > { %232 = vst [vmem:[#allocation2 + $0x50] sm:$0xff] %v2222_v2  ;;  %233 = vst [vmem:[#allocation2 + $0x58] sm:$0x7] %v2222_v2  ;;  %v407_v12 = vld [vmem:[#allocation2 + $0x5] sm:$0xff]  ;;  %v2397_v39 = vunpack.c.l.bf16 %v2051_v33  ;;  %v2399_v40 = vunpack.c.h.bf16 %v2051_v33  ;;  %v2412_v51 = vld [vmem:[%s3448_s1 + $0x3] ss:$0 sm:$0xff] }
  0x19   : > { %238 = vst [vmem:[#allocation2 + $0x80] sm:$0xff] %v2222_v2  ;;  %241 = vst [vmem:[#allocation2 + $0x98] sm:$0x7] %v2222_v2  ;;  %v408_v13 = vld [vmem:[#allocation2 + $0xd] sm:$0xff]  ;;  %v444_v15 = vmul.f32 %v2326_v7, %v407_v12  ;;  %v2357_v24 = vmul.f32 %v1989_v8, %v2335_v14  ;;  %v2365_v28 = vmul.f32 %v1989_v8, %v2354_v23  ;;  %v2054_v34 = vld [vmem:[%s2314_s15 + $0x20] sm:$0xff]  }
  0x1a   : > { %242 = vst [vmem:[#allocation2 + $0xa0] sm:$0xff] %v2222_v2  ;;  %245 = vst [vmem:[#allocation2 + $0xb8] sm:$0x7] %v2222_v2  ;;  %v445_v16 = vmul.f32 %v2326_v7, %v408_v13  ;;  %v609_v18 = vld [vmem:[#allocation2 + $0xb] sm:$0xff]  ;;  %v610_v19 = vld [vmem:[#allocation2 + $0x13] sm:$0xff]  ;;  %2095 = vmatpush3.bf16.msra.mxu0 %v2181_v3  ;;  %2148 = vmatpush3.bf16.msra.mxu1 %v2181_v3  ;;  %v2373_v30 = vmul.f32 %v1990_v9, %v2354_v23  ;;  %v2401_v44 = vunpack.c.l.bf16 %v2054_v34 }
  0x1b   : > { %250 = vst [vmem:[#allocation2 + $0xe0] sm:$0xff] %v2222_v2  ;;  %253 = vst [vmem:[#allocation2 + $0xf8] sm:$0x7] %v2222_v2  ;;  %v646_v21 = vmul.f32 %v2345_v20, %v609_v18  ;;  %v647_v22 = vmul.f32 %v2345_v20, %v610_v19  ;;  %2096 = vmatprep.subr.bf16.mxu0 %v2182_v4  ;;  %2141 = vmatprep.subr.bf16.mxu1 %v2182_v4  ;;  %v2403_v45 = vunpack.c.h.bf16 %v2054_v34  ;;  %v2055_v49 = vld [vmem:[%s2314_s15 + $0x28] sm:$0xff]   ;;  %v2058_v50 = vld [vmem:[%s2314_s15 + $0x40] sm:$0xff]  }
  0x1c   : > { %254 = vst [vmem:[#allocation2 + $0x100] sm:$0xff] %v2222_v2  ;;  %257 = vst [vmem:[#allocation2 + $0x118] sm:$0x7] %v2222_v2  ;;  %v577_v26 = vadd.f32 %v2340_v17, %v444_v15  ;;  %v578_v27 = vadd.f32 %v2340_v17, %v445_v16  ;;  %v2377_v31 = vmul.f32 %v2328_v10, %v2370_v29  ;;  %v409_v41 = vld [vmem:[#allocation2 + $0x25] sm:$0xff]  ;;  %v2427_v56 = vunpack.c.l.bf16 %v2055_v49  ;;  %v2061_v57 = vld [vmem:[%s2314_s15 + $0x58] sm:$0xff]  }
  0x1d   : > { %258 = vst [vmem:[#allocation2 + $0x120] sm:$0xff] %v2222_v2  ;;  %261 = vst [vmem:[#allocation2 + $0x138] sm:$0x7] %v2222_v2  ;;  %v2381_v32 = vmul.f32 %v2330_v11, %v2370_v29  ;;  %v2386_v35 = vmul.f32 %v1990_v9, %v2335_v14  ;;  %v410_v42 = vld [vmem:[#allocation2 + $0x2d] sm:$0xff]  ;;  %v446_v46 = vmul.f32 %v2326_v7, %v409_v41  ;;  %v2417_v52 = vld [vmem:[%s3448_s1 + $0x5] ss:$0 sm:$0xff]  ;;  %v2467_v5 = vunpack.c.h.bf16 %v2055_v49 }
  0x1e   : > { %262 = vst [vmem:[#allocation2 + $0x140] sm:$0xff] %v2222_v2  ;;  %265 = vst [vmem:[#allocation2 + $0x158] sm:$0x7] %v2222_v2  ;;  %v2393_v37 = vadd.f32 %v646_v21, %v577_v26  ;;  %v2395_v38 = vadd.f32 %v647_v22, %v578_v27  ;;  %v611_v43 = vld [vmem:[#allocation2 + $0x2b] sm:$0xff]  ;;  %2097 = vmatpush3.bf16.msra.mxu0 %v2182_v4  ;;  %2149 = vmatpush3.bf16.msra.mxu1 %v2182_v4  ;;  %v612_v48 = vld [vmem:[#allocation2 + $0x33] sm:$0xff]  ;;  %v2469_v6 = vunpack.c.l.bf16 %v2058_v50 }
  0x1f   : > { %266 = vst [vmem:[#allocation2 + $0x160] sm:$0xff] %v2222_v2  ;;  %269 = vst [vmem:[#allocation2 + $0x178] sm:$0x7] %v2222_v2  ;;  %v447_v47 = vmul.f32 %v2326_v7, %v410_v42  ;;  %2098 = vmatprep.subr.bf16.mxu0 %v2183_v25  ;;  %2142 = vmatprep.subr.bf16.mxu1 %v2183_v25  ;;  %v648_v53 = vmul.f32 %v2345_v20, %v611_v43  ;;  %v2433_v58 = vld [vmem:[%s3448_s1 + $0x6] ss:$0 sm:$0xff]  ;;  %v2486_v19 = vunpack.c.l.bf16 %v2061_v57  ;;  %v2056_v34 = vld [vmem:[%s2314_s15 + $0x30] sm:$0xff]  }
  0x20   : > { %270 = vst [vmem:[#allocation2 + $0x180] sm:$0xff] %v2222_v2  ;;  %273 = vst [vmem:[#allocation2 + $0x198] sm:$0x7] %v2222_v2  ;;  %v649_v54 = vmul.f32 %v2345_v20, %v612_v48  ;;  %v2425_v55 = vmul.f32 %v2397_v39, %v2354_v23  ;;  %v2438_v59 = vld [vmem:[%s3448_s1 + $0x8] ss:$0 sm:$0xff]  ;;  %v579_v60 = vadd.f32 %v2340_v17, %v446_v46  ;;  %v2500_v33 = vunpack.c.h.bf16 %v2061_v57 }
  0x21   : > { %274 = vst [vmem:[#allocation2 + $0x1a0] sm:$0xff] %v2222_v2  ;;  %277 = vst [vmem:[#allocation2 + $0x1b8] sm:$0x7] %v2222_v2  ;;  %v580_v61 = vadd.f32 %v2340_v17, %v447_v47  ;;  %v2446_v62 = vmul.f32 %v2399_v40, %v2354_v23  ;;  %v2450_v63 = vmul.f32 %v2401_v44, %v2370_v29  ;;  %v2520_v47 = vld [vmem:[%s3450_s3] sm:$0xff]  }
  0x22   : > { %278 = vst [vmem:[#allocation2 + $0x1c0] sm:$0xff] %v2222_v2  ;;  %281 = vst [vmem:[#allocation2 + $0x1d8] sm:$0x7] %v2222_v2  ;;  %v2465_v4 = vmul.f32 %v2403_v45, %v2370_v29  ;;  %2099 = vmatpush3.bf16.msra.mxu0 %v2183_v25  ;;  %2150 = vmatpush3.bf16.msra.mxu1 %v2183_v25  ;;  %v680_v48 = vadd.f32 %v648_v53, %v579_v60 }
  0x23   : > { %282 = vst [vmem:[#allocation2 + $0x1e0] sm:$0xff] %v2222_v2  ;;  %285 = vst [vmem:[#allocation2 + $0x1f8] sm:$0x7] %v2222_v2  ;;  %2100 = vmatprep.subr.bf16.mxu0 %v2391_v36  ;;  %2143 = vmatprep.subr.bf16.mxu1 %v2391_v36  ;;  %v681_v49 = vadd.f32 %v649_v54, %v580_v61  ;;  %v2542_v61 = vmul.f32 %v2469_v6, %v2354_v23 }
  0x24   : > { %286 = vst [vmem:[#allocation2 + $0x200] sm:$0xff] %v2222_v2  ;;  %289 = vst [vmem:[#allocation2 + $0x218] sm:$0x7] %v2222_v2 }
  0x25   : > { %290 = vst [vmem:[#allocation2 + $0x220] sm:$0xff] %v2222_v2  ;;  %293 = vst [vmem:[#allocation2 + $0x238] sm:$0x7] %v2222_v2 }
  0x26   : > { %294 = vst [vmem:[#allocation2 + $0x240] sm:$0xff] %v2222_v2  ;;  %297 = vst [vmem:[#allocation2 + $0x258] sm:$0x7] %v2222_v2  ;;  %2101 = vmatpush3.bf16.msra.mxu0 %v2391_v36  ;;  %2151 = vmatpush3.bf16.msra.mxu1 %v2391_v36 }
  0x27   : > { %298 = vst [vmem:[#allocation2 + $0x260] sm:$0xff] %v2222_v2  ;;  %299 = vst [vmem:[#allocation2 + $0x268] sm:$0xff] %v2222_v2  ;;  %2102 = vmatprep.subr.bf16.mxu0 %v2455_v0  ;;  %2144 = vmatprep.subr.bf16.mxu1 %v2455_v0 }
  0x28   : > { %300 = vst [vmem:[#allocation2 + $0x270] sm:$0xff] %v2222_v2  ;;  %301 = vst [vmem:[#allocation2 + $0x278] sm:$0x7] %v2222_v2 }
  0x29   : > { %302 = vst [vmem:[#allocation2 + $0x280] sm:$0xff] %v2222_v2  ;;  %303 = vst [vmem:[#allocation2 + $0x288] sm:$0xff] %v2222_v2 }
  0x2a   : > { %304 = vst [vmem:[#allocation2 + $0x290] sm:$0xff] %v2222_v2  ;;  %305 = vst [vmem:[#allocation2 + $0x298] sm:$0x7] %v2222_v2  ;;  %2103 = vmatpush3.bf16.msra.mxu0 %v2455_v0  ;;  %2152 = vmatpush3.bf16.msra.mxu1 %v2455_v0 }
  0x2b   : > { %306 = vst [vmem:[#allocation2 + $0x2a0] sm:$0xff] %v2222_v2  ;;  %307 = vst [vmem:[#allocation2 + $0x2a8] sm:$0xff] %v2222_v2  ;;  %2104 = vmatprep.subr.bf16.mxu0 %v2520_v47  ;;  %2145 = vmatprep.subr.bf16.mxu1 %v2520_v47 }
  0x2c   : > { %308 = vst [vmem:[#allocation2 + $0x2b0] sm:$0xff] %v2222_v2  ;;  %309 = vst [vmem:[#allocation2 + $0x2b8] sm:$0x7] %v2222_v2 }
  0x2d   : > { %3524 = vst [vmem:[#allocation4_spill] sm:$0xff] %v2328_v10  ;;  %3525 = vst [vmem:[#allocation5_spill] sm:$0xff] %v2330_v11 }
  0x2e   : > { %375 = vst [vmem:[#allocation2 + $0x68] sm:$0xff] %v1989_v8  ;;  %376 = vst [vmem:[#allocation2 + $0x70] sm:$0xff] %v1990_v9  ;;  %v2471_v8 = vunpack.c.h.bf16 %v2058_v50  ;;  %v2059_v50 = vld [vmem:[%s2314_s15 + $0x48] sm:$0xff]   ;;  %2105 = vmatpush3.bf16.msra.mxu0 %v2520_v47  ;;  %2153 = vmatpush3.bf16.msra.mxu1 %v2520_v47 }
  0x2f   : > { %381 = vst [vmem:[#allocation2 + $0xc8] sm:$0xff] %v2328_v10  ;;  %382 = vst [vmem:[#allocation2 + $0xd0] sm:$0xff] %v2330_v11  ;;  %v2596_v0 = vunpack.c.h.bf16 %v2059_v50 }
  0x30   : > { %3526 = vst [vmem:[#allocation6_spill] sm:$0xff] %v2397_v39  ;;  %3527 = vst [vmem:[#allocation7_spill] sm:$0xff] %v2399_v40 }
  0x31   : > { %3528 = vst [vmem:[#allocation8_spill] sm:$0xff] %v2401_v44  ;;  %3529 = vst [vmem:[#allocation9_spill] sm:$0xff] %v2403_v45 }
  0x32   : > { %377 = vst [vmem:[#allocation2 + $0x88] sm:$0xff] %v2397_v39  ;;  %378 = vst [vmem:[#allocation2 + $0x90] sm:$0xff] %v2399_v40 }
  0x33   : > { %3530 = vst [vmem:[#allocation10_spill] sm:$0xff] %v2427_v56  ;;  %383 = vst [vmem:[#allocation2 + $0xe8] sm:$0xff] %v2401_v44  ;;  %v2560_v44 = vunpack.c.h.bf16 %v2056_v34 }
  0x34   : > { %384 = vst [vmem:[#allocation2 + $0xf0] sm:$0xff] %v2403_v45  ;;  %3531 = vst [vmem:[#allocation11_spill] sm:$0xff] %v2467_v5 }
  0x35   : > { %v2457_v1 = vld [vmem:[#allocation2 + $0x65] sm:$0xff]  ;;  %v2459_v2 = vld [vmem:[#allocation2 + $0x6d] sm:$0xff]  ;;  %3532 = vst [vmem:[#allocation12_spill] sm:$0xff] %v2469_v6  ;;  %3533 = vst [vmem:[#allocation13_spill] sm:$0xff] %v2471_v8 }
  0x36   : > { %v2461_v3 = vld [vmem:[#allocation2 + $0x6b] sm:$0xff]  ;;  %385 = vst [vmem:[#allocation2 + $0x108] sm:$0xff] %v2427_v56  ;;  %v747_v9 = vmul.f32 %v2412_v51, %v2457_v1  ;;  %v748_v12 = vmul.f32 %v2412_v51, %v2459_v2  ;;  %v2478_v13 = vld [vmem:[#allocation2 + $0x73] sm:$0xff]  ;;  %3534 = vst [vmem:[#allocation14_spill] sm:$0xff] %v2486_v19 }
  0x37   : > { %v949_v15 = vmul.f32 %v2417_v52, %v2461_v3  ;;  %v2482_v16 = vld [vmem:[#allocation2 + $0xc5] sm:$0xff]  ;;  %v2484_v18 = vld [vmem:[#allocation2 + $0xcd] sm:$0xff]  ;;  %v950_v21 = vmul.f32 %v2417_v52, %v2478_v13  ;;  %3537 = vst [vmem:[#allocation17_spill] sm:$0xff] %v2500_v33  ;;  %386 = vst [vmem:[#allocation2 + $0x110] sm:$0xff] %v2467_v5 }
  0x38   : > { %v1051_v22 = vmul.f32 %v2433_v58, %v2482_v16  ;;  %v1052_v25 = vmul.f32 %v2433_v58, %v2484_v18  ;;  %v2496_v26 = vld [vmem:[#allocation2 + $0xcb] sm:$0xff]  ;;  %v2498_v27 = vld [vmem:[#allocation2 + $0xd3] sm:$0xff]  ;;  %391 = vst [vmem:[#allocation2 + $0x168] sm:$0xff] %v2469_v6  ;;  %392 = vst [vmem:[#allocation2 + $0x170] sm:$0xff] %v2471_v8  ;;  %v779_v41 = vadd.f32 %v747_v9, %v2393_v37 }
  0x39   : > { %3535 = vst [vmem:[#allocation15_spill] sm:$0xff] %v2496_v26  ;;  %3536 = vst [vmem:[#allocation16_spill] sm:$0xff] %v2498_v27  ;;  %v780_v42 = vadd.f32 %v748_v12, %v2395_v38  ;;  %v2510_v43 = vmul.f32 %v2438_v59, %v2496_v26  ;;  %v2514_v46 = vmul.f32 %v2438_v59, %v2498_v27  ;;  %v2534_v53 = vld [vmem:[#allocation2 + $0x85] sm:$0xff]  ;;  %v2536_v54 = vld [vmem:[#allocation2 + $0x8d] sm:$0xff]  ;;  %v2544_v12 = vunpack.c.l.bf16 %v2056_v34 }
  0x3a   : > { %397 = vst [vmem:[#allocation2 + $0x1c8] sm:$0xff] %v2486_v19  ;;  %398 = vst [vmem:[#allocation2 + $0x1d0] sm:$0xff] %v2500_v33  ;;  %v561_v37 = vmul.f32 %v2427_v56, %v2335_v14  ;;  %v2527_v38 = vmul.f32 %v2467_v5, %v2335_v14  ;;  %v880_v57 = vadd.f32 %v2365_v28, %v779_v41  ;;  %v2538_v60 = vld [vmem:[#allocation2 + $0x8b] sm:$0xff]  ;;  %v2552_v36 = vld [vmem:[#allocation2 + $0x93] sm:$0xff] }
  0x3b   : > { %v881_v9 = vadd.f32 %v2373_v30, %v780_v42  ;;  %3538 = vst [vmem:[#allocation18_spill] sm:$0xff] %v2534_v53  ;;  %3539 = vst [vmem:[#allocation19_spill] sm:$0xff] %v2536_v54  ;;  %v749_v28 = vmul.f32 %v2412_v51, %v2534_v53  ;;  %v750_v30 = vmul.f32 %v2412_v51, %v2536_v54  ;;  %v2556_v42 = vld [vmem:[#allocation2 + $0xe5] sm:$0xff]  ;;  %v2558_v45 = vld [vmem:[#allocation2 + $0xed] sm:$0xff] }
  0x3c   : > { %3540 = vst [vmem:[#allocation20_spill] sm:$0xff] %v2538_v60  ;;  %3541 = vst [vmem:[#allocation21_spill] sm:$0xff] %v2552_v36  ;;  %v951_v41 = vmul.f32 %v2417_v52, %v2538_v60  ;;  %v981_v40 = vadd.f32 %v949_v15, %v880_v57  ;;  %v952_v6 = vmul.f32 %v2417_v52, %v2552_v36  ;;  %v2566_v54 = vld [vmem:[#allocation2 + $0xeb] sm:$0xff]  ;;  %v2568_v27 = vld [vmem:[#allocation2 + $0xf3] sm:$0xff] }
  0x3d   : > { %3542 = vst [vmem:[#allocation22_spill] sm:$0xff] %v2556_v42  ;;  %3543 = vst [vmem:[#allocation23_spill] sm:$0xff] %v2558_v45  ;;  %v982_v39 = vadd.f32 %v950_v21, %v881_v9  ;;  %v1053_v53 = vmul.f32 %v2433_v58, %v2556_v42  ;;  %v2570_v26 = vld [vmem:[#allocation2 + $0x105] sm:$0xff]  ;;  %v781_v60 = vadd.f32 %v749_v28, %v680_v48 }
  0x3e   : > { %3544 = vst [vmem:[#allocation24_spill] sm:$0xff] %v2566_v54  ;;  %3545 = vst [vmem:[#allocation25_spill] sm:$0xff] %v2568_v27  ;;  %v782_v11 = vadd.f32 %v750_v30, %v681_v49  ;;  %v1054_v15 = vmul.f32 %v2433_v58, %v2558_v45  ;;  %v1255_v21 = vmul.f32 %v2438_v59, %v2566_v54  ;;  %v2582_v48 = vld [vmem:[#allocation2 + $0x10d] sm:$0xff]  ;;  %v2588_v30 = vunpack.c.l.bf16 %v2059_v50 }
  0x3f   : > { %3546 = vst [vmem:[#allocation26_spill] sm:$0xff] %v2570_v26  ;;  %387 = vst [vmem:[#allocation2 + $0x128] sm:$0xff] %v2544_v12  ;;  %v1083_v34 = vadd.f32 %v1051_v22, %v981_v40  ;;  %v1084_v57 = vadd.f32 %v1052_v25, %v982_v39  ;;  %v1256_v9 = vmul.f32 %v2438_v59, %v2568_v27  ;;  %v2584_v49 = vld [vmem:[#allocation2 + $0x10b] sm:$0xff]  ;;  %v2586_v28 = vld [vmem:[#allocation2 + $0x113] sm:$0xff] }
  0x40   : > { %388 = vst [vmem:[#allocation2 + $0x130] sm:$0xff] %v2560_v44  ;;  %3547 = vst [vmem:[#allocation27_spill] sm:$0xff] %v2582_v48  ;;  %v882_v54 = vadd.f32 %v2425_v55, %v781_v60  ;;  %v883_v40 = vadd.f32 %v2446_v62, %v782_v11  ;;  %v460_v39 = vmul.f32 %v2326_v7, %v2570_v26  ;;  %v2599_v22 = vld [vmem:[%s2314_s15 + $0x60] sm:$0xff]   ;;  %v2617_v60 = vld [vmem:[#allocation2 + $0x16d] sm:$0xff] }
  0x41   : > { %3548 = vst [vmem:[#allocation28_spill] sm:$0xff] %v2584_v49  ;;  %3549 = vst [vmem:[#allocation29_spill] sm:$0xff] %v2586_v28  ;;  %v1184_v25 = vadd.f32 %v2377_v31, %v1083_v34  ;;  %v1185_v27 = vadd.f32 %v2381_v32, %v1084_v57  ;;  %v461_v45 = vmul.f32 %v2326_v7, %v2582_v48  ;;  %v2607_v55 = vld [vmem:[#allocation2 + $0x165] sm:$0xff]  ;;  %v2613_v11 = vld [vmem:[%s3449_s2] ss:$0 sm:$0xff] }
  0x42   : > { %3550 = vst [vmem:[#allocation30_spill] sm:$0xff] %v2588_v30  ;;  %3551 = vst [vmem:[#allocation31_spill] sm:$0xff] %v2596_v0  ;;  %v662_v42 = vmul.f32 %v2345_v20, %v2584_v49  ;;  %v983_v62 = vadd.f32 %v951_v41, %v882_v54  ;;  %v984_v50 = vadd.f32 %v952_v6, %v883_v40  ;;  %v2626_v6 = vunpack.c.l.bf16 %v2599_v22 }
  0x43   : > { %393 = vst [vmem:[#allocation2 + $0x188] sm:$0xff] %v2588_v30  ;;  %v593_v31 = vadd.f32 %v561_v37, %v460_v39  ;;  %v663_v32 = vmul.f32 %v2345_v20, %v2586_v28  ;;  %394 = vst [vmem:[#allocation2 + $0x190] sm:$0xff] %v2596_v0  ;;  %v1285_v34 = vadd.f32 %v2510_v43, %v1184_v25  ;;  %v2630_v39 = vld [vmem:[#allocation2 + $0x16b] sm:$0xff] }
  0x44   : > { %v1286_v57 = vadd.f32 %v2514_v46, %v1185_v27  ;;  %v594_v36 = vadd.f32 %v2527_v38, %v461_v45  ;;  %3552 = vst [vmem:[#allocation32_spill] sm:$0xff] %v2626_v6  ;;  %v1085_v37 = vadd.f32 %v1053_v53, %v983_v62  ;;  %v1086_v54 = vadd.f32 %v1054_v15, %v984_v50  ;;  %v2636_v45 = vld [vmem:[#allocation2 + $0x173] sm:$0xff]  ;;  %v2643_v15 = vld [vmem:[#allocation2 + $0x1c5] sm:$0xff] }
  0x45   : > { %v694_v41 = vadd.f32 %v662_v42, %v593_v31  ;;  %v763_v40 = vmul.f32 %v2412_v51, %v2607_v55  ;;  %3553 = vst [vmem:[#allocation33_spill] sm:$0xff] %v2630_v39  ;;  %v1324_v10 = vadd.f32 %v2613_v11, %v1285_v34  ;;  %v764_v46 = vmul.f32 %v2412_v51, %v2617_v60  ;;  %v2645_v25 = vld [vmem:[#allocation2 + $0x1cd] sm:$0xff] }
  0x46   : > { %v1325_v43 = vadd.f32 %v2613_v11, %v1286_v57  ;;  %v695_v27 = vadd.f32 %v663_v32, %v594_v36  ;;  %3554 = vst [vmem:[#allocation34_spill] sm:$0xff] %v2636_v45  ;;  %399 = vst [vmem:[#allocation2 + $0x1e8] sm:$0xff] %v2626_v6  ;;  %v1186_v47 = vadd.f32 %v2450_v63, %v1085_v37  ;;  %v2652_v57 = vld [vmem:[#allocation2 + $0x1cb] sm:$0xff]  ;;  %v2654_v37 = vld [vmem:[#allocation2 + $0x1d3] sm:$0xff] }
  0x47   : > { %v1187_v38 = vadd.f32 %v2465_v4, %v1086_v54  ;;  %v795_v53 = vadd.f32 %v763_v40, %v694_v41  ;;  %v865_v42 = vmul.f32 %v2471_v8, %v2354_v23  ;;  %3555 = vst [vmem:[#allocation35_spill] sm:$0xff] %v2643_v15  ;;  %3556 = vst [vmem:[#allocation36_spill] sm:$0xff] %v2645_v25  ;;  %v1356_v36 = vmax.f32 %v1324_v10, 0.0 }
  0x48   : > { %v1357_v62 = vmax.f32 %v1325_v43, 0.0  ;;  %v796_v50 = vadd.f32 %v764_v46, %v695_v27  ;;  %v965_v31 = vmul.f32 %v2417_v52, %v2630_v39  ;;  %v1287_v32 = vadd.f32 %v1255_v21, %v1186_v47  ;;  %3557 = vst [vmem:[#allocation37_spill] sm:$0xff] %v2652_v57  ;;  %3558 = vst [vmem:[#allocation38_spill] sm:$0xff] %v2654_v37  ;;  %v2664_v27 = vld [vmem:[#allocation2 + $0x125] sm:$0xff]  ;;  %v2666_v46 = vld [vmem:[#allocation2 + $0x12d] sm:$0xff] }
  0x49   : > { %v1288_v34 = vadd.f32 %v1256_v9, %v1187_v38  ;;  %v896_v63 = vadd.f32 %v2542_v61, %v795_v53  ;;  %v966_v4 = vmul.f32 %v2417_v52, %v2636_v45  ;;  %v1067_v10 = vmul.f32 %v2433_v58, %v2643_v15  ;;  %v2052_v15 = vld [vmem:[%s2314_s15 + $0x10] sm:$0xff]  }
  0x4a   : > { %v1388_v54 = vpack.c.bf16 %v1357_v62, %v1356_v36  ;;  %v897_v41 = vadd.f32 %v865_v42, %v796_v50  ;;  %v1068_v40 = vmul.f32 %v2433_v58, %v2645_v25  ;;  %v1326_v21 = vadd.f32 %v2613_v11, %v1287_v32  ;;  %v2674_v36 = vld [vmem:[#allocation2 + $0x12b] sm:$0xff] }
  0x4b   : > { %v1327_v9 = vadd.f32 %v2613_v11, %v1288_v34  ;;  %v997_v61 = vadd.f32 %v965_v31, %v896_v63  ;;  %v1168_v43 = vmul.f32 %v2486_v19, %v2370_v29  ;;  %v1169_v38 = vmul.f32 %v2500_v33, %v2370_v29  ;;  %v2679_v34 = vld [vmem:[#allocation2 + $0x133] sm:$0xff]  ;;  %v2681_v63 = vld [vmem:[#allocation2 + $0x185] sm:$0xff] }
  0x4c   : > { %2106 = vmatprep.mubr.bf16.mxu0 %v1388_v54  ;;  %v998_v47 = vadd.f32 %v966_v4, %v897_v41  ;;  %v1269_v53 = vmul.f32 %v2438_v59, %v2652_v57  ;;  %v1270_v42 = vmul.f32 %v2438_v59, %v2654_v37  ;;  %v1358_v62 = vmax.f32 %v1326_v21, 0.0  ;;  %3560 = vst [vmem:[#allocation40_spill] sm:$0xff] %v2681_v63  ;;  %v2689_v21 = vld [vmem:[#allocation2 + $0x18d] sm:$0xff] }
  0x4d   : > { %v1359_v50 = vmax.f32 %v1327_v9, 0.0  ;;  %v1099_v31 = vadd.f32 %v1067_v10, %v997_v61  ;;  %v2677_v32 = vunpack.c.h.bf16 %v2599_v22  ;;  %v462_v54 = vmul.f32 %v2326_v7, %v2664_v27  ;;  %3561 = vst [vmem:[#allocation41_spill] sm:$0xff] %v2689_v21  ;;  %v2696_v61 = vld [vmem:[#allocation2 + $0x18b] sm:$0xff] }
  0x4e   : > { %v1100_v4 = vadd.f32 %v1068_v40, %v998_v47  ;;  %v463_v41 = vmul.f32 %v2326_v7, %v2666_v46  ;;  %v563_v37 = vmul.f32 %v2544_v12, %v2335_v14  ;;  %v564_v22 = vmul.f32 %v2560_v44, %v2335_v14  ;;  %3562 = vst [vmem:[#allocation42_spill] sm:$0xff] %v2696_v61 }
  0x4f   : > { %3559 = vst [vmem:[#allocation39_spill] sm:$0xff] %v2677_v32  ;;  %v1389_v10 = vpack.c.bf16 %v1359_v50, %v1358_v62  ;;  %v1200_v9 = vadd.f32 %v1168_v43, %v1099_v31  ;;  %400 = vst [vmem:[#allocation2 + $0x1f0] sm:$0xff] %v2677_v32  ;;  %v664_v40 = vmul.f32 %v2345_v20, %v2674_v36  ;;  %v2702_v43 = vld [vmem:[#allocation2 + $0x193] sm:$0xff]  ;;  %v2704_v50 = vld [vmem:[#allocation2 + $0x1e5] sm:$0xff] }
  0x50   : > { %v1201_v47 = vadd.f32 %v1169_v38, %v1100_v4  ;;  %v595_v57 = vadd.f32 %v563_v37, %v462_v54  ;;  %v665_v33 = vmul.f32 %v2345_v20, %v2679_v34  ;;  %v765_v62 = vmul.f32 %v2412_v51, %v2681_v63  ;;  %3563 = vst [vmem:[#allocation43_spill] sm:$0xff] %v2702_v43 }
  0x51   : > { %3564 = vst [vmem:[#allocation44_spill] sm:$0xff] %v2704_v50  ;;  %2107 = vmatmul.mubr.bf16.vlgmr.msra.gmra.mxu0 %v1389_v10  ;;  %v1301_v31 = vadd.f32 %v1269_v53, %v1200_v9  ;;  %v596_v19 = vadd.f32 %v564_v22, %v463_v41  ;;  %v766_v25 = vmul.f32 %v2412_v51, %v2689_v21  ;;  %v411_v9 = vld [vmem:[#allocation2 + $0x45] sm:$0xff]  ;;  %v412_v22 = vld [vmem:[#allocation2 + $0x4d] sm:$0xff] }
  0x52   : > { %v866_v38 = vmul.f32 %v2588_v30, %v2354_v23  ;;  %v1302_v37 = vadd.f32 %v1270_v42, %v1201_v47  ;;  %v696_v4 = vadd.f32 %v664_v40, %v595_v57  ;;  %v867_v54 = vmul.f32 %v2596_v0, %v2354_v23  ;;  %v614_v0 = vld [vmem:[#allocation2 + $0x53] sm:$0xff] }
  0x53   : > { %v967_v63 = vmul.f32 %v2417_v52, %v2696_v61  ;;  %v1340_v45 = vadd.f32 %v2613_v11, %v1301_v31  ;;  %v697_v10 = vadd.f32 %v665_v33, %v596_v19  ;;  %v968_v53 = vmul.f32 %v2417_v52, %v2702_v43  ;;  %v613_v43 = vld [vmem:[#allocation2 + $0x4b] sm:$0xff] }
  0x54   : > { %v1069_v41 = vmul.f32 %v2433_v58, %v2704_v50  ;;  %v1341_v57 = vadd.f32 %v2613_v11, %v1302_v37  ;;  %v797_v42 = vadd.f32 %v765_v62, %v696_v4  ;;  %v1170_v40 = vmul.f32 %v2626_v6, %v2370_v29 }
  0x55   : > { %v1171_v47 = vmul.f32 %v2677_v32, %v2370_v29  ;;  %v1372_v61 = vmax.f32 %v1340_v45, 0.0  ;;  %v798_v31 = vadd.f32 %v766_v25, %v697_v10  ;;  %v2725_v19 = vunpack.c.l.bf16 %v2052_v15 }
  0x56   : > { %v2727_v33 = vunpack.c.h.bf16 %v2052_v15  ;;  %v1373_v50 = vmax.f32 %v1341_v57, 0.0  ;;  %v898_v30 = vadd.f32 %v866_v38, %v797_v42  ;;  %v2729_v21 = vld [vmem:[#allocation2 + $0x1ed] sm:$0xff]  ;;  %v448_v4 = vmul.f32 %v2326_v7, %v411_v9 }
  0x57   : > { %3565 = vst [vmem:[#allocation45_spill] sm:$0xff] %v2729_v21  ;;  %v2731_v37 = vld [vmem:[#allocation2 + $0x1eb] sm:$0xff]  ;;  %v2733_v62 = vld [vmem:[#allocation2 + $0x1f3] sm:$0xff]  ;;  %v449_v32 = vmul.f32 %v2326_v7, %v412_v22  ;;  %v899_v45 = vadd.f32 %v867_v54, %v798_v31  ;;  %v1070_v25 = vmul.f32 %v2433_v58, %v2729_v21  ;;  %379 = vst [vmem:[#allocation2 + $0xa8] sm:$0xff] %v2725_v19 }
  0x58   : > { %3566 = vst [vmem:[#allocation46_spill] sm:$0xff] %v2731_v37  ;;  %3567 = vst [vmem:[#allocation47_spill] sm:$0xff] %v2733_v62  ;;  %v1271_v15 = vmul.f32 %v2438_v59, %v2731_v37  ;;  %v1272_v38 = vmul.f32 %v2438_v59, %v2733_v62  ;;  %v1396_v10 = vpack.c.bf16 %v1373_v50, %v1372_v61 }
  0x59   : > { %380 = vst [vmem:[#allocation2 + $0xb0] sm:$0xff] %v2727_v33  ;;  %v999_v57 = vadd.f32 %v967_v63, %v898_v30  ;;  %v581_v9 = vadd.f32 %v2340_v17, %v448_v4  ;;  %v582_v22 = vadd.f32 %v2340_v17, %v449_v32  ;;  %v1000_v54 = vadd.f32 %v968_v53, %v899_v45 }
  0x5a   : > { %v650_v42 = vmul.f32 %v2345_v20, %v613_v43  ;;  %v651_v31 = vmul.f32 %v2345_v20, %v614_v0  ;;  %v852_v37 = vmul.f32 %v2725_v19, %v2354_v23  ;;  %2122 = vmatprep.mubr.bf16.mxu1 %v1396_v10  ;;  %v853_v6 = vmul.f32 %v2727_v33, %v2354_v23 }
  0x5b   : > { %v1101_v62 = vadd.f32 %v1069_v41, %v999_v57  ;;  %v1055_v30 = vmul.f32 %v2433_v58, %v2570_v26  ;;  %v1056_v63 = vmul.f32 %v2433_v58, %v2582_v48  ;;  %v1102_v17 = vadd.f32 %v1070_v25, %v1000_v54 }
  0x5c   : > { %v682_v32 = vadd.f32 %v650_v42, %v581_v9  ;;  %v683_v61 = vadd.f32 %v651_v31, %v582_v22  ;;  %v1156_v0 = vmul.f32 %v2427_v56, %v2370_v29  ;;  %v1157_v50 = vmul.f32 %v2467_v5, %v2370_v29 }
  0x5d   : > { %v1202_v43 = vadd.f32 %v1170_v40, %v1101_v62  ;;  %v2763_v53 = vmul.f32 %v2438_v59, %v2584_v49  ;;  %v2767_v41 = vmul.f32 %v2438_v59, %v2586_v28  ;;  %v1203_v4 = vadd.f32 %v1171_v47, %v1102_v17 }
  0x5e   : > { %v450_v45 = vmul.f32 %v2326_v7, %v2457_v1  ;;  %v451_v25 = vmul.f32 %v2326_v7, %v2459_v2  ;;  %v652_v40 = vmul.f32 %v2345_v20, %v2461_v3  ;;  %v2775_v10 = vld [vmem:[#allocation2 + $0xa5] sm:$0xff]  ;;  %v653_v22 = vmul.f32 %v2345_v20, %v2478_v13 }
  0x5f   : > { %v1303_v62 = vadd.f32 %v1271_v15, %v1202_v43  ;;  %v753_v47 = vmul.f32 %v2412_v51, %v2482_v16  ;;  %v754_v1 = vmul.f32 %v2412_v51, %v2484_v18  ;;  %v1304_v2 = vadd.f32 %v1272_v38, %v1203_v4  ;;  %v3568_v4 = vld [vmem:[#allocation4_spill] sm:$0xff] }
  0x60   : > { %v2777_v57 = vld [vmem:[#allocation2 + $0xad] sm:$0xff]  ;;  %v751_v3 = vmul.f32 %v2412_v51, %v2775_v10  ;;  %v583_v31 = vadd.f32 %v2357_v24, %v450_v45  ;;  %v584_v18 = vadd.f32 %v2386_v35, %v451_v25  ;;  %v854_v21 = vmul.f32 %v3568_v4, %v2354_v23  ;;  %v3570_v45 = vld [vmem:[#allocation15_spill] sm:$0xff] }
  0x61   : > { %v2779_v9 = vld [vmem:[#allocation2 + $0xab] sm:$0xff]  ;;  %v752_v15 = vmul.f32 %v2412_v51, %v2777_v57  ;;  %v2791_v54 = vld [vmem:[#allocation2 + $0xb3] sm:$0xff]  ;;  %v1342_v13 = vadd.f32 %v2613_v11, %v1303_v62  ;;  %v1343_v38 = vadd.f32 %v2613_v11, %v1304_v2  ;;  %v955_v35 = vmul.f32 %v2417_v52, %v3570_v45 }
  0x62   : > { %v953_v42 = vmul.f32 %v2417_v52, %v2779_v9  ;;  %v954_v16 = vmul.f32 %v2417_v52, %v2791_v54  ;;  %v783_v17 = vadd.f32 %v751_v3, %v682_v32  ;;  %v684_v49 = vadd.f32 %v652_v40, %v583_v31  ;;  %v3569_v62 = vld [vmem:[#allocation5_spill] sm:$0xff] }
  0x63   : > { %v784_v43 = vadd.f32 %v752_v15, %v683_v61  ;;  %v1374_v28 = vmax.f32 %v1342_v13, 0.0  ;;  %v685_v5 = vadd.f32 %v653_v22, %v584_v18  ;;  %v855_v56 = vmul.f32 %v3569_v62, %v2354_v23  ;;  %v3571_v61 = vld [vmem:[#allocation16_spill] sm:$0xff]  ;;  %v2057_v13 = vld [vmem:[%s2314_s15 + $0x38] sm:$0xff]  }
  0x64   : > { %v1375_v48 = vmax.f32 %v1343_v38, 0.0  ;;  %v884_v26 = vadd.f32 %v852_v37, %v783_v17  ;;  %v785_v25 = vadd.f32 %v753_v47, %v684_v49  ;;  %v956_v2 = vmul.f32 %v2417_v52, %v3571_v61  ;;  %v2060_v47 = vld [vmem:[%s2314_s15 + $0x50] sm:$0xff]  }
  0x65   : > { %v885_v24 = vadd.f32 %v853_v6, %v784_v43  ;;  %v786_v32 = vadd.f32 %v754_v1, %v685_v5  ;;  %v1057_v3 = vmul.f32 %v2433_v58, %v2664_v27  ;;  %v1058_v37 = vmul.f32 %v2433_v58, %v2666_v46  ;;  %v2064_v43 = vld [vmem:[%s2314_s15 + $0x70] sm:$0xff]  }
  0x66   : > { %v1397_v40 = vpack.c.bf16 %v1375_v48, %v1374_v28  ;;  %v985_v22 = vadd.f32 %v953_v42, %v884_v26  ;;  %v886_v6 = vadd.f32 %v854_v21, %v785_v25  ;;  %v1158_v49 = vmul.f32 %v2544_v12, %v2370_v29  ;;  %v2063_v28 = vld [vmem:[%s2314_s15 + $0x68] sm:$0xff]  }
  0x67   : > { %v986_v15 = vadd.f32 %v954_v16, %v885_v24  ;;  %v887_v31 = vadd.f32 %v855_v56, %v786_v32  ;;  %v1159_v5 = vmul.f32 %v2560_v44, %v2370_v29  ;;  %v1259_v26 = vmul.f32 %v2438_v59, %v2674_v36 }
  0x68   : > { %2123 = vmatmul.mubr.bf16.vlgmr.msra.gmra.mxu1 %v1397_v40  ;;  %v1087_v1 = vadd.f32 %v1055_v30, %v985_v22  ;;  %v1260_v48 = vmul.f32 %v2438_v59, %v2679_v34  ;;  %v987_v46 = vadd.f32 %v955_v35, %v886_v6  ;;  %v2824_v56 = vunpack.c.l.bf16 %v2057_v13 }
  0x69   : > { %v1088_v27 = vadd.f32 %v1056_v63, %v986_v15  ;;  %v988_v21 = vadd.f32 %v956_v2, %v887_v31  ;;  %v2826_v42 = vunpack.c.h.bf16 %v2057_v13  ;;  %v2828_v16 = vunpack.c.l.bf16 %v2060_v47  ;;  %v3578_v31 = vld [vmem:[#allocation12_spill] sm:$0xff] }
  0x6a   : > { %v1188_v12 = vadd.f32 %v1156_v0, %v1087_v1  ;;  %v2830_v30 = vunpack.c.h.bf16 %v2060_v47  ;;  %v1089_v63 = vadd.f32 %v1057_v3, %v987_v46  ;;  %v2832_v36 = vunpack.c.l.bf16 %v2063_v28  ;;  %389 = vst [vmem:[#allocation2 + $0x148] sm:$0xff] %v2824_v56 }
  0x6b   : > { %v1189_v44 = vadd.f32 %v1157_v50, %v1088_v27  ;;  %3572 = vst [vmem:[#allocation4_spill] sm:$0xff] %v2828_v16  ;;  %v1090_v18 = vadd.f32 %v1058_v37, %v988_v21  ;;  %v2834_v38 = vunpack.c.h.bf16 %v2063_v28  ;;  %390 = vst [vmem:[#allocation2 + $0x150] sm:$0xff] %v2826_v42  ;;  %v565_v50 = vmul.f32 %v2824_v56, %v2335_v14  ;;  %v3579_v28 = vld [vmem:[#allocation34_spill] sm:$0xff]  ;;  %v3580_v21 = vld [vmem:[#allocation35_spill] sm:$0xff] }
  0x6c   : > { %3573 = vst [vmem:[#allocation5_spill] sm:$0xff] %v2830_v30  ;;  %3574 = vst [vmem:[#allocation15_spill] sm:$0xff] %v2832_v36  ;;  %v1289_v34 = vadd.f32 %v2763_v53, %v1188_v12  ;;  %v566_v17 = vmul.f32 %v2826_v42, %v2335_v14  ;;  %v1190_v4 = vadd.f32 %v1158_v49, %v1089_v63  ;;  %v2867_v2 = vunpack.c.l.bf16 %v2064_v43 }
  0x6d   : > { %3575 = vst [vmem:[#allocation16_spill] sm:$0xff] %v2834_v38  ;;  %v1290_v0 = vadd.f32 %v2767_v41, %v1189_v44  ;;  %395 = vst [vmem:[#allocation2 + $0x1a8] sm:$0xff] %v2828_v16  ;;  %v1191_v62 = vadd.f32 %v1159_v5, %v1090_v18  ;;  %v2851_v53 = vmul.f32 %v2828_v16, %v2354_v23  ;;  %v2869_v3 = vunpack.c.h.bf16 %v2064_v43 }
  0x6e   : > { %396 = vst [vmem:[#allocation2 + $0x1b0] sm:$0xff] %v2830_v30  ;;  %401 = vst [vmem:[#allocation2 + $0x208] sm:$0xff] %v2832_v36  ;;  %v2855_v41 = vmul.f32 %v2830_v30, %v2354_v23  ;;  %v1328_v24 = vadd.f32 %v2613_v11, %v1289_v34  ;;  %v2861_v35 = vmul.f32 %v2832_v36, %v2370_v29 }
  0x6f   : > { %402 = vst [vmem:[#allocation2 + $0x210] sm:$0xff] %v2834_v38  ;;  %v1329_v45 = vadd.f32 %v2613_v11, %v1290_v0  ;;  %v2865_v25 = vmul.f32 %v2834_v38, %v2370_v29  ;;  %v1291_v32 = vadd.f32 %v1259_v26, %v1190_v4  ;;  %v1292_v61 = vadd.f32 %v1260_v48, %v1191_v62 }
  0x70   : > { %3576 = vst [vmem:[#allocation48_spill] sm:$0xff] %v2867_v2  ;;  %3577 = vst [vmem:[#allocation49_spill] sm:$0xff] %v2869_v3  ;;  %v1360_v40 = vmax.f32 %v1328_v24, 0.0  ;;  %v466_v15 = vmul.f32 %v2326_v7, %v2607_v55  ;;  %v467_v37 = vmul.f32 %v2326_v7, %v2617_v60  ;;  %v567_v49 = vmul.f32 %v3578_v31, %v2335_v14 }
  0x71   : > { %v1361_v22 = vmax.f32 %v1329_v45, 0.0  ;;  %v1330_v13 = vadd.f32 %v2613_v11, %v1291_v32  ;;  %v1331_v6 = vadd.f32 %v2613_v11, %v1292_v61  ;;  %403 = vst [vmem:[#allocation2 + $0x228] sm:$0xff] %v2867_v2  ;;  %404 = vst [vmem:[#allocation2 + $0x230] sm:$0xff] %v2869_v3  ;;  %v568_v5 = vmul.f32 %v2471_v8, %v2335_v14  ;;  %v2883_v1 = vld [vmem:[#allocation2 + $0x145] sm:$0xff] }
  0x72   : > { %v2885_v27 = vld [vmem:[#allocation2 + $0x14d] sm:$0xff]  ;;  %v668_v48 = vmul.f32 %v2345_v20, %v2630_v39  ;;  %v669_v46 = vmul.f32 %v2345_v20, %v3579_v28  ;;  %v769_v12 = vmul.f32 %v2412_v51, %v3580_v21  ;;  %v464_v18 = vmul.f32 %v2326_v7, %v2883_v1 }
  0x73   : > { %v1390_v47 = vpack.c.bf16 %v1361_v22, %v1360_v40  ;;  %v2887_v26 = vld [vmem:[#allocation2 + $0x14b] sm:$0xff]  ;;  %v1362_v44 = vmax.f32 %v1330_v13, 0.0  ;;  %v1363_v63 = vmax.f32 %v1331_v6, 0.0  ;;  %v465_v34 = vmul.f32 %v2326_v7, %v2885_v27  ;;  %v2899_v0 = vld [vmem:[#allocation2 + $0x153] sm:$0xff] }
  0x74   : > { %v2901_v43 = vld [vmem:[#allocation2 + $0x1a5] sm:$0xff]  ;;  %v666_v62 = vmul.f32 %v2345_v20, %v2887_v26  ;;  %v667_v24 = vmul.f32 %v2345_v20, %v2899_v0  ;;  %v597_v6 = vadd.f32 %v565_v50, %v464_v18  ;;  %v3589_v28 = vld [vmem:[#allocation14_spill] sm:$0xff] }
  0x75   : > { %3581 = vst [vmem:[#allocation12_spill] sm:$0xff] %v2901_v43  ;;  %v2903_v4 = vld [vmem:[#allocation2 + $0x1ad] sm:$0xff]  ;;  %2110 = vmatprep.mubr.bf16.mxu0 %v1390_v47  ;;  %v767_v45 = vmul.f32 %v2412_v51, %v2901_v43  ;;  %v2917_v22 = vld [vmem:[#allocation2 + $0x205] sm:$0xff]  ;;  %v1391_v13 = vpack.c.bf16 %v1363_v63, %v1362_v44  ;;  %v598_v47 = vadd.f32 %v566_v17, %v465_v34 }
  0x76   : > { %3582 = vst [vmem:[#allocation35_spill] sm:$0xff] %v2903_v4  ;;  %v768_v32 = vmul.f32 %v2412_v51, %v2903_v4  ;;  %v2913_v61 = vld [vmem:[#allocation2 + $0x1ab] sm:$0xff]  ;;  %v2915_v40 = vld [vmem:[#allocation2 + $0x1b3] sm:$0xff]  ;;  %3585 = vst [vmem:[#allocation52_spill] sm:$0xff] %v2917_v22  ;;  %v1071_v4 = vmul.f32 %v2433_v58, %v2917_v22  ;;  %v698_v17 = vadd.f32 %v666_v62, %v597_v6 }
  0x77   : > { %3583 = vst [vmem:[#allocation50_spill] sm:$0xff] %v2913_v61  ;;  %3584 = vst [vmem:[#allocation51_spill] sm:$0xff] %v2915_v40  ;;  %v969_v21 = vmul.f32 %v2417_v52, %v2913_v61  ;;  %v2921_v38 = vld [vmem:[#allocation2 + $0x20d] sm:$0xff]  ;;  %v970_v16 = vmul.f32 %v2417_v52, %v2915_v40  ;;  %2111 = vmatmul.mubr.bf16.gmra.mxu0 %v1391_v13  ;;  %v699_v63 = vadd.f32 %v667_v24, %v598_v47  ;;  %v3588_v43 = vld [vmem:[#allocation36_spill] sm:$0xff] }
  0x78   : > { %3586 = vst [vmem:[#allocation53_spill] sm:$0xff] %v2921_v38  ;;  %v2923_v36 = vld [vmem:[#allocation2 + $0x20b] sm:$0xff]  ;;  %v2925_v30 = vld [vmem:[#allocation2 + $0x213] sm:$0xff]  ;;  %v1072_v44 = vmul.f32 %v2433_v58, %v2921_v38  ;;  %v599_v34 = vadd.f32 %v567_v49, %v466_v15  ;;  %v600_v61 = vadd.f32 %v568_v5, %v467_v37  ;;  %v770_v40 = vmul.f32 %v2412_v51, %v3588_v43 }
  0x79   : > { %3587 = vst [vmem:[#allocation54_spill] sm:$0xff] %v2923_v36  ;;  %v1273_v50 = vmul.f32 %v2438_v59, %v2923_v36  ;;  %v1274_v18 = vmul.f32 %v2438_v59, %v2925_v30  ;;  %v870_v22 = vmul.f32 %v3589_v28, %v2354_v23  ;;  %v3590_v39 = vld [vmem:[#allocation17_spill] sm:$0xff]  ;;  %v799_v62 = vadd.f32 %v767_v45, %v698_v17  ;;  %v2951_v49 = vld [vmem:[#allocation2 + $0x233] sm:$0xff] }
  0x7a   : > { %v871_v38 = vmul.f32 %v3590_v39, %v2354_v23  ;;  %v2943_v8 = vld [vmem:[#allocation2 + $0x225] sm:$0xff]  ;;  %v2945_v36 = vld [vmem:[#allocation2 + $0x22d] sm:$0xff]  ;;  %v800_v24 = vadd.f32 %v768_v32, %v699_v63  ;;  %v700_v13 = vadd.f32 %v668_v48, %v599_v34  ;;  %v701_v5 = vadd.f32 %v669_v46, %v600_v61 }
  0x7b   : > { %3591 = vst [vmem:[#allocation36_spill] sm:$0xff] %v2943_v8  ;;  %3592 = vst [vmem:[#allocation14_spill] sm:$0xff] %v2945_v36  ;;  %v3593_v6 = vld [vmem:[#allocation37_spill] sm:$0xff]  ;;  %v3596_v43 = vld [vmem:[#allocation38_spill] sm:$0xff]  ;;  %v1073_v39 = vmul.f32 %v2433_v58, %v2943_v8  ;;  %v1074_v47 = vmul.f32 %v2433_v58, %v2945_v36  ;;  %v900_v45 = vadd.f32 %v2851_v53, %v799_v62 }
  0x7c   : > { %v971_v15 = vmul.f32 %v2417_v52, %v3593_v6  ;;  %v2949_v37 = vld [vmem:[#allocation2 + $0x22b] sm:$0xff]  ;;  %3595 = vst [vmem:[#allocation37_spill] sm:$0xff] %v2951_v49  ;;  %v972_v28 = vmul.f32 %v2417_v52, %v3596_v43  ;;  %v901_v48 = vadd.f32 %v2855_v41, %v800_v24  ;;  %v801_v32 = vadd.f32 %v769_v12, %v700_v13  ;;  %v3598_v62 = vld [vmem:[#allocation19_spill] sm:$0xff] }
  0x7d   : > { %3594 = vst [vmem:[#allocation17_spill] sm:$0xff] %v2949_v37  ;;  %v1174_v17 = vmul.f32 %v2867_v2, %v2370_v29  ;;  %v802_v63 = vadd.f32 %v770_v40, %v701_v5  ;;  %v1175_v46 = vmul.f32 %v2869_v3, %v2370_v29  ;;  %v1275_v61 = vmul.f32 %v2438_v59, %v2949_v37  ;;  %v3597_v53 = vld [vmem:[#allocation18_spill] sm:$0xff]  ;;  %v3600_v5 = vld [vmem:[#allocation7_spill] sm:$0xff] }
  0x7e   : > { %v1276_v34 = vmul.f32 %v2438_v59, %v2951_v49  ;;  %v1001_v6 = vadd.f32 %v969_v21, %v900_v45  ;;  %v1002_v43 = vadd.f32 %v970_v16, %v901_v48  ;;  %v902_v36 = vadd.f32 %v870_v22, %v801_v32  ;;  %v3599_v40 = vld [vmem:[#allocation6_spill] sm:$0xff]  ;;  %v3601_v49 = vld [vmem:[#allocation20_spill] sm:$0xff]  ;;  %v3602_v48 = vld [vmem:[#allocation21_spill] sm:$0xff] }
  0x7f   : > { %v452_v41 = vmul.f32 %v2326_v7, %v3597_v53  ;;  %v903_v12 = vadd.f32 %v871_v38, %v802_v63  ;;  %v453_v24 = vmul.f32 %v2326_v7, %v3598_v62  ;;  %v553_v13 = vmul.f32 %v3599_v40, %v2335_v14  ;;  %v3603_v53 = vld [vmem:[#allocation22_spill] sm:$0xff] }
  0x80   : > { %v554_v3 = vmul.f32 %v3600_v5, %v2335_v14  ;;  %v1103_v37 = vadd.f32 %v1071_v4, %v1001_v6  ;;  %v1104_v2 = vadd.f32 %v1072_v44, %v1002_v43  ;;  %v1003_v8 = vadd.f32 %v971_v15, %v902_v36  ;;  %v3604_v15 = vld [vmem:[#allocation23_spill] sm:$0xff]  ;;  %v3605_v43 = vld [vmem:[#allocation8_spill] sm:$0xff] }
  0x81   : > { %v654_v16 = vmul.f32 %v2345_v20, %v3601_v49  ;;  %v1004_v22 = vadd.f32 %v972_v28, %v903_v12  ;;  %v585_v21 = vadd.f32 %v553_v13, %v452_v41  ;;  %v655_v38 = vmul.f32 %v2345_v20, %v3602_v48  ;;  %v3607_v12 = vld [vmem:[#allocation24_spill] sm:$0xff] }
  0x82   : > { %v586_v45 = vadd.f32 %v554_v3, %v453_v24  ;;  %v1204_v7 = vadd.f32 %v2861_v35, %v1103_v37  ;;  %v1205_v32 = vadd.f32 %v2865_v25, %v1104_v2  ;;  %v1105_v63 = vadd.f32 %v1073_v39, %v1003_v8  ;;  %v3606_v8 = vld [vmem:[#allocation9_spill] sm:$0xff] }
  0x83   : > { %v755_v14 = vmul.f32 %v2412_v51, %v3603_v53  ;;  %v1106_v4 = vadd.f32 %v1074_v47, %v1004_v22  ;;  %v686_v44 = vadd.f32 %v654_v16, %v585_v21  ;;  %v756_v49 = vmul.f32 %v2412_v51, %v3604_v15  ;;  %v3608_v24 = vld [vmem:[#allocation25_spill] sm:$0xff] }
  0x84   : > { %v687_v36 = vadd.f32 %v655_v38, %v586_v45  ;;  %v1305_v28 = vadd.f32 %v1273_v50, %v1204_v7  ;;  %v1306_v6 = vadd.f32 %v1274_v18, %v1205_v32  ;;  %v1206_v3 = vadd.f32 %v1174_v17, %v1105_v63 }
  0x85   : > { %v856_v20 = vmul.f32 %v3605_v43, %v2354_v23  ;;  %v1207_v41 = vadd.f32 %v1175_v46, %v1106_v4  ;;  %v787_v35 = vadd.f32 %v755_v14, %v686_v44  ;;  %v857_v25 = vmul.f32 %v3606_v8, %v2354_v23  ;;  %v3014_v4 = vld [vmem:[%s3448_s1] ss:$0 sm:$0xff]  ;;  %v3610_v8 = vld [vmem:[#allocation27_spill] sm:$0xff] }
  0x86   : > { %v788_v37 = vadd.f32 %v756_v49, %v687_v36  ;;  %v1344_v2 = vadd.f32 %v2613_v11, %v1305_v28  ;;  %v1345_v39 = vadd.f32 %v2613_v11, %v1306_v6  ;;  %v1307_v47 = vadd.f32 %v1275_v61, %v1206_v3  ;;  %v3023_v36 = vld [vmem:[%s3448_s1 + $0x1] ss:$0 sm:$0xff] }
  0x87   : > { %v957_v62 = vmul.f32 %v2417_v52, %v3607_v12  ;;  %v1308_v50 = vadd.f32 %v1276_v34, %v1207_v41  ;;  %v888_v18 = vadd.f32 %v856_v20, %v787_v35  ;;  %v958_v40 = vmul.f32 %v2417_v52, %v3608_v24  ;;  %v3609_v41 = vld [vmem:[#allocation26_spill] sm:$0xff]  ;;  %v3614_v24 = vld [vmem:[#allocation29_spill] sm:$0xff] }
  0x88   : > { %v889_v17 = vadd.f32 %v857_v25, %v788_v37  ;;  %v1376_v46 = vmax.f32 %v1344_v2, 0.0  ;;  %v1377_v13 = vmax.f32 %v1345_v39, 0.0  ;;  %v1346_v5 = vadd.f32 %v2613_v11, %v1307_v47  ;;  %v3045_v39 = vld [vmem:[%s3448_s1 + $0x4] ss:$0 sm:$0xff]  ;;  %v3612_v47 = vld [vmem:[#allocation11_spill] sm:$0xff] }
  0x89   : > { %v1059_v23 = vmul.f32 %v2433_v58, %v2883_v1  ;;  %v1347_v16 = vadd.f32 %v2613_v11, %v1308_v50  ;;  %v989_v22 = vadd.f32 %v957_v62, %v888_v18  ;;  %v1060_v21 = vmul.f32 %v2433_v58, %v2885_v27  ;;  %v3613_v62 = vld [vmem:[#allocation28_spill] sm:$0xff] }
  0x8a   : > { %v990_v61 = vadd.f32 %v958_v40, %v889_v17  ;;  %v1398_v34 = vpack.c.bf16 %v1377_v13, %v1376_v46  ;;  %v1378_v45 = vmax.f32 %v1346_v5, 0.0  ;;  %v1160_v48 = vmul.f32 %v2824_v56, %v2370_v29  ;;  %v2065_v46 = vld [vmem:[%s2314_s15 + $0x78] sm:$0xff]  }
  0x8b   : > { %v1161_v38 = vmul.f32 %v2826_v42, %v2370_v29  ;;  %v1379_v7 = vmax.f32 %v1347_v16, 0.0  ;;  %v1091_v32 = vadd.f32 %v1059_v23, %v989_v22  ;;  %v1261_v53 = vmul.f32 %v2438_v59, %v2887_v26  ;;  %v3065_v16 = vld [vmem:[%s3448_s1 + $0x7] ss:$0 sm:$0xff] }
  0x8c   : > { %v1092_v63 = vadd.f32 %v1060_v21, %v990_v61  ;;  %2126 = vmatprep.mubr.bf16.mxu1 %v1398_v34  ;;  %v1262_v14 = vmul.f32 %v2438_v59, %v2899_v0  ;;  %v454_v44 = vmul.f32 %v3014_v4, %v2775_v10  ;;  %v455_v29 = vmul.f32 %v3014_v4, %v2777_v57  ;;  %v3032_v10 = vld [vmem:[%s3448_s1 + $0x2] ss:$0 sm:$0xff] }
  0x8d   : > { %v555_v15 = vmul.f32 %v3023_v36, %v2725_v19  ;;  %v1399_v49 = vpack.c.bf16 %v1379_v7, %v1378_v45  ;;  %v1192_v28 = vadd.f32 %v1160_v48, %v1091_v32  ;;  %v556_v3 = vmul.f32 %v3023_v36, %v2727_v33  ;;  %v3617_v7 = vld [vmem:[#allocation34_spill] sm:$0xff] }
  0x8e   : > { %v1193_v6 = vadd.f32 %v1161_v38, %v1092_v63  ;;  %v656_v57 = vmul.f32 %v3032_v10, %v2779_v9  ;;  %v657_v20 = vmul.f32 %v3032_v10, %v2791_v54  ;;  %v757_v19 = vmul.f32 %v2412_v51, %v3609_v41  ;;  %v3611_v9 = vld [vmem:[#allocation10_spill] sm:$0xff]  ;;  %v3616_v38 = vld [vmem:[#allocation33_spill] sm:$0xff] }
  0x8f   : > { %v587_v43 = vadd.f32 %v555_v15, %v454_v44  ;;  %2127 = vmatmul.mubr.bf16.gmra.mxu1 %v1399_v49  ;;  %v1293_v35 = vadd.f32 %v1261_v53, %v1192_v28  ;;  %v588_v33 = vadd.f32 %v556_v3, %v455_v29  ;;  %v758_v25 = vmul.f32 %v2412_v51, %v3610_v8  ;;  %v3619_v29 = vld [vmem:[#allocation41_spill] sm:$0xff]  ;;  %v3620_v49 = vld [vmem:[#allocation30_spill] sm:$0xff] }
  0x90   : > { %v1294_v37 = vadd.f32 %v1262_v14, %v1193_v6  ;;  %v858_v54 = vmul.f32 %v3045_v39, %v3611_v9  ;;  %v859_v12 = vmul.f32 %v3045_v39, %v3612_v47  ;;  %v959_v50 = vmul.f32 %v2417_v52, %v3613_v62  ;;  %v3621_v6 = vld [vmem:[#allocation31_spill] sm:$0xff]  ;;  %v3626_v47 = vld [vmem:[#allocation32_spill] sm:$0xff] }
  0x91   : > { %v688_v2 = vadd.f32 %v656_v57, %v587_v43  ;;  %v1332_v18 = vadd.f32 %v2613_v11, %v1293_v35  ;;  %v689_v51 = vadd.f32 %v657_v20, %v588_v33  ;;  %v960_v40 = vmul.f32 %v2417_v52, %v3614_v24  ;;  %v3615_v52 = vld [vmem:[#allocation13_spill] sm:$0xff]  ;;  %v3622_v43 = vld [vmem:[#allocation42_spill] sm:$0xff]  ;;  %v3623_v20 = vld [vmem:[#allocation43_spill] sm:$0xff] }
  0x92   : > { %v1333_v17 = vadd.f32 %v2613_v11, %v1294_v37  ;;  %v1061_v5 = vmul.f32 %v2433_v58, %v2607_v55  ;;  %v1062_v23 = vmul.f32 %v2433_v58, %v2617_v60  ;;  %v1162_v22 = vmul.f32 %v3065_v16, %v3578_v31  ;;  %v3618_v31 = vld [vmem:[#allocation40_spill] sm:$0xff]  ;;  %v3627_v62 = vld [vmem:[#allocation39_spill] sm:$0xff] }
  0x93   : > { %v789_v13 = vadd.f32 %v757_v19, %v688_v2  ;;  %v1364_v61 = vmax.f32 %v1332_v18, 0.0  ;;  %v790_v34 = vadd.f32 %v758_v25, %v689_v51  ;;  %v1163_v45 = vmul.f32 %v3065_v16, %v3615_v52  ;;  %v3096_v19 = vld [vmem:[%s3448_s1 + $0x3] ss:$0 sm:$0xff]  ;;  %v3625_v2 = vld [vmem:[#allocation45_spill] sm:$0xff]  ;;  %v3109_v18 = vld [vmem:[%s3448_s1 + $0x5] ss:$0 sm:$0xff] }
  0x94   : > { %v1365_v21 = vmax.f32 %v1333_v17, 0.0  ;;  %v1263_v55 = vmul.f32 %v2438_v59, %v3616_v38  ;;  %v1264_v58 = vmul.f32 %v2438_v59, %v3617_v7  ;;  %v3075_v60 = vunpack.c.l.bf16 %v2065_v46  ;;  %v3624_v35 = vld [vmem:[#allocation44_spill] sm:$0xff]  ;;  %v3628_v17 = vld [vmem:[#allocation46_spill] sm:$0xff] }
  0x95   : > { %v890_v48 = vadd.f32 %v858_v54, %v789_v13  ;;  %v891_v63 = vadd.f32 %v859_v12, %v790_v34  ;;  %v3077_v53 = vunpack.c.h.bf16 %v2065_v46  ;;  %v468_v14 = vmul.f32 %v3014_v4, %v3618_v31  ;;  %v3629_v13 = vld [vmem:[#allocation47_spill] sm:$0xff]  ;;  %v3630_v34 = vld [vmem:[#allocation12_spill] sm:$0xff] }
  0x96   : > { %v1392_v32 = vpack.c.bf16 %v1365_v21, %v1364_v61  ;;  %405 = vst [vmem:[#allocation2 + $0x248] sm:$0xff] %v3075_v60  ;;  %v469_v15 = vmul.f32 %v3014_v4, %v3619_v29  ;;  %v569_v28 = vmul.f32 %v3023_v36, %v3620_v49  ;;  %v570_v59 = vmul.f32 %v3023_v36, %v3621_v6 }
  0x97   : > { %v991_v44 = vadd.f32 %v959_v50, %v890_v48  ;;  %v992_v3 = vadd.f32 %v960_v40, %v891_v63  ;;  %406 = vst [vmem:[#allocation2 + $0x250] sm:$0xff] %v3077_v53  ;;  %v670_v57 = vmul.f32 %v3032_v10, %v3622_v43  ;;  %v671_v41 = vmul.f32 %v3032_v10, %v3623_v20 }
  0x98   : > { %2114 = vmatprep.mubr.bf16.mxu0 %v1392_v32  ;;  %v771_v37 = vmul.f32 %v3096_v19, %v3624_v35  ;;  %v601_v8 = vadd.f32 %v569_v28, %v468_v14  ;;  %v602_v25 = vadd.f32 %v570_v59, %v469_v15  ;;  %v772_v9 = vmul.f32 %v3096_v19, %v3625_v2  ;;  %v3631_v32 = vld [vmem:[#allocation35_spill] sm:$0xff]  ;;  %v3632_v14 = vld [vmem:[#allocation4_spill] sm:$0xff]  ;;  %v3634_v15 = vld [vmem:[#allocation50_spill] sm:$0xff] }
  0x99   : > { %v1093_v33 = vadd.f32 %v1061_v5, %v991_v44  ;;  %v1094_v54 = vadd.f32 %v1062_v23, %v992_v3  ;;  %v872_v12 = vmul.f32 %v3045_v39, %v3626_v47  ;;  %v873_v50 = vmul.f32 %v3045_v39, %v3627_v62  ;;  %v3633_v44 = vld [vmem:[#allocation5_spill] sm:$0xff] }
  0x9a   : > { %v973_v51 = vmul.f32 %v3109_v18, %v3628_v17  ;;  %v702_v40 = vadd.f32 %v670_v57, %v601_v8  ;;  %v703_v46 = vadd.f32 %v671_v41, %v602_v25  ;;  %v974_v5 = vmul.f32 %v3109_v18, %v3629_v13  ;;  %v3151_v35 = vld [vmem:[%s3448_s1 + $0x8] ss:$0 sm:$0xff] }
  0x9b   : > { %v1194_v24 = vadd.f32 %v1162_v22, %v1093_v33  ;;  %v1195_v23 = vadd.f32 %v1163_v45, %v1094_v54  ;;  %v1176_v61 = vmul.f32 %v3065_v16, %v3075_v60  ;;  %v1177_v21 = vmul.f32 %v3065_v16, %v3077_v53  ;;  %v3637_v13 = vld [vmem:[#allocation53_spill] sm:$0xff] }
  0x9c   : > { %v470_v52 = vmul.f32 %v3014_v4, %v3630_v34  ;;  %v803_v38 = vadd.f32 %v771_v37, %v702_v40  ;;  %v804_v7 = vadd.f32 %v772_v9, %v703_v46  ;;  %v471_v22 = vmul.f32 %v3014_v4, %v3631_v32 }
  0x9d   : > { %v1295_v48 = vadd.f32 %v1263_v55, %v1194_v24  ;;  %v1296_v63 = vadd.f32 %v1264_v58, %v1195_v23  ;;  %v3123_v31 = vld [vmem:[#allocation2 + $0x245] sm:$0xff]  ;;  %v571_v45 = vmul.f32 %v3023_v36, %v3632_v14  ;;  %v572_v29 = vmul.f32 %v3023_v36, %v3633_v44 }
  0x9e   : > { %v672_v49 = vmul.f32 %v3032_v10, %v3634_v15  ;;  %v904_v55 = vadd.f32 %v872_v12, %v803_v38  ;;  %v905_v6 = vadd.f32 %v873_v50, %v804_v7  ;;  %v3132_v59 = vld [vmem:[#allocation2 + $0x24d] sm:$0xff]  ;;  %v3137_v58 = vld [vmem:[%s3448_s1 + $0x6] ss:$0 sm:$0xff]  ;;  %v3635_v12 = vld [vmem:[#allocation51_spill] sm:$0xff]  ;;  %v774_v23 = vmul.f32 %v3096_v19, %v3637_v13 }
  0x9f   : > { %v1334_v28 = vadd.f32 %v2613_v11, %v1295_v48  ;;  %v1075_v3 = vmul.f32 %v3137_v58, %v3123_v31  ;;  %v3141_v43 = vld [vmem:[#allocation2 + $0x24b] sm:$0xff]  ;;  %v3143_v57 = vld [vmem:[#allocation2 + $0x253] sm:$0xff]  ;;  %v1335_v20 = vadd.f32 %v2613_v11, %v1296_v63  ;;  %v1076_v41 = vmul.f32 %v3137_v58, %v3132_v59  ;;  %v3636_v50 = vld [vmem:[#allocation52_spill] sm:$0xff] }
  0xa0   : > { %v1277_v37 = vmul.f32 %v3151_v35, %v3141_v43  ;;  %v1278_v33 = vmul.f32 %v3151_v35, %v3143_v57  ;;  %v1005_v25 = vadd.f32 %v973_v51, %v904_v55  ;;  %v1006_v2 = vadd.f32 %v974_v5, %v905_v6  ;;  %v1040_v48 = vld [vmem:[#allocation2 + $0x265] sm:$0xff]  ;;  %v1041_v38 = vld [vmem:[#allocation2 + $0x26d] sm:$0xff]  ;;  %v3638_v5 = vld [vmem:[#allocation15_spill] sm:$0xff] }
  0xa1   : > { %v1366_v8 = vmax.f32 %v1334_v28, 0.0  ;;  %v603_v9 = vadd.f32 %v571_v45, %v470_v52  ;;  %v1367_v54 = vmax.f32 %v1335_v20, 0.0  ;;  %v604_v47 = vadd.f32 %v572_v29, %v471_v22  ;;  %v3639_v22 = vld [vmem:[#allocation16_spill] sm:$0xff]  ;;  %v3640_v55 = vld [vmem:[#allocation54_spill] sm:$0xff] }
  0xa2   : > { %v673_v62 = vmul.f32 %v3032_v10, %v3635_v12  ;;  %v773_v17 = vmul.f32 %v3096_v19, %v3636_v50  ;;  %v1107_v24 = vadd.f32 %v1075_v3, %v1005_v25  ;;  %v1108_v40 = vadd.f32 %v1076_v41, %v1006_v2  ;;  %v1243_v3 = vld [vmem:[#allocation2 + $0x273] sm:$0xff]  ;;  %v419_v20 = vld [vmem:[#allocation2 + $0xc5] sm:$0xff] }
  0xa3   : > { %v704_v46 = vadd.f32 %v672_v49, %v603_v9  ;;  %v1393_v7 = vpack.c.bf16 %v1367_v54, %v1366_v8  ;;  %v874_v52 = vmul.f32 %v3045_v39, %v3638_v5  ;;  %v875_v63 = vmul.f32 %v3045_v39, %v3639_v22  ;;  %v1242_v49 = vld [vmem:[#allocation2 + $0x26b] sm:$0xff] }
  0xa4   : > { %v705_v51 = vadd.f32 %v673_v62, %v604_v47  ;;  %v1208_v45 = vadd.f32 %v1176_v61, %v1107_v24  ;;  %v1209_v29 = vadd.f32 %v1177_v21, %v1108_v40  ;;  %v975_v6 = vmul.f32 %v3109_v18, %v3640_v55  ;;  %v420_v9 = vld [vmem:[#allocation2 + $0xcd] sm:$0xff]  ;;  %v2196_v47 = vld [vmem:[#allocation2] sm:$0xff] }
  0xa5   : > { %v805_v28 = vadd.f32 %v773_v17, %v704_v46  ;;  %2115 = vmatmul.mubr.bf16.gmra.mxu0 %v1393_v7  ;;  %v976_v8 = vmul.f32 %v3109_v18, %v2925_v30  ;;  %v1077_v25 = vmul.f32 %v3137_v58, %v1040_v48  ;;  %v1078_v2 = vmul.f32 %v3137_v58, %v1041_v38  ;;  %v520_v50 = vld [vmem:[#allocation2 + $0xc8] sm:$0xff]  ;;  %v521_v17 = vld [vmem:[#allocation2 + $0xd0] sm:$0xff] }
  0xa6   : > { %v806_v41 = vadd.f32 %v774_v23, %v705_v51  ;;  %v1309_v54 = vadd.f32 %v1277_v37, %v1208_v45  ;;  %v1310_v61 = vadd.f32 %v1278_v33, %v1209_v29  ;;  %v3174_v62 = vmul.f32 %v2196_v47, %v3065_v16  ;;  %v621_v24 = vld [vmem:[#allocation2 + $0xcb] sm:$0xff]  ;;  %v622_v23 = vld [vmem:[#allocation2 + $0xd3] sm:$0xff] }
  0xa7   : > { %v906_v21 = vadd.f32 %v874_v52, %v805_v28  ;;  %v1279_v46 = vmul.f32 %v3151_v35, %v1242_v49  ;;  %v1280_v30 = vmul.f32 %v3151_v35, %v1243_v3  ;;  %v456_v13 = vmul.f32 %v3014_v4, %v419_v20  ;;  %v722_v7 = vld [vmem:[#allocation2 + $0x125] sm:$0xff]  ;;  %v824_v3 = vld [vmem:[#allocation2 + $0x130] sm:$0xff] }
  0xa8   : > { %v907_v40 = vadd.f32 %v875_v63, %v806_v41  ;;  %v1348_v48 = vadd.f32 %v2613_v11, %v1309_v54  ;;  %v1349_v37 = vadd.f32 %v2613_v11, %v1310_v61  ;;  %v457_v38 = vmul.f32 %v3014_v4, %v420_v9  ;;  %v723_v63 = vld [vmem:[#allocation2 + $0x12d] sm:$0xff]  ;;  %v1026_v54 = vld [vmem:[#allocation2 + $0x185] sm:$0xff] }
  0xa9   : > { %v1007_v33 = vadd.f32 %v975_v6, %v906_v21  ;;  %v557_v5 = vmul.f32 %v3023_v36, %v520_v50  ;;  %v558_v52 = vmul.f32 %v3023_v36, %v521_v17  ;;  %v658_v22 = vmul.f32 %v3032_v10, %v621_v24  ;;  %v823_v45 = vld [vmem:[#allocation2 + $0x128] sm:$0xff]  ;;  %v925_v9 = vld [vmem:[#allocation2 + $0x133] sm:$0xff] }
  0xaa   : > { %v1008_v51 = vadd.f32 %v976_v8, %v907_v40  ;;  %v1380_v29 = vmax.f32 %v1348_v48, 0.0  ;;  %v1381_v28 = vmax.f32 %v1349_v37, 0.0  ;;  %v659_v49 = vmul.f32 %v3032_v10, %v622_v23  ;;  %v924_v8 = vld [vmem:[#allocation2 + $0x12b] sm:$0xff] }
  0xab   : > { %v1109_v55 = vadd.f32 %v1077_v25, %v1007_v33  ;;  %v589_v6 = vadd.f32 %v557_v5, %v456_v13  ;;  %v590_v20 = vadd.f32 %v558_v52, %v457_v38  ;;  %v759_v41 = vmul.f32 %v3096_v19, %v722_v7  ;;  %v1027_v17 = vld [vmem:[#allocation2 + $0x18d] sm:$0xff] }
  0xac   : > { %v1110_v11 = vadd.f32 %v1078_v2, %v1008_v51  ;;  %v1400_v61 = vpack.c.bf16 %v1381_v28, %v1380_v29  ;;  %v760_v47 = vmul.f32 %v3096_v19, %v723_v63  ;;  %v860_v50 = vmul.f32 %v3045_v39, %v823_v45  ;;  %v1127_v13 = vld [vmem:[#allocation2 + $0x188] sm:$0xff]  ;;  %v1128_v23 = vld [vmem:[#allocation2 + $0x190] sm:$0xff] }
  0xad   : > { %v1210_v21 = vadd.f32 %v3174_v62, %v1109_v55  ;;  %v690_v24 = vadd.f32 %v658_v22, %v589_v6  ;;  %v691_v40 = vadd.f32 %v659_v49, %v590_v20  ;;  %v861_v2 = vmul.f32 %v3045_v39, %v824_v3  ;;  %v1228_v48 = vld [vmem:[#allocation2 + $0x18b] sm:$0xff]  ;;  %v1229_v51 = vld [vmem:[#allocation2 + $0x193] sm:$0xff]  ;;  %v3199_v55 = vld [vmem:[%s3449_s2] ss:$0 sm:$0xff] }
  0xae   : > { %v1211_v25 = vadd.f32 %v3174_v62, %v1110_v11  ;;  %2130 = vmatprep.mubr.bf16.mxu1 %v1400_v61  ;;  %v961_v33 = vmul.f32 %v3109_v18, %v924_v8  ;;  %v962_v38 = vmul.f32 %v3109_v18, %v925_v9  ;;  %v1063_v7 = vmul.f32 %v3137_v58, %v1026_v54  ;;  %v421_v45 = vld [vmem:[#allocation2 + $0xe5] sm:$0xff]  ;;  %v422_v29 = vld [vmem:[#allocation2 + $0xed] sm:$0xff] }
  0xaf   : > { %v1311_v37 = vadd.f32 %v1279_v46, %v1210_v21  ;;  %v791_v52 = vadd.f32 %v759_v41, %v690_v24  ;;  %v792_v63 = vadd.f32 %v760_v47, %v691_v40  ;;  %v1064_v22 = vmul.f32 %v3137_v58, %v1027_v17  ;;  %v522_v28 = vld [vmem:[#allocation2 + $0xe8] sm:$0xff]  ;;  %v523_v11 = vld [vmem:[#allocation2 + $0xf0] sm:$0xff] }
  0xb0   : > { %v1312_v5 = vadd.f32 %v1280_v30, %v1211_v25  ;;  %v1164_v49 = vmul.f32 %v3065_v16, %v1127_v13  ;;  %v1165_v3 = vmul.f32 %v3065_v16, %v1128_v23  ;;  %v1265_v30 = vmul.f32 %v3151_v35, %v1228_v48  ;;  %v623_v9 = vld [vmem:[#allocation2 + $0xeb] sm:$0xff]  ;;  %v624_v54 = vld [vmem:[#allocation2 + $0xf3] sm:$0xff] }
  0xb1   : > { %v1350_v46 = vadd.f32 %v3199_v55, %v1311_v37  ;;  %v892_v20 = vadd.f32 %v860_v50, %v791_v52  ;;  %v893_v41 = vadd.f32 %v861_v2, %v792_v63  ;;  %v1266_v8 = vmul.f32 %v3151_v35, %v1229_v51 }
  0xb2   : > { %v1351_v6 = vadd.f32 %v3199_v55, %v1312_v5  ;;  %v458_v21 = vmul.f32 %v3014_v4, %v421_v45  ;;  %v459_v47 = vmul.f32 %v3014_v4, %v422_v29  ;;  %v559_v17 = vmul.f32 %v3023_v36, %v522_v28 }
  0xb3   : > { %v1382_v61 = vmax.f32 %v1350_v46, 0.0  ;;  %v993_v24 = vadd.f32 %v961_v33, %v892_v20  ;;  %v994_v40 = vadd.f32 %v962_v38, %v893_v41  ;;  %v560_v13 = vmul.f32 %v3023_v36, %v523_v11  ;;  %v435_v11 = vld [vmem:[#allocation2 + $0x1c5] sm:$0xff] }
  0xb4   : > { %v1383_v25 = vmax.f32 %v1351_v6, 0.0  ;;  %v591_v23 = vadd.f32 %v559_v17, %v458_v21  ;;  %v660_v50 = vmul.f32 %v3032_v10, %v623_v9  ;;  %v661_v2 = vmul.f32 %v3032_v10, %v624_v54  ;;  %v536_v41 = vld [vmem:[#allocation2 + $0x1c8] sm:$0xff]  ;;  %v638_v21 = vld [vmem:[#allocation2 + $0x1d3] sm:$0xff] }
  0xb5   : > { %v761_v48 = vmul.f32 %v3096_v19, %v2883_v1  ;;  %v1095_v51 = vadd.f32 %v1063_v7, %v993_v24  ;;  %v1096_v5 = vadd.f32 %v1064_v22, %v994_v40  ;;  %v592_v52 = vadd.f32 %v560_v13, %v459_v47  ;;  %v637_v54 = vld [vmem:[#allocation2 + $0x1cb] sm:$0xff] }
  0xb6   : > { %v1401_v37 = vpack.c.bf16 %v1383_v25, %v1382_v61  ;;  %v692_v63 = vadd.f32 %v660_v50, %v591_v23  ;;  %v762_v45 = vmul.f32 %v3096_v19, %v2885_v27  ;;  %v862_v33 = vmul.f32 %v3045_v39, %v2824_v56 }
  0xb7   : > { %v863_v38 = vmul.f32 %v3045_v39, %v2826_v42  ;;  %v1196_v29 = vadd.f32 %v1164_v49, %v1095_v51  ;;  %v1197_v28 = vadd.f32 %v1165_v3, %v1096_v5  ;;  %v693_v46 = vadd.f32 %v661_v2, %v592_v52  ;;  %v436_v3 = vld [vmem:[#allocation2 + $0x1cd] sm:$0xff] }
  0xb8   : > { %2131 = vmatmul.mubr.bf16.gmra.mxu1 %v1401_v37  ;;  %v963_v1 = vmul.f32 %v3109_v18, %v2887_v26  ;;  %v793_v7 = vadd.f32 %v761_v48, %v692_v63  ;;  %v964_v22 = vmul.f32 %v3109_v18, %v2899_v0  ;;  %v1065_v27 = vmul.f32 %v3137_v58, %v3630_v34  ;;  %v537_v26 = vld [vmem:[#allocation2 + $0x1d0] sm:$0xff]  ;;  %v3641_v37 = vld [vmem:[#allocation36_spill] sm:$0xff] }
  0xb9   : > { %v1066_v56 = vmul.f32 %v3137_v58, %v3631_v32  ;;  %v1297_v6 = vadd.f32 %v1265_v30, %v1196_v29  ;;  %v1298_v42 = vadd.f32 %v1266_v8, %v1197_v28  ;;  %v794_v20 = vadd.f32 %v762_v45, %v693_v46  ;;  %v3642_v5 = vld [vmem:[#allocation14_spill] sm:$0xff]  ;;  %v1042_v63 = vld [vmem:[#allocation2 + $0x285] sm:$0xff] }
  0xba   : > { %v1166_v49 = vmul.f32 %v3065_v16, %v3632_v14  ;;  %v894_v9 = vadd.f32 %v862_v33, %v793_v7  ;;  %v1167_v0 = vmul.f32 %v3065_v16, %v3633_v44  ;;  %v1267_v34 = vmul.f32 %v3151_v35, %v3634_v15  ;;  %v3643_v29 = vld [vmem:[#allocation48_spill] sm:$0xff]  ;;  %v1043_v46 = vld [vmem:[#allocation2 + $0x28d] sm:$0xff] }
  0xbb   : > { %v1268_v32 = vmul.f32 %v3151_v35, %v3635_v12  ;;  %v1336_v30 = vadd.f32 %v3199_v55, %v1297_v6  ;;  %v1337_v8 = vadd.f32 %v3199_v55, %v1298_v42  ;;  %v895_v61 = vadd.f32 %v863_v38, %v794_v20  ;;  %v1245_v7 = vld [vmem:[#allocation2 + $0x293] sm:$0xff]  ;;  %v3646_v42 = vld [vmem:[#allocation37_spill] sm:$0xff] }
  0xbc   : > { %v472_v14 = vmul.f32 %v3014_v4, %v435_v11  ;;  %v995_v47 = vadd.f32 %v963_v1, %v894_v9  ;;  %v473_v17 = vmul.f32 %v3014_v4, %v436_v3  ;;  %v573_v16 = vmul.f32 %v3023_v36, %v536_v41  ;;  %v1244_v1 = vld [vmem:[#allocation2 + $0x28b] sm:$0xff] }
  0xbd   : > { %v574_v44 = vmul.f32 %v3023_v36, %v537_v26  ;;  %v1368_v15 = vmax.f32 %v1336_v30, 0.0  ;;  %v1369_v25 = vmax.f32 %v1337_v8, 0.0  ;;  %v996_v24 = vadd.f32 %v964_v22, %v895_v61  ;;  %v3645_v11 = vld [vmem:[#allocation17_spill] sm:$0xff]  ;;  %v539_v8 = vld [vmem:[#allocation2 + $0x1f0] sm:$0xff] }
  0xbe   : > { %v674_v12 = vmul.f32 %v3032_v10, %v637_v54  ;;  %v1097_v40 = vadd.f32 %v1065_v27, %v995_v47  ;;  %v605_v13 = vadd.f32 %v573_v16, %v472_v14  ;;  %v675_v50 = vmul.f32 %v3032_v10, %v638_v21  ;;  %v3644_v27 = vld [vmem:[#allocation49_spill] sm:$0xff] }
  0xbf   : > { %v606_v23 = vadd.f32 %v574_v44, %v473_v17  ;;  %v1394_v2 = vpack.c.bf16 %v1369_v25, %v1368_v15  ;;  %v1098_v48 = vadd.f32 %v1066_v56, %v996_v24  ;;  %v775_v51 = vmul.f32 %v3096_v19, %v3641_v37  ;;  %v438_v54 = vld [vmem:[#allocation2 + $0x1ed] sm:$0xff] }
  0xc0   : > { %v776_v52 = vmul.f32 %v3096_v19, %v3642_v5  ;;  %v1198_v45 = vadd.f32 %v1166_v49, %v1097_v40  ;;  %v706_v33 = vadd.f32 %v674_v12, %v605_v13  ;;  %v876_v28 = vmul.f32 %v3045_v39, %v3643_v29  ;;  %v437_v49 = vld [vmem:[#allocation2 + $0x1e5] sm:$0xff]  ;;  %v640_v15 = vld [vmem:[#allocation2 + $0x1f3] sm:$0xff] }
  0xc1   : > { %v707_v38 = vadd.f32 %v675_v50, %v606_v23  ;;  %2118 = vmatprep.mubr.bf16.mxu0 %v1394_v2  ;;  %v1199_v22 = vadd.f32 %v1167_v0, %v1098_v48  ;;  %v877_v56 = vmul.f32 %v3045_v39, %v3644_v27  ;;  %v977_v6 = vmul.f32 %v3109_v18, %v3645_v11  ;;  %v538_v30 = vld [vmem:[#allocation2 + $0x1e8] sm:$0xff] }
  0xc2   : > { %v978_v20 = vmul.f32 %v3109_v18, %v3646_v42  ;;  %v1299_v3 = vadd.f32 %v1267_v34, %v1198_v45  ;;  %v807_v41 = vadd.f32 %v775_v51, %v706_v33  ;;  %v1079_v9 = vmul.f32 %v3137_v58, %v1042_v63  ;;  %v639_v47 = vld [vmem:[#allocation2 + $0x1eb] sm:$0xff] }
  0xc3   : > { %v808_v26 = vadd.f32 %v776_v52, %v707_v38  ;;  %v1300_v61 = vadd.f32 %v1268_v32, %v1199_v22  ;;  %v1080_v0 = vmul.f32 %v3137_v58, %v1043_v46  ;;  %v1281_v14 = vmul.f32 %v3151_v35, %v1244_v1  ;;  %v1044_v46 = vld [vmem:[#allocation2 + $0x2a5] sm:$0xff]  ;;  %v1045_v1 = vld [vmem:[#allocation2 + $0x2ad] sm:$0xff] }
  0xc4   : > { %v1282_v21 = vmul.f32 %v3151_v35, %v1245_v7  ;;  %v1338_v17 = vadd.f32 %v3199_v55, %v1299_v3  ;;  %v908_v16 = vadd.f32 %v876_v28, %v807_v41  ;;  %v474_v34 = vmul.f32 %v3014_v4, %v437_v49  ;;  %v1246_v42 = vld [vmem:[#allocation2 + $0x2ab] sm:$0xff] }
  0xc5   : > { %v909_v44 = vadd.f32 %v877_v56, %v808_v26  ;;  %v1339_v25 = vadd.f32 %v3199_v55, %v1300_v61  ;;  %v475_v24 = vmul.f32 %v3014_v4, %v438_v54  ;;  %v575_v32 = vmul.f32 %v3023_v36, %v538_v30 }
  0xc6   : > { %v576_v12 = vmul.f32 %v3023_v36, %v539_v8  ;;  %v1370_v40 = vmax.f32 %v1338_v17, 0.0  ;;  %v1009_v13 = vadd.f32 %v977_v6, %v908_v16  ;;  %v676_v50 = vmul.f32 %v3032_v10, %v639_v47 }
  0xc7   : > { %v1010_v23 = vadd.f32 %v978_v20, %v909_v44  ;;  %v1371_v2 = vmax.f32 %v1339_v25, 0.0  ;;  %v607_v48 = vadd.f32 %v575_v32, %v474_v34  ;;  %v677_v51 = vmul.f32 %v3032_v10, %v640_v15  ;;  %v1247_v20 = vld [vmem:[#allocation2 + $0x2b3] sm:$0xff] }
  0xc8   : > { %v608_v37 = vadd.f32 %v576_v12, %v475_v24  ;;  %v1111_v5 = vadd.f32 %v1079_v9, %v1009_v13  ;;  %v777_v63 = vmul.f32 %v3096_v19, %v3123_v31  ;;  %v778_v4 = vmul.f32 %v3096_v19, %v3132_v59 }
  0xc9   : > { %v1112_v52 = vadd.f32 %v1080_v0, %v1010_v23  ;;  %v1395_v45 = vpack.c.bf16 %v1371_v2, %v1370_v40  ;;  %v708_v36 = vadd.f32 %v676_v50, %v607_v48  ;;  %v878_v38 = vmul.f32 %v3045_v39, %v3075_v60 }
  0xca   : > { %v709_v33 = vadd.f32 %v677_v51, %v608_v37  ;;  %v1212_v29 = vadd.f32 %v3174_v62, %v1111_v5  ;;  %v879_v10 = vmul.f32 %v3045_v39, %v3077_v53  ;;  %v979_v19 = vmul.f32 %v3109_v18, %v3141_v43 }
  0xcb   : > { %v1213_v28 = vadd.f32 %v3174_v62, %v1112_v52  ;;  %2119 = vmatmul.mubr.bf16.gmra.mxu0 %v1395_v45  ;;  %v809_v31 = vadd.f32 %v777_v63, %v708_v36  ;;  %v980_v59 = vmul.f32 %v3109_v18, %v3143_v57  ;;  %v1081_v11 = vmul.f32 %v3137_v58, %v1044_v46 }
  0xcc   : > { %v810_v7 = vadd.f32 %v778_v4, %v709_v33  ;;  %v1313_v22 = vadd.f32 %v1281_v14, %v1212_v29  ;;  %v1082_v6 = vmul.f32 %v3137_v58, %v1045_v1  ;;  %v1283_v57 = vmul.f32 %v3151_v35, %v1246_v42 }
  0xcd   : > { %v1314_v60 = vadd.f32 %v1282_v21, %v1213_v28  ;;  %v910_v27 = vadd.f32 %v878_v38, %v809_v31  ;;  %v1284_v9 = vmul.f32 %v3151_v35, %v1247_v20  ;;  %v3297_v35 = vld [vmem:[%s3451_s4] ss:$0 sm:$0xff] }
  0xce   : > { %v911_v56 = vadd.f32 %v879_v10, %v810_v7  ;;  %v1352_v39 = vadd.f32 %v3199_v55, %v1313_v22 }
  0xcf   : > { %v1353_v53 = vadd.f32 %v3199_v55, %v1314_v60  ;;  %v1011_v49 = vadd.f32 %v979_v19, %v910_v27 }
  0xd0   : > { %v1012_v3 = vadd.f32 %v980_v59, %v911_v56  ;;  %v1384_v43 = vmax.f32 %v1352_v39, 0.0 }
  0xd1   : > { %v1385_v41 = vmax.f32 %v1353_v53, 0.0  ;;  %v1113_v26 = vadd.f32 %v1081_v11, %v1011_v49 }
  0xd2   : > { %v1114_v18 = vadd.f32 %v1082_v6, %v1012_v3 }
  0xd3   : > { %v1402_v54 = vpack.c.bf16 %v1385_v41, %v1384_v43  ;;  %v1214_v58 = vadd.f32 %v3174_v62, %v1113_v26 }
  0xd4   : > { %v1215_v30 = vadd.f32 %v3174_v62, %v1114_v18 }
  0xd5   : > { %2134 = vmatprep.mubr.bf16.mxu1 %v1402_v54  ;;  %v1315_v8 = vadd.f32 %v1283_v57, %v1214_v58 }
  0xd6   : > { %v1316_v61 = vadd.f32 %v1284_v9, %v1215_v30 }
  0xd7   : > { %v1354_v0 = vadd.f32 %v3199_v55, %v1315_v8 }
  0xd8   : > { %v1355_v14 = vadd.f32 %v3199_v55, %v1316_v61 }
  0xd9   : > { %v1386_v21 = vmax.f32 %v1354_v0, 0.0 }
  0xda   : > { %v1387_v47 = vmax.f32 %v1355_v14, 0.0 }
  0xdc   : > { %v1403_v17 = vpack.c.bf16 %v1387_v47, %v1386_v21 }
  0xde   : > { %2135 = vmatmul.mubr.bf16.gmra.mxu1 %v1403_v17 }
 0x111   : > { %v2108_v16 = vpop.f32.mrf.mxu0 }
 0x112   : > { %v1518_v62 = vadd.f32 %v2108_v16, %v3297_v35 }
 0x113   : > { %v1509_v44 = vpop.f32.mrf.mxu0 }
 0x114   : > { %v1638_v34 = vmax.f32 %v1518_v62, 0.0  ;;  %v1510_v15 = vadd.f32 %v3297_v35, %v1509_v44 }
 0x115   : > { %v2109_v25 = vpop.f32.mrf.mxu0 }
 0x116   : > { %1670 = vst [vmem:[%s3301_s14 + $0x10] sm:$0xff] %v1638_v34  ;;  %v1636_v55 = vmax.f32 %v1510_v15, 0.0  ;;  %v1521_v24 = vadd.f32 %v2109_v25, %v3297_v35 }
 0x117   : > { %v1512_v32 = vpop.f32.mrf.mxu0 }
 0x118   : > { %1668 = vst [vmem:[%s3301_s14] sm:$0xff] %v1636_v55  ;;  %v1639_v12 = vmax.f32 %v1521_v24, 0.0  ;;  %v1513_v40 = vadd.f32 %v3297_v35, %v1512_v32 }
 0x11a   : > { %1671 = vst [vmem:[%s3301_s14 + $0x18] sm:$0xff] %v1639_v12  ;;  %v1637_v13 = vmax.f32 %v1513_v40, 0.0 }
 0x11c   : > { %1669 = vst [vmem:[%s3301_s14 + $0x8] sm:$0xff] %v1637_v13 }
 0x128   : > { %v2124_v23 = vpop.f32.mrf.mxu1 }
 0x129   : > { %v1582_v50 = vadd.f32 %v2124_v23, %v3297_v35 }
 0x12a   : > { %v1573_v2 = vpop.f32.mrf.mxu1 }
 0x12b   : > { %v1654_v48 = vmax.f32 %v1582_v50, 0.0  ;;  %v1574_v37 = vadd.f32 %v3297_v35, %v1573_v2 }
 0x12c   : > { %v2125_v51 = vpop.f32.mrf.mxu1 }
 0x12d   : > { %1686 = vst [vmem:[%s3301_s14 + $0x90] sm:$0xff] %v1654_v48  ;;  %v1652_v5 = vmax.f32 %v1574_v37, 0.0  ;;  %v1585_v52 = vadd.f32 %v2125_v51, %v3297_v35 }
 0x12e   : > { %v1576_v63 = vpop.f32.mrf.mxu1 }
 0x12f   : > { %1684 = vst [vmem:[%s3301_s14 + $0x80] sm:$0xff] %v1652_v5  ;;  %v1655_v4 = vmax.f32 %v1585_v52, 0.0  ;;  %v1577_v45 = vadd.f32 %v3297_v35, %v1576_v63 }
 0x131   : > { %1687 = vst [vmem:[%s3301_s14 + $0x98] sm:$0xff] %v1655_v4  ;;  %v1653_v36 = vmax.f32 %v1577_v45, 0.0 }
 0x133   : > { %1685 = vst [vmem:[%s3301_s14 + $0x88] sm:$0xff] %v1653_v36 }
 0x137   : > { %v2112_v33 = vpop.f32.mrf.mxu0 }
 0x138   : > { %v1534_v38 = vadd.f32 %v2112_v33, %v3297_v35 }
 0x139   : > { %v1525_v29 = vpop.f32.mrf.mxu0 }
 0x13a   : > { %v1642_v28 = vmax.f32 %v1534_v38, 0.0  ;;  %v1526_v10 = vadd.f32 %v3297_v35, %v1525_v29 }
 0x13b   : > { %v2113_v46 = vpop.f32.mrf.mxu0 }
 0x13c   : > { %1674 = vst [vmem:[%s3301_s14 + $0x30] sm:$0xff] %v1642_v28  ;;  %v1640_v1 = vmax.f32 %v1526_v10, 0.0  ;;  %v1537_v31 = vadd.f32 %v2113_v46, %v3297_v35 }
 0x13d   : > { %v1528_v7 = vpop.f32.mrf.mxu0 }
 0x13e   : > { %1672 = vst [vmem:[%s3301_s14 + $0x20] sm:$0xff] %v1640_v1  ;;  %v1643_v19 = vmax.f32 %v1537_v31, 0.0  ;;  %v1529_v59 = vadd.f32 %v3297_v35, %v1528_v7 }
 0x140   : > { %1675 = vst [vmem:[%s3301_s14 + $0x38] sm:$0xff] %v1643_v19  ;;  %v1641_v22 = vmax.f32 %v1529_v59, 0.0  ;;  %v1802_v19 = vld [vmem:[%s3301_s14] sm:$0xff] (%p2283_p4)  ;;  %v1804_v59 = vld [vmem:[%s3301_s14 + $0x8] sm:$0xff] (%p2283_p4) }
 0x141   : > { %1951 = vst [vmem:[%s3374_s18 + $0x18] sm:$0xff] (%p2283_p4), %v1802_v19  ;;  %1952 = vst [vmem:[%s3374_s18 + $0x38] sm:$0xff] (%p2283_p4), %v1804_v59 }
 0x142   : > { %1673 = vst [vmem:[%s3301_s14 + $0x28] sm:$0xff] %v1641_v22  ;;  %v1808_v22 = vld [vmem:[%s3301_s14 + $0x18] sm:$0xff] (%p2283_p4) }
 0x143   : > { %1954 = vst [vmem:[%s3374_s18 + $0x78] sm:$0xff] (%p2283_p4), %v1808_v22 }
 0x14f   : > { %v2128_v60 = vpop.f32.mrf.mxu1 }
 0x150   : > { %v1598_v27 = vadd.f32 %v2128_v60, %v3297_v35  ;;  %v1810_v60 = vld [vmem:[%s3301_s14 + $0x20] sm:$0xff] (%p2283_p4) }
 0x151   : > { %v1589_v56 = vpop.f32.mrf.mxu1  ;;  %1955 = vst [vmem:[%s3374_s18 + $0x98] sm:$0xff] (%p2283_p4), %v1810_v60 }
 0x152   : > { %v1658_v11 = vmax.f32 %v1598_v27, 0.0  ;;  %v1590_v6 = vadd.f32 %v3297_v35, %v1589_v56  ;;  %v1812_v27 = vld [vmem:[%s3301_s14 + $0x28] sm:$0xff] (%p2283_p4)  ;;  %v1814_v56 = vld [vmem:[%s3301_s14 + $0x30] sm:$0xff] (%p2283_p4) }
 0x153   : > { %v2129_v39 = vpop.f32.mrf.mxu1  ;;  %1956 = vst [vmem:[%s3374_s18 + $0xb8] sm:$0xff] (%p2283_p4), %v1812_v27  ;;  %1957 = vst [vmem:[%s3374_s18 + $0xd8] sm:$0xff] (%p2283_p4), %v1814_v56 }
 0x154   : > { %1690 = vst [vmem:[%s3301_s14 + $0xb0] sm:$0xff] %v1658_v11  ;;  %v1656_v53 = vmax.f32 %v1590_v6, 0.0  ;;  %v1601_v42 = vadd.f32 %v2129_v39, %v3297_v35  ;;  %v1816_v11 = vld [vmem:[%s3301_s14 + $0x38] sm:$0xff] (%p2283_p4) }
 0x155   : > { %v1592_v20 = vpop.f32.mrf.mxu1  ;;  %1958 = vst [vmem:[%s3374_s18 + $0xf8] sm:$0xff] (%p2283_p4), %v1816_v11 }
 0x156   : > { %1688 = vst [vmem:[%s3301_s14 + $0xa0] sm:$0xff] %v1656_v53  ;;  %v1659_v49 = vmax.f32 %v1601_v42, 0.0  ;;  %v1593_v3 = vadd.f32 %v3297_v35, %v1592_v20 }
 0x158   : > { %1691 = vst [vmem:[%s3301_s14 + $0xb8] sm:$0xff] %v1659_v49  ;;  %v1657_v43 = vmax.f32 %v1593_v3, 0.0 }
 0x15a   : > { %1689 = vst [vmem:[%s3301_s14 + $0xa8] sm:$0xff] %v1657_v43 }
 0x165   : > { %v2116_v41 = vpop.f32.mrf.mxu0 }
 0x166   : > { %v1550_v26 = vadd.f32 %v2116_v41, %v3297_v35  ;;  %v1834_v41 = vld [vmem:[%s3301_s14 + $0x80] sm:$0xff] (%p2283_p4) }
 0x167   : > { %v1541_v18 = vpop.f32.mrf.mxu0  ;;  %1967 = vst [vmem:[%s3374_s18 + $0x218] sm:$0xff] (%p2283_p4), %v1834_v41 }
 0x168   : > { %v1646_v57 = vmax.f32 %v1550_v26, 0.0  ;;  %v1542_v9 = vadd.f32 %v3297_v35, %v1541_v18  ;;  %v1836_v26 = vld [vmem:[%s3301_s14 + $0x88] sm:$0xff] (%p2283_p4)  ;;  %v1838_v18 = vld [vmem:[%s3301_s14 + $0x90] sm:$0xff] (%p2283_p4) }
 0x169   : > { %v2117_v54 = vpop.f32.mrf.mxu0  ;;  %1968 = vst [vmem:[%s3374_s18 + $0x238] sm:$0xff] (%p2283_p4), %v1836_v26  ;;  %1969 = vst [vmem:[%s3374_s18 + $0x258] sm:$0xff] (%p2283_p4), %v1838_v18 }
 0x16a   : > { %1678 = vst [vmem:[%s3301_s14 + $0x50] sm:$0xff] %v1646_v57  ;;  %v1644_v58 = vmax.f32 %v1542_v9, 0.0  ;;  %v1553_v30 = vadd.f32 %v2117_v54, %v3297_v35  ;;  %v1840_v57 = vld [vmem:[%s3301_s14 + $0x98] sm:$0xff] (%p2283_p4)  ;;  %v1842_v9 = vld [vmem:[%s3301_s14 + $0xa0] sm:$0xff] (%p2283_p4)  ;;  %v1844_v54 = vld [vmem:[%s3301_s14 + $0xa8] sm:$0xff] (%p2283_p4) }
 0x16b   : > { %v1544_v8 = vpop.f32.mrf.mxu0  ;;  %1970 = vst [vmem:[%s3374_s18 + $0x278] sm:$0xff] (%p2283_p4), %v1840_v57  ;;  %1971 = vst [vmem:[%s3374_s18 + $0x298] sm:$0xff] (%p2283_p4), %v1842_v9 }
 0x16c   : > { %1676 = vst [vmem:[%s3301_s14 + $0x40] sm:$0xff] %v1644_v58  ;;  %v1647_v61 = vmax.f32 %v1553_v30, 0.0  ;;  %v1545_v0 = vadd.f32 %v3297_v35, %v1544_v8  ;;  %v1846_v58 = vld [vmem:[%s3301_s14 + $0xb0] sm:$0xff] (%p2283_p4)  ;;  %v1848_v30 = vld [vmem:[%s3301_s14 + $0xb8] sm:$0xff] (%p2283_p4)  ;;  %1972 = vst [vmem:[%s3374_s18 + $0x2b8] sm:$0xff] (%p2283_p4), %v1844_v54 }
 0x16d   : > { %1973 = vst [vmem:[%s3374_s18 + $0x2d8] sm:$0xff] (%p2283_p4), %v1846_v58  ;;  %1974 = vst [vmem:[%s3374_s18 + $0x2f8] sm:$0xff] (%p2283_p4), %v1848_v30 }
 0x16e   : > { %1679 = vst [vmem:[%s3301_s14 + $0x58] sm:$0xff] %v1647_v61  ;;  %v1645_v14 = vmax.f32 %v1545_v0, 0.0 }
 0x170   : > { %1677 = vst [vmem:[%s3301_s14 + $0x48] sm:$0xff] %v1645_v14 }
 0x171   : > { %v1822_v53 = vld [vmem:[%s3301_s14 + $0x50] sm:$0xff] (%p2283_p4) }
 0x172   : > { %1961 = vst [vmem:[%s3374_s18 + $0x158] sm:$0xff] (%p2283_p4), %v1822_v53 }
 0x173   : > { %v1818_v6 = vld [vmem:[%s3301_s14 + $0x40] sm:$0xff] (%p2283_p4) }
 0x174   : > { %1959 = vst [vmem:[%s3374_s18 + $0x118] sm:$0xff] (%p2283_p4), %v1818_v6 }
 0x175   : > { %v1824_v42 = vld [vmem:[%s3301_s14 + $0x58] sm:$0xff] (%p2283_p4) }
 0x176   : > { %1962 = vst [vmem:[%s3374_s18 + $0x178] sm:$0xff] (%p2283_p4), %v1824_v42 }
 0x177   : > { %v1820_v39 = vld [vmem:[%s3301_s14 + $0x48] sm:$0xff] (%p2283_p4) }
 0x178   : > { %v2132_v21 = vpop.f32.mrf.mxu1  ;;  %1960 = vst [vmem:[%s3374_s18 + $0x138] sm:$0xff] (%p2283_p4), %v1820_v39 }
 0x179   : > { %v1614_v47 = vadd.f32 %v2132_v21, %v3297_v35 }
 0x17a   : > { %v1605_v17 = vpop.f32.mrf.mxu1 }
 0x17b   : > { %v1662_v16 = vmax.f32 %v1614_v47, 0.0  ;;  %v1606_v62 = vadd.f32 %v3297_v35, %v1605_v17 }
 0x17c   : > { %v2133_v44 = vpop.f32.mrf.mxu1 }
 0x17d   : > { %1694 = vst [vmem:[%s3301_s14 + $0xd0] sm:$0xff] %v1662_v16  ;;  %v1660_v34 = vmax.f32 %v1606_v62, 0.0  ;;  %v1617_v15 = vadd.f32 %v2133_v44, %v3297_v35 }
 0x17e   : > { %v1608_v25 = vpop.f32.mrf.mxu1 }
 0x17f   : > { %1692 = vst [vmem:[%s3301_s14 + $0xc0] sm:$0xff] %v1660_v34  ;;  %v1663_v55 = vmax.f32 %v1617_v15, 0.0  ;;  %v1609_v24 = vadd.f32 %v3297_v35, %v1608_v25 }
 0x181   : > { %1695 = vst [vmem:[%s3301_s14 + $0xd8] sm:$0xff] %v1663_v55  ;;  %v1661_v32 = vmax.f32 %v1609_v24, 0.0 }
 0x183   : > { %1693 = vst [vmem:[%s3301_s14 + $0xc8] sm:$0xff] %v1661_v32 }
 0x184   : > { %v1854_v0 = vld [vmem:[%s3301_s14 + $0xd0] sm:$0xff] (%p2283_p4) }
 0x185   : > { %1977 = vst [vmem:[%s3374_s18 + $0x358] sm:$0xff] (%p2283_p4), %v1854_v0 }
 0x186   : > { %v1850_v8 = vld [vmem:[%s3301_s14 + $0xc0] sm:$0xff] (%p2283_p4) }
 0x187   : > { %1975 = vst [vmem:[%s3374_s18 + $0x318] sm:$0xff] (%p2283_p4), %v1850_v8 }
 0x188   : > { %v1856_v14 = vld [vmem:[%s3301_s14 + $0xd8] sm:$0xff] (%p2283_p4) }
 0x189   : > { %1978 = vst [vmem:[%s3374_s18 + $0x378] sm:$0xff] (%p2283_p4), %v1856_v14 }
 0x18a   : > { %v1852_v61 = vld [vmem:[%s3301_s14 + $0xc8] sm:$0xff] (%p2283_p4) }
 0x18b   : > { %v2120_v12 = vpop.f32.mrf.mxu0  ;;  %1976 = vst [vmem:[%s3374_s18 + $0x338] sm:$0xff] (%p2283_p4), %v1852_v61 }
 0x18c   : > { %v1566_v40 = vadd.f32 %v2120_v12, %v3297_v35 }
 0x18d   : > { %v1557_v13 = vpop.f32.mrf.mxu0 }
 0x18e   : > { %v1650_v23 = vmax.f32 %v1566_v40, 0.0  ;;  %v1558_v50 = vadd.f32 %v3297_v35, %v1557_v13 }
 0x18f   : > { %v2121_v2 = vpop.f32.mrf.mxu0 }
 0x190   : > { %1682 = vst [vmem:[%s3301_s14 + $0x70] sm:$0xff] %v1650_v23  ;;  %v1648_v48 = vmax.f32 %v1558_v50, 0.0  ;;  %v1569_v37 = vadd.f32 %v2121_v2, %v3297_v35 }
 0x191   : > { %v1560_v51 = vpop.f32.mrf.mxu0 }
 0x192   : > { %1680 = vst [vmem:[%s3301_s14 + $0x60] sm:$0xff] %v1648_v48  ;;  %v1651_v5 = vmax.f32 %v1569_v37, 0.0  ;;  %v1561_v52 = vadd.f32 %v3297_v35, %v1560_v51 }
 0x194   : > { %1683 = vst [vmem:[%s3301_s14 + $0x78] sm:$0xff] %v1651_v5  ;;  %v1649_v63 = vmax.f32 %v1561_v52, 0.0 }
 0x196   : > { %1681 = vst [vmem:[%s3301_s14 + $0x68] sm:$0xff] %v1649_v63 }
 0x197   : > { %v1830_v3 = vld [vmem:[%s3301_s14 + $0x70] sm:$0xff] (%p2283_p4) }
 0x198   : > { %1965 = vst [vmem:[%s3374_s18 + $0x1d8] sm:$0xff] (%p2283_p4), %v1830_v3 }
 0x199   : > { %v1826_v20 = vld [vmem:[%s3301_s14 + $0x60] sm:$0xff] (%p2283_p4) }
 0x19a   : > { %1963 = vst [vmem:[%s3374_s18 + $0x198] sm:$0xff] (%p2283_p4), %v1826_v20 }
 0x19b   : > { %v1832_v43 = vld [vmem:[%s3301_s14 + $0x78] sm:$0xff] (%p2283_p4) }
 0x19c   : > { %1966 = vst [vmem:[%s3374_s18 + $0x1f8] sm:$0xff] (%p2283_p4), %v1832_v43 }
 0x19d   : > { %v1828_v49 = vld [vmem:[%s3301_s14 + $0x68] sm:$0xff] (%p2283_p4) }
 0x19e   : > { %v2136_v4 = vpop.f32.mrf.mxu1  ;;  %1964 = vst [vmem:[%s3374_s18 + $0x1b8] sm:$0xff] (%p2283_p4), %v1828_v49 }
 0x19f   : > { %v1630_v45 = vadd.f32 %v2136_v4, %v3297_v35 }
 0x1a0   : > { %v1621_v36 = vpop.f32.mrf.mxu1 }
 0x1a1   : > { %v1666_v33 = vmax.f32 %v1630_v45, 0.0  ;;  %v1622_v38 = vadd.f32 %v3297_v35, %v1621_v36 }
 0x1a2   : > { %v2137_v29 = vpop.f32.mrf.mxu1 }
 0x1a3   : > { %1698 = vst [vmem:[%s3301_s14 + $0xf0] sm:$0xff] %v1666_v33  ;;  %v1664_v28 = vmax.f32 %v1622_v38, 0.0  ;;  %v1633_v10 = vadd.f32 %v2137_v29, %v3297_v35 }
 0x1a4   : > { %v1624_v46 = vpop.f32.mrf.mxu1 }
 0x1a5   : > { %1696 = vst [vmem:[%s3301_s14 + $0xe0] sm:$0xff] %v1664_v28  ;;  %v1667_v1 = vmax.f32 %v1633_v10, 0.0  ;;  %v1625_v31 = vadd.f32 %v3297_v35, %v1624_v46  ;;  %1706 = sbr.rel (!%p2283_p4) target bundleno = 434 (0x1b2), region = 44  ;;  %v1806_v35 = vld [vmem:[%s3301_s14 + $0x10] sm:$0xff] (%p2283_p4) }
 0x1a6   : > { %1953 = vst [vmem:[%s3374_s18 + $0x58] sm:$0xff] (%p2283_p4), %v1806_v35 }
 0x1a7   : > { %1699 = vst [vmem:[%s3301_s14 + $0xf8] sm:$0xff] %v1667_v1  ;;  %v1665_v7 = vmax.f32 %v1625_v31, 0.0 }
 0x1a9   : > { %1697 = vst [vmem:[%s3301_s14 + $0xe8] sm:$0xff] %v1665_v7 }
 0x1aa   : > { %v1862_v17 = vld [vmem:[%s3301_s14 + $0xf0] sm:$0xff] }
 0x1ab   : > { %1981 = vst [vmem:[%s3374_s18 + $0x3d8] sm:$0xff] %v1862_v17 }
 0x1ac   : > { %v1858_v21 = vld [vmem:[%s3301_s14 + $0xe0] sm:$0xff] }
 0x1ad   : > { %1979 = vst [vmem:[%s3374_s18 + $0x398] sm:$0xff] %v1858_v21 }
 0x1ae   : > { %v1864_v16 = vld [vmem:[%s3301_s14 + $0xf8] sm:$0xff] }
 0x1af   : > { %1982 = vst [vmem:[%s3374_s18 + $0x3f8] sm:$0xff] %v1864_v16 }
 0x1b0   : > { %v1860_v47 = vld [vmem:[%s3301_s14 + $0xe8] sm:$0xff] }
 0x1b1   : > { %1980 = vst [vmem:[%s3374_s18 + $0x3b8] sm:$0xff] %v1860_v47 }
 0x1b2 PF: > { %p13_p8 = scmp.ge.s32.totalorder %s2273_s24, 4   ;;  %s3647_s21 = smov %s2216_s22 }
 0x1b3   : > { %s3648_s22 = smov %s2281_s27  ;;  %s3649_s23 = smov %s2273_s24 }
 0x1b4   :  { %15 = sbr.rel (!%p13_p8) target bundleno = 2 (0x2), region = 110 }

</bundles_post_ra>
